<compile_context>
chip_gen: v5e
topology: v5e:2x2
jax: 0.10.0
libtpu: 0.0.40
codegen_flags: <defaults>
</compile_context>

<pallas_src>
import math

import numpy as np

import jax
import jax.numpy as jnp
from jax.experimental import pallas as pl
from jax.experimental.pallas import tpu as pltpu

EPS = 1e-5
K = 3  # all kernels are 3x3


# ----------------------------------------------------------------------------
# One-time operator preparation (weights folded into dense per-image matrices)
# ----------------------------------------------------------------------------
def _conv_op_matrix(w_oihw, h, w, stride):
    """Dense operator M (Cin*H*W, Cout*OH*OW): NCHW-flat conv, pad=0."""
    cout, cin, kh, kw = w_oihw.shape
    oh_n = (h - kh) // stride + 1
    ow_n = (w - kw) // stride + 1
    kk = np.arange(kh)[:, None, None]
    sel_h = (np.arange(h)[None, :, None] ==
             stride * np.arange(oh_n)[None, None, :] + kk).astype(np.float32)
    ll = np.arange(kw)[:, None, None]
    sel_w = (np.arange(w)[None, :, None] ==
             stride * np.arange(ow_n)[None, None, :] + ll).astype(np.float32)
    m = jnp.einsum('oikl,khp,lwq->ihwopq', w_oihw.astype(jnp.float32),
                   jnp.asarray(sel_h), jnp.asarray(sel_w))
    return m.reshape(cin * h * w, cout * oh_n * ow_n)


def _convT_op_matrix(w_iohw, h, w, stride, outpad):
    """Dense operator (Cin*H*W, Cout*OH*OW) for ConvTranspose2d, pad=0."""
    cin, cout, kh, kw = w_iohw.shape
    oh_n = stride * (h - 1) + kh + outpad
    ow_n = stride * (w - 1) + kw + outpad
    kk = np.arange(kh)[:, None, None]
    sel_h = (np.arange(oh_n)[None, None, :] ==
             stride * np.arange(h)[None, :, None] + kk).astype(np.float32)
    ll = np.arange(kw)[:, None, None]
    sel_w = (np.arange(ow_n)[None, None, :] ==
             stride * np.arange(w)[None, :, None] + ll).astype(np.float32)
    m = jnp.einsum('iokl,khp,lwq->ihwopq', w_iohw.astype(jnp.float32),
                   jnp.asarray(sel_h), jnp.asarray(sel_w))
    return m.reshape(cin * h * w, cout * oh_n * ow_n)


def _bn_pool(c, hw, count):
    """Per-channel pooling (F,C with 1/count folded) and broadcast (C,F)."""
    eye = np.eye(c, dtype=np.float32)
    pm = np.repeat(eye, hw, axis=0) / float(count)      # (c*hw, c)
    pb = np.repeat(eye, hw, axis=1)                     # (c, c*hw)
    return jnp.asarray(pm), jnp.asarray(pb)


def prepare_operands(p, n_batch):
    """One-time prep: build the six bf16 stage operators + BN constants."""
    ops = {}
    ops["A1"] = _conv_op_matrix(p["ew1"], 16, 16, 2).astype(jnp.bfloat16)    # (1024, 392)
    ops["A2"] = _conv_op_matrix(p["ew2"], 7, 7, 2).astype(jnp.bfloat16)      # (392, 144)
    ops["A3"] = jnp.transpose(p["efw"]).astype(jnp.bfloat16)                 # (144, 32)
    ops["A4"] = jnp.transpose(p["dfw"]).astype(jnp.bfloat16)                 # (32, 144)
    ops["A5"] = _convT_op_matrix(p["dw1"], 3, 3, 2, 0).astype(jnp.bfloat16)  # (144, 392)
    ops["A6"] = _convT_op_matrix(p["dw2"], 7, 7, 2, 1).astype(jnp.bfloat16)  # (392, 1024)
    ops["PM1"], ops["PB1"] = _bn_pool(8, 49, n_batch * 49)     # shared by conv1 & convT1
    ops["PM2"], ops["PB2"] = _bn_pool(16, 9, n_batch * 9)
    ops["PM6"], ops["PB6"] = _bn_pool(4, 256, n_batch * 256)

    def row(v):
        return v.reshape(1, -1).astype(jnp.float32)

    ops["G1"], ops["B1"] = row(p["eg1"]), row(p["eb1"])
    ops["G2"], ops["B2"] = row(p["eg2"]), row(p["eb2"])
    ops["G3"], ops["B3"] = row(p["efg"]), row(p["efb"])
    ops["G4"], ops["B4"] = row(p["dfg"]), row(p["dfb"])
    ops["G5"], ops["B5"] = row(p["dg1"]), row(p["db1"])
    ops["G6"], ops["B6"] = row(p["dg2"]), row(p["db2"])
    return ops


# ----------------------------------------------------------------------------
# The single fused Pallas kernel (entire forward pass, VMEM-resident)
# ----------------------------------------------------------------------------
def _fused_forward_kernel(
        x_ref,
        a1_ref, a2_ref, a3_ref, a4_ref, a5_ref, a6_ref,
        pm1_ref, pb1_ref, pm2_ref, pb2_ref, pm6_ref, pb6_ref,
        g1_ref, b1_ref, g2_ref, b2_ref, g3_ref, b3_ref,
        g4_ref, b4_ref, g5_ref, b5_ref, g6_ref, b6_ref,
        out_ref):

    def stage(x_f32, op_ref):
        # bf16 operands, f32 accumulation — one MXU matmul per layer.
        return jnp.dot(x_f32.astype(jnp.bfloat16), op_ref[...],
                       preferred_element_type=jnp.float32)

    def bn2d(x, pm_ref, pb_ref, g_ref, b_ref, relu):
        # BatchNorm2d on (N, C*HW): one-pass batch stats, var = E[x^2]-mean^2.
        s = jnp.concatenate([jnp.sum(x, axis=0, keepdims=True),
                             jnp.sum(x * x, axis=0, keepdims=True)], axis=0)
        m = jnp.dot(s, pm_ref[...], preferred_element_type=jnp.float32)  # (2, C)
        mean = m[0:1]
        var = m[1:2] - mean * mean
        scale = g_ref[...] * jax.lax.rsqrt(var + EPS)
        shift = b_ref[...] - mean * scale
        cols = jnp.dot(jnp.concatenate([scale, shift], axis=0), pb_ref[...],
                       preferred_element_type=jnp.float32)               # (2, F)
        y = x * cols[0:1] + cols[1:2]
        return jnp.maximum(y, 0.0) if relu else y

    def bn1d(x, g_ref, b_ref, relu):
        mean = jnp.mean(x, axis=0, keepdims=True)
        var = jnp.mean(x * x, axis=0, keepdims=True) - mean * mean
        scale = g_ref[...] * jax.lax.rsqrt(var + EPS)
        shift = b_ref[...] - mean * scale
        y = x * scale + shift
        return jnp.maximum(y, 0.0) if relu else y

    x = x_ref[...]                                                        # (N, 1024)
    a1 = bn2d(stage(x, a1_ref), pm1_ref, pb1_ref, g1_ref, b1_ref, True)   # (N, 392)
    a2 = bn2d(stage(a1, a2_ref), pm2_ref, pb2_ref, g2_ref, b2_ref, True)  # (N, 144)
    h = bn1d(stage(a2, a3_ref), g3_ref, b3_ref, True)                     # (N, 32)
    y = bn1d(stage(h, a4_ref), g4_ref, b4_ref, True)                      # (N, 144)
    a5 = bn2d(stage(y, a5_ref), pm1_ref, pb1_ref, g5_ref, b5_ref, True)   # (N, 392)
    a6 = bn2d(stage(a5, a6_ref), pm6_ref, pb6_ref, g6_ref, b6_ref, False) # (N, 1024)
    out_ref[...] = a6


# ----------------------------------------------------------------------------
# Parameters (deterministic, Kaiming-normal-like scales)
# ----------------------------------------------------------------------------
def init_params(key):
    ks = jax.random.split(key, 6)

    def kaiming(k, shape, fan_in):
        return jax.random.normal(k, shape, jnp.float32) * math.sqrt(2.0 / fan_in)

    p = {}
    # encoder convs (Conv2d weight layout: Cout, Cin, kh, kw)
    p["ew1"] = kaiming(ks[0], (8, 4, 3, 3), 4 * 9)
    p["eg1"], p["eb1"] = jnp.ones((8,)), jnp.zeros((8,))
    p["ew2"] = kaiming(ks[1], (16, 8, 3, 3), 8 * 9)
    p["eg2"], p["eb2"] = jnp.ones((16,)), jnp.zeros((16,))
    # encoder FC (Linear weight layout: out, in)
    p["efw"] = kaiming(ks[2], (32, 144), 144)
    p["efg"], p["efb"] = jnp.ones((32,)), jnp.zeros((32,))
    # decoder FC
    p["dfw"] = kaiming(ks[3], (144, 32), 32)
    p["dfg"], p["dfb"] = jnp.ones((144,)), jnp.zeros((144,))
    # decoder transposed convs (ConvTranspose2d weight layout: Cin, Cout, kh, kw)
    p["dw1"] = kaiming(ks[4], (16, 8, 3, 3), 8 * 9)
    p["dg1"], p["db1"] = jnp.ones((8,)), jnp.zeros((8,))
    p["dw2"] = kaiming(ks[5], (8, 4, 3, 3), 4 * 9)
    p["dg2"], p["db2"] = jnp.ones((4,)), jnp.zeros((4,))
    return p


# ----------------------------------------------------------------------------
# Forward pass: one pallas_call; per-call wrapper work is only free reshapes
# ----------------------------------------------------------------------------
def conv_ae_forward(x_nchw, ops):
    n = x_nchw.shape[0]
    x_flat = x_nchw.reshape(n, -1).astype(jnp.float32)   # NCHW flatten (free)

    operands = (
        x_flat,
        ops["A1"], ops["A2"], ops["A3"], ops["A4"], ops["A5"], ops["A6"],
        ops["PM1"], ops["PB1"], ops["PM2"], ops["PB2"], ops["PM6"], ops["PB6"],
        ops["G1"], ops["B1"], ops["G2"], ops["B2"], ops["G3"], ops["B3"],
        ops["G4"], ops["B4"], ops["G5"], ops["B5"], ops["G6"], ops["B6"],
    )

    def spec(a):
        nd = a.ndim
        return pl.BlockSpec(a.shape, lambda i, nd=nd: (0,) * nd)

    flops = 2 * n * (1024 * 392 + 392 * 144 + 144 * 32 + 32 * 144
                     + 144 * 392 + 392 * 1024)
    bytes_accessed = (sum(int(a.size) * a.dtype.itemsize for a in operands)
                      + n * 1024 * 4)
    cost = pl.CostEstimate(flops=flops, transcendentals=212,
                           bytes_accessed=bytes_accessed)

    # TODO(synk): a batch-parallel grid axis (v7x 2nd TensorCore) would require
    # a cross-core BatchNorm reduction; skipped to keep batch-stat semantics.
    y = pl.pallas_call(
        _fused_forward_kernel,
        out_shape=jax.ShapeDtypeStruct((n, 1024), jnp.float32),
        grid=(1,),
        in_specs=[spec(a) for a in operands],
        out_specs=pl.BlockSpec((n, 1024), lambda i: (0, 0)),
        compiler_params=pltpu.CompilerParams(
            dimension_semantics=("arbitrary",),
            vmem_limit_bytes=32 * 1024 * 1024),
        cost_estimate=cost,
    )(*operands)

    # Final bilinear Upsample(size=16) is the identity here (decoder already
    # produces 16x16); output is already NCHW-flat, so only a free reshape.
    # TODO(synk): general half-pixel bilinear resize (only needed if the
    # decoder output size != insize) kept out of the kernel.
    return y.reshape(n, 4, 16, 16)


# ----------------------------------------------------------------------------
# Pure-JAX reference (independently validated im2col / dilate+flip lowering)
# ----------------------------------------------------------------------------
def im2col(x_nhwc, kh, kw, stride):
    N, H, W, C = x_nhwc.shape
    OH = (H - kh) // stride + 1
    OW = (W - kw) // stride + 1
    patches = []
    for i in range(kh):
        for j in range(kw):
            patches.append(x_nhwc[:, i:i + stride * OH:stride,
                                  j:j + stride * OW:stride, :])
    p = jnp.stack(patches, axis=3)                 # (N, OH, OW, kh*kw, C)
    return p.reshape(N * OH * OW, kh * kw * C), (N, OH, OW)


def _dot_hp(a, b):
    return jnp.dot(a, b, precision=jax.lax.Precision.HIGHEST)


def reference_forward(x_nchw, p):
    def bn(x, g, b, relu=True):
        mean = jnp.mean(x, axis=0, keepdims=True)
        var = jnp.mean(jnp.square(x - mean), axis=0, keepdims=True)
        y = (x - mean) * jax.lax.rsqrt(var + EPS) * g.reshape(1, -1) + b.reshape(1, -1)
        return jnp.maximum(y, 0.0) if relu else y

    def conv(x_nhwc, w_oihw, g, bta, stride, relu=True):
        cout, cin, kh, kw = w_oihw.shape
        cols, (n, oh, ow) = im2col(x_nhwc, kh, kw, stride)
        wmat = jnp.transpose(w_oihw, (2, 3, 1, 0)).reshape(kh * kw * cin, cout)
        y = bn(_dot_hp(cols, wmat), g, bta, relu)
        return y.reshape(n, oh, ow, cout)

    def convT(x_nhwc, w_iohw, g, bta, stride, outpad, relu=True):
        cin, cout, kh, kw = w_iohw.shape
        n, hh, ww, _ = x_nhwc.shape
        xd = jnp.zeros((n, (hh - 1) * stride + 1, (ww - 1) * stride + 1, cin),
                       x_nhwc.dtype)
        xd = xd.at[:, ::stride, ::stride, :].set(x_nhwc)
        pp = kh - 1
        xp = jnp.pad(xd, ((0, 0), (pp, pp + outpad), (pp, pp + outpad), (0, 0)))
        w_eq = jnp.transpose(w_iohw[:, :, ::-1, ::-1], (1, 0, 2, 3))
        return conv(xp, w_eq, g, bta, 1, relu)

    n = x_nchw.shape[0]
    x = jnp.transpose(x_nchw, (0, 2, 3, 1)).astype(jnp.float32)
    x = conv(x, p["ew1"], p["eg1"], p["eb1"], 2)                       # (N,7,7,8)
    x = conv(x, p["ew2"], p["eg2"], p["eb2"], 2)                       # (N,3,3,16)
    xf = jnp.transpose(x, (0, 3, 1, 2)).reshape(n, -1)                 # NCHW flatten
    h = bn(_dot_hp(xf, p["efw"].T), p["efg"], p["efb"])                # (N,32)
    y = bn(_dot_hp(h, p["dfw"].T), p["dfg"], p["dfb"])                 # (N,144)
    y = jnp.transpose(y.reshape(n, 16, 3, 3), (0, 2, 3, 1))            # NHWC
    y = convT(y, p["dw1"], p["dg1"], p["db1"], 2, 0, True)             # (N,7,7,8)
    y = convT(y, p["dw2"], p["dg2"], p["db2"], 2, 1, False)            # (N,16,16,4)
    return jnp.transpose(y, (0, 3, 1, 2))


if __name__ == "__main__":
    key = jax.random.PRNGKey(0)
    kparam, kx = jax.random.split(key)
    params = init_params(kparam)
    x = jax.random.normal(kx, (2, 4, 16, 16), jnp.float32)   # NCHW, like PyTorch

    # One-time operator prep (hoisted out of the per-call path).
    ops = jax.block_until_ready(prepare_operands(params, 2))

    fwd = jax.jit(conv_ae_forward)
    out = jax.block_until_ready(fwd(x, ops))
    assert out.shape == (2, 4, 16, 16), out.shape
    assert bool(jnp.all(jnp.isfinite(out)))

    ref = jax.block_until_ready(reference_forward(x, params))
    err = float(jnp.max(jnp.abs(out - ref)))
    # bf16 MXU operands across 6 stages vs an f32-HIGHEST reference: expect
    # ~1e-2-level max-abs error on BN-normalized O(1) activations.
    assert err < 1e-1, f"max abs err vs reference: {err}"

    print("KERNEL_OK")
</pallas_src>

<mosaic_0001>
module attributes {stable_mosaic.version = 11 : i64} {
  func.func @_fused_forward_kernel(%arg0: i32, %arg1: memref<2x1024xf32, #tpu.memory_space<vmem>>, %arg2: memref<1024x392xbf16, #tpu.memory_space<vmem>>, %arg3: memref<392x144xbf16, #tpu.memory_space<vmem>>, %arg4: memref<144x32xbf16, #tpu.memory_space<vmem>>, %arg5: memref<32x144xbf16, #tpu.memory_space<vmem>>, %arg6: memref<144x392xbf16, #tpu.memory_space<vmem>>, %arg7: memref<392x1024xbf16, #tpu.memory_space<vmem>>, %arg8: memref<392x8xf32, #tpu.memory_space<vmem>>, %arg9: memref<8x392xf32, #tpu.memory_space<vmem>>, %arg10: memref<144x16xf32, #tpu.memory_space<vmem>>, %arg11: memref<16x144xf32, #tpu.memory_space<vmem>>, %arg12: memref<1024x4xf32, #tpu.memory_space<vmem>>, %arg13: memref<4x1024xf32, #tpu.memory_space<vmem>>, %arg14: memref<1x8xf32, #tpu.memory_space<vmem>>, %arg15: memref<1x8xf32, #tpu.memory_space<vmem>>, %arg16: memref<1x16xf32, #tpu.memory_space<vmem>>, %arg17: memref<1x16xf32, #tpu.memory_space<vmem>>, %arg18: memref<1x32xf32, #tpu.memory_space<vmem>>, %arg19: memref<1x32xf32, #tpu.memory_space<vmem>>, %arg20: memref<1x144xf32, #tpu.memory_space<vmem>>, %arg21: memref<1x144xf32, #tpu.memory_space<vmem>>, %arg22: memref<1x8xf32, #tpu.memory_space<vmem>>, %arg23: memref<1x8xf32, #tpu.memory_space<vmem>>, %arg24: memref<1x4xf32, #tpu.memory_space<vmem>>, %arg25: memref<1x4xf32, #tpu.memory_space<vmem>>, %arg26: memref<2x1024xf32, #tpu.memory_space<vmem>>) attributes {dimension_semantics = [#tpu.dimension_semantics<arbitrary>], iteration_bounds = array<i64: 1>, scalar_prefetch = 0 : i64, scratch_operands = 0 : i64, tpu.core_type = #tpu.core_type<tc>, window_params = [{pipeline_mode = #tpu.pipeline_mode<synchronous>, transform_indices = @transform_0, window_bounds = array<i64: 2, 1024>}, {pipeline_mode = #tpu.pipeline_mode<synchronous>, transform_indices = @transform_1, window_bounds = array<i64: 1024, 392>}, {pipeline_mode = #tpu.pipeline_mode<synchronous>, transform_indices = @transform_2, window_bounds = array<i64: 392, 144>}, {pipeline_mode = #tpu.pipeline_mode<synchronous>, transform_indices = @transform_3, window_bounds = array<i64: 144, 32>}, {pipeline_mode = #tpu.pipeline_mode<synchronous>, transform_indices = @transform_4, window_bounds = array<i64: 32, 144>}, {pipeline_mode = #tpu.pipeline_mode<synchronous>, transform_indices = @transform_5, window_bounds = array<i64: 144, 392>}, {pipeline_mode = #tpu.pipeline_mode<synchronous>, transform_indices = @transform_6, window_bounds = array<i64: 392, 1024>}, {pipeline_mode = #tpu.pipeline_mode<synchronous>, transform_indices = @transform_7, window_bounds = array<i64: 392, 8>}, {pipeline_mode = #tpu.pipeline_mode<synchronous>, transform_indices = @transform_8, window_bounds = array<i64: 8, 392>}, {pipeline_mode = #tpu.pipeline_mode<synchronous>, transform_indices = @transform_9, window_bounds = array<i64: 144, 16>}, {pipeline_mode = #tpu.pipeline_mode<synchronous>, transform_indices = @transform_10, window_bounds = array<i64: 16, 144>}, {pipeline_mode = #tpu.pipeline_mode<synchronous>, transform_indices = @transform_11, window_bounds = array<i64: 1024, 4>}, {pipeline_mode = #tpu.pipeline_mode<synchronous>, transform_indices = @transform_12, window_bounds = array<i64: 4, 1024>}, {pipeline_mode = #tpu.pipeline_mode<synchronous>, transform_indices = @transform_13, window_bounds = array<i64: 1, 8>}, {pipeline_mode = #tpu.pipeline_mode<synchronous>, transform_indices = @transform_14, window_bounds = array<i64: 1, 8>}, {pipeline_mode = #tpu.pipeline_mode<synchronous>, transform_indices = @transform_15, window_bounds = array<i64: 1, 16>}, {pipeline_mode = #tpu.pipeline_mode<synchronous>, transform_indices = @transform_16, window_bounds = array<i64: 1, 16>}, {pipeline_mode = #tpu.pipeline_mode<synchronous>, transform_indices = @transform_17, window_bounds = array<i64: 1, 32>}, {pipeline_mode = #tpu.pipeline_mode<synchronous>, transform_indices = @transform_18, window_bounds = array<i64: 1, 32>}, {pipeline_mode = #tpu.pipeline_mode<synchronous>, transform_indices = @transform_19, window_bounds = array<i64: 1, 144>}, {pipeline_mode = #tpu.pipeline_mode<synchronous>, transform_indices = @transform_20, window_bounds = array<i64: 1, 144>}, {pipeline_mode = #tpu.pipeline_mode<synchronous>, transform_indices = @transform_21, window_bounds = array<i64: 1, 8>}, {pipeline_mode = #tpu.pipeline_mode<synchronous>, transform_indices = @transform_22, window_bounds = array<i64: 1, 8>}, {pipeline_mode = #tpu.pipeline_mode<synchronous>, transform_indices = @transform_23, window_bounds = array<i64: 1, 4>}, {pipeline_mode = #tpu.pipeline_mode<synchronous>, transform_indices = @transform_24, window_bounds = array<i64: 1, 4>}, {pipeline_mode = #tpu.pipeline_mode<synchronous>, transform_indices = @transform_25, window_bounds = array<i64: 2, 1024>}]} {
    %c0 = arith.constant 0 : index
    %c0_0 = arith.constant 0 : index
    %0 = vector.load %arg1[%c0, %c0_0] : memref<2x1024xf32, #tpu.memory_space<vmem>>, vector<2x1024xf32>
    %1 = arith.truncf %0 : vector<2x1024xf32> to vector<2x1024xbf16>
    %c0_1 = arith.constant 0 : index
    %c0_2 = arith.constant 0 : index
    %2 = vector.load %arg2[%c0_1, %c0_2] : memref<1024x392xbf16, #tpu.memory_space<vmem>>, vector<1024x392xbf16>
    %cst = arith.constant dense<0.000000e+00> : vector<2x392xf32>
    %3 = tpu.matmul %1, %2, %cst {dimension_numbers = #tpu.dot_dimension_numbers<[1], [0], [0], [1], [0, 0, 1, 1], [], []>} : vector<2x1024xbf16>, vector<1024x392xbf16>, vector<2x392xf32> -> vector<2x392xf32>
    %cst_3 = arith.constant dense<0.000000e+00> : vector<392xf32>
    %4 = vector.multi_reduction <add>, %3, %cst_3 [0] : vector<2x392xf32> to vector<392xf32>
    %5 = vector.shape_cast %4 : vector<392xf32> to vector<1x392xf32>
    %6 = arith.mulf %3, %3 : vector<2x392xf32>
    %cst_4 = arith.constant dense<0.000000e+00> : vector<392xf32>
    %7 = vector.multi_reduction <add>, %6, %cst_4 [0] : vector<2x392xf32> to vector<392xf32>
    %8 = vector.shape_cast %7 : vector<392xf32> to vector<1x392xf32>
    %9 = tpu.concatenate %5, %8 in 0 : vector<1x392xf32>, vector<1x392xf32> -> vector<2x392xf32>
    %c0_5 = arith.constant 0 : index
    %c0_6 = arith.constant 0 : index
    %10 = vector.load %arg8[%c0_5, %c0_6] : memref<392x8xf32, #tpu.memory_space<vmem>>, vector<392x8xf32>
    %cst_7 = arith.constant dense<0.000000e+00> : vector<2x8xf32>
    %11 = tpu.matmul %9, %10, %cst_7 {dimension_numbers = #tpu.dot_dimension_numbers<[1], [0], [0], [1], [0, 0, 1, 1], [], []>} : vector<2x392xf32>, vector<392x8xf32>, vector<2x8xf32> -> vector<2x8xf32>
    %12 = vector.extract_strided_slice %11 {offsets = [0, 0], sizes = [1, 8], strides = [1, 1]} : vector<2x8xf32> to vector<1x8xf32>
    %13 = vector.extract_strided_slice %11 {offsets = [1, 0], sizes = [1, 8], strides = [1, 1]} : vector<2x8xf32> to vector<1x8xf32>
    %14 = arith.mulf %12, %12 : vector<1x8xf32>
    %15 = arith.subf %13, %14 : vector<1x8xf32>
    %c0_8 = arith.constant 0 : index
    %c0_9 = arith.constant 0 : index
    %16 = vector.load %arg14[%c0_8, %c0_9] : memref<1x8xf32, #tpu.memory_space<vmem>>, vector<1x8xf32>
    %cst_10 = arith.constant 9.99999974E-6 : f32
    %17 = vector.broadcast %cst_10 : f32 to vector<1x8xf32>
    %18 = arith.addf %15, %17 : vector<1x8xf32>
    %19 = math.rsqrt %18 : vector<1x8xf32>
    %20 = arith.mulf %16, %19 : vector<1x8xf32>
    %c0_11 = arith.constant 0 : index
    %c0_12 = arith.constant 0 : index
    %21 = vector.load %arg15[%c0_11, %c0_12] : memref<1x8xf32, #tpu.memory_space<vmem>>, vector<1x8xf32>
    %22 = arith.mulf %12, %20 : vector<1x8xf32>
    %23 = arith.subf %21, %22 : vector<1x8xf32>
    %24 = tpu.concatenate %20, %23 in 0 : vector<1x8xf32>, vector<1x8xf32> -> vector<2x8xf32>
    %c0_13 = arith.constant 0 : index
    %c0_14 = arith.constant 0 : index
    %25 = vector.load %arg9[%c0_13, %c0_14] : memref<8x392xf32, #tpu.memory_space<vmem>>, vector<8x392xf32>
    %cst_15 = arith.constant dense<0.000000e+00> : vector<2x392xf32>
    %26 = tpu.matmul %24, %25, %cst_15 {dimension_numbers = #tpu.dot_dimension_numbers<[1], [0], [0], [1], [0, 0, 1, 1], [], []>} : vector<2x8xf32>, vector<8x392xf32>, vector<2x392xf32> -> vector<2x392xf32>
    %27 = vector.extract_strided_slice %26 {offsets = [0, 0], sizes = [1, 392], strides = [1, 1]} : vector<2x392xf32> to vector<1x392xf32>
    %28 = vector.broadcast %27 : vector<1x392xf32> to vector<2x392xf32>
    %29 = arith.mulf %3, %28 : vector<2x392xf32>
    %30 = vector.extract_strided_slice %26 {offsets = [1, 0], sizes = [1, 392], strides = [1, 1]} : vector<2x392xf32> to vector<1x392xf32>
    %31 = vector.broadcast %30 : vector<1x392xf32> to vector<2x392xf32>
    %32 = arith.addf %29, %31 : vector<2x392xf32>
    %cst_16 = arith.constant 0.000000e+00 : f32
    %33 = vector.broadcast %cst_16 : f32 to vector<2x392xf32>
    %34 = arith.maximumf %32, %33 : vector<2x392xf32>
    %35 = arith.truncf %34 : vector<2x392xf32> to vector<2x392xbf16>
    %c0_17 = arith.constant 0 : index
    %c0_18 = arith.constant 0 : index
    %36 = vector.load %arg3[%c0_17, %c0_18] : memref<392x144xbf16, #tpu.memory_space<vmem>>, vector<392x144xbf16>
    %cst_19 = arith.constant dense<0.000000e+00> : vector<2x144xf32>
    %37 = tpu.matmul %35, %36, %cst_19 {dimension_numbers = #tpu.dot_dimension_numbers<[1], [0], [0], [1], [0, 0, 1, 1], [], []>} : vector<2x392xbf16>, vector<392x144xbf16>, vector<2x144xf32> -> vector<2x144xf32>
    %cst_20 = arith.constant dense<0.000000e+00> : vector<144xf32>
    %38 = vector.multi_reduction <add>, %37, %cst_20 [0] : vector<2x144xf32> to vector<144xf32>
    %39 = vector.shape_cast %38 : vector<144xf32> to vector<1x144xf32>
    %40 = arith.mulf %37, %37 : vector<2x144xf32>
    %cst_21 = arith.constant dense<0.000000e+00> : vector<144xf32>
    %41 = vector.multi_reduction <add>, %40, %cst_21 [0] : vector<2x144xf32> to vector<144xf32>
    %42 = vector.shape_cast %41 : vector<144xf32> to vector<1x144xf32>
    %43 = tpu.concatenate %39, %42 in 0 : vector<1x144xf32>, vector<1x144xf32> -> vector<2x144xf32>
    %c0_22 = arith.constant 0 : index
    %c0_23 = arith.constant 0 : index
    %44 = vector.load %arg10[%c0_22, %c0_23] : memref<144x16xf32, #tpu.memory_space<vmem>>, vector<144x16xf32>
    %cst_24 = arith.constant dense<0.000000e+00> : vector<2x16xf32>
    %45 = tpu.matmul %43, %44, %cst_24 {dimension_numbers = #tpu.dot_dimension_numbers<[1], [0], [0], [1], [0, 0, 1, 1], [], []>} : vector<2x144xf32>, vector<144x16xf32>, vector<2x16xf32> -> vector<2x16xf32>
    %46 = vector.extract_strided_slice %45 {offsets = [0, 0], sizes = [1, 16], strides = [1, 1]} : vector<2x16xf32> to vector<1x16xf32>
    %47 = vector.extract_strided_slice %45 {offsets = [1, 0], sizes = [1, 16], strides = [1, 1]} : vector<2x16xf32> to vector<1x16xf32>
    %48 = arith.mulf %46, %46 : vector<1x16xf32>
    %49 = arith.subf %47, %48 : vector<1x16xf32>
    %c0_25 = arith.constant 0 : index
    %c0_26 = arith.constant 0 : index
    %50 = vector.load %arg16[%c0_25, %c0_26] : memref<1x16xf32, #tpu.memory_space<vmem>>, vector<1x16xf32>
    %cst_27 = arith.constant 9.99999974E-6 : f32
    %51 = vector.broadcast %cst_27 : f32 to vector<1x16xf32>
    %52 = arith.addf %49, %51 : vector<1x16xf32>
    %53 = math.rsqrt %52 : vector<1x16xf32>
    %54 = arith.mulf %50, %53 : vector<1x16xf32>
    %c0_28 = arith.constant 0 : index
    %c0_29 = arith.constant 0 : index
    %55 = vector.load %arg17[%c0_28, %c0_29] : memref<1x16xf32, #tpu.memory_space<vmem>>, vector<1x16xf32>
    %56 = arith.mulf %46, %54 : vector<1x16xf32>
    %57 = arith.subf %55, %56 : vector<1x16xf32>
    %58 = tpu.concatenate %54, %57 in 0 : vector<1x16xf32>, vector<1x16xf32> -> vector<2x16xf32>
    %c0_30 = arith.constant 0 : index
    %c0_31 = arith.constant 0 : index
    %59 = vector.load %arg11[%c0_30, %c0_31] : memref<16x144xf32, #tpu.memory_space<vmem>>, vector<16x144xf32>
    %cst_32 = arith.constant dense<0.000000e+00> : vector<2x144xf32>
    %60 = tpu.matmul %58, %59, %cst_32 {dimension_numbers = #tpu.dot_dimension_numbers<[1], [0], [0], [1], [0, 0, 1, 1], [], []>} : vector<2x16xf32>, vector<16x144xf32>, vector<2x144xf32> -> vector<2x144xf32>
    %61 = vector.extract_strided_slice %60 {offsets = [0, 0], sizes = [1, 144], strides = [1, 1]} : vector<2x144xf32> to vector<1x144xf32>
    %62 = vector.broadcast %61 : vector<1x144xf32> to vector<2x144xf32>
    %63 = arith.mulf %37, %62 : vector<2x144xf32>
    %64 = vector.extract_strided_slice %60 {offsets = [1, 0], sizes = [1, 144], strides = [1, 1]} : vector<2x144xf32> to vector<1x144xf32>
    %65 = vector.broadcast %64 : vector<1x144xf32> to vector<2x144xf32>
    %66 = arith.addf %63, %65 : vector<2x144xf32>
    %cst_33 = arith.constant 0.000000e+00 : f32
    %67 = vector.broadcast %cst_33 : f32 to vector<2x144xf32>
    %68 = arith.maximumf %66, %67 : vector<2x144xf32>
    %69 = arith.truncf %68 : vector<2x144xf32> to vector<2x144xbf16>
    %c0_34 = arith.constant 0 : index
    %c0_35 = arith.constant 0 : index
    %70 = vector.load %arg4[%c0_34, %c0_35] : memref<144x32xbf16, #tpu.memory_space<vmem>>, vector<144x32xbf16>
    %cst_36 = arith.constant dense<0.000000e+00> : vector<2x32xf32>
    %71 = tpu.matmul %69, %70, %cst_36 {dimension_numbers = #tpu.dot_dimension_numbers<[1], [0], [0], [1], [0, 0, 1, 1], [], []>} : vector<2x144xbf16>, vector<144x32xbf16>, vector<2x32xf32> -> vector<2x32xf32>
    %cst_37 = arith.constant dense<0.000000e+00> : vector<32xf32>
    %72 = vector.multi_reduction <add>, %71, %cst_37 [0] : vector<2x32xf32> to vector<32xf32>
    %73 = vector.shape_cast %72 : vector<32xf32> to vector<1x32xf32>
    %cst_38 = arith.constant 2.000000e+00 : f32
    %74 = vector.broadcast %cst_38 : f32 to vector<1x32xf32>
    %75 = arith.divf %73, %74 : vector<1x32xf32>
    %76 = arith.mulf %71, %71 : vector<2x32xf32>
    %cst_39 = arith.constant dense<0.000000e+00> : vector<32xf32>
    %77 = vector.multi_reduction <add>, %76, %cst_39 [0] : vector<2x32xf32> to vector<32xf32>
    %78 = vector.shape_cast %77 : vector<32xf32> to vector<1x32xf32>
    %cst_40 = arith.constant 2.000000e+00 : f32
    %79 = vector.broadcast %cst_40 : f32 to vector<1x32xf32>
    %80 = arith.divf %78, %79 : vector<1x32xf32>
    %81 = arith.mulf %75, %75 : vector<1x32xf32>
    %82 = arith.subf %80, %81 : vector<1x32xf32>
    %c0_41 = arith.constant 0 : index
    %c0_42 = arith.constant 0 : index
    %83 = vector.load %arg18[%c0_41, %c0_42] : memref<1x32xf32, #tpu.memory_space<vmem>>, vector<1x32xf32>
    %cst_43 = arith.constant 9.99999974E-6 : f32
    %84 = vector.broadcast %cst_43 : f32 to vector<1x32xf32>
    %85 = arith.addf %82, %84 : vector<1x32xf32>
    %86 = math.rsqrt %85 : vector<1x32xf32>
    %87 = arith.mulf %83, %86 : vector<1x32xf32>
    %c0_44 = arith.constant 0 : index
    %c0_45 = arith.constant 0 : index
    %88 = vector.load %arg19[%c0_44, %c0_45] : memref<1x32xf32, #tpu.memory_space<vmem>>, vector<1x32xf32>
    %89 = arith.mulf %75, %87 : vector<1x32xf32>
    %90 = arith.subf %88, %89 : vector<1x32xf32>
    %91 = vector.broadcast %87 : vector<1x32xf32> to vector<2x32xf32>
    %92 = arith.mulf %71, %91 : vector<2x32xf32>
    %93 = vector.broadcast %90 : vector<1x32xf32> to vector<2x32xf32>
    %94 = arith.addf %92, %93 : vector<2x32xf32>
    %cst_46 = arith.constant 0.000000e+00 : f32
    %95 = vector.broadcast %cst_46 : f32 to vector<2x32xf32>
    %96 = arith.maximumf %94, %95 : vector<2x32xf32>
    %97 = arith.truncf %96 : vector<2x32xf32> to vector<2x32xbf16>
    %c0_47 = arith.constant 0 : index
    %c0_48 = arith.constant 0 : index
    %98 = vector.load %arg5[%c0_47, %c0_48] : memref<32x144xbf16, #tpu.memory_space<vmem>>, vector<32x144xbf16>
    %cst_49 = arith.constant dense<0.000000e+00> : vector<2x144xf32>
    %99 = tpu.matmul %97, %98, %cst_49 {dimension_numbers = #tpu.dot_dimension_numbers<[1], [0], [0], [1], [0, 0, 1, 1], [], []>} : vector<2x32xbf16>, vector<32x144xbf16>, vector<2x144xf32> -> vector<2x144xf32>
    %cst_50 = arith.constant dense<0.000000e+00> : vector<144xf32>
    %100 = vector.multi_reduction <add>, %99, %cst_50 [0] : vector<2x144xf32> to vector<144xf32>
    %101 = vector.shape_cast %100 : vector<144xf32> to vector<1x144xf32>
    %cst_51 = arith.constant 2.000000e+00 : f32
    %102 = vector.broadcast %cst_51 : f32 to vector<1x144xf32>
    %103 = arith.divf %101, %102 : vector<1x144xf32>
    %104 = arith.mulf %99, %99 : vector<2x144xf32>
    %cst_52 = arith.constant dense<0.000000e+00> : vector<144xf32>
    %105 = vector.multi_reduction <add>, %104, %cst_52 [0] : vector<2x144xf32> to vector<144xf32>
    %106 = vector.shape_cast %105 : vector<144xf32> to vector<1x144xf32>
    %cst_53 = arith.constant 2.000000e+00 : f32
    %107 = vector.broadcast %cst_53 : f32 to vector<1x144xf32>
    %108 = arith.divf %106, %107 : vector<1x144xf32>
    %109 = arith.mulf %103, %103 : vector<1x144xf32>
    %110 = arith.subf %108, %109 : vector<1x144xf32>
    %c0_54 = arith.constant 0 : index
    %c0_55 = arith.constant 0 : index
    %111 = vector.load %arg20[%c0_54, %c0_55] : memref<1x144xf32, #tpu.memory_space<vmem>>, vector<1x144xf32>
    %cst_56 = arith.constant 9.99999974E-6 : f32
    %112 = vector.broadcast %cst_56 : f32 to vector<1x144xf32>
    %113 = arith.addf %110, %112 : vector<1x144xf32>
    %114 = math.rsqrt %113 : vector<1x144xf32>
    %115 = arith.mulf %111, %114 : vector<1x144xf32>
    %c0_57 = arith.constant 0 : index
    %c0_58 = arith.constant 0 : index
    %116 = vector.load %arg21[%c0_57, %c0_58] : memref<1x144xf32, #tpu.memory_space<vmem>>, vector<1x144xf32>
    %117 = arith.mulf %103, %115 : vector<1x144xf32>
    %118 = arith.subf %116, %117 : vector<1x144xf32>
    %119 = vector.broadcast %115 : vector<1x144xf32> to vector<2x144xf32>
    %120 = arith.mulf %99, %119 : vector<2x144xf32>
    %121 = vector.broadcast %118 : vector<1x144xf32> to vector<2x144xf32>
    %122 = arith.addf %120, %121 : vector<2x144xf32>
    %cst_59 = arith.constant 0.000000e+00 : f32
    %123 = vector.broadcast %cst_59 : f32 to vector<2x144xf32>
    %124 = arith.maximumf %122, %123 : vector<2x144xf32>
    %125 = arith.truncf %124 : vector<2x144xf32> to vector<2x144xbf16>
    %c0_60 = arith.constant 0 : index
    %c0_61 = arith.constant 0 : index
    %126 = vector.load %arg6[%c0_60, %c0_61] : memref<144x392xbf16, #tpu.memory_space<vmem>>, vector<144x392xbf16>
    %cst_62 = arith.constant dense<0.000000e+00> : vector<2x392xf32>
    %127 = tpu.matmul %125, %126, %cst_62 {dimension_numbers = #tpu.dot_dimension_numbers<[1], [0], [0], [1], [0, 0, 1, 1], [], []>} : vector<2x144xbf16>, vector<144x392xbf16>, vector<2x392xf32> -> vector<2x392xf32>
    %cst_63 = arith.constant dense<0.000000e+00> : vector<392xf32>
    %128 = vector.multi_reduction <add>, %127, %cst_63 [0] : vector<2x392xf32> to vector<392xf32>
    %129 = vector.shape_cast %128 : vector<392xf32> to vector<1x392xf32>
    %130 = arith.mulf %127, %127 : vector<2x392xf32>
    %cst_64 = arith.constant dense<0.000000e+00> : vector<392xf32>
    %131 = vector.multi_reduction <add>, %130, %cst_64 [0] : vector<2x392xf32> to vector<392xf32>
    %132 = vector.shape_cast %131 : vector<392xf32> to vector<1x392xf32>
    %133 = tpu.concatenate %129, %132 in 0 : vector<1x392xf32>, vector<1x392xf32> -> vector<2x392xf32>
    %c0_65 = arith.constant 0 : index
    %c0_66 = arith.constant 0 : index
    %134 = vector.load %arg8[%c0_65, %c0_66] : memref<392x8xf32, #tpu.memory_space<vmem>>, vector<392x8xf32>
    %cst_67 = arith.constant dense<0.000000e+00> : vector<2x8xf32>
    %135 = tpu.matmul %133, %134, %cst_67 {dimension_numbers = #tpu.dot_dimension_numbers<[1], [0], [0], [1], [0, 0, 1, 1], [], []>} : vector<2x392xf32>, vector<392x8xf32>, vector<2x8xf32> -> vector<2x8xf32>
    %136 = vector.extract_strided_slice %135 {offsets = [0, 0], sizes = [1, 8], strides = [1, 1]} : vector<2x8xf32> to vector<1x8xf32>
    %137 = vector.extract_strided_slice %135 {offsets = [1, 0], sizes = [1, 8], strides = [1, 1]} : vector<2x8xf32> to vector<1x8xf32>
    %138 = arith.mulf %136, %136 : vector<1x8xf32>
    %139 = arith.subf %137, %138 : vector<1x8xf32>
    %c0_68 = arith.constant 0 : index
    %c0_69 = arith.constant 0 : index
    %140 = vector.load %arg22[%c0_68, %c0_69] : memref<1x8xf32, #tpu.memory_space<vmem>>, vector<1x8xf32>
    %cst_70 = arith.constant 9.99999974E-6 : f32
    %141 = vector.broadcast %cst_70 : f32 to vector<1x8xf32>
    %142 = arith.addf %139, %141 : vector<1x8xf32>
    %143 = math.rsqrt %142 : vector<1x8xf32>
    %144 = arith.mulf %140, %143 : vector<1x8xf32>
    %c0_71 = arith.constant 0 : index
    %c0_72 = arith.constant 0 : index
    %145 = vector.load %arg23[%c0_71, %c0_72] : memref<1x8xf32, #tpu.memory_space<vmem>>, vector<1x8xf32>
    %146 = arith.mulf %136, %144 : vector<1x8xf32>
    %147 = arith.subf %145, %146 : vector<1x8xf32>
    %148 = tpu.concatenate %144, %147 in 0 : vector<1x8xf32>, vector<1x8xf32> -> vector<2x8xf32>
    %c0_73 = arith.constant 0 : index
    %c0_74 = arith.constant 0 : index
    %149 = vector.load %arg9[%c0_73, %c0_74] : memref<8x392xf32, #tpu.memory_space<vmem>>, vector<8x392xf32>
    %cst_75 = arith.constant dense<0.000000e+00> : vector<2x392xf32>
    %150 = tpu.matmul %148, %149, %cst_75 {dimension_numbers = #tpu.dot_dimension_numbers<[1], [0], [0], [1], [0, 0, 1, 1], [], []>} : vector<2x8xf32>, vector<8x392xf32>, vector<2x392xf32> -> vector<2x392xf32>
    %151 = vector.extract_strided_slice %150 {offsets = [0, 0], sizes = [1, 392], strides = [1, 1]} : vector<2x392xf32> to vector<1x392xf32>
    %152 = vector.broadcast %151 : vector<1x392xf32> to vector<2x392xf32>
    %153 = arith.mulf %127, %152 : vector<2x392xf32>
    %154 = vector.extract_strided_slice %150 {offsets = [1, 0], sizes = [1, 392], strides = [1, 1]} : vector<2x392xf32> to vector<1x392xf32>
    %155 = vector.broadcast %154 : vector<1x392xf32> to vector<2x392xf32>
    %156 = arith.addf %153, %155 : vector<2x392xf32>
    %cst_76 = arith.constant 0.000000e+00 : f32
    %157 = vector.broadcast %cst_76 : f32 to vector<2x392xf32>
    %158 = arith.maximumf %156, %157 : vector<2x392xf32>
    %159 = arith.truncf %158 : vector<2x392xf32> to vector<2x392xbf16>
    %c0_77 = arith.constant 0 : index
    %c0_78 = arith.constant 0 : index
    %160 = vector.load %arg7[%c0_77, %c0_78] : memref<392x1024xbf16, #tpu.memory_space<vmem>>, vector<392x1024xbf16>
    %cst_79 = arith.constant dense<0.000000e+00> : vector<2x1024xf32>
    %161 = tpu.matmul %159, %160, %cst_79 {dimension_numbers = #tpu.dot_dimension_numbers<[1], [0], [0], [1], [0, 0, 1, 1], [], []>} : vector<2x392xbf16>, vector<392x1024xbf16>, vector<2x1024xf32> -> vector<2x1024xf32>
    %cst_80 = arith.constant dense<0.000000e+00> : vector<1024xf32>
    %162 = vector.multi_reduction <add>, %161, %cst_80 [0] : vector<2x1024xf32> to vector<1024xf32>
    %163 = vector.shape_cast %162 : vector<1024xf32> to vector<1x1024xf32>
    %164 = arith.mulf %161, %161 : vector<2x1024xf32>
    %cst_81 = arith.constant dense<0.000000e+00> : vector<1024xf32>
    %165 = vector.multi_reduction <add>, %164, %cst_81 [0] : vector<2x1024xf32> to vector<1024xf32>
    %166 = vector.shape_cast %165 : vector<1024xf32> to vector<1x1024xf32>
    %167 = tpu.concatenate %163, %166 in 0 : vector<1x1024xf32>, vector<1x1024xf32> -> vector<2x1024xf32>
    %c0_82 = arith.constant 0 : index
    %c0_83 = arith.constant 0 : index
    %168 = vector.load %arg12[%c0_82, %c0_83] : memref<1024x4xf32, #tpu.memory_space<vmem>>, vector<1024x4xf32>
    %cst_84 = arith.constant dense<0.000000e+00> : vector<2x4xf32>
    %169 = tpu.matmul %167, %168, %cst_84 {dimension_numbers = #tpu.dot_dimension_numbers<[1], [0], [0], [1], [0, 0, 1, 1], [], []>} : vector<2x1024xf32>, vector<1024x4xf32>, vector<2x4xf32> -> vector<2x4xf32>
    %170 = vector.extract_strided_slice %169 {offsets = [0, 0], sizes = [1, 4], strides = [1, 1]} : vector<2x4xf32> to vector<1x4xf32>
    %171 = vector.extract_strided_slice %169 {offsets = [1, 0], sizes = [1, 4], strides = [1, 1]} : vector<2x4xf32> to vector<1x4xf32>
    %172 = arith.mulf %170, %170 : vector<1x4xf32>
    %173 = arith.subf %171, %172 : vector<1x4xf32>
    %c0_85 = arith.constant 0 : index
    %c0_86 = arith.constant 0 : index
    %174 = vector.load %arg24[%c0_85, %c0_86] : memref<1x4xf32, #tpu.memory_space<vmem>>, vector<1x4xf32>
    %cst_87 = arith.constant 9.99999974E-6 : f32
    %175 = vector.broadcast %cst_87 : f32 to vector<1x4xf32>
    %176 = arith.addf %173, %175 : vector<1x4xf32>
    %177 = math.rsqrt %176 : vector<1x4xf32>
    %178 = arith.mulf %174, %177 : vector<1x4xf32>
    %c0_88 = arith.constant 0 : index
    %c0_89 = arith.constant 0 : index
    %179 = vector.load %arg25[%c0_88, %c0_89] : memref<1x4xf32, #tpu.memory_space<vmem>>, vector<1x4xf32>
    %180 = arith.mulf %170, %178 : vector<1x4xf32>
    %181 = arith.subf %179, %180 : vector<1x4xf32>
    %182 = tpu.concatenate %178, %181 in 0 : vector<1x4xf32>, vector<1x4xf32> -> vector<2x4xf32>
    %c0_90 = arith.constant 0 : index
    %c0_91 = arith.constant 0 : index
    %183 = vector.load %arg13[%c0_90, %c0_91] : memref<4x1024xf32, #tpu.memory_space<vmem>>, vector<4x1024xf32>
    %cst_92 = arith.constant dense<0.000000e+00> : vector<2x1024xf32>
    %184 = tpu.matmul %182, %183, %cst_92 {dimension_numbers = #tpu.dot_dimension_numbers<[1], [0], [0], [1], [0, 0, 1, 1], [], []>} : vector<2x4xf32>, vector<4x1024xf32>, vector<2x1024xf32> -> vector<2x1024xf32>
    %185 = vector.extract_strided_slice %184 {offsets = [0, 0], sizes = [1, 1024], strides = [1, 1]} : vector<2x1024xf32> to vector<1x1024xf32>
    %186 = vector.broadcast %185 : vector<1x1024xf32> to vector<2x1024xf32>
    %187 = arith.mulf %161, %186 : vector<2x1024xf32>
    %188 = vector.extract_strided_slice %184 {offsets = [1, 0], sizes = [1, 1024], strides = [1, 1]} : vector<2x1024xf32> to vector<1x1024xf32>
    %189 = vector.broadcast %188 : vector<1x1024xf32> to vector<2x1024xf32>
    %190 = arith.addf %187, %189 : vector<2x1024xf32>
    %c0_93 = arith.constant 0 : index
    %c0_94 = arith.constant 0 : index
    %191 = vector.load %arg26[%c0_93, %c0_94] : memref<2x1024xf32, #tpu.memory_space<vmem>>, vector<2x1024xf32>
    tpu.vector_store %arg26[%c0_93, %c0_94], %190 {strides = array<i32>} : memref<2x1024xf32, #tpu.memory_space<vmem>>, vector<2x1024xf32>,
    return
  }
  func.func @transform_0(%arg0: i32) -> (i32, i32) {
    %c0_i32 = arith.constant 0 : i32
    %c0_i32_0 = arith.constant 0 : i32
    %c0_i32_1 = arith.constant 0 : i32
    return %c0_i32, %c0_i32_0 : i32, i32
  }
  func.func @transform_1(%arg0: i32) -> (i32, i32) {
    %c0_i32 = arith.constant 0 : i32
    %c0_i32_0 = arith.constant 0 : i32
    %c0_i32_1 = arith.constant 0 : i32
    return %c0_i32, %c0_i32_0 : i32, i32
  }
  func.func @transform_2(%arg0: i32) -> (i32, i32) {
    %c0_i32 = arith.constant 0 : i32
    %c0_i32_0 = arith.constant 0 : i32
    %c0_i32_1 = arith.constant 0 : i32
    return %c0_i32, %c0_i32_0 : i32, i32
  }
  func.func @transform_3(%arg0: i32) -> (i32, i32) {
    %c0_i32 = arith.constant 0 : i32
    %c0_i32_0 = arith.constant 0 : i32
    %c0_i32_1 = arith.constant 0 : i32
    return %c0_i32, %c0_i32_0 : i32, i32
  }
  func.func @transform_4(%arg0: i32) -> (i32, i32) {
    %c0_i32 = arith.constant 0 : i32
    %c0_i32_0 = arith.constant 0 : i32
    %c0_i32_1 = arith.constant 0 : i32
    return %c0_i32, %c0_i32_0 : i32, i32
  }
  func.func @transform_5(%arg0: i32) -> (i32, i32) {
    %c0_i32 = arith.constant 0 : i32
    %c0_i32_0 = arith.constant 0 : i32
    %c0_i32_1 = arith.constant 0 : i32
    return %c0_i32, %c0_i32_0 : i32, i32
  }
  func.func @transform_6(%arg0: i32) -> (i32, i32) {
    %c0_i32 = arith.constant 0 : i32
    %c0_i32_0 = arith.constant 0 : i32
    %c0_i32_1 = arith.constant 0 : i32
    return %c0_i32, %c0_i32_0 : i32, i32
  }
  func.func @transform_7(%arg0: i32) -> (i32, i32) {
    %c0_i32 = arith.constant 0 : i32
    %c0_i32_0 = arith.constant 0 : i32
    %c0_i32_1 = arith.constant 0 : i32
    return %c0_i32, %c0_i32_0 : i32, i32
  }
  func.func @transform_8(%arg0: i32) -> (i32, i32) {
    %c0_i32 = arith.constant 0 : i32
    %c0_i32_0 = arith.constant 0 : i32
    %c0_i32_1 = arith.constant 0 : i32
    return %c0_i32, %c0_i32_0 : i32, i32
  }
  func.func @transform_9(%arg0: i32) -> (i32, i32) {
    %c0_i32 = arith.constant 0 : i32
    %c0_i32_0 = arith.constant 0 : i32
    %c0_i32_1 = arith.constant 0 : i32
    return %c0_i32, %c0_i32_0 : i32, i32
  }
  func.func @transform_10(%arg0: i32) -> (i32, i32) {
    %c0_i32 = arith.constant 0 : i32
    %c0_i32_0 = arith.constant 0 : i32
    %c0_i32_1 = arith.constant 0 : i32
    return %c0_i32, %c0_i32_0 : i32, i32
  }
  func.func @transform_11(%arg0: i32) -> (i32, i32) {
    %c0_i32 = arith.constant 0 : i32
    %c0_i32_0 = arith.constant 0 : i32
    %c0_i32_1 = arith.constant 0 : i32
    return %c0_i32, %c0_i32_0 : i32, i32
  }
  func.func @transform_12(%arg0: i32) -> (i32, i32) {
    %c0_i32 = arith.constant 0 : i32
    %c0_i32_0 = arith.constant 0 : i32
    %c0_i32_1 = arith.constant 0 : i32
    return %c0_i32, %c0_i32_0 : i32, i32
  }
  func.func @transform_13(%arg0: i32) -> (i32, i32) {
    %c0_i32 = arith.constant 0 : i32
    %c0_i32_0 = arith.constant 0 : i32
    %c0_i32_1 = arith.constant 0 : i32
    return %c0_i32, %c0_i32_0 : i32, i32
  }
  func.func @transform_14(%arg0: i32) -> (i32, i32) {
    %c0_i32 = arith.constant 0 : i32
    %c0_i32_0 = arith.constant 0 : i32
    %c0_i32_1 = arith.constant 0 : i32
    return %c0_i32, %c0_i32_0 : i32, i32
  }
  func.func @transform_15(%arg0: i32) -> (i32, i32) {
    %c0_i32 = arith.constant 0 : i32
    %c0_i32_0 = arith.constant 0 : i32
    %c0_i32_1 = arith.constant 0 : i32
    return %c0_i32, %c0_i32_0 : i32, i32
  }
  func.func @transform_16(%arg0: i32) -> (i32, i32) {
    %c0_i32 = arith.constant 0 : i32
    %c0_i32_0 = arith.constant 0 : i32
    %c0_i32_1 = arith.constant 0 : i32
    return %c0_i32, %c0_i32_0 : i32, i32
  }
  func.func @transform_17(%arg0: i32) -> (i32, i32) {
    %c0_i32 = arith.constant 0 : i32
    %c0_i32_0 = arith.constant 0 : i32
    %c0_i32_1 = arith.constant 0 : i32
    return %c0_i32, %c0_i32_0 : i32, i32
  }
  func.func @transform_18(%arg0: i32) -> (i32, i32) {
    %c0_i32 = arith.constant 0 : i32
    %c0_i32_0 = arith.constant 0 : i32
    %c0_i32_1 = arith.constant 0 : i32
    return %c0_i32, %c0_i32_0 : i32, i32
  }
  func.func @transform_19(%arg0: i32) -> (i32, i32) {
    %c0_i32 = arith.constant 0 : i32
    %c0_i32_0 = arith.constant 0 : i32
    %c0_i32_1 = arith.constant 0 : i32
    return %c0_i32, %c0_i32_0 : i32, i32
  }
  func.func @transform_20(%arg0: i32) -> (i32, i32) {
    %c0_i32 = arith.constant 0 : i32
    %c0_i32_0 = arith.constant 0 : i32
    %c0_i32_1 = arith.constant 0 : i32
    return %c0_i32, %c0_i32_0 : i32, i32
  }
  func.func @transform_21(%arg0: i32) -> (i32, i32) {
    %c0_i32 = arith.constant 0 : i32
    %c0_i32_0 = arith.constant 0 : i32
    %c0_i32_1 = arith.constant 0 : i32
    return %c0_i32, %c0_i32_0 : i32, i32
  }
  func.func @transform_22(%arg0: i32) -> (i32, i32) {
    %c0_i32 = arith.constant 0 : i32
    %c0_i32_0 = arith.constant 0 : i32
    %c0_i32_1 = arith.constant 0 : i32
    return %c0_i32, %c0_i32_0 : i32, i32
  }
  func.func @transform_23(%arg0: i32) -> (i32, i32) {
    %c0_i32 = arith.constant 0 : i32
    %c0_i32_0 = arith.constant 0 : i32
    %c0_i32_1 = arith.constant 0 : i32
    return %c0_i32, %c0_i32_0 : i32, i32
  }
  func.func @transform_24(%arg0: i32) -> (i32, i32) {
    %c0_i32 = arith.constant 0 : i32
    %c0_i32_0 = arith.constant 0 : i32
    %c0_i32_1 = arith.constant 0 : i32
    return %c0_i32, %c0_i32_0 : i32, i32
  }
  func.func @transform_25(%arg0: i32) -> (i32, i32) {
    %c0_i32 = arith.constant 0 : i32
    %c0_i32_0 = arith.constant 0 : i32
    %c0_i32_1 = arith.constant 0 : i32
    return %c0_i32, %c0_i32_0 : i32, i32
  }
}

</mosaic_0001>

<bundles_post_ra>
// kernel: conv_ae_forward.1
= control target key start
LH: loop header
LB: loop body
LE: loop exit
PB: predicated region body
PF: predicated region fallthrough
CT: control target
= control target key end

     0   :  { %vm2064_vm0 = vcmask 1041408   ;;  %vm2126_vm1 = vcmask 1040384   ;;  %vm2086_vm2 = vcmask 58368   ;;  %vm2180_vm3 = vcmask 64512   ;;  %s13777_s1 = inlined_call_operand.vmem [shape: bf16[1024,392], index: 1, kind: input, shape index: {}]   ;;  %s13778_s0 = inlined_call_operand.vmem [shape: f32[2,1024], index: 0, kind: input, shape index: {}]   ;;  %s13779_s12 = inlined_call_operand.vmem [shape: f32[4,1024], index: 12, kind: input, shape index: {}]   ;;  %s13780_s7 = inlined_call_operand.vmem [shape: f32[392,8], index: 7, kind: input, shape index: {}]   ;;  %s13781_s8 = inlined_call_operand.vmem [shape: f32[8,392], index: 8, kind: input, shape index: {}]   ;;  %s13782_s2 = inlined_call_operand.vmem [shape: bf16[392,144], index: 2, kind: input, shape index: {}]   ;;  %s13783_s13 = inlined_call_operand.vmem [shape: f32[1,8], index: 13, kind: input, shape index: {}]   ;;  %s13784_s14 = inlined_call_operand.vmem [shape: f32[1,8], index: 14, kind: input, shape index: {}]   ;;  %s13785_s9 = inlined_call_operand.vmem [shape: f32[144,16], index: 9, kind: input, shape index: {}]   ;;  %s13786_s10 = inlined_call_operand.vmem [shape: f32[16,144], index: 10, kind: input, shape index: {}]   ;;  %s13787_s3 = inlined_call_operand.vmem [shape: bf16[144,32], index: 3, kind: input, shape index: {}]   ;;  %s13788_s15 = inlined_call_operand.vmem [shape: f32[1,16], index: 15, kind: input, shape index: {}]   ;;  %s13789_s16 = inlined_call_operand.vmem [shape: f32[1,16], index: 16, kind: input, shape index: {}]   ;;  %s13790_s4 = inlined_call_operand.vmem [shape: bf16[32,144], index: 4, kind: input, shape index: {}]   ;;  %s13791_s17 = inlined_call_operand.vmem [shape: f32[1,32], index: 17, kind: input, shape index: {}]   ;;  %s13792_s18 = inlined_call_operand.vmem [shape: f32[1,32], index: 18, kind: input, shape index: {}]   ;;  %s13793_s5 = inlined_call_operand.vmem [shape: bf16[144,392], index: 5, kind: input, shape index: {}]   ;;  %s13794_s19 = inlined_call_operand.vmem [shape: f32[1,144], index: 19, kind: input, shape index: {}]   ;;  %s13795_s20 = inlined_call_operand.vmem [shape: f32[1,144], index: 20, kind: input, shape index: {}]   ;;  %s13796_s6 = inlined_call_operand.vmem [shape: bf16[392,1024], index: 6, kind: input, shape index: {}]   ;;  %s13797_s21 = inlined_call_operand.vmem [shape: f32[1,8], index: 21, kind: input, shape index: {}]   ;;  %s13798_s22 = inlined_call_operand.vmem [shape: f32[1,8], index: 22, kind: input, shape index: {}]   ;;  %s13799_s11 = inlined_call_operand.vmem [shape: f32[1024,4], index: 11, kind: input, shape index: {}]   ;;  %s13800_s23 = inlined_call_operand.vmem [shape: f32[1,4], index: 23, kind: input, shape index: {}]   ;;  %s13801_s24 = inlined_call_operand.vmem [shape: f32[1,4], index: 24, kind: input, shape index: {}]   ;;  %s13802_s25 = inlined_call_operand.vmem [shape: f32[2,1024], index: 25, kind: output, shape index: {}]  }
   0x1   :  { %13811 = sst [smem:[#allocation2_spill]] %s13777_s1  ;;  %vm2702_vm7 = vcmask 1043456   ;;  %vm2820_vm8 = vcmask 123904   ;;  %vm2864_vm9 = vcmask 130048   ;;  %vm3098_vm13 = vcmask 254976  }
   0x2   :  { %13812 = sst [smem:[#allocation3_spill]] %s13778_s0 }
   0x3   :  { %13813 = sst [smem:[#allocation4_spill]] %s13779_s12 }
   0x4   :  { %13814 = sst [smem:[#allocation5_spill]] %s13780_s7 }
   0x5   :  { %13815 = sst [smem:[#allocation6_spill]] %s13781_s8 }
   0x6   :  { %13816 = sst [smem:[#allocation7_spill]] %s13782_s2 }
   0x7   :  { %13817 = sst [smem:[#allocation8_spill]] %s13783_s13 }
   0x8   :  { %13818 = sst [smem:[#allocation9_spill]] %s13784_s14 }
   0x9   :  { %13819 = sst [smem:[#allocation10_spill]] %s13785_s9 }
   0xa   :  { %13820 = sst [smem:[#allocation11_spill]] %s13786_s10 }
   0xb   :  { %s13821_s13 = sld [smem:[#allocation2_spill]] }
   0xc   :  { %s13822_s27 = sld [smem:[#allocation3_spill]] }
   0xd   :  { %s13823_s28 = sld [smem:[#allocation4_spill]] }
   0xe   :  { %s13824_s7 = sld [smem:[#allocation5_spill]] }
   0xf   :  { %s13825_s1 = sld [smem:[#allocation6_spill]] }
  0x10   :  { %s13826_s9 = sld [smem:[#allocation7_spill]] }
  0x11   :  { %v6349_v0 = vld [vmem:[%s13821_s13 + $0xe0] sm:$0xf]  ;;  %v8491_v1 = vld [vmem:[%s13821_s13 + $0xec] sm:$0xf0]  ;;  %s13827_s10 = sld [smem:[#allocation8_spill]] }
  0x12   :  { %v6477_v2 = vld [vmem:[%s13821_s13 + $0x1e0] sm:$0xf]  ;;  %v6350_v3 = vor.u32 %v8491_v1, %v6349_v0  ;;  %v8523_v4 = vld [vmem:[%s13821_s13 + $0x1ec] sm:$0xf0]  ;;  %s13830_s12 = sld [smem:[#allocation11_spill]] }
  0x13   :  { %v6605_v5 = vld [vmem:[%s13821_s13 + $0x2e0] sm:$0xf]  ;;  %v8555_v6 = vld [vmem:[%s13821_s13 + $0x2ec] sm:$0xf0]  ;;  %v6478_v7 = vor.u32 %v8523_v4, %v6477_v2 }
  0x14   :  { %v6606_v8 = vor.u32 %v8555_v6, %v6605_v5  ;;  %v6733_v9 = vld [vmem:[%s13821_s13 + $0x3e0] sm:$0xf]  ;;  %v8587_v10 = vld [vmem:[%s13821_s13 + $0x3ec] sm:$0xf0]  ;;  %1648 = vmatpush.bf16.msra.mxu0 %v6350_v3 }
  0x15   :  { %v6333_v11 = vld [vmem:[%s13821_s13 + $0xc0] sm:$0xf]  ;;  %v6734_v12 = vor.u32 %v8587_v10, %v6733_v9  ;;  %v8487_v13 = vld [vmem:[%s13821_s13 + $0xcc] sm:$0xf0]  ;;  %1661 = vmatpush.bf16.msra.mxu1 %v6478_v7 }
  0x16   :  { %v6461_v14 = vld [vmem:[%s13821_s13 + $0x1c0] sm:$0xf]  ;;  %v8519_v15 = vld [vmem:[%s13821_s13 + $0x1cc] sm:$0xf0]  ;;  %1674 = vmatpush.bf16.msra.mxu2 %v6606_v8  ;;  %v6334_v16 = vor.u32 %v8487_v13, %v6333_v11 }
  0x17   :  { %v6462_v17 = vor.u32 %v8519_v15, %v6461_v14  ;;  %v6589_v18 = vld [vmem:[%s13821_s13 + $0x2c0] sm:$0xf]  ;;  %v8551_v19 = vld [vmem:[%s13821_s13 + $0x2cc] sm:$0xf0]  ;;  %1687 = vmatpush.bf16.msra.mxu3 %v6734_v12 }
  0x18   :  { %v6717_v20 = vld [vmem:[%s13821_s13 + $0x3c0] sm:$0xf]  ;;  %v6590_v21 = vor.u32 %v8551_v19, %v6589_v18  ;;  %v8583_v22 = vld [vmem:[%s13821_s13 + $0x3cc] sm:$0xf0]  ;;  %1649 = vmatpush.bf16.msra.mxu0 %v6334_v16 }
  0x19   :  { %v6317_v23 = vld [vmem:[%s13821_s13 + $0xa0] sm:$0xf]  ;;  %v8483_v24 = vld [vmem:[%s13821_s13 + $0xac] sm:$0xf0]  ;;  %v6718_v25 = vor.u32 %v8583_v22, %v6717_v20  ;;  %1662 = vmatpush.bf16.msra.mxu1 %v6462_v17 }
  0x1a   :  { %v6445_v26 = vld [vmem:[%s13821_s13 + $0x1a0] sm:$0xf]  ;;  %v8515_v27 = vld [vmem:[%s13821_s13 + $0x1ac] sm:$0xf0]  ;;  %v6318_v29 = vor.u32 %v8483_v24, %v6317_v23  ;;  %1675 = vmatpush.bf16.msra.mxu2 %v6590_v21 }
  0x1b   :  { %v6573_v28 = vld [vmem:[%s13821_s13 + $0x2a0] sm:$0xf]  ;;  %v8547_v30 = vld [vmem:[%s13821_s13 + $0x2ac] sm:$0xf0]  ;;  %v6446_v33 = vor.u32 %v8515_v27, %v6445_v26  ;;  %1688 = vmatpush.bf16.msra.mxu3 %v6718_v25 }
  0x1c   :  { %v6701_v31 = vld [vmem:[%s13821_s13 + $0x3a0] sm:$0xf]  ;;  %v8579_v32 = vld [vmem:[%s13821_s13 + $0x3ac] sm:$0xf0]  ;;  %v6574_v34 = vor.u32 %v8547_v30, %v6573_v28  ;;  %1650 = vmatpush.bf16.msra.mxu0 %v6318_v29 }
  0x1d   :  { %v6301_v35 = vld [vmem:[%s13821_s13 + $0x80] sm:$0xf]  ;;  %v8479_v36 = vld [vmem:[%s13821_s13 + $0x8c] sm:$0xf0]  ;;  %v6702_v38 = vor.u32 %v8579_v32, %v6701_v31  ;;  %1663 = vmatpush.bf16.msra.mxu1 %v6446_v33 }
  0x1e   :  { %v6429_v37 = vld [vmem:[%s13821_s13 + $0x180] sm:$0xf]  ;;  %v8511_v39 = vld [vmem:[%s13821_s13 + $0x18c] sm:$0xf0]  ;;  %v6302_v44 = vor.u32 %v8479_v36, %v6301_v35  ;;  %1676 = vmatpush.bf16.msra.mxu2 %v6574_v34 }
  0x1f   :  { %v6557_v40 = vld [vmem:[%s13821_s13 + $0x280] sm:$0xf]  ;;  %v8543_v41 = vld [vmem:[%s13821_s13 + $0x28c] sm:$0xf0]  ;;  %v6430_v45 = vor.u32 %v8511_v39, %v6429_v37  ;;  %1689 = vmatpush.bf16.msra.mxu3 %v6702_v38 }
  0x20   :  { %v6685_v42 = vld [vmem:[%s13821_s13 + $0x380] sm:$0xf]  ;;  %v8575_v43 = vld [vmem:[%s13821_s13 + $0x38c] sm:$0xf0]  ;;  %v6558_v46 = vor.u32 %v8543_v41, %v6557_v40  ;;  %1651 = vmatpush.bf16.msra.mxu0 %v6302_v44 }
  0x21   :  { %v6285_v47 = vld [vmem:[%s13821_s13 + $0x60] sm:$0xf]  ;;  %v8475_v48 = vld [vmem:[%s13821_s13 + $0x6c] sm:$0xf0]  ;;  %v6686_v50 = vor.u32 %v8575_v43, %v6685_v42  ;;  %1664 = vmatpush.bf16.msra.mxu1 %v6430_v45 }
  0x22   :  { %v6413_v49 = vld [vmem:[%s13821_s13 + $0x160] sm:$0xf]  ;;  %v8507_v51 = vld [vmem:[%s13821_s13 + $0x16c] sm:$0xf0]  ;;  %v6286_v56 = vor.u32 %v8475_v48, %v6285_v47  ;;  %1677 = vmatpush.bf16.msra.mxu2 %v6558_v46 }
  0x23   :  { %v6541_v52 = vld [vmem:[%s13821_s13 + $0x260] sm:$0xf]  ;;  %v8539_v53 = vld [vmem:[%s13821_s13 + $0x26c] sm:$0xf0]  ;;  %v6414_v57 = vor.u32 %v8507_v51, %v6413_v49  ;;  %1690 = vmatpush.bf16.msra.mxu3 %v6686_v50 }
  0x24   :  { %v6669_v54 = vld [vmem:[%s13821_s13 + $0x360] sm:$0xf]  ;;  %v8571_v55 = vld [vmem:[%s13821_s13 + $0x36c] sm:$0xf0]  ;;  %v6542_v58 = vor.u32 %v8539_v53, %v6541_v52  ;;  %1652 = vmatpush.bf16.msra.mxu0 %v6286_v56 }
  0x25   :  { %v6269_v59 = vld [vmem:[%s13821_s13 + $0x40] sm:$0xf]  ;;  %v8471_v60 = vld [vmem:[%s13821_s13 + $0x4c] sm:$0xf0]  ;;  %v6670_v62 = vor.u32 %v8571_v55, %v6669_v54  ;;  %1665 = vmatpush.bf16.msra.mxu1 %v6414_v57 }
  0x26   :  { %v6397_v61 = vld [vmem:[%s13821_s13 + $0x140] sm:$0xf]  ;;  %v8503_v63 = vld [vmem:[%s13821_s13 + $0x14c] sm:$0xf0]  ;;  %v6270_v4 = vor.u32 %v8471_v60, %v6269_v59  ;;  %1678 = vmatpush.bf16.msra.mxu2 %v6542_v58 }
  0x27   :  { %v6525_v0 = vld [vmem:[%s13821_s13 + $0x240] sm:$0xf]  ;;  %v8535_v1 = vld [vmem:[%s13821_s13 + $0x24c] sm:$0xf0]  ;;  %v6398_v5 = vor.u32 %v8503_v63, %v6397_v61  ;;  %1691 = vmatpush.bf16.msra.mxu3 %v6670_v62 }
  0x28   :  { %v6653_v2 = vld [vmem:[%s13821_s13 + $0x340] sm:$0xf]  ;;  %v8567_v3 = vld [vmem:[%s13821_s13 + $0x34c] sm:$0xf0]  ;;  %v6526_v6 = vor.u32 %v8535_v1, %v6525_v0  ;;  %1653 = vmatpush.bf16.msra.mxu0 %v6270_v4 }
  0x29   :  { %v6253_v7 = vld [vmem:[%s13821_s13 + $0x20] sm:$0xf]  ;;  %v8467_v8 = vld [vmem:[%s13821_s13 + $0x2c] sm:$0xf0]  ;;  %v6654_v10 = vor.u32 %v8567_v3, %v6653_v2  ;;  %1666 = vmatpush.bf16.msra.mxu1 %v6398_v5 }
  0x2a   :  { %v6381_v9 = vld [vmem:[%s13821_s13 + $0x120] sm:$0xf]  ;;  %v8499_v11 = vld [vmem:[%s13821_s13 + $0x12c] sm:$0xf0]  ;;  %v6254_v16 = vor.u32 %v8467_v8, %v6253_v7  ;;  %1679 = vmatpush.bf16.msra.mxu2 %v6526_v6 }
  0x2b   :  { %v6509_v12 = vld [vmem:[%s13821_s13 + $0x220] sm:$0xf]  ;;  %v8531_v13 = vld [vmem:[%s13821_s13 + $0x22c] sm:$0xf0]  ;;  %v6382_v19 = vor.u32 %v8499_v11, %v6381_v9  ;;  %1692 = vmatpush.bf16.msra.mxu3 %v6654_v10 }
  0x2c   :  { %v6637_v14 = vld [vmem:[%s13821_s13 + $0x320] sm:$0xf]  ;;  %v8563_v15 = vld [vmem:[%s13821_s13 + $0x32c] sm:$0xf0]  ;;  %v6510_v20 = vor.u32 %v8531_v13, %v6509_v12  ;;  %1654 = vmatpush.bf16.msra.mxu0 %v6254_v16 }
  0x2d   :  { %v6237_v17 = vld [vmem:[%s13821_s13] sm:$0xf]  ;;  %v8463_v18 = vld [vmem:[%s13821_s13 + $0xc] sm:$0xf0]  ;;  %v6638_v24 = vor.u32 %v8563_v15, %v6637_v14  ;;  %1667 = vmatpush.bf16.msra.mxu1 %v6382_v19 }
  0x2e   :  { %v6365_v21 = vld [vmem:[%s13821_s13 + $0x100] sm:$0xf]  ;;  %v8495_v22 = vld [vmem:[%s13821_s13 + $0x10c] sm:$0xf0]  ;;  %v6238_v31 = vor.u32 %v8463_v18, %v6237_v17  ;;  %1680 = vmatpush.bf16.msra.mxu2 %v6510_v20 }
  0x2f   :  { %v6493_v23 = vld [vmem:[%s13821_s13 + $0x200] sm:$0xf]  ;;  %v8527_v25 = vld [vmem:[%s13821_s13 + $0x20c] sm:$0xf0]  ;;  %v6366_v35 = vor.u32 %v8495_v22, %v6365_v21  ;;  %1693 = vmatpush.bf16.msra.mxu3 %v6638_v24 }
  0x30   :  { %v6621_v26 = vld [vmem:[%s13821_s13 + $0x300] sm:$0xf]  ;;  %v8559_v27 = vld [vmem:[%s13821_s13 + $0x30c] sm:$0xf0]  ;;  %v6494_v36 = vor.u32 %v8527_v25, %v6493_v23  ;;  %1655 = vmatpush.bf16.msra.mxu0 %v6238_v31 }
  0x31   :  { %v6861_v28 = vld [vmem:[%s13821_s13 + $0x4e0] sm:$0xf]  ;;  %v8619_v29 = vld [vmem:[%s13821_s13 + $0x4ec] sm:$0xf0]  ;;  %v6622_v39 = vor.u32 %v8559_v27, %v6621_v26  ;;  %1668 = vmatpush.bf16.msra.mxu1 %v6366_v35 }
  0x32   :  { %v6989_v30 = vld [vmem:[%s13821_s13 + $0x5e0] sm:$0xf]  ;;  %v8651_v32 = vld [vmem:[%s13821_s13 + $0x5ec] sm:$0xf0]  ;;  %v6862_v40 = vor.u32 %v8619_v29, %v6861_v28  ;;  %1681 = vmatpush.bf16.msra.mxu2 %v6494_v36 }
  0x33   :  { %v7117_v33 = vld [vmem:[%s13821_s13 + $0x6e0] sm:$0xf]  ;;  %v8683_v34 = vld [vmem:[%s13821_s13 + $0x6ec] sm:$0xf0]  ;;  %v6990_v41 = vor.u32 %v8651_v32, %v6989_v30  ;;  %1694 = vmatpush.bf16.msra.mxu3 %v6622_v39 }
  0x34   :  { %v7245_v37 = vld [vmem:[%s13821_s13 + $0x7e0] sm:$0xf]  ;;  %v8715_v38 = vld [vmem:[%s13821_s13 + $0x7ec] sm:$0xf0]  ;;  %v7118_v42 = vor.u32 %v8683_v34, %v7117_v33  ;;  %1700 = vmatpush.bf16.msrb.mxu0 %v6862_v40 }
  0x35   :  { %v6845_v43 = vld [vmem:[%s13821_s13 + $0x4c0] sm:$0xf]  ;;  %v8615_v44 = vld [vmem:[%s13821_s13 + $0x4cc] sm:$0xf0]  ;;  %v7246_v46 = vor.u32 %v8715_v38, %v7245_v37  ;;  %1713 = vmatpush.bf16.msrb.mxu1 %v6990_v41 }
  0x36   :  { %v6973_v45 = vld [vmem:[%s13821_s13 + $0x5c0] sm:$0xf]  ;;  %v8647_v47 = vld [vmem:[%s13821_s13 + $0x5cc] sm:$0xf0]  ;;  %v6846_v53 = vor.u32 %v8615_v44, %v6845_v43  ;;  %1726 = vmatpush.bf16.msrb.mxu2 %v7118_v42 }
  0x37   :  { %v7101_v48 = vld [vmem:[%s13821_s13 + $0x6c0] sm:$0xf]  ;;  %v8679_v49 = vld [vmem:[%s13821_s13 + $0x6cc] sm:$0xf0]  ;;  %v6974_v54 = vor.u32 %v8647_v47, %v6973_v45  ;;  %1739 = vmatpush.bf16.msrb.mxu3 %v7246_v46  ;;  %v82_v45 = vld [vmem:[%s13822_s27 + $0x8] sm:$0xff] }
  0x38   :  { %v7229_v50 = vld [vmem:[%s13821_s13 + $0x7c0] sm:$0xf]  ;;  %v8711_v51 = vld [vmem:[%s13821_s13 + $0x7cc] sm:$0xf0]  ;;  %v7102_v55 = vor.u32 %v8679_v49, %v7101_v48  ;;  %1701 = vmatpush.bf16.msrb.mxu0 %v6846_v53  ;;  %87 = vst [vmem:[#allocation1 + $0x20] ss:$4 sm:$0xff] %v82_v45 }
  0x39   :  { %v81_v52 = vld [vmem:[%s13822_s27] sm:$0xff]  ;;  %v8611_v57 = vld [vmem:[%s13821_s13 + $0x4ac] sm:$0xf0]  ;;  %v7230_v59 = vor.u32 %v8711_v51, %v7229_v50  ;;  %1714 = vmatpush.bf16.msrb.mxu1 %v6974_v54 }
  0x3a   :  { %85 = vst [vmem:[#allocation1] ss:$4 sm:$0xff] %v81_v52  ;;  %v6829_v56 = vld [vmem:[%s13821_s13 + $0x4a0] sm:$0xf]  ;;  %v8643_v60 = vld [vmem:[%s13821_s13 + $0x5ac] sm:$0xf0]  ;;  %1727 = vmatpush.bf16.msrb.mxu2 %v7102_v55 }
  0x3b   :  { %v6957_v58 = vld [vmem:[%s13821_s13 + $0x5a0] sm:$0xf]  ;;  %v8675_v62 = vld [vmem:[%s13821_s13 + $0x6ac] sm:$0xf0]  ;;  %v6830_v1 = vor.u32 %v8611_v57, %v6829_v56  ;;  %1740 = vmatpush.bf16.msrb.mxu3 %v7230_v59 }
  0x3c   :  { %v7085_v61 = vld [vmem:[%s13821_s13 + $0x6a0] sm:$0xf]  ;;  %v8707_v0 = vld [vmem:[%s13821_s13 + $0x7ac] sm:$0xf0]  ;;  %v6958_v4 = vor.u32 %v8643_v60, %v6957_v58 }
  0x3d   :  { %v7213_v63 = vld [vmem:[%s13821_s13 + $0x7a0] sm:$0xf]  ;;  %v8607_v3 = vld [vmem:[%s13821_s13 + $0x48c] sm:$0xf0]  ;;  %v7086_v5 = vor.u32 %v8675_v62, %v7085_v61  ;;  %1702 = vmatpush.bf16.msrb.mxu0 %v6830_v1 }
  0x3e   :  { %v6813_v2 = vld [vmem:[%s13821_s13 + $0x480] sm:$0xf]  ;;  %v8639_v7 = vld [vmem:[%s13821_s13 + $0x58c] sm:$0xf0]  ;;  %v7214_v9 = vor.u32 %v8707_v0, %v7213_v63  ;;  %1715 = vmatpush.bf16.msrb.mxu1 %v6958_v4 }
  0x3f   :  { %v6941_v6 = vld [vmem:[%s13821_s13 + $0x580] sm:$0xf]  ;;  %v8671_v10 = vld [vmem:[%s13821_s13 + $0x68c] sm:$0xf0]  ;;  %v6814_v15 = vor.u32 %v8607_v3, %v6813_v2  ;;  %1728 = vmatpush.bf16.msrb.mxu2 %v7086_v5  ;;  %v8489_v5 = vld [vmem:[%s13821_s13 + $0xe4] sm:$0xf] }
  0x40   :  { %v7069_v8 = vld [vmem:[%s13821_s13 + $0x680] sm:$0xf]  ;;  %v8703_v12 = vld [vmem:[%s13821_s13 + $0x78c] sm:$0xf0]  ;;  %v6942_v16 = vor.u32 %v8639_v7, %v6941_v6  ;;  %1741 = vmatpush.bf16.msrb.mxu3 %v7214_v9  ;;  %v6351_v6 = vld [vmem:[%s13821_s13 + $0xf0] sm:$0xf0] }
  0x41   :  { %v7197_v11 = vld [vmem:[%s13821_s13 + $0x780] sm:$0xf]  ;;  %v90_v13 = vld.sshfl [vmem:[#allocation1 + $0x10] sm:$0xff pattern:$0x73625140]  ;;  %v7070_v21 = vor.u32 %v8671_v10, %v7069_v8  ;;  %1703 = vmatpush.bf16.msrb.mxu0 %v6814_v15  ;;  %v5974_v10 = vld [vmem:[%s13823_s28 + $0x18] sm:$0xff] }
  0x42   :  { %v88_v14 = vld.sshfl [vmem:[#allocation1] sm:$0xff pattern:$0x73625140]  ;;  %v9498_v17 = vpack.c.bf16 %v90_v13, %v90_v13  ;;  %v91_v19 = vld.sshfl [vmem:[#allocation1 + $0x18] sm:$0xff pattern:$0x73625140]  ;;  %v7198_v27 = vor.u32 %v8703_v12, %v7197_v11  ;;  %1716 = vmatpush.bf16.msrb.mxu1 %v6942_v16 }
  0x43   :  { %v9500_v18 = vpack.c.bf16 %v88_v14, %v88_v14  ;;  %v89_v20 = vld.sshfl [vmem:[#allocation1 + $0x8] sm:$0xff pattern:$0x73625140]  ;;  %v6797_v22 = vld [vmem:[%s13821_s13 + $0x460] sm:$0xf]  ;;  %v9511_v25 = vpack.c.bf16 %v91_v19, %v91_v19  ;;  %1729 = vmatpush.bf16.msrb.mxu2 %v7070_v21 }
  0x44   :  { %v8603_v23 = vld [vmem:[%s13821_s13 + $0x46c] sm:$0xf0]  ;;  %v6925_v24 = vld [vmem:[%s13821_s13 + $0x560] sm:$0xf]  ;;  %v9513_v26 = vpack.c.bf16 %v89_v20, %v89_v20  ;;  %1682 = vmatmul.bf16.vlgmr.msra.gmra.mxu2 %v9498_v17  ;;  %1742 = vmatpush.bf16.msrb.mxu3 %v7198_v27  ;;  %v8521_v8 = vld [vmem:[%s13821_s13 + $0x1e4] sm:$0xf] }
  0x45   :  { %v8635_v28 = vld [vmem:[%s13821_s13 + $0x56c] sm:$0xf0]  ;;  %v7053_v29 = vld [vmem:[%s13821_s13 + $0x660] sm:$0xf]  ;;  %1656 = vmatmul.bf16.vlgmr.msra.gmra.mxu0 %v9500_v18  ;;  %1695 = vmatmul.bf16.vlgmr.msra.gmra.mxu3 %v9511_v25  ;;  %v6798_v33 = vor.u32 %v8603_v23, %v6797_v22  ;;  %v6479_v9 = vld [vmem:[%s13821_s13 + $0x1f0] sm:$0xf0] }
  0x46   :  { %v8667_v30 = vld [vmem:[%s13821_s13 + $0x66c] sm:$0xf0]  ;;  %v7181_v31 = vld [vmem:[%s13821_s13 + $0x760] sm:$0xf]  ;;  %1669 = vmatmul.bf16.vlgmr.msra.gmra.mxu1 %v9513_v26  ;;  %v6926_v34 = vor.u32 %v8635_v28, %v6925_v24  ;;  %v8553_v11 = vld [vmem:[%s13821_s13 + $0x2e4] sm:$0xf]  ;;  %v6354_v24 = vor.u32 %v8489_v5, %v6351_v6 }
  0x47   :  { %v8699_v32 = vld [vmem:[%s13821_s13 + $0x76c] sm:$0xf0]  ;;  %v7054_v35 = vor.u32 %v8667_v30, %v7053_v29  ;;  %v6781_v36 = vld [vmem:[%s13821_s13 + $0x440] sm:$0xf]  ;;  %1704 = vmatpush.bf16.msrb.mxu0 %v6798_v33  ;;  %v6607_v12 = vld [vmem:[%s13821_s13 + $0x2f0] sm:$0xf0]  ;;  %v6482_v29 = vor.u32 %v8521_v8, %v6479_v9 }
  0x48   :  { %v8599_v37 = vld [vmem:[%s13821_s13 + $0x44c] sm:$0xf0]  ;;  %v6909_v38 = vld [vmem:[%s13821_s13 + $0x540] sm:$0xf]  ;;  %v7182_v39 = vor.u32 %v8699_v32, %v7181_v31  ;;  %1717 = vmatpush.bf16.msrb.mxu1 %v6926_v34  ;;  %v8585_v13 = vld [vmem:[%s13821_s13 + $0x3e4] sm:$0xf]  ;;  %v6610_v30 = vor.u32 %v8553_v11, %v6607_v12 }
  0x49   :  { %v8631_v40 = vld [vmem:[%s13821_s13 + $0x54c] sm:$0xf0]  ;;  %v7037_v41 = vld [vmem:[%s13821_s13 + $0x640] sm:$0xf]  ;;  %v6782_v46 = vor.u32 %v8599_v37, %v6781_v36  ;;  %1730 = vmatpush.bf16.msrb.mxu2 %v7054_v35  ;;  %v6735_v21 = vld [vmem:[%s13821_s13 + $0x3f0] sm:$0xf0] }
  0x4a   :  { %v8663_v42 = vld [vmem:[%s13821_s13 + $0x64c] sm:$0xf0]  ;;  %v7165_v43 = vld [vmem:[%s13821_s13 + $0x740] sm:$0xf]  ;;  %v6910_v48 = vor.u32 %v8631_v40, %v6909_v38  ;;  %1743 = vmatpush.bf16.msrb.mxu3 %v7182_v39  ;;  %v8485_v22 = vld [vmem:[%s13821_s13 + $0xc4] sm:$0xf]  ;;  %v6738_v33 = vor.u32 %v8585_v13, %v6735_v21 }
  0x4b   :  { %v8695_v44 = vld [vmem:[%s13821_s13 + $0x74c] sm:$0xf0]  ;;  %v6765_v47 = vld [vmem:[%s13821_s13 + $0x420] sm:$0xf]  ;;  %v7038_v49 = vor.u32 %v8663_v42, %v7037_v41  ;;  %1705 = vmatpush.bf16.msrb.mxu0 %v6782_v46  ;;  %v6335_v28 = vld [vmem:[%s13821_s13 + $0xd0] sm:$0xf0] }
  0x4c   :  { %v8595_v50 = vld [vmem:[%s13821_s13 + $0x42c] sm:$0xf0]  ;;  %v6893_v51 = vld [vmem:[%s13821_s13 + $0x520] sm:$0xf]  ;;  %v7166_v53 = vor.u32 %v8695_v44, %v7165_v43  ;;  %1718 = vmatpush.bf16.msrb.mxu1 %v6910_v48  ;;  %v8517_v31 = vld [vmem:[%s13821_s13 + $0x1c4] sm:$0xf]  ;;  %v6338_v42 = vor.u32 %v8485_v22, %v6335_v28 }
  0x4d   :  { %v8627_v52 = vld [vmem:[%s13821_s13 + $0x52c] sm:$0xf0]  ;;  %v7021_v54 = vld [vmem:[%s13821_s13 + $0x620] sm:$0xf]  ;;  %v6766_v60 = vor.u32 %v8595_v50, %v6765_v47  ;;  %1731 = vmatpush.bf16.msrb.mxu2 %v7038_v49  ;;  %v6463_v35 = vld [vmem:[%s13821_s13 + $0x1d0] sm:$0xf0] }
  0x4e   :  { %v8659_v55 = vld [vmem:[%s13821_s13 + $0x62c] sm:$0xf0]  ;;  %v7149_v56 = vld [vmem:[%s13821_s13 + $0x720] sm:$0xf]  ;;  %v6894_v1 = vor.u32 %v8627_v52, %v6893_v51  ;;  %1744 = vmatpush.bf16.msrb.mxu3 %v7166_v53  ;;  %v8549_v36 = vld [vmem:[%s13821_s13 + $0x2c4] sm:$0xf]  ;;  %v6466_v44 = vor.u32 %v8517_v31, %v6463_v35 }
  0x4f   :  { %v8691_v57 = vld [vmem:[%s13821_s13 + $0x72c] sm:$0xf0]  ;;  %v6749_v58 = vld [vmem:[%s13821_s13 + $0x400] sm:$0xf]  ;;  %v7022_v2 = vor.u32 %v8659_v55, %v7021_v54  ;;  %1706 = vmatpush.bf16.msrb.mxu0 %v6766_v60  ;;  %v6591_v37 = vld [vmem:[%s13821_s13 + $0x2d0] sm:$0xf0] }
  0x50   :  { %v8591_v59 = vld [vmem:[%s13821_s13 + $0x40c] sm:$0xf0]  ;;  %v6877_v61 = vld [vmem:[%s13821_s13 + $0x500] sm:$0xf]  ;;  %v7150_v7 = vor.u32 %v8691_v57, %v7149_v56  ;;  %1719 = vmatpush.bf16.msrb.mxu1 %v6894_v1  ;;  %v8581_v40 = vld [vmem:[%s13821_s13 + $0x3c4] sm:$0xf]  ;;  %v6594_v45 = vor.u32 %v8549_v36, %v6591_v37 }
  0x51   :  { %v8623_v62 = vld [vmem:[%s13821_s13 + $0x50c] sm:$0xf0]  ;;  %v7005_v63 = vld [vmem:[%s13821_s13 + $0x600] sm:$0xf]  ;;  %v6750_v14 = vor.u32 %v8591_v59, %v6749_v58  ;;  %1732 = vmatpush.bf16.msrb.mxu2 %v7022_v2  ;;  %v6719_v41 = vld [vmem:[%s13821_s13 + $0x3d0] sm:$0xf0] }
  0x52   :  { %v8655_v0 = vld [vmem:[%s13821_s13 + $0x60c] sm:$0xf0]  ;;  %v7133_v3 = vld [vmem:[%s13821_s13 + $0x700] sm:$0xf]  ;;  %v6878_v19 = vor.u32 %v8623_v62, %v6877_v61  ;;  %1745 = vmatpush.bf16.msrb.mxu3 %v7150_v7  ;;  %v8481_v46 = vld [vmem:[%s13821_s13 + $0xa4] sm:$0xf]  ;;  %v6722_v49 = vor.u32 %v8581_v40, %v6719_v41 }
  0x53   :  { %v8687_v4 = vld [vmem:[%s13821_s13 + $0x70c] sm:$0xf0]  ;;  %v95_v16 = vld.sshfl [vmem:[#allocation1 + $0x38] sm:$0xff pattern:$0x73625140]  ;;  %v7006_v20 = vor.u32 %v8655_v0, %v7005_v63  ;;  %1707 = vmatpush.bf16.msrb.mxu0 %v6750_v14 }
  0x54   :  { %v94_v15 = vld.sshfl [vmem:[#allocation1 + $0x30] sm:$0xff pattern:$0x73625140]  ;;  %v7134_v23 = vor.u32 %v8687_v4, %v7133_v3  ;;  %v92_v27 = vld.sshfl [vmem:[#allocation1 + $0x20] sm:$0xff pattern:$0x73625140]  ;;  %1720 = vmatpush.bf16.msrb.mxu1 %v6878_v19  ;;  %v9658_v39 = vpack.c.bf16 %v95_v16, %v95_v16 }
  0x55   :  { %5985 = vst [vmem:[#allocation1 + $0x30] ss:$2 sm:$0xff] %v5974_v10  ;;  %v93_v32 = vld.sshfl [vmem:[#allocation1 + $0x28] sm:$0xff pattern:$0x73625140]  ;;  %v9645_v34 = vpack.c.bf16 %v94_v15, %v94_v15  ;;  %1733 = vmatpush.bf16.msrb.mxu2 %v7006_v20  ;;  %v9656_v38 = vpack.c.bf16 %v92_v27, %v92_v27 }
  0x56   :  { %1746 = vmatpush.bf16.msrb.mxu3 %v7134_v23  ;;  %v9666_v43 = vpack.c.bf16 %v93_v32, %v93_v32  ;;  %v6319_v47 = vld [vmem:[%s13821_s13 + $0xb0] sm:$0xf0]  ;;  %v8513_v48 = vld [vmem:[%s13821_s13 + $0x1a4] sm:$0xf] }
  0x57   :  { %1752 = vmatpush.bf16.msra.mxu0 %v6354_v24  ;;  %v6447_v50 = vld [vmem:[%s13821_s13 + $0x1b0] sm:$0xf0]  ;;  %v8545_v51 = vld [vmem:[%s13821_s13 + $0x2a4] sm:$0xf]  ;;  %v6322_v55 = vor.u32 %v8481_v46, %v6319_v47 }
  0x58   :  { %1765 = vmatpush.bf16.msra.mxu1 %v6482_v29  ;;  %1734 = vmatmul.bf16.vlgmr.msrb.gmra.mxu2 %v9645_v34  ;;  %v6575_v52 = vld [vmem:[%s13821_s13 + $0x2b0] sm:$0xf0]  ;;  %v8577_v53 = vld [vmem:[%s13821_s13 + $0x3a4] sm:$0xf]  ;;  %v6450_v56 = vor.u32 %v8513_v48, %v6447_v50 }
  0x59   :  { %1778 = vmatpush.bf16.msra.mxu2 %v6610_v30  ;;  %1708 = vmatmul.bf16.vlgmr.msrb.gmra.mxu0 %v9656_v38  ;;  %v6703_v54 = vld [vmem:[%s13821_s13 + $0x3b0] sm:$0xf0]  ;;  %v6578_v57 = vor.u32 %v8545_v51, %v6575_v52  ;;  %v8477_v58 = vld [vmem:[%s13821_s13 + $0x84] sm:$0xf] }
  0x5a   :  { %1791 = vmatpush.bf16.msra.mxu3 %v6738_v33  ;;  %1721 = vmatmul.bf16.vlgmr.msrb.gmra.mxu1 %v9666_v43  ;;  %v6303_v59 = vld [vmem:[%s13821_s13 + $0x90] sm:$0xf0]  ;;  %v8509_v60 = vld [vmem:[%s13821_s13 + $0x184] sm:$0xf]  ;;  %v6706_v61 = vor.u32 %v8577_v53, %v6703_v54 }
  0x5b   :  { %1747 = vmatmul.bf16.vlgmr.msrb.gmra.mxu3 %v9658_v39  ;;  %1753 = vmatpush.bf16.msra.mxu0 %v6338_v42  ;;  %v6431_v62 = vld [vmem:[%s13821_s13 + $0x190] sm:$0xf0]  ;;  %v8541_v63 = vld [vmem:[%s13821_s13 + $0x284] sm:$0xf]  ;;  %v6306_v3 = vor.u32 %v8477_v58, %v6303_v59 }
  0x5c   :  { %1766 = vmatpush.bf16.msra.mxu1 %v6466_v44  ;;  %v6559_v0 = vld [vmem:[%s13821_s13 + $0x290] sm:$0xf0]  ;;  %v8573_v1 = vld [vmem:[%s13821_s13 + $0x384] sm:$0xf]  ;;  %v6434_v4 = vor.u32 %v8509_v60, %v6431_v62 }
  0x5d   :  { %1779 = vmatpush.bf16.msra.mxu2 %v6594_v45  ;;  %v6687_v2 = vld [vmem:[%s13821_s13 + $0x390] sm:$0xf0]  ;;  %v6562_v5 = vor.u32 %v8541_v63, %v6559_v0  ;;  %v8473_v6 = vld [vmem:[%s13821_s13 + $0x64] sm:$0xf] }
  0x5e   :  { %1792 = vmatpush.bf16.msra.mxu3 %v6722_v49  ;;  %v6287_v7 = vld [vmem:[%s13821_s13 + $0x70] sm:$0xf0]  ;;  %v8505_v8 = vld [vmem:[%s13821_s13 + $0x164] sm:$0xf]  ;;  %v6690_v9 = vor.u32 %v8573_v1, %v6687_v2 }
  0x5f   :  { %1754 = vmatpush.bf16.msra.mxu0 %v6322_v55  ;;  %v6415_v10 = vld [vmem:[%s13821_s13 + $0x170] sm:$0xf0]  ;;  %v8537_v11 = vld [vmem:[%s13821_s13 + $0x264] sm:$0xf]  ;;  %v6290_v15 = vor.u32 %v8473_v6, %v6287_v7 }
  0x60   :  { %1767 = vmatpush.bf16.msra.mxu1 %v6450_v56  ;;  %v6543_v12 = vld [vmem:[%s13821_s13 + $0x270] sm:$0xf0]  ;;  %v8569_v13 = vld [vmem:[%s13821_s13 + $0x364] sm:$0xf]  ;;  %v6418_v16 = vor.u32 %v8505_v8, %v6415_v10 }
  0x61   :  { %1780 = vmatpush.bf16.msra.mxu2 %v6578_v57  ;;  %v6671_v14 = vld [vmem:[%s13821_s13 + $0x370] sm:$0xf0]  ;;  %v6546_v19 = vor.u32 %v8537_v11, %v6543_v12  ;;  %v8469_v20 = vld [vmem:[%s13821_s13 + $0x44] sm:$0xf] }
  0x62   :  { %1793 = vmatpush.bf16.msra.mxu3 %v6706_v61  ;;  %v6271_v21 = vld [vmem:[%s13821_s13 + $0x50] sm:$0xf0]  ;;  %v8501_v22 = vld [vmem:[%s13821_s13 + $0x144] sm:$0xf]  ;;  %v6674_v23 = vor.u32 %v8569_v13, %v6671_v14 }
  0x63   :  { %1755 = vmatpush.bf16.msra.mxu0 %v6306_v3  ;;  %v6399_v24 = vld [vmem:[%s13821_s13 + $0x150] sm:$0xf0]  ;;  %v8533_v27 = vld [vmem:[%s13821_s13 + $0x244] sm:$0xf]  ;;  %v6274_v31 = vor.u32 %v8469_v20, %v6271_v21 }
  0x64   :  { %1768 = vmatpush.bf16.msra.mxu1 %v6434_v4  ;;  %v6527_v28 = vld [vmem:[%s13821_s13 + $0x250] sm:$0xf0]  ;;  %v8565_v29 = vld [vmem:[%s13821_s13 + $0x344] sm:$0xf]  ;;  %v6402_v32 = vor.u32 %v8501_v22, %v6399_v24 }
  0x65   :  { %1781 = vmatpush.bf16.msra.mxu2 %v6562_v5  ;;  %v6655_v30 = vld [vmem:[%s13821_s13 + $0x350] sm:$0xf0]  ;;  %v6530_v33 = vor.u32 %v8533_v27, %v6527_v28  ;;  %v8465_v35 = vld [vmem:[%s13821_s13 + $0x24] sm:$0xf] }
  0x66   :  { %1794 = vmatpush.bf16.msra.mxu3 %v6690_v9  ;;  %v6255_v36 = vld [vmem:[%s13821_s13 + $0x30] sm:$0xf0]  ;;  %v8497_v37 = vld [vmem:[%s13821_s13 + $0x124] sm:$0xf]  ;;  %v6658_v40 = vor.u32 %v8565_v29, %v6655_v30 }
  0x67   :  { %1756 = vmatpush.bf16.msra.mxu0 %v6290_v15  ;;  %v6383_v41 = vld [vmem:[%s13821_s13 + $0x130] sm:$0xf0]  ;;  %v8529_v42 = vld [vmem:[%s13821_s13 + $0x224] sm:$0xf]  ;;  %v6258_v47 = vor.u32 %v8465_v35, %v6255_v36 }
  0x68   :  { %1769 = vmatpush.bf16.msra.mxu1 %v6418_v16  ;;  %v6511_v44 = vld [vmem:[%s13821_s13 + $0x230] sm:$0xf0]  ;;  %v8561_v45 = vld [vmem:[%s13821_s13 + $0x324] sm:$0xf]  ;;  %v6386_v50 = vor.u32 %v8497_v37, %v6383_v41 }
  0x69   :  { %1782 = vmatpush.bf16.msra.mxu2 %v6546_v19  ;;  %v6639_v46 = vld [vmem:[%s13821_s13 + $0x330] sm:$0xf0]  ;;  %v8461_v48 = vld [vmem:[%s13821_s13 + $0x4] sm:$0xf]  ;;  %v6514_v51 = vor.u32 %v8529_v42, %v6511_v44 }
  0x6a   :  { %1795 = vmatpush.bf16.msra.mxu3 %v6674_v23  ;;  %v6239_v49 = vld [vmem:[%s13821_s13 + $0x10] sm:$0xf0]  ;;  %v8493_v52 = vld [vmem:[%s13821_s13 + $0x104] sm:$0xf]  ;;  %v6642_v55 = vor.u32 %v8561_v45, %v6639_v46 }
  0x6b   :  { %1757 = vmatpush.bf16.msra.mxu0 %v6274_v31  ;;  %v6367_v53 = vld [vmem:[%s13821_s13 + $0x110] sm:$0xf0]  ;;  %v8525_v54 = vld [vmem:[%s13821_s13 + $0x204] sm:$0xf]  ;;  %v6242_v62 = vor.u32 %v8461_v48, %v6239_v49 }
  0x6c   :  { %1770 = vmatpush.bf16.msra.mxu1 %v6402_v32  ;;  %v6495_v56 = vld [vmem:[%s13821_s13 + $0x210] sm:$0xf0]  ;;  %v8557_v57 = vld [vmem:[%s13821_s13 + $0x304] sm:$0xf]  ;;  %v6370_v2 = vor.u32 %v8493_v52, %v6367_v53 }
  0x6d   :  { %1783 = vmatpush.bf16.msra.mxu2 %v6530_v33  ;;  %v6623_v58 = vld [vmem:[%s13821_s13 + $0x310] sm:$0xf0]  ;;  %v8617_v59 = vld [vmem:[%s13821_s13 + $0x4e4] sm:$0xf]  ;;  %v6498_v3 = vor.u32 %v8525_v54, %v6495_v56 }
  0x6e   :  { %1796 = vmatpush.bf16.msra.mxu3 %v6658_v40  ;;  %v6863_v60 = vld [vmem:[%s13821_s13 + $0x4f0] sm:$0xf0]  ;;  %v8649_v61 = vld [vmem:[%s13821_s13 + $0x5e4] sm:$0xf]  ;;  %v6626_v6 = vor.u32 %v8557_v57, %v6623_v58 }
  0x6f   :  { %1758 = vmatpush.bf16.msra.mxu0 %v6258_v47  ;;  %v6991_v63 = vld [vmem:[%s13821_s13 + $0x5f0] sm:$0xf0]  ;;  %v8681_v0 = vld [vmem:[%s13821_s13 + $0x6e4] sm:$0xf]  ;;  %v6866_v7 = vor.u32 %v8617_v59, %v6863_v60 }
  0x70   :  { %v7119_v1 = vld [vmem:[%s13821_s13 + $0x6f0] sm:$0xf0]  ;;  %1771 = vmatpush.bf16.msra.mxu1 %v6386_v50  ;;  %v8713_v4 = vld [vmem:[%s13821_s13 + $0x7e4] sm:$0xf]  ;;  %v6994_v8 = vor.u32 %v8649_v61, %v6991_v63 }
  0x71   :  { %1784 = vmatpush.bf16.msra.mxu2 %v6514_v51  ;;  %v7247_v5 = vld [vmem:[%s13821_s13 + $0x7f0] sm:$0xf0]  ;;  %v7122_v9 = vor.u32 %v8681_v0, %v7119_v1  ;;  %v8613_v10 = vld [vmem:[%s13821_s13 + $0x4c4] sm:$0xf] }
  0x72   :  { %1797 = vmatpush.bf16.msra.mxu3 %v6642_v55  ;;  %v6847_v11 = vld [vmem:[%s13821_s13 + $0x4d0] sm:$0xf0]  ;;  %v8645_v12 = vld [vmem:[%s13821_s13 + $0x5c4] sm:$0xf]  ;;  %v7250_v13 = vor.u32 %v8713_v4, %v7247_v5 }
  0x73   :  { %1759 = vmatpush.bf16.msra.mxu0 %v6242_v62  ;;  %v6975_v14 = vld [vmem:[%s13821_s13 + $0x5d0] sm:$0xf0]  ;;  %v8677_v15 = vld [vmem:[%s13821_s13 + $0x6c4] sm:$0xf]  ;;  %v6850_v21 = vor.u32 %v8613_v10, %v6847_v11 }
  0x74   :  { %v7103_v16 = vld [vmem:[%s13821_s13 + $0x6d0] sm:$0xf0]  ;;  %1772 = vmatpush.bf16.msra.mxu1 %v6370_v2  ;;  %v8709_v19 = vld [vmem:[%s13821_s13 + $0x7c4] sm:$0xf]  ;;  %v6978_v22 = vor.u32 %v8645_v12, %v6975_v14 }
  0x75   :  { %1785 = vmatpush.bf16.msra.mxu2 %v6498_v3  ;;  %v7231_v20 = vld [vmem:[%s13821_s13 + $0x7d0] sm:$0xf0]  ;;  %v7106_v23 = vor.u32 %v8677_v15, %v7103_v16  ;;  %v8609_v24 = vld [vmem:[%s13821_s13 + $0x4a4] sm:$0xf] }
  0x76   :  { %1798 = vmatpush.bf16.msra.mxu3 %v6626_v6  ;;  %v6831_v27 = vld [vmem:[%s13821_s13 + $0x4b0] sm:$0xf0]  ;;  %v8641_v28 = vld [vmem:[%s13821_s13 + $0x5a4] sm:$0xf]  ;;  %v7234_v29 = vor.u32 %v8709_v19, %v7231_v20  ;;  %1760 = vmatmul.bf16.vlgmr.msra.gmra.mxu0 %v9500_v18 }
  0x77   :  { %1804 = vmatpush.bf16.msrb.mxu0 %v6866_v7  ;;  %v6959_v30 = vld [vmem:[%s13821_s13 + $0x5b0] sm:$0xf0]  ;;  %v8673_v31 = vld [vmem:[%s13821_s13 + $0x6a4] sm:$0xf]  ;;  %v6834_v36 = vor.u32 %v8609_v24, %v6831_v27  ;;  %1773 = vmatmul.bf16.vlgmr.msra.gmra.mxu1 %v9513_v26 }
  0x78   :  { %1817 = vmatpush.bf16.msrb.mxu1 %v6994_v8  ;;  %v7087_v32 = vld [vmem:[%s13821_s13 + $0x6b0] sm:$0xf0]  ;;  %1786 = vmatmul.bf16.vlgmr.msra.gmra.mxu2 %v9498_v17  ;;  %v8705_v33 = vld [vmem:[%s13821_s13 + $0x7a4] sm:$0xf]  ;;  %v6962_v37 = vor.u32 %v8641_v28, %v6959_v30 }
  0x79   :  { %1830 = vmatpush.bf16.msrb.mxu2 %v7122_v9  ;;  %v7215_v35 = vld [vmem:[%s13821_s13 + $0x7b0] sm:$0xf0]  ;;  %1799 = vmatmul.bf16.vlgmr.msra.gmra.mxu3 %v9511_v25  ;;  %v7090_v40 = vor.u32 %v8673_v31, %v7087_v32  ;;  %v8605_v41 = vld [vmem:[%s13821_s13 + $0x484] sm:$0xf] }
  0x7a   :  { %1843 = vmatpush.bf16.msrb.mxu3 %v7250_v13  ;;  %v6815_v42 = vld [vmem:[%s13821_s13 + $0x490] sm:$0xf0]  ;;  %v8637_v44 = vld [vmem:[%s13821_s13 + $0x584] sm:$0xf]  ;;  %v7218_v45 = vor.u32 %v8705_v33, %v7215_v35 }
  0x7b   :  { %1805 = vmatpush.bf16.msrb.mxu0 %v6850_v21  ;;  %v6943_v46 = vld [vmem:[%s13821_s13 + $0x590] sm:$0xf0]  ;;  %v8669_v47 = vld [vmem:[%s13821_s13 + $0x684] sm:$0xf]  ;;  %v6818_v51 = vor.u32 %v8605_v41, %v6815_v42  ;;  %v6357_v42 = vld [vmem:[%s13821_s13 + $0xe8] sm:$0xf] }
  0x7c   :  { %1818 = vmatpush.bf16.msrb.mxu1 %v6978_v22  ;;  %v7071_v48 = vld [vmem:[%s13821_s13 + $0x690] sm:$0xf0]  ;;  %v8701_v49 = vld [vmem:[%s13821_s13 + $0x784] sm:$0xf]  ;;  %v6946_v52 = vor.u32 %v8637_v44, %v6943_v46  ;;  %v8492_v44 = vld [vmem:[%s13821_s13 + $0xf4] sm:$0xf0] }
  0x7d   :  { %1831 = vmatpush.bf16.msrb.mxu2 %v7106_v23  ;;  %v7199_v50 = vld [vmem:[%s13821_s13 + $0x790] sm:$0xf0]  ;;  %v7074_v53 = vor.u32 %v8669_v47, %v7071_v48  ;;  %v8601_v54 = vld [vmem:[%s13821_s13 + $0x464] sm:$0xf]  ;;  %v8524_v47 = vld [vmem:[%s13821_s13 + $0x1f4] sm:$0xf0] }
  0x7e   :  { %1844 = vmatpush.bf16.msrb.mxu3 %v7234_v29  ;;  %v6799_v55 = vld [vmem:[%s13821_s13 + $0x470] sm:$0xf0]  ;;  %v8633_v56 = vld [vmem:[%s13821_s13 + $0x564] sm:$0xf]  ;;  %v7202_v57 = vor.u32 %v8701_v49, %v7199_v50  ;;  %v6613_v48 = vld [vmem:[%s13821_s13 + $0x2e8] sm:$0xf] }
  0x7f   :  { %1806 = vmatpush.bf16.msrb.mxu0 %v6834_v36  ;;  %v6927_v58 = vld [vmem:[%s13821_s13 + $0x570] sm:$0xf0]  ;;  %v8665_v59 = vld [vmem:[%s13821_s13 + $0x664] sm:$0xf]  ;;  %v6802_v63 = vor.u32 %v8601_v54, %v6799_v55  ;;  %v8556_v49 = vld [vmem:[%s13821_s13 + $0x2f4] sm:$0xf0]  ;;  %v6358_v55 = vor.u32 %v8492_v44, %v6357_v42 }
  0x80   :  { %1819 = vmatpush.bf16.msrb.mxu1 %v6962_v37  ;;  %v7055_v60 = vld [vmem:[%s13821_s13 + $0x670] sm:$0xf0]  ;;  %v8697_v61 = vld [vmem:[%s13821_s13 + $0x764] sm:$0xf]  ;;  %v6930_v0 = vor.u32 %v8633_v56, %v6927_v58  ;;  %v6341_v58 = vld [vmem:[%s13821_s13 + $0xc8] sm:$0xf] }
  0x81   :  { %1832 = vmatpush.bf16.msrb.mxu2 %v7090_v40  ;;  %v7183_v62 = vld [vmem:[%s13821_s13 + $0x770] sm:$0xf0]  ;;  %v7058_v1 = vor.u32 %v8665_v59, %v7055_v60  ;;  %v8597_v2 = vld [vmem:[%s13821_s13 + $0x444] sm:$0xf]  ;;  %v8488_v59 = vld [vmem:[%s13821_s13 + $0xd4] sm:$0xf0] }
  0x82   :  { %1845 = vmatpush.bf16.msrb.mxu3 %v7218_v45  ;;  %v6783_v3 = vld [vmem:[%s13821_s13 + $0x450] sm:$0xf0]  ;;  %v8629_v4 = vld [vmem:[%s13821_s13 + $0x544] sm:$0xf]  ;;  %v7186_v5 = vor.u32 %v8697_v61, %v7183_v62  ;;  %v6485_v45 = vld [vmem:[%s13821_s13 + $0x1e8] sm:$0xf] }
  0x83   :  { %1807 = vmatpush.bf16.msrb.mxu0 %v6818_v51  ;;  %v6911_v6 = vld [vmem:[%s13821_s13 + $0x550] sm:$0xf0]  ;;  %v8661_v7 = vld [vmem:[%s13821_s13 + $0x644] sm:$0xf]  ;;  %v6786_v11 = vor.u32 %v8597_v2, %v6783_v3  ;;  %v6486_v56 = vor.u32 %v8524_v47, %v6485_v45  ;;  %v6469_v60 = vld [vmem:[%s13821_s13 + $0x1c8] sm:$0xf]  ;;  %v6342_v3 = vor.u32 %v8488_v59, %v6341_v58 }
  0x84   :  { %1820 = vmatpush.bf16.msrb.mxu1 %v6946_v52  ;;  %v7039_v8 = vld [vmem:[%s13821_s13 + $0x650] sm:$0xf0]  ;;  %v8693_v9 = vld [vmem:[%s13821_s13 + $0x744] sm:$0xf]  ;;  %v6914_v12 = vor.u32 %v8629_v4, %v6911_v6  ;;  %v6741_v52 = vld [vmem:[%s13821_s13 + $0x3e8] sm:$0xf] }
  0x85   :  { %1833 = vmatpush.bf16.msrb.mxu2 %v7074_v53  ;;  %v7167_v10 = vld [vmem:[%s13821_s13 + $0x750] sm:$0xf0]  ;;  %v7042_v13 = vor.u32 %v8661_v7, %v7039_v8  ;;  %v8593_v14 = vld [vmem:[%s13821_s13 + $0x424] sm:$0xf]  ;;  %v8588_v53 = vld [vmem:[%s13821_s13 + $0x3f4] sm:$0xf0] }
  0x86   :  { %1846 = vmatpush.bf16.msrb.mxu3 %v7202_v57  ;;  %v6767_v15 = vld [vmem:[%s13821_s13 + $0x430] sm:$0xf0]  ;;  %v8625_v16 = vld [vmem:[%s13821_s13 + $0x524] sm:$0xf]  ;;  %v7170_v19 = vor.u32 %v8693_v9, %v7167_v10  ;;  %v6614_v57 = vor.u32 %v8556_v49, %v6613_v48  ;;  %v6742_v61 = vor.u32 %v8588_v53, %v6741_v52  ;;  %v8520_v62 = vld [vmem:[%s13821_s13 + $0x1d4] sm:$0xf0] }
  0x87   :  { %1808 = vmatpush.bf16.msrb.mxu0 %v6802_v63  ;;  %v6895_v20 = vld [vmem:[%s13821_s13 + $0x530] sm:$0xf0]  ;;  %v8657_v21 = vld [vmem:[%s13821_s13 + $0x624] sm:$0xf]  ;;  %v6770_v27 = vor.u32 %v8593_v14, %v6767_v15  ;;  %v6597_v63 = vld [vmem:[%s13821_s13 + $0x2c8] sm:$0xf]  ;;  %v6470_v4 = vor.u32 %v8520_v62, %v6469_v60 }
  0x88   :  { %1821 = vmatpush.bf16.msrb.mxu1 %v6930_v0  ;;  %v7023_v22 = vld [vmem:[%s13821_s13 + $0x630] sm:$0xf0]  ;;  %v8689_v23 = vld [vmem:[%s13821_s13 + $0x724] sm:$0xf]  ;;  %v6898_v30 = vor.u32 %v8625_v16, %v6895_v20  ;;  %v8552_v0 = vld [vmem:[%s13821_s13 + $0x2d4] sm:$0xf0] }
  0x89   :  { %1834 = vmatpush.bf16.msrb.mxu2 %v7058_v1  ;;  %v7151_v24 = vld [vmem:[%s13821_s13 + $0x730] sm:$0xf0]  ;;  %v8589_v28 = vld [vmem:[%s13821_s13 + $0x404] sm:$0xf]  ;;  %v7026_v31 = vor.u32 %v8657_v21, %v7023_v22  ;;  %v6725_v1 = vld [vmem:[%s13821_s13 + $0x3c8] sm:$0xf] }
  0x8a   :  { %1847 = vmatpush.bf16.msrb.mxu3 %v7186_v5  ;;  %v6751_v29 = vld [vmem:[%s13821_s13 + $0x410] sm:$0xf0]  ;;  %v8621_v32 = vld [vmem:[%s13821_s13 + $0x504] sm:$0xf]  ;;  %v7154_v36 = vor.u32 %v8689_v23, %v7151_v24  ;;  %v8584_v2 = vld [vmem:[%s13821_s13 + $0x3d4] sm:$0xf0]  ;;  %v6598_v5 = vor.u32 %v8552_v0, %v6597_v63 }
  0x8b   :  { %1809 = vmatpush.bf16.msrb.mxu0 %v6786_v11  ;;  %v6879_v33 = vld [vmem:[%s13821_s13 + $0x510] sm:$0xf0]  ;;  %v8653_v35 = vld [vmem:[%s13821_s13 + $0x604] sm:$0xf]  ;;  %v6754_v46 = vor.u32 %v8589_v28, %v6751_v29  ;;  %v6325_v6 = vld [vmem:[%s13821_s13 + $0xa8] sm:$0xf]  ;;  %v6726_v9 = vor.u32 %v8584_v2, %v6725_v1 }
  0x8c   :  { %1822 = vmatpush.bf16.msrb.mxu1 %v6914_v12  ;;  %v7007_v37 = vld [vmem:[%s13821_s13 + $0x610] sm:$0xf0]  ;;  %v8685_v40 = vld [vmem:[%s13821_s13 + $0x704] sm:$0xf]  ;;  %v6882_v50 = vor.u32 %v8621_v32, %v6879_v33  ;;  %v8484_v7 = vld [vmem:[%s13821_s13 + $0xb4] sm:$0xf0] }
  0x8d   :  { %1835 = vmatpush.bf16.msrb.mxu2 %v7042_v13  ;;  %v7135_v41 = vld [vmem:[%s13821_s13 + $0x710] sm:$0xf0]  ;;  %v7010_v51 = vor.u32 %v8653_v35, %v7007_v37  ;;  %v6453_v8 = vld [vmem:[%s13821_s13 + $0x1a8] sm:$0xf]  ;;  %v8516_v10 = vld [vmem:[%s13821_s13 + $0x1b4] sm:$0xf0]  ;;  %v6326_v15 = vor.u32 %v8484_v7, %v6325_v6 }
  0x8e   :  { %1848 = vmatpush.bf16.msrb.mxu3 %v7170_v19  ;;  %v7138_v54 = vor.u32 %v8685_v40, %v7135_v41  ;;  %v6581_v11 = vld [vmem:[%s13821_s13 + $0x2a8] sm:$0xf]  ;;  %v8548_v12 = vld [vmem:[%s13821_s13 + $0x2b4] sm:$0xf0]  ;;  %v6454_v16 = vor.u32 %v8516_v10, %v6453_v8 }
  0x8f   :  { %1810 = vmatpush.bf16.msrb.mxu0 %v6770_v27  ;;  %v6709_v13 = vld [vmem:[%s13821_s13 + $0x3a8] sm:$0xf]  ;;  %v8580_v14 = vld [vmem:[%s13821_s13 + $0x3b4] sm:$0xf0]  ;;  %v6582_v19 = vor.u32 %v8548_v12, %v6581_v11 }
  0x90   :  { %1823 = vmatpush.bf16.msrb.mxu1 %v6898_v30  ;;  %v6309_v20 = vld [vmem:[%s13821_s13 + $0x88] sm:$0xf]  ;;  %v8480_v21 = vld [vmem:[%s13821_s13 + $0x94] sm:$0xf0]  ;;  %v6710_v23 = vor.u32 %v8580_v14, %v6709_v13 }
  0x91   :  { %1836 = vmatpush.bf16.msrb.mxu2 %v7026_v31  ;;  %v6437_v22 = vld [vmem:[%s13821_s13 + $0x188] sm:$0xf]  ;;  %v8512_v24 = vld [vmem:[%s13821_s13 + $0x194] sm:$0xf0]  ;;  %v6310_v31 = vor.u32 %v8480_v21, %v6309_v20 }
  0x92   :  { %1849 = vmatpush.bf16.msrb.mxu3 %v7154_v36  ;;  %v6565_v27 = vld [vmem:[%s13821_s13 + $0x288] sm:$0xf]  ;;  %v8544_v28 = vld [vmem:[%s13821_s13 + $0x294] sm:$0xf0]  ;;  %v6438_v32 = vor.u32 %v8512_v24, %v6437_v22 }
  0x93   :  { %1811 = vmatpush.bf16.msrb.mxu0 %v6754_v46  ;;  %v6693_v29 = vld [vmem:[%s13821_s13 + $0x388] sm:$0xf]  ;;  %v8576_v30 = vld [vmem:[%s13821_s13 + $0x394] sm:$0xf0]  ;;  %v6566_v33 = vor.u32 %v8544_v28, %v6565_v27 }
  0x94   :  { %1824 = vmatpush.bf16.msrb.mxu1 %v6882_v50  ;;  %v6293_v35 = vld [vmem:[%s13821_s13 + $0x68] sm:$0xf]  ;;  %v8476_v36 = vld [vmem:[%s13821_s13 + $0x74] sm:$0xf0]  ;;  %v6694_v40 = vor.u32 %v8576_v30, %v6693_v29 }
  0x95   :  { %1837 = vmatpush.bf16.msrb.mxu2 %v7010_v51  ;;  %v6421_v37 = vld [vmem:[%s13821_s13 + $0x168] sm:$0xf]  ;;  %v8508_v41 = vld [vmem:[%s13821_s13 + $0x174] sm:$0xf0]  ;;  %v6294_v47 = vor.u32 %v8476_v36, %v6293_v35 }
  0x96   :  { %1850 = vmatpush.bf16.msrb.mxu3 %v7138_v54  ;;  %1812 = vmatmul.bf16.vlgmr.msrb.gmra.mxu0 %v9656_v38  ;;  %v6549_v42 = vld [vmem:[%s13821_s13 + $0x268] sm:$0xf]  ;;  %v8540_v44 = vld [vmem:[%s13821_s13 + $0x274] sm:$0xf0]  ;;  %v6422_v48 = vor.u32 %v8508_v41, %v6421_v37 }
  0x97   :  { %1856 = vmatpush.bf16.msra.mxu0 %v6358_v55  ;;  %1825 = vmatmul.bf16.vlgmr.msrb.gmra.mxu1 %v9666_v43  ;;  %v6677_v45 = vld [vmem:[%s13821_s13 + $0x368] sm:$0xf]  ;;  %v8572_v46 = vld [vmem:[%s13821_s13 + $0x374] sm:$0xf0]  ;;  %v6550_v49 = vor.u32 %v8540_v44, %v6549_v42 }
  0x98   :  { %1869 = vmatpush.bf16.msra.mxu1 %v6486_v56  ;;  %1838 = vmatmul.bf16.vlgmr.msrb.gmra.mxu2 %v9645_v34  ;;  %v6277_v50 = vld [vmem:[%s13821_s13 + $0x48] sm:$0xf]  ;;  %v8472_v51 = vld [vmem:[%s13821_s13 + $0x54] sm:$0xf0]  ;;  %v6678_v53 = vor.u32 %v8572_v46, %v6677_v45 }
  0x99   :  { %1882 = vmatpush.bf16.msra.mxu2 %v6614_v57  ;;  %1851 = vmatmul.bf16.vlgmr.msrb.gmra.mxu3 %v9658_v39  ;;  %v6405_v52 = vld [vmem:[%s13821_s13 + $0x148] sm:$0xf]  ;;  %v8504_v54 = vld [vmem:[%s13821_s13 + $0x154] sm:$0xf0]  ;;  %v6278_v59 = vor.u32 %v8472_v51, %v6277_v50 }
  0x9a   :  { %1895 = vmatpush.bf16.msra.mxu3 %v6742_v61  ;;  %v6533_v55 = vld [vmem:[%s13821_s13 + $0x248] sm:$0xf]  ;;  %v8536_v56 = vld [vmem:[%s13821_s13 + $0x254] sm:$0xf0]  ;;  %v6406_v60 = vor.u32 %v8504_v54, %v6405_v52 }
  0x9b   :  { %1857 = vmatpush.bf16.msra.mxu0 %v6342_v3  ;;  %v6661_v57 = vld [vmem:[%s13821_s13 + $0x348] sm:$0xf]  ;;  %v8568_v58 = vld [vmem:[%s13821_s13 + $0x354] sm:$0xf0]  ;;  %v6534_v61 = vor.u32 %v8536_v56, %v6533_v55 }
  0x9c   :  { %1870 = vmatpush.bf16.msra.mxu1 %v6470_v4  ;;  %v6261_v62 = vld [vmem:[%s13821_s13 + $0x28] sm:$0xf]  ;;  %v8468_v63 = vld [vmem:[%s13821_s13 + $0x34] sm:$0xf0]  ;;  %v6662_v1 = vor.u32 %v8568_v58, %v6661_v57 }
  0x9d   :  { %1883 = vmatpush.bf16.msra.mxu2 %v6598_v5  ;;  %v6389_v0 = vld [vmem:[%s13821_s13 + $0x128] sm:$0xf]  ;;  %v8500_v2 = vld [vmem:[%s13821_s13 + $0x134] sm:$0xf0]  ;;  %v6262_v7 = vor.u32 %v8468_v63, %v6261_v62 }
  0x9e   :  { %1896 = vmatpush.bf16.msra.mxu3 %v6726_v9  ;;  %v6517_v3 = vld [vmem:[%s13821_s13 + $0x228] sm:$0xf]  ;;  %v8532_v4 = vld [vmem:[%s13821_s13 + $0x234] sm:$0xf0]  ;;  %v6390_v10 = vor.u32 %v8500_v2, %v6389_v0 }
  0x9f   :  { %1858 = vmatpush.bf16.msra.mxu0 %v6326_v15  ;;  %v6645_v5 = vld [vmem:[%s13821_s13 + $0x328] sm:$0xf]  ;;  %v8564_v6 = vld [vmem:[%s13821_s13 + $0x334] sm:$0xf0]  ;;  %v6518_v11 = vor.u32 %v8532_v4, %v6517_v3 }
  0xa0   :  { %1871 = vmatpush.bf16.msra.mxu1 %v6454_v16  ;;  %v6245_v8 = vld [vmem:[%s13821_s13 + $0x8] sm:$0xf]  ;;  %v8464_v9 = vld [vmem:[%s13821_s13 + $0x14] sm:$0xf0]  ;;  %v6646_v15 = vor.u32 %v8564_v6, %v6645_v5 }
  0xa1   :  { %1884 = vmatpush.bf16.msra.mxu2 %v6582_v19  ;;  %v6373_v12 = vld [vmem:[%s13821_s13 + $0x108] sm:$0xf]  ;;  %v8496_v13 = vld [vmem:[%s13821_s13 + $0x114] sm:$0xf0]  ;;  %v6246_v24 = vor.u32 %v8464_v9, %v6245_v8 }
  0xa2   :  { %1897 = vmatpush.bf16.msra.mxu3 %v6710_v23  ;;  %v6501_v14 = vld [vmem:[%s13821_s13 + $0x208] sm:$0xf]  ;;  %v8528_v16 = vld [vmem:[%s13821_s13 + $0x214] sm:$0xf0]  ;;  %v6374_v30 = vor.u32 %v8496_v13, %v6373_v12 }
  0xa3   :  { %1859 = vmatpush.bf16.msra.mxu0 %v6310_v31  ;;  %v6629_v19 = vld [vmem:[%s13821_s13 + $0x308] sm:$0xf]  ;;  %v8560_v20 = vld [vmem:[%s13821_s13 + $0x314] sm:$0xf0]  ;;  %v6502_v31 = vor.u32 %v8528_v16, %v6501_v14 }
  0xa4   :  { %1872 = vmatpush.bf16.msra.mxu1 %v6438_v32  ;;  %v6869_v21 = vld [vmem:[%s13821_s13 + $0x4e8] sm:$0xf]  ;;  %v8620_v22 = vld [vmem:[%s13821_s13 + $0x4f4] sm:$0xf0]  ;;  %v6630_v35 = vor.u32 %v8560_v20, %v6629_v19 }
  0xa5   :  { %1885 = vmatpush.bf16.msra.mxu2 %v6566_v33  ;;  %v6997_v23 = vld [vmem:[%s13821_s13 + $0x5e8] sm:$0xf]  ;;  %v8652_v27 = vld [vmem:[%s13821_s13 + $0x5f4] sm:$0xf0]  ;;  %v6870_v36 = vor.u32 %v8620_v22, %v6869_v21 }
  0xa6   :  { %1898 = vmatpush.bf16.msra.mxu3 %v6694_v40  ;;  %v7125_v28 = vld [vmem:[%s13821_s13 + $0x6e8] sm:$0xf]  ;;  %v8684_v29 = vld [vmem:[%s13821_s13 + $0x6f4] sm:$0xf0]  ;;  %v6998_v37 = vor.u32 %v8652_v27, %v6997_v23 }
  0xa7   :  { %1860 = vmatpush.bf16.msra.mxu0 %v6294_v47  ;;  %v7253_v32 = vld [vmem:[%s13821_s13 + $0x7e8] sm:$0xf]  ;;  %v8716_v33 = vld [vmem:[%s13821_s13 + $0x7f4] sm:$0xf0]  ;;  %v7126_v40 = vor.u32 %v8684_v29, %v7125_v28 }
  0xa8   :  { %1873 = vmatpush.bf16.msra.mxu1 %v6422_v48  ;;  %v6853_v41 = vld [vmem:[%s13821_s13 + $0x4c8] sm:$0xf]  ;;  %v8616_v42 = vld [vmem:[%s13821_s13 + $0x4d4] sm:$0xf0]  ;;  %v7254_v45 = vor.u32 %v8716_v33, %v7253_v32 }
  0xa9   :  { %1886 = vmatpush.bf16.msra.mxu2 %v6550_v49  ;;  %v6981_v44 = vld [vmem:[%s13821_s13 + $0x5c8] sm:$0xf]  ;;  %v8648_v46 = vld [vmem:[%s13821_s13 + $0x5d4] sm:$0xf0]  ;;  %v6854_v51 = vor.u32 %v8616_v42, %v6853_v41 }
  0xaa   :  { %1899 = vmatpush.bf16.msra.mxu3 %v6678_v53  ;;  %v7109_v47 = vld [vmem:[%s13821_s13 + $0x6c8] sm:$0xf]  ;;  %v8680_v48 = vld [vmem:[%s13821_s13 + $0x6d4] sm:$0xf0]  ;;  %v6982_v52 = vor.u32 %v8648_v46, %v6981_v44 }
  0xab   :  { %1861 = vmatpush.bf16.msra.mxu0 %v6278_v59  ;;  %v7237_v49 = vld [vmem:[%s13821_s13 + $0x7c8] sm:$0xf]  ;;  %v8712_v50 = vld [vmem:[%s13821_s13 + $0x7d4] sm:$0xf0]  ;;  %v7110_v53 = vor.u32 %v8680_v48, %v7109_v47 }
  0xac   :  { %1874 = vmatpush.bf16.msra.mxu1 %v6406_v60  ;;  %v6837_v54 = vld [vmem:[%s13821_s13 + $0x4a8] sm:$0xf]  ;;  %v8612_v55 = vld [vmem:[%s13821_s13 + $0x4b4] sm:$0xf0]  ;;  %v7238_v57 = vor.u32 %v8712_v50, %v7237_v49 }
  0xad   :  { %1887 = vmatpush.bf16.msra.mxu2 %v6534_v61  ;;  %v6965_v56 = vld [vmem:[%s13821_s13 + $0x5a8] sm:$0xf]  ;;  %v8644_v58 = vld [vmem:[%s13821_s13 + $0x5b4] sm:$0xf0]  ;;  %v6838_v63 = vor.u32 %v8612_v55, %v6837_v54 }
  0xae   :  { %1900 = vmatpush.bf16.msra.mxu3 %v6662_v1  ;;  %v7093_v59 = vld [vmem:[%s13821_s13 + $0x6a8] sm:$0xf]  ;;  %v8676_v60 = vld [vmem:[%s13821_s13 + $0x6b4] sm:$0xf0]  ;;  %v6966_v0 = vor.u32 %v8644_v58, %v6965_v56 }
  0xaf   :  { %1862 = vmatpush.bf16.msra.mxu0 %v6262_v7  ;;  %v7221_v61 = vld [vmem:[%s13821_s13 + $0x7a8] sm:$0xf]  ;;  %v8708_v62 = vld [vmem:[%s13821_s13 + $0x7b4] sm:$0xf0]  ;;  %v7094_v1 = vor.u32 %v8676_v60, %v7093_v59 }
  0xb0   :  { %1875 = vmatpush.bf16.msra.mxu1 %v6390_v10  ;;  %v6821_v2 = vld [vmem:[%s13821_s13 + $0x488] sm:$0xf]  ;;  %v8608_v3 = vld [vmem:[%s13821_s13 + $0x494] sm:$0xf0]  ;;  %v7222_v5 = vor.u32 %v8708_v62, %v7221_v61 }
  0xb1   :  { %1888 = vmatpush.bf16.msra.mxu2 %v6518_v11  ;;  %v6949_v4 = vld [vmem:[%s13821_s13 + $0x588] sm:$0xf]  ;;  %v8640_v6 = vld [vmem:[%s13821_s13 + $0x594] sm:$0xf0]  ;;  %v6822_v11 = vor.u32 %v8608_v3, %v6821_v2 }
  0xb2   :  { %1901 = vmatpush.bf16.msra.mxu3 %v6646_v15  ;;  %v7077_v7 = vld [vmem:[%s13821_s13 + $0x688] sm:$0xf]  ;;  %v8672_v8 = vld [vmem:[%s13821_s13 + $0x694] sm:$0xf0]  ;;  %v6950_v12 = vor.u32 %v8640_v6, %v6949_v4 }
  0xb3   :  { %1863 = vmatpush.bf16.msra.mxu0 %v6246_v24  ;;  %v7205_v9 = vld [vmem:[%s13821_s13 + $0x788] sm:$0xf]  ;;  %v8704_v10 = vld [vmem:[%s13821_s13 + $0x794] sm:$0xf0]  ;;  %v7078_v13 = vor.u32 %v8672_v8, %v7077_v7 }
  0xb4   :  { %1876 = vmatpush.bf16.msra.mxu1 %v6374_v30  ;;  %v6805_v14 = vld [vmem:[%s13821_s13 + $0x468] sm:$0xf]  ;;  %v8604_v15 = vld [vmem:[%s13821_s13 + $0x474] sm:$0xf0]  ;;  %v7206_v19 = vor.u32 %v8704_v10, %v7205_v9  ;;  %v8490_v9 = vld [vmem:[%s13821_s13 + $0xec] sm:$0xf] }
  0xb5   :  { %1889 = vmatpush.bf16.msra.mxu2 %v6502_v31  ;;  %v6933_v16 = vld [vmem:[%s13821_s13 + $0x568] sm:$0xf]  ;;  %v8636_v20 = vld [vmem:[%s13821_s13 + $0x574] sm:$0xf0]  ;;  %v6806_v27 = vor.u32 %v8604_v15, %v6805_v14  ;;  %v6359_v10 = vld [vmem:[%s13821_s13 + $0xf8] sm:$0xf0] }
  0xb6   :  { %1902 = vmatpush.bf16.msra.mxu3 %v6630_v35  ;;  %1864 = vmatmul.bf16.vlgmr.msra.gmra.mxu0 %v9500_v18  ;;  %v7061_v21 = vld [vmem:[%s13821_s13 + $0x668] sm:$0xf]  ;;  %v8668_v22 = vld [vmem:[%s13821_s13 + $0x674] sm:$0xf0]  ;;  %v6934_v28 = vor.u32 %v8636_v20, %v6933_v16  ;;  %v8554_v14 = vld [vmem:[%s13821_s13 + $0x2ec] sm:$0xf] }
  0xb7   :  { %1908 = vmatpush.bf16.msrb.mxu0 %v6870_v36  ;;  %1877 = vmatmul.bf16.vlgmr.msra.gmra.mxu1 %v9513_v26  ;;  %v7189_v23 = vld [vmem:[%s13821_s13 + $0x768] sm:$0xf]  ;;  %v8700_v24 = vld [vmem:[%s13821_s13 + $0x774] sm:$0xf0]  ;;  %v7062_v29 = vor.u32 %v8668_v22, %v7061_v21  ;;  %v6615_v15 = vld [vmem:[%s13821_s13 + $0x2f8] sm:$0xf0] }
  0xb8   :  { %1921 = vmatpush.bf16.msrb.mxu1 %v6998_v37  ;;  %1890 = vmatmul.bf16.vlgmr.msra.gmra.mxu2 %v9498_v17  ;;  %v6789_v30 = vld [vmem:[%s13821_s13 + $0x448] sm:$0xf]  ;;  %v8600_v31 = vld [vmem:[%s13821_s13 + $0x454] sm:$0xf0]  ;;  %v7190_v33 = vor.u32 %v8700_v24, %v7189_v23  ;;  %v8586_v21 = vld [vmem:[%s13821_s13 + $0x3ec] sm:$0xf] }
  0xb9   :  { %1934 = vmatpush.bf16.msrb.mxu2 %v7126_v40  ;;  %1903 = vmatmul.bf16.vlgmr.msra.gmra.mxu3 %v9511_v25  ;;  %v6917_v32 = vld [vmem:[%s13821_s13 + $0x548] sm:$0xf]  ;;  %v8632_v35 = vld [vmem:[%s13821_s13 + $0x554] sm:$0xf0]  ;;  %v6790_v42 = vor.u32 %v8600_v31, %v6789_v30  ;;  %v6743_v22 = vld [vmem:[%s13821_s13 + $0x3f8] sm:$0xf0] }
  0xba   :  { %1947 = vmatpush.bf16.msrb.mxu3 %v7254_v45  ;;  %v7045_v36 = vld [vmem:[%s13821_s13 + $0x648] sm:$0xf]  ;;  %v8664_v37 = vld [vmem:[%s13821_s13 + $0x654] sm:$0xf0]  ;;  %v6918_v45 = vor.u32 %v8632_v35, %v6917_v32  ;;  %v8486_v30 = vld [vmem:[%s13821_s13 + $0xcc] sm:$0xf] }
  0xbb   :  { %1909 = vmatpush.bf16.msrb.mxu0 %v6854_v51  ;;  %v7173_v40 = vld [vmem:[%s13821_s13 + $0x748] sm:$0xf]  ;;  %v8696_v41 = vld [vmem:[%s13821_s13 + $0x754] sm:$0xf0]  ;;  %v7046_v46 = vor.u32 %v8664_v37, %v7045_v36  ;;  %v6343_v31 = vld [vmem:[%s13821_s13 + $0xd8] sm:$0xf0] }
  0xbc   :  { %1922 = vmatpush.bf16.msrb.mxu1 %v6982_v52  ;;  %v6773_v47 = vld [vmem:[%s13821_s13 + $0x428] sm:$0xf]  ;;  %v8596_v48 = vld [vmem:[%s13821_s13 + $0x434] sm:$0xf0]  ;;  %v7174_v51 = vor.u32 %v8696_v41, %v7173_v40  ;;  %v8518_v32 = vld [vmem:[%s13821_s13 + $0x1cc] sm:$0xf] }
  0xbd   :  { %1935 = vmatpush.bf16.msrb.mxu2 %v7110_v53  ;;  %v6901_v49 = vld [vmem:[%s13821_s13 + $0x528] sm:$0xf]  ;;  %v8628_v52 = vld [vmem:[%s13821_s13 + $0x534] sm:$0xf0]  ;;  %v6774_v58 = vor.u32 %v8596_v48, %v6773_v47  ;;  %v6471_v35 = vld [vmem:[%s13821_s13 + $0x1d8] sm:$0xf0] }
  0xbe   :  { %1948 = vmatpush.bf16.msrb.mxu3 %v7238_v57  ;;  %v7029_v53 = vld [vmem:[%s13821_s13 + $0x628] sm:$0xf]  ;;  %v8660_v54 = vld [vmem:[%s13821_s13 + $0x634] sm:$0xf0]  ;;  %v6902_v61 = vor.u32 %v8628_v52, %v6901_v49  ;;  %v8550_v36 = vld [vmem:[%s13821_s13 + $0x2cc] sm:$0xf] }
  0xbf   :  { %1910 = vmatpush.bf16.msrb.mxu0 %v6838_v63  ;;  %v7157_v56 = vld [vmem:[%s13821_s13 + $0x728] sm:$0xf]  ;;  %v8692_v57 = vld [vmem:[%s13821_s13 + $0x734] sm:$0xf0]  ;;  %v7030_v62 = vor.u32 %v8660_v54, %v7029_v53  ;;  %v6599_v37 = vld [vmem:[%s13821_s13 + $0x2d8] sm:$0xf0] }
  0xc0   :  { %1923 = vmatpush.bf16.msrb.mxu1 %v6966_v0  ;;  %v6757_v59 = vld [vmem:[%s13821_s13 + $0x408] sm:$0xf]  ;;  %v8592_v60 = vld [vmem:[%s13821_s13 + $0x414] sm:$0xf0]  ;;  %v7158_v3 = vor.u32 %v8692_v57, %v7157_v56  ;;  %v8582_v40 = vld [vmem:[%s13821_s13 + $0x3cc] sm:$0xf]  ;;  %v6602_v47 = vor.u32 %v8550_v36, %v6599_v37 }
  0xc1   :  { %1936 = vmatpush.bf16.msrb.mxu2 %v7094_v1  ;;  %v6885_v63 = vld [vmem:[%s13821_s13 + $0x508] sm:$0xf]  ;;  %v8624_v0 = vld [vmem:[%s13821_s13 + $0x514] sm:$0xf0]  ;;  %v6727_v41 = vld [vmem:[%s13821_s13 + $0x3d8] sm:$0xf0] }
  0xc2   :  { %1949 = vmatpush.bf16.msrb.mxu3 %v7222_v5  ;;  %v1657_v44 = vpop.f32.mrf.mxu0  ;;  %v7013_v1 = vld [vmem:[%s13821_s13 + $0x608] sm:$0xf]  ;;  %v8656_v4 = vld [vmem:[%s13821_s13 + $0x614] sm:$0xf0]  ;;  %v8482_v48 = vld [vmem:[%s13821_s13 + $0xac] sm:$0xf] }
  0xc3   :  { %1911 = vmatpush.bf16.msrb.mxu0 %v6822_v11  ;;  %v1670_v50 = vpop.f32.mrf.mxu1  ;;  %v7141_v5 = vld [vmem:[%s13821_s13 + $0x708] sm:$0xf]  ;;  %v8688_v6 = vld [vmem:[%s13821_s13 + $0x714] sm:$0xf0]  ;;  %v8522_v11 = vld [vmem:[%s13821_s13 + $0x1ec] sm:$0xf]  ;;  %v7014_v20 = vor.u32 %v8656_v4, %v7013_v1 }
  0xc4   :  { %1924 = vmatpush.bf16.msrb.mxu1 %v6950_v12  ;;  %v1671_v55 = vadd.f32 %v1670_v50, %v1657_v44  ;;  %v6758_v12 = vor.u32 %v8592_v60, %v6757_v59  ;;  %v7142_v24 = vor.u32 %v8688_v6, %v7141_v5  ;;  %v6346_v44 = vor.u32 %v8486_v30, %v6343_v31  ;;  %v6327_v49 = vld [vmem:[%s13821_s13 + $0xb8] sm:$0xf0]  ;;  %v8514_v50 = vld [vmem:[%s13821_s13 + $0x1ac] sm:$0xf] }
  0xc5   :  { %1937 = vmatpush.bf16.msrb.mxu2 %v7078_v13  ;;  %v6487_v13 = vld [vmem:[%s13821_s13 + $0x1f8] sm:$0xf0]  ;;  %v8546_v53 = vld [vmem:[%s13821_s13 + $0x2ac] sm:$0xf]  ;;  %v6330_v57 = vor.u32 %v8482_v48, %v6327_v49 }
  0xc6   :  { %1950 = vmatpush.bf16.msrb.mxu3 %v7206_v19  ;;  %v6886_v19 = vor.u32 %v8624_v0, %v6885_v63  ;;  %v6455_v52 = vld [vmem:[%s13821_s13 + $0x1b8] sm:$0xf0]  ;;  %v8478_v60 = vld [vmem:[%s13821_s13 + $0x8c] sm:$0xf] }
  0xc7   :  { %1912 = vmatpush.bf16.msrb.mxu0 %v6806_v27  ;;  %v1683_v2 = vpop.f32.mrf.mxu2  ;;  %v6362_v27 = vor.u32 %v8490_v9, %v6359_v10  ;;  %v6583_v54 = vld [vmem:[%s13821_s13 + $0x2b8] sm:$0xf0]  ;;  %v8542_v1 = vld [vmem:[%s13821_s13 + $0x28c] sm:$0xf] }
  0xc8   :  { %1925 = vmatpush.bf16.msrb.mxu1 %v6934_v28  ;;  %v10404_v7 = vadd.f32 %v1683_v2, %v1671_v55  ;;  %v10406_v8 = vpop.f32.mrf.mxu3  ;;  %v6490_v28 = vor.u32 %v8522_v11, %v6487_v13  ;;  %v8578_v55 = vld [vmem:[%s13821_s13 + $0x3ac] sm:$0xf]  ;;  %v6711_v56 = vld [vmem:[%s13821_s13 + $0x3b8] sm:$0xf0]  ;;  %v6586_v59 = vor.u32 %v8546_v53, %v6583_v54 }
  0xc9   :  { %1938 = vmatpush.bf16.msrb.mxu2 %v7062_v29  ;;  %v6618_v29 = vor.u32 %v8554_v14, %v6615_v15  ;;  %v6714_v63 = vor.u32 %v8578_v55, %v6711_v56  ;;  %v6439_v0 = vld [vmem:[%s13821_s13 + $0x198] sm:$0xf0]  ;;  %v8506_v14 = vld [vmem:[%s13821_s13 + $0x16c] sm:$0xf] }
  0xca   :  { %1951 = vmatpush.bf16.msrb.mxu3 %v7190_v33  ;;  %v1659_v16 = vpop.f32.mrf.mxu0  ;;  %v6746_v33 = vor.u32 %v8586_v21, %v6743_v22  ;;  %v6567_v2 = vld [vmem:[%s13821_s13 + $0x298] sm:$0xf0]  ;;  %v8570_v21 = vld [vmem:[%s13821_s13 + $0x36c] sm:$0xf] }
  0xcb   :  { %1913 = vmatpush.bf16.msrb.mxu0 %v6790_v42  ;;  %v1672_v23 = vpop.f32.mrf.mxu1  ;;  %v6695_v4 = vld [vmem:[%s13821_s13 + $0x398] sm:$0xf0]  ;;  %v6570_v10 = vor.u32 %v8542_v1, %v6567_v2  ;;  %v8502_v31 = vld [vmem:[%s13821_s13 + $0x14c] sm:$0xf] }
  0xcc   :  { %1926 = vmatpush.bf16.msrb.mxu1 %v6918_v45  ;;  %v6295_v13 = vld [vmem:[%s13821_s13 + $0x78] sm:$0xf0]  ;;  %v8534_v36 = vld [vmem:[%s13821_s13 + $0x24c] sm:$0xf] }
  0xcd   :  { %1939 = vmatpush.bf16.msrb.mxu2 %v7046_v46  ;;  %v6474_v46 = vor.u32 %v8518_v32, %v6471_v35  ;;  %v6423_v16 = vld [vmem:[%s13821_s13 + $0x178] sm:$0xf0]  ;;  %v8498_v49 = vld [vmem:[%s13821_s13 + $0x12c] sm:$0xf] }
  0xce   :  { %1952 = vmatpush.bf16.msrb.mxu3 %v7174_v51  ;;  %v6730_v51 = vor.u32 %v8582_v40, %v6727_v41  ;;  %v6679_v22 = vld [vmem:[%s13821_s13 + $0x378] sm:$0xf0]  ;;  %v8566_v40 = vld [vmem:[%s13821_s13 + $0x34c] sm:$0xf] }
  0xcf   :  { %1914 = vmatpush.bf16.msrb.mxu0 %v6774_v58  ;;  %v1685_v42 = vpop.f32.mrf.mxu2  ;;  %v6458_v58 = vor.u32 %v8514_v50, %v6455_v52  ;;  %v6279_v30 = vld [vmem:[%s13821_s13 + $0x58] sm:$0xf0]  ;;  %v6682_v32 = vor.u32 %v8570_v21, %v6679_v22  ;;  %v8530_v53 = vld [vmem:[%s13821_s13 + $0x22c] sm:$0xf] }
  0xd0   :  { %1927 = vmatpush.bf16.msrb.mxu1 %v6902_v61  ;;  %v1698_v45 = vpop.f32.mrf.mxu3  ;;  %v6311_v61 = vld [vmem:[%s13821_s13 + $0x98] sm:$0xf0]  ;;  %v8562_v55 = vld [vmem:[%s13821_s13 + $0x32c] sm:$0xf] }
  0xd1   :  { %1940 = vmatpush.bf16.msrb.mxu2 %v7030_v62  ;;  %v8510_v62 = vld [vmem:[%s13821_s13 + $0x18c] sm:$0xf]  ;;  %v6314_v5 = vor.u32 %v8478_v60, %v6311_v61  ;;  %v6407_v35 = vld [vmem:[%s13821_s13 + $0x158] sm:$0xf0] }
  0xd2   :  { %1953 = vmatpush.bf16.msrb.mxu3 %v7158_v3  ;;  %v8574_v3 = vld [vmem:[%s13821_s13 + $0x38c] sm:$0xf]  ;;  %v6442_v9 = vor.u32 %v8510_v62, %v6439_v0  ;;  %v6535_v37 = vld [vmem:[%s13821_s13 + $0x258] sm:$0xf0]  ;;  %v6410_v45 = vor.u32 %v8502_v31, %v6407_v35 }
  0xd3   :  { %1915 = vmatpush.bf16.msrb.mxu0 %v6758_v12  ;;  %v8474_v12 = vld [vmem:[%s13821_s13 + $0x6c] sm:$0xf]  ;;  %v6698_v15 = vor.u32 %v8574_v3, %v6695_v4  ;;  %v6663_v41 = vld [vmem:[%s13821_s13 + $0x358] sm:$0xf0] }
  0xd4   :  { %1928 = vmatpush.bf16.msrb.mxu1 %v6886_v19  ;;  %v8538_v19 = vld [vmem:[%s13821_s13 + $0x26c] sm:$0xf]  ;;  %v6298_v23 = vor.u32 %v8474_v12, %v6295_v13  ;;  %v6263_v48 = vld [vmem:[%s13821_s13 + $0x38] sm:$0xf0] }
  0xd5   :  { %1941 = vmatpush.bf16.msrb.mxu2 %v7014_v20  ;;  %v6551_v20 = vld [vmem:[%s13821_s13 + $0x278] sm:$0xf0]  ;;  %v8494_v62 = vld [vmem:[%s13821_s13 + $0x10c] sm:$0xf] }
  0xd6   :  { %1954 = vmatpush.bf16.msrb.mxu3 %v7142_v24  ;;  %1916 = vmatmul.bf16.vlgmr.msrb.gmra.mxu0 %v9656_v38  ;;  %v10508_v6 = vpop.f32.mrf.mxu0  ;;  %v6426_v24 = vor.u32 %v8506_v14, %v6423_v16  ;;  %v6391_v52 = vld [vmem:[%s13821_s13 + $0x138] sm:$0xf0]  ;;  %v8526_v0 = vld [vmem:[%s13821_s13 + $0x20c] sm:$0xf] }
  0xd7   :  { %1960 = vmatpush.bf16.msra.mxu0 %v6362_v27  ;;  %1929 = vmatmul.bf16.vlgmr.msrb.gmra.mxu1 %v9666_v43  ;;  %v10510_v11 = vpop.f32.mrf.mxu1  ;;  %v6554_v27 = vor.u32 %v8538_v19, %v6551_v20  ;;  %v6519_v54 = vld [vmem:[%s13821_s13 + $0x238] sm:$0xf0]  ;;  %v6394_v60 = vor.u32 %v8498_v49, %v6391_v52  ;;  %v8558_v4 = vld [vmem:[%s13821_s13 + $0x30c] sm:$0xf] }
  0xd8   :  { %1973 = vmatpush.bf16.msra.mxu1 %v6490_v28  ;;  %1942 = vmatmul.bf16.vlgmr.msrb.gmra.mxu2 %v9645_v34  ;;  %v6647_v56 = vld [vmem:[%s13821_s13 + $0x338] sm:$0xf0]  ;;  %v6522_v61 = vor.u32 %v8530_v53, %v6519_v54  ;;  %v8650_v13 = vld [vmem:[%s13821_s13 + $0x5ec] sm:$0xf] }
  0xd9   :  { %1986 = vmatpush.bf16.msra.mxu2 %v6618_v29  ;;  %1955 = vmatmul.bf16.vlgmr.msrb.gmra.mxu3 %v9658_v39  ;;  %v8470_v29 = vld [vmem:[%s13821_s13 + $0x4c] sm:$0xf]  ;;  %v6650_v2 = vor.u32 %v8562_v55, %v6647_v56  ;;  %v6503_v3 = vld [vmem:[%s13821_s13 + $0x218] sm:$0xf0] }
  0xda   :  { %1999 = vmatpush.bf16.msra.mxu3 %v6746_v33  ;;  %v6282_v42 = vor.u32 %v8470_v29, %v6279_v30  ;;  %v6871_v12 = vld [vmem:[%s13821_s13 + $0x4f8] sm:$0xf0]  ;;  %v8682_v16 = vld [vmem:[%s13821_s13 + $0x6ec] sm:$0xf]  ;;  %v6506_v21 = vor.u32 %v8526_v0, %v6503_v3 }
  0xdb   :  { %1961 = vmatpush.bf16.msra.mxu0 %v6346_v44  ;;  %v10536_v28 = vpop.f32.mrf.mxu2  ;;  %v7127_v19 = vld [vmem:[%s13821_s13 + $0x6f8] sm:$0xf0]  ;;  %v8714_v22 = vld [vmem:[%s13821_s13 + $0x7ec] sm:$0xf] }
  0xdc   :  { %1974 = vmatpush.bf16.msra.mxu1 %v6474_v46  ;;  %v6538_v46 = vor.u32 %v8534_v36, %v6535_v37  ;;  %v7130_v30 = vor.u32 %v8682_v16, %v7127_v19  ;;  %v8614_v31 = vld [vmem:[%s13821_s13 + $0x4cc] sm:$0xf]  ;;  %v6983_v37 = vld [vmem:[%s13821_s13 + $0x5d8] sm:$0xf0] }
  0xdd   :  { %1987 = vmatpush.bf16.msra.mxu2 %v6602_v47  ;;  %v8466_v47 = vld [vmem:[%s13821_s13 + $0x2c] sm:$0xf]  ;;  %v6839_v49 = vld [vmem:[%s13821_s13 + $0x4b8] sm:$0xf0] }
  0xde   :  { %2000 = vmatpush.bf16.msra.mxu3 %v6730_v51  ;;  %v10547_v33 = vpop.f32.mrf.mxu3  ;;  %v1711_v44 = vpop.f32.mrf.mxu0  ;;  %v6666_v51 = vor.u32 %v8566_v40, %v6663_v41  ;;  %v8646_v35 = vld [vmem:[%s13821_s13 + $0x5cc] sm:$0xf]  ;;  %v7111_v41 = vld [vmem:[%s13821_s13 + $0x6d8] sm:$0xf0] }
  0xdf   :  { %1962 = vmatpush.bf16.msra.mxu0 %v6330_v57  ;;  %v1724_v50 = vpop.f32.mrf.mxu1  ;;  %v6266_v57 = vor.u32 %v8466_v47, %v6263_v48  ;;  %v8678_v40 = vld [vmem:[%s13821_s13 + $0x6cc] sm:$0xf]  ;;  %v7239_v44 = vld [vmem:[%s13821_s13 + $0x7d8] sm:$0xf0] }
  0xe0   :  { %1975 = vmatpush.bf16.msra.mxu1 %v6458_v58  ;;  %v8462_v58 = vld [vmem:[%s13821_s13 + $0xc] sm:$0xf]  ;;  %v7114_v47 = vor.u32 %v8678_v40, %v7111_v41  ;;  %v6967_v52 = vld [vmem:[%s13821_s13 + $0x5b8] sm:$0xf0] }
  0xe1   :  { %1988 = vmatpush.bf16.msra.mxu2 %v6586_v59  ;;  %v6247_v59 = vld [vmem:[%s13821_s13 + $0x18] sm:$0xf0]  ;;  %v8610_v48 = vld [vmem:[%s13821_s13 + $0x4ac] sm:$0xf] }
  0xe2   :  { %2001 = vmatpush.bf16.msra.mxu3 %v6714_v63  ;;  %v6375_v63 = vld [vmem:[%s13821_s13 + $0x118] sm:$0xf0]  ;;  %v6250_v14 = vor.u32 %v8462_v58, %v6247_v59  ;;  %v8642_v50 = vld [vmem:[%s13821_s13 + $0x5ac] sm:$0xf]  ;;  %v6842_v56 = vor.u32 %v8610_v48, %v6839_v49 }
  0xe3   :  { %1963 = vmatpush.bf16.msra.mxu0 %v6314_v5  ;;  %v1737_v1 = vpop.f32.mrf.mxu2  ;;  %v6631_v5 = vld [vmem:[%s13821_s13 + $0x318] sm:$0xf0]  ;;  %v6378_v20 = vor.u32 %v8494_v62, %v6375_v63  ;;  %v8674_v53 = vld [vmem:[%s13821_s13 + $0x6ac] sm:$0xf] }
  0xe4   :  { %1976 = vmatpush.bf16.msra.mxu1 %v6442_v9  ;;  %v7095_v54 = vld [vmem:[%s13821_s13 + $0x6b8] sm:$0xf0]  ;;  %v8706_v55 = vld [vmem:[%s13821_s13 + $0x7ac] sm:$0xf] }
  0xe5   :  { %1989 = vmatpush.bf16.msra.mxu2 %v6570_v10  ;;  %v8618_v10 = vld [vmem:[%s13821_s13 + $0x4ec] sm:$0xf]  ;;  %v7098_v58 = vor.u32 %v8674_v53, %v7095_v54  ;;  %v7079_v62 = vld [vmem:[%s13821_s13 + $0x698] sm:$0xf0] }
  0xe6   :  { %2002 = vmatpush.bf16.msra.mxu3 %v6698_v15  ;;  %v1750_v9 = vpop.f32.mrf.mxu3  ;;  %v6999_v15 = vld [vmem:[%s13821_s13 + $0x5f8] sm:$0xf0]  ;;  %v8606_v59 = vld [vmem:[%s13821_s13 + $0x48c] sm:$0xf] }
  0xe7   :  { %1964 = vmatpush.bf16.msra.mxu0 %v6298_v23  ;;  %v7255_v23 = vld [vmem:[%s13821_s13 + $0x7f8] sm:$0xf0]  ;;  %v7002_v29 = vor.u32 %v8650_v13, %v6999_v15  ;;  %v8702_v63 = vld [vmem:[%s13821_s13 + $0x78c] sm:$0xf]  ;;  %v1697_v13 = vadd.f32 %v10406_v8, %v10404_v7 }
  0xe8   :  { %1977 = vmatpush.bf16.msra.mxu1 %v6426_v24  ;;  %v6634_v24 = vor.u32 %v8558_v4, %v6631_v5  ;;  %v7258_v36 = vor.u32 %v8714_v22, %v7255_v23  ;;  %v7207_v0 = vld [vmem:[%s13821_s13 + $0x798] sm:$0xf0]  ;;  %v8602_v5 = vld [vmem:[%s13821_s13 + $0x46c] sm:$0xf] }
  0xe9   :  { %1990 = vmatpush.bf16.msra.mxu2 %v6554_v27  ;;  %v6874_v27 = vor.u32 %v8618_v10, %v6871_v12  ;;  %v6807_v9 = vld [vmem:[%s13821_s13 + $0x478] sm:$0xf0]  ;;  %v8634_v10 = vld [vmem:[%s13821_s13 + $0x56c] sm:$0xf] }
  0xea   :  { %2003 = vmatpush.bf16.msra.mxu3 %v6682_v32  ;;  %v6855_v32 = vld [vmem:[%s13821_s13 + $0x4d8] sm:$0xf0]  ;;  %v8666_v16 = vld [vmem:[%s13821_s13 + $0x66c] sm:$0xf]  ;;  %v6810_v8 = vor.u32 %v8602_v5, %v6807_v9 }
  0xeb   :  { %1965 = vmatpush.bf16.msra.mxu0 %v6282_v42  ;;  %v8710_v42 = vld [vmem:[%s13821_s13 + $0x7cc] sm:$0xf]  ;;  %v6935_v15 = vld [vmem:[%s13821_s13 + $0x578] sm:$0xf0] }
  0xec   :  { %1978 = vmatpush.bf16.msra.mxu1 %v6410_v45  ;;  %v6858_v45 = vor.u32 %v8614_v31, %v6855_v32  ;;  %v7063_v19 = vld [vmem:[%s13821_s13 + $0x678] sm:$0xf0]  ;;  %v8598_v23 = vld [vmem:[%s13821_s13 + $0x44c] sm:$0xf] }
  0xed   :  { %1991 = vmatpush.bf16.msra.mxu2 %v6538_v46  ;;  %v6986_v46 = vor.u32 %v8646_v35, %v6983_v37  ;;  %v7191_v7 = vld [vmem:[%s13821_s13 + $0x778] sm:$0xf0]  ;;  %v7066_v22 = vor.u32 %v8666_v16, %v7063_v19  ;;  %v8662_v35 = vld [vmem:[%s13821_s13 + $0x64c] sm:$0xf]  ;;  %v2161_v16 = vld [vmem:[%s13824_s7 + $0xf0] sm:$0xff] }
  0xee   :  { %2004 = vmatpush.bf16.msra.mxu3 %v6666_v51  ;;  %v7242_v51 = vor.u32 %v8710_v42, %v7239_v44  ;;  %v6919_v32 = vld [vmem:[%s13821_s13 + $0x558] sm:$0xf0]  ;;  %v8626_v48 = vld [vmem:[%s13821_s13 + $0x52c] sm:$0xf] }
  0xef   :  { %1966 = vmatpush.bf16.msra.mxu0 %v6266_v57  ;;  %v6970_v57 = vor.u32 %v8642_v50, %v6967_v52  ;;  %v7175_v40 = vld [vmem:[%s13821_s13 + $0x758] sm:$0xf0]  ;;  %v8658_v53 = vld [vmem:[%s13821_s13 + $0x62c] sm:$0xf] }
  0xf0   :  { %1979 = vmatpush.bf16.msra.mxu1 %v6394_v60  ;;  %v6823_v60 = vld [vmem:[%s13821_s13 + $0x498] sm:$0xf0]  ;;  %v2144_v19 = vld [vmem:[%s13824_s7 + $0x68] sm:$0xff] }
  0xf1   :  { %1992 = vmatpush.bf16.msra.mxu2 %v6522_v61  ;;  %v8670_v61 = vld [vmem:[%s13821_s13 + $0x68c] sm:$0xf]  ;;  %v6826_v1 = vor.u32 %v8606_v59, %v6823_v60  ;;  %v6903_v52 = vld [vmem:[%s13821_s13 + $0x538] sm:$0xf0] }
  0xf2   :  { %2005 = vmatpush.bf16.msra.mxu3 %v6650_v2  ;;  %v7082_v4 = vor.u32 %v8670_v61, %v7079_v62  ;;  %v7031_v54 = vld [vmem:[%s13821_s13 + $0x638] sm:$0xf0]  ;;  %v8622_v60 = vld [vmem:[%s13821_s13 + $0x50c] sm:$0xf] }
  0xf3   :  { %1967 = vmatpush.bf16.msra.mxu0 %v6250_v14  ;;  %v10712_v2 = vpop.f32.mrf.mxu0  ;;  %v7210_v14 = vor.u32 %v8702_v63, %v7207_v0  ;;  %v6759_v59 = vld [vmem:[%s13821_s13 + $0x418] sm:$0xf0]  ;;  %v8654_v62 = vld [vmem:[%s13821_s13 + $0x60c] sm:$0xf] }
  0xf4   :  { %1980 = vmatpush.bf16.msra.mxu1 %v6378_v20  ;;  %v10723_v12 = vpop.f32.mrf.mxu1  ;;  %v8698_v20 = vld [vmem:[%s13821_s13 + $0x76c] sm:$0xf]  ;;  %v6887_v61 = vld [vmem:[%s13821_s13 + $0x518] sm:$0xf0] }
  0xf5   :  { %1993 = vmatpush.bf16.msra.mxu2 %v6506_v21  ;;  %v6938_v21 = vor.u32 %v8634_v10, %v6935_v15  ;;  %v7194_v31 = vor.u32 %v8698_v20, %v7191_v7  ;;  %v7015_v63 = vld [vmem:[%s13821_s13 + $0x618] sm:$0xf0]  ;;  %v2159_v7 = vld [vmem:[%s13824_s7 + $0xe0] sm:$0xff] }
  0xf6   :  { %2006 = vmatpush.bf16.msra.mxu3 %v6634_v24  ;;  %1968 = vmatmul.bf16.vlgmr.msra.gmra.mxu0 %v9500_v18  ;;  %v8638_v18 = vld [vmem:[%s13821_s13 + $0x58c] sm:$0xf]  ;;  %v6791_v24 = vld [vmem:[%s13821_s13 + $0x458] sm:$0xf0]  ;;  %v7018_v5 = vor.u32 %v8654_v62, %v7015_v63 }
  0xf7   :  { %2012 = vmatpush.bf16.msrb.mxu0 %v6874_v27  ;;  %1981 = vmatmul.bf16.vlgmr.msra.gmra.mxu1 %v9513_v26  ;;  %v6951_v26 = vld [vmem:[%s13821_s13 + $0x598] sm:$0xf0]  ;;  %v8630_v27 = vld [vmem:[%s13821_s13 + $0x54c] sm:$0xf]  ;;  %v6794_v41 = vor.u32 %v8598_v23, %v6791_v24  ;;  %v2141_v23 = vld [vmem:[%s13824_s7 + $0x50] sm:$0xff] }
  0xf8   :  { %2025 = vmatpush.bf16.msrb.mxu1 %v7002_v29  ;;  %1994 = vmatmul.bf16.vlgmr.msra.gmra.mxu2 %v9498_v17  ;;  %v7223_v17 = vld [vmem:[%s13821_s13 + $0x7b8] sm:$0xf0]  ;;  %v6954_v3 = vor.u32 %v8638_v18, %v6951_v26  ;;  %v6922_v44 = vor.u32 %v8630_v27, %v6919_v32  ;;  %v2140_v32 = vld [vmem:[%s13824_s7 + $0x48] sm:$0xff] }
  0xf9   :  { %2038 = vmatpush.bf16.msrb.mxu2 %v7130_v30  ;;  %2007 = vmatmul.bf16.vlgmr.msra.gmra.mxu3 %v9511_v25  ;;  %v7226_v25 = vor.u32 %v8706_v55, %v7223_v17  ;;  %v1710_v30 = vadd.f32 %v10508_v6, %v1697_v13  ;;  %v8694_v6 = vld [vmem:[%s13821_s13 + $0x74c] sm:$0xf]  ;;  %v1775_v13 = vadd.f32 %v10723_v12, %v10712_v2  ;;  %v2162_v15 = vld [vmem:[%s13824_s7 + $0xf8] sm:$0xff]  ;;  %v2145_v2 = vld [vmem:[%s13824_s7 + $0x70] sm:$0xff] }
  0xfa   :  { %2051 = vmatpush.bf16.msrb.mxu3 %v7258_v36  ;;  %v7047_v36 = vld [vmem:[%s13821_s13 + $0x658] sm:$0xf0]  ;;  %v8690_v55 = vld [vmem:[%s13821_s13 + $0x72c] sm:$0xf] }
  0xfb   :  { %2013 = vmatpush.bf16.msrb.mxu0 %v6858_v45  ;;  %v10751_v29 = vpop.f32.mrf.mxu2  ;;  %v1763_v42 = vpop.f32.mrf.mxu0  ;;  %v7050_v45 = vor.u32 %v8662_v35, %v7047_v36  ;;  %v1723_v50 = vadd.f32 %v10510_v11, %v1710_v30  ;;  %v7159_v11 = vld [vmem:[%s13821_s13 + $0x738] sm:$0xf0] }
  0xfc   :  { %2026 = vmatpush.bf16.msrb.mxu1 %v6986_v46  ;;  %v10763_v37 = vpop.f32.mrf.mxu3  ;;  %v8594_v46 = vld [vmem:[%s13821_s13 + $0x42c] sm:$0xf]  ;;  %v1776_v49 = vpop.f32.mrf.mxu1  ;;  %v7162_v26 = vor.u32 %v8690_v55, %v7159_v11  ;;  %v1788_v12 = vadd.f32 %v10751_v29, %v1775_v13  ;;  %v2155_v42 = vld [vmem:[%s13824_s7 + $0xc0] sm:$0xff]  ;;  %v2150_v13 = vld [vmem:[%s13824_s7 + $0x98] sm:$0xff] }
  0xfd   :  { %2039 = vmatpush.bf16.msrb.mxu2 %v7114_v47  ;;  %v6775_v47 = vld [vmem:[%s13821_s13 + $0x438] sm:$0xf0] }
  0xfe   :  { %2052 = vmatpush.bf16.msrb.mxu3 %v7242_v51  ;;  %v7178_v51 = vor.u32 %v8694_v6, %v7175_v40  ;;  %v6778_v17 = vor.u32 %v8594_v46, %v6775_v47  ;;  %v2139_v6 = vld [vmem:[%s13824_s7 + $0x40] sm:$0xff]  ;;  %v2178_v49 = vld [vmem:[%s13824_s7 + $0x178] sm:$0xff] }
  0xff   :  { %2014 = vmatpush.bf16.msrb.mxu0 %v6842_v56  ;;  %v6906_v56 = vor.u32 %v8626_v48, %v6903_v52  ;;  %v2154_v48 = vld [vmem:[%s13824_s7 + $0xb8] sm:$0xff] }
 0x100   :  { %2027 = vmatpush.bf16.msrb.mxu1 %v6970_v57  ;;  %v7034_v57 = vor.u32 %v8658_v53, %v7031_v54  ;;  %v2153_v54 = vld [vmem:[%s13824_s7 + $0xb0] sm:$0xff] }
 0x101   :  { %2040 = vmatpush.bf16.msrb.mxu2 %v7098_v58  ;;  %v8590_v58 = vld [vmem:[%s13821_s13 + $0x40c] sm:$0xf] }
 0x102   :  { %2053 = vmatpush.bf16.msrb.mxu3 %v7226_v25  ;;  %v1736_v25 = vadd.f32 %v10536_v28, %v1723_v50  ;;  %v7143_v28 = vld [vmem:[%s13821_s13 + $0x718] sm:$0xf0]  ;;  %v2137_v50 = vld [vmem:[%s13824_s7 + $0x30] sm:$0xff] }
 0x103   :  { %2015 = vmatpush.bf16.msrb.mxu0 %v6826_v1  ;;  %v1789_v18 = vpop.f32.mrf.mxu2  ;;  %v8686_v1 = vld [vmem:[%s13821_s13 + $0x70c] sm:$0xf] }
 0x104   :  { %2028 = vmatpush.bf16.msrb.mxu1 %v6954_v3  ;;  %v1802_v0 = vpop.f32.mrf.mxu3  ;;  %v6762_v3 = vor.u32 %v8590_v58, %v6759_v59  ;;  %v10822_v9 = vadd.f32 %v10547_v33, %v1736_v25  ;;  %v7146_v10 = vor.u32 %v8686_v1, %v7143_v28  ;;  %v2152_v58 = vld [vmem:[%s13824_s7 + $0xa8] sm:$0xff]  ;;  %v2135_v25 = vld [vmem:[%s13824_s7 + $0x20] sm:$0xff]  ;;  %v2134_v28 = vld [vmem:[%s13824_s7 + $0x18] sm:$0xff] }
 0x105   :  { %2041 = vmatpush.bf16.msrb.mxu2 %v7082_v4  ;;  %v6890_v4 = vor.u32 %v8622_v60, %v6887_v61  ;;  %v2177_v60 = vld [vmem:[%s13824_s7 + $0x170] sm:$0xff]  ;;  %v2151_v0 = vld [vmem:[%s13824_s7 + $0xa0] sm:$0xff] }
 0x106   :  { %2054 = vmatpush.bf16.msrb.mxu3 %v7210_v14  ;;  %v2146_v14 = vld [vmem:[%s13824_s7 + $0x78] sm:$0xff]  ;;  %v2094_v33 = vmul.f32 %v10822_v9, %v10822_v9 }
 0x107   :  { %2016 = vmatpush.bf16.msrb.mxu0 %v6810_v8  ;;  %v2142_v8 = vld [vmem:[%s13824_s7 + $0x58] sm:$0xff] }
 0x108   :  { %2029 = vmatpush.bf16.msrb.mxu1 %v6938_v21  ;;  %v2098_v20 = vsel %vm2064_vm0, %v2094_v33, 0.0 }
 0x109   :  { %2042 = vmatpush.bf16.msrb.mxu2 %v7066_v22  ;;  %v2099_v21 = vrot.slane %v2098_v20, 4  ;;  %v2158_v22 = vld [vmem:[%s13824_s7 + $0xd8] sm:$0xff] }
 0x10a   :  { %2055 = vmatpush.bf16.msrb.mxu3 %v7194_v31  ;;  %v2157_v31 = vld [vmem:[%s13824_s7 + $0xd0] sm:$0xff] }
 0x10b   :  { %2017 = vmatpush.bf16.msrb.mxu0 %v6794_v41  ;;  %v2100_v35 = vadd.f32 %v2099_v21, %v2098_v20 }
 0x10c   :  { %2030 = vmatpush.bf16.msrb.mxu1 %v6922_v44  ;;  %v2138_v44 = vld [vmem:[%s13824_s7 + $0x38] sm:$0xff] }
 0x10d   :  { %2043 = vmatpush.bf16.msrb.mxu2 %v7050_v45  ;;  %v2101_v47 = vrot.slane %v2100_v35, 2 }
 0x10e   :  { %2056 = vmatpush.bf16.msrb.mxu3 %v7178_v51 }
 0x10f   :  { %2018 = vmatpush.bf16.msrb.mxu0 %v6778_v17  ;;  %v2102_v59 = vadd.f32 %v2101_v47, %v2100_v35  ;;  %v2168_v47 = vld [vmem:[%s13824_s7 + $0x128] sm:$0xff] }
 0x110   :  { %2031 = vmatpush.bf16.msrb.mxu1 %v6906_v56  ;;  %v2136_v56 = vld [vmem:[%s13824_s7 + $0x28] sm:$0xff] }
 0x111   :  { %2044 = vmatpush.bf16.msrb.mxu2 %v7034_v57 }
 0x112   :  { %2057 = vmatpush.bf16.msrb.mxu3 %v7162_v26  ;;  %v2176_v26 = vld [vmem:[%s13824_s7 + $0x168] sm:$0xff] }
 0x113   :  { %2019 = vmatpush.bf16.msrb.mxu0 %v6762_v3  ;;  %v1813_v24 = vpop.f32.mrf.mxu0 }
 0x114   :  { %2032 = vmatpush.bf16.msrb.mxu1 %v6890_v4  ;;  %v1826_v30 = vpop.f32.mrf.mxu1 }
 0x115   :  { %2045 = vmatpush.bf16.msrb.mxu2 %v7018_v5 }
 0x116   :  { %2058 = vmatpush.bf16.msrb.mxu3 %v7146_v10  ;;  %2020 = vmatmul.bf16.vlgmr.msrb.gmra.mxu0 %v9656_v38  ;;  %v2160_v38 = vld [vmem:[%s13824_s7 + $0xe8] sm:$0xff]  ;;  %v2103_v10 = vrot.slane %v2102_v59, 1 }
 0x117   :  { %2184 = vmatpush.msra.mxu0 %v2146_v14  ;;  %2033 = vmatmul.bf16.vlgmr.msrb.gmra.mxu1 %v9666_v43  ;;  %v2143_v43 = vld [vmem:[%s13824_s7 + $0x60] sm:$0xff]  ;;  %v2133_v14 = vld [vmem:[%s13824_s7 + $0x10] sm:$0xff] }
 0x118   :  { %2204 = vmatpush.msra.mxu1 %v2162_v15  ;;  %2046 = vmatmul.bf16.vlgmr.msrb.gmra.mxu2 %v9645_v34  ;;  %v1801_v34 = vadd.f32 %v10763_v37, %v1788_v12  ;;  %v2156_v37 = vld [vmem:[%s13824_s7 + $0xc8] sm:$0xff]  ;;  %v2149_v12 = vld [vmem:[%s13824_s7 + $0x90] sm:$0xff] }
 0x119   :  { %2059 = vmatmul.bf16.vlgmr.msrb.gmra.mxu3 %v9658_v39  ;;  %2185 = vmatpush.msra.mxu0 %v2145_v2  ;;  %v2065_v39 = vsel %vm2064_vm0, %v10822_v9, 0.0 }
 0x11a   :  { %2205 = vmatpush.msra.mxu1 %v2161_v16  ;;  %v2066_v27 = vrot.slane %v2065_v39, 4  ;;  %v1814_v29 = vadd.f32 %v1813_v24, %v1801_v34  ;;  %2224 = vmatpush.msra.mxu2 %v2178_v49  ;;  %v2132_v16 = vld [vmem:[%s13824_s7 + $0x8] sm:$0xff]  ;;  %v2131_v34 = vld [vmem:[%s13824_s7] sm:$0xff]  ;;  %v2166_v49 = vld [vmem:[%s13824_s7 + $0x118] sm:$0xff] }
 0x11b   :  { %2186 = vmatpush.msra.mxu0 %v2144_v19  ;;  %v1839_v41 = vpop.f32.mrf.mxu2  ;;  %v1815_v52 = vpop.f32.mrf.mxu0  ;;  %v2104_v19 = vadd.f32 %v2103_v10, %v2102_v59 }
 0x11c   :  { %2206 = vmatpush.msra.mxu1 %v2160_v38  ;;  %v1827_v36 = vadd.f32 %v1826_v30, %v1814_v29  ;;  %v2067_v40 = vadd.f32 %v2066_v27, %v2065_v39  ;;  %v1852_v46 = vpop.f32.mrf.mxu3  ;;  %v1828_v55 = vpop.f32.mrf.mxu1  ;;  %2225 = vmatpush.msra.mxu2 %v2177_v60  ;;  %v2148_v38 = vld [vmem:[%s13824_s7 + $0x88] sm:$0xff]  ;;  %v2147_v39 = vld [vmem:[%s13824_s7 + $0x80] sm:$0xff]  ;;  %v2165_v52 = vld [vmem:[%s13824_s7 + $0x110] sm:$0xff] }
 0x11d   :  { %2187 = vmatpush.msra.mxu0 %v2143_v43  ;;  %v2175_v27 = vld [vmem:[%s13824_s7 + $0x160] sm:$0xff] }
 0x11e   :  { %2207 = vmatpush.msra.mxu1 %v2159_v7  ;;  %v1840_v45 = vadd.f32 %v1839_v41, %v1827_v36  ;;  %v2068_v53 = vrot.slane %v2067_v40, 2  ;;  %2226 = vmatpush.msra.mxu2 %v2176_v26  ;;  %v2171_v41 = vld [vmem:[%s13824_s7 + $0x140] sm:$0xff] }
 0x11f   :  { %2188 = vmatpush.msra.mxu0 %v2142_v8  ;;  %v2163_v55 = vld [vmem:[%s13824_s7 + $0x100] sm:$0xff] }
 0x120   :  { %2208 = vmatpush.msra.mxu1 %v2158_v22  ;;  %v10897_v51 = vadd.f32 %v1852_v46, %v1840_v45  ;;  %v2069_v61 = vadd.f32 %v2068_v53, %v2067_v40  ;;  %2227 = vmatpush.msra.mxu2 %v2175_v27  ;;  %v2169_v45 = vld [vmem:[%s13824_s7 + $0x130] sm:$0xff]  ;;  %v2164_v53 = vld [vmem:[%s13824_s7 + $0x108] sm:$0xff] }
 0x121   :  { %2189 = vmatpush.msra.mxu0 %v2141_v23 }
 0x122   :  { %2209 = vmatpush.msra.mxu1 %v2157_v31  ;;  %v2072_v11 = vsel %vm2064_vm0, %v10897_v51, 0.0  ;;  %v2095_v17 = vmul.f32 %v10897_v51, %v10897_v51  ;;  %v2070_v2 = vrot.slane %v2069_v61, 1  ;;  %v2174_v31 = vld [vmem:[%s13824_s7 + $0x158] sm:$0xff] }
 0x123   :  { %2190 = vmatpush.msra.mxu0 %v2140_v32  ;;  %v2073_v57 = vrot.slane %v2072_v11, 4  ;;  %v1841_v1 = vpop.f32.mrf.mxu2  ;;  %2228 = vmatpush.msra.mxu2 %v2174_v31  ;;  %v2173_v32 = vld [vmem:[%s13824_s7 + $0x150] sm:$0xff] }
 0x124   :  { %2210 = vmatpush.msra.mxu1 %v2156_v37  ;;  %v2105_v18 = vsel %vm2064_vm0, %v2095_v17, 0.0  ;;  %v1854_v3 = vpop.f32.mrf.mxu3  ;;  %v2071_v7 = vadd.f32 %v2070_v2, %v2069_v61  ;;  %v2172_v37 = vld [vmem:[%s13824_s7 + $0x148] sm:$0xff] }
 0x125   :  { %2191 = vmatpush.msra.mxu0 %v2139_v6  ;;  %v2074_v62 = vadd.f32 %v2073_v57, %v2072_v11  ;;  %v2106_v63 = vrot.slane %v2105_v18, 4  ;;  %2229 = vmatpush.msra.mxu2 %v2173_v32 }
 0x126   :  { %2211 = vmatpush.msra.mxu1 %v2155_v42  ;;  %v2127_v21 = vsel %vm2126_vm1, %v2071_v7, %v2104_v19  ;;  %v2170_v42 = vld [vmem:[%s13824_s7 + $0x138] sm:$0xff] }
 0x127   :  { %2192 = vmatpush.msra.mxu0 %v2138_v44  ;;  %v2075_v4 = vrot.slane %v2074_v62, 2  ;;  %v2107_v5 = vadd.f32 %v2106_v63, %v2105_v18  ;;  %2230 = vmatpush.msra.mxu2 %v2172_v37 }
 0x128   :  { %2212 = vmatpush.msra.mxu1 %v2154_v48  ;;  %v2167_v48 = vld [vmem:[%s13824_s7 + $0x120] sm:$0xff] }
 0x129   :  { %2193 = vmatpush.msra.mxu0 %v2137_v50  ;;  %v2076_v15 = vadd.f32 %v2075_v4, %v2074_v62  ;;  %v2108_v33 = vrot.slane %v2107_v5, 2  ;;  %2231 = vmatpush.msra.mxu2 %v2171_v41 }
 0x12a   :  { %2213 = vmatpush.msra.mxu1 %v2153_v54 }
 0x12b   :  { %2194 = vmatpush.msra.mxu0 %v2136_v56  ;;  %v2077_v20 = vrot.slane %v2076_v15, 1  ;;  %v2109_v43 = vadd.f32 %v2108_v33, %v2107_v5  ;;  %2232 = vmatpush.msra.mxu2 %v2170_v42 }
 0x12c   :  { %2214 = vmatpush.msra.mxu1 %v2152_v58 }
 0x12d   :  { %2195 = vmatpush.msra.mxu0 %v2135_v25  ;;  %v2110_v8 = vrot.slane %v2109_v43, 1  ;;  %v2078_v22 = vadd.f32 %v2077_v20, %v2076_v15  ;;  %2233 = vmatpush.msra.mxu2 %v2169_v45 }
 0x12e   :  { %2215 = vmatpush.msra.mxu1 %v2151_v0 }
 0x12f   :  { %2196 = vmatpush.msra.mxu0 %v2134_v28  ;;  %v2111_v23 = vadd.f32 %v2110_v8, %v2109_v43  ;;  %2234 = vmatpush.msra.mxu2 %v2168_v47 }
 0x130   :  { %2216 = vmatpush.msra.mxu1 %v2150_v13 }
 0x131   :  { %2197 = vmatpush.msra.mxu0 %v2133_v14  ;;  %v2128_v24 = vsel %vm2126_vm1, %v2078_v22, %v2111_v23  ;;  %2235 = vmatpush.msra.mxu2 %v2167_v48  ;;  %v2179_v23 = vld [vmem:[%s13824_s7 + $0x180] sm:$0xff] }
 0x132   :  { %2217 = vmatpush.msra.mxu1 %v2149_v12  ;;  %2259 = vmatpush.msra.mxu3 %v2179_v23  ;;  %v7306_v23 = vld [vmem:[%s13826_s9 + $0x50] sm:$0xf] }
 0x133   :  { %2198 = vmatpush.msra.mxu0 %v2132_v16  ;;  %v1865_v29 = vpop.f32.mrf.mxu0  ;;  %2236 = vmatpush.msra.mxu2 %v2166_v49 }
 0x134   :  { %2218 = vmatpush.msra.mxu1 %v2148_v38  ;;  %v1878_v30 = vpop.f32.mrf.mxu1 }
 0x135   :  { %2199 = vmatpush.msra.mxu0 %v2131_v34  ;;  %v1879_v50 = vadd.f32 %v1878_v30, %v1865_v29  ;;  %2237 = vmatpush.msra.mxu2 %v2165_v52 }
 0x136   :  { %2200 = vmatmul.f32.vlgmr.msra.gmra.mxu0 %v2127_v21  ;;  %2219 = vmatpush.msra.mxu1 %v2147_v39 }
 0x137   :  { %2220 = vmatmul.f32.vlgmr.msra.gmra.mxu1 %v2128_v24  ;;  %2238 = vmatpush.msra.mxu2 %v2164_v53 }
 0x139   :  { %2239 = vmatpush.msra.mxu2 %v2163_v55 }
 0x13b   :  { %v1891_v35 = vpop.f32.mrf.mxu2  ;;  %v1867_v6 = vpop.f32.mrf.mxu0 }
 0x13c   :  { %v1904_v36 = vpop.f32.mrf.mxu3  ;;  %v1880_v40 = vpop.f32.mrf.mxu1  ;;  %v1892_v54 = vadd.f32 %v1891_v35, %v1879_v50 }
 0x13e   :  { %v1905_v11 = vadd.f32 %v1904_v36, %v1892_v54 }
 0x143   :  { %v1893_v44 = vpop.f32.mrf.mxu2 }
 0x144   :  { %v1906_v46 = vpop.f32.mrf.mxu3 }
 0x153   :  { %v1917_v17 = vpop.f32.mrf.mxu0 }
 0x154   :  { %v1918_v56 = vadd.f32 %v1917_v17, %v1905_v11  ;;  %v1930_v57 = vpop.f32.mrf.mxu1 }
 0x156   :  { %v1931_v58 = vadd.f32 %v1930_v57, %v1918_v56 }
 0x15b   :  { %v1943_v59 = vpop.f32.mrf.mxu2  ;;  %v1919_v26 = vpop.f32.mrf.mxu0 }
 0x15c   :  { %v1944_v60 = vadd.f32 %v1943_v59, %v1931_v58  ;;  %v1956_v18 = vpop.f32.mrf.mxu3  ;;  %v1932_v61 = vpop.f32.mrf.mxu1 }
 0x15e   :  { %v10990_v25 = vadd.f32 %v1956_v18, %v1944_v60 }
 0x160   :  { %v2079_v62 = vsel %vm2064_vm0, %v10990_v25, 0.0  ;;  %v2096_v63 = vmul.f32 %v10990_v25, %v10990_v25 }
 0x161   :  { %v2080_v0 = vrot.slane %v2079_v62, 4 }
 0x162   :  { %v2112_v1 = vsel %vm2064_vm0, %v2096_v63, 0.0 }
 0x163   :  { %v2081_v28 = vadd.f32 %v2080_v0, %v2079_v62  ;;  %v2113_v3 = vrot.slane %v2112_v1, 4  ;;  %v1945_v4 = vpop.f32.mrf.mxu2 }
 0x164   :  { %v1958_v5 = vpop.f32.mrf.mxu3 }
 0x165   :  { %v2082_v10 = vrot.slane %v2081_v28, 2  ;;  %v2114_v13 = vadd.f32 %v2113_v3, %v2112_v1 }
 0x167   :  { %v2083_v14 = vadd.f32 %v2082_v10, %v2081_v28  ;;  %v2115_v15 = vrot.slane %v2114_v13, 2  ;;  %v2294_v10 = vld [vmem:[%s13825_s1] sm:$0xff] }
 0x168   :  { %2316 = vmatpush.msrb.mxu3 %v2294_v10 }
 0x169   :  { %v2084_v33 = vrot.slane %v2083_v14, 1  ;;  %v2116_v2 = vadd.f32 %v2115_v15, %v2114_v13  ;;  %v2296_v13 = vld [vmem:[%s13825_s1 + $0x10] sm:$0xff]  ;;  %v2295_v15 = vld [vmem:[%s13825_s1 + $0x8] sm:$0xff] }
 0x16a   :  { %2356 = vmatpush.msrb.mxu0 %v2296_v13 }
 0x16b   :  { %v2117_v12 = vrot.slane %v2116_v2, 1  ;;  %v2085_v16 = vadd.f32 %v2084_v33, %v2083_v14  ;;  %v2297_v14 = vld [vmem:[%s13825_s1 + $0x18] sm:$0xff] }
 0x16c   :  { %2376 = vmatpush.msrb.mxu1 %v2297_v14  ;;  %v7378_v14 = vld [vmem:[%s13826_s9 + $0xe0] sm:$0xf] }
 0x16d   :  { %v2118_v19 = vadd.f32 %v2117_v12, %v2116_v2 }
 0x16f   :  { %v2129_v38 = vsel %vm2126_vm1, %v2085_v16, %v2118_v19  ;;  %v7322_v19 = vld [vmem:[%s13826_s9 + $0x70] sm:$0xf] }
 0x170   :  { %2240 = vmatmul.f32.vlgmr.msra.gmra.mxu2 %v2129_v38  ;;  %v8732_v38 = vld [vmem:[%s13826_s9 + $0x74] sm:$0xf0] }
 0x173   :  { %v1969_v20 = vpop.f32.mrf.mxu0 }
 0x174   :  { %v1982_v43 = vpop.f32.mrf.mxu1 }
 0x175   :  { %v1983_v24 = vadd.f32 %v1982_v43, %v1969_v20  ;;  %v7323_v20 = vor.u32 %v8732_v38, %v7322_v19  ;;  %v7314_v43 = vld [vmem:[%s13826_s9 + $0x60] sm:$0xf]  ;;  %v7370_v19 = vld [vmem:[%s13826_s9 + $0xd0] sm:$0xf]  ;;  %v8744_v38 = vld [vmem:[%s13826_s9 + $0xd4] sm:$0xf0] }
 0x177   :  { %2709 = vmatpush.bf16.msrb.mxu2 %v7323_v20  ;;  %v7371_v20 = vor.u32 %v8744_v38, %v7370_v19  ;;  %v8721_v38 = vld [vmem:[%s13826_s9 + $0x24] sm:$0xf] }
 0x17b   :  { %v1995_v34 = vpop.f32.mrf.mxu2  ;;  %v1971_v39 = vpop.f32.mrf.mxu0 }
 0x17c   :  { %v2008_v7 = vpop.f32.mrf.mxu3  ;;  %v1984_v8 = vpop.f32.mrf.mxu1  ;;  %v1996_v27 = vadd.f32 %v1995_v34, %v1983_v24  ;;  %v8730_v34 = vld [vmem:[%s13826_s9 + $0x64] sm:$0xf0] }
 0x17d   :  { %v8764_v8 = vld [vmem:[%s13826_s9 + $0x174] sm:$0xf0] }
 0x17e   :  { %v2009_v29 = vadd.f32 %v2008_v7, %v1996_v27  ;;  %v7450_v7 = vld [vmem:[%s13826_s9 + $0x170] sm:$0xf]  ;;  %v8728_v27 = vld [vmem:[%s13826_s9 + $0x54] sm:$0xf0] }
 0x183   :  { %v1997_v21 = vpop.f32.mrf.mxu2 }
 0x184   :  { %v2010_v22 = vpop.f32.mrf.mxu3  ;;  %v7315_v21 = vor.u32 %v8730_v34, %v7314_v43  ;;  %v7362_v43 = vld [vmem:[%s13826_s9 + $0xc0] sm:$0xf]  ;;  %v8742_v34 = vld [vmem:[%s13826_s9 + $0xc4] sm:$0xf0] }
 0x185   :  { %v7451_v22 = vor.u32 %v8764_v8, %v7450_v7  ;;  %v7363_v7 = vor.u32 %v8742_v34, %v7362_v43  ;;  %v8740_v8 = vld [vmem:[%s13826_s9 + $0xb4] sm:$0xf0]  ;;  %v8739_v34 = vld [vmem:[%s13826_s9 + $0xb4] sm:$0xf] }
 0x186   :  { %2710 = vmatpush.bf16.msrb.mxu2 %v7315_v21 }
 0x187   :  { %2735 = vmatpush.bf16.msra.mxu0 %v7451_v22  ;;  %v7410_v22 = vld [vmem:[%s13826_s9 + $0x120] sm:$0xf] }
 0x193   :  { %v2021_v30 = vpop.f32.mrf.mxu0 }
 0x194   :  { %v2034_v31 = vpop.f32.mrf.mxu1  ;;  %v2022_v32 = vadd.f32 %v2021_v30, %v2009_v29  ;;  %v7442_v29 = vld [vmem:[%s13826_s9 + $0x160] sm:$0xf]  ;;  %v8762_v30 = vld [vmem:[%s13826_s9 + $0x164] sm:$0xf0] }
 0x196   :  { %v2035_v35 = vadd.f32 %v2034_v31, %v2022_v32  ;;  %v7443_v31 = vor.u32 %v8762_v30, %v7442_v29  ;;  %v7316_v29 = vld [vmem:[%s13826_s9 + $0x68] sm:$0xf0]  ;;  %v7266_v30 = vld [vmem:[%s13826_s9] sm:$0xf] }
 0x198   :  { %2736 = vmatpush.bf16.msra.mxu0 %v7443_v31  ;;  %v8718_v31 = vld [vmem:[%s13826_s9 + $0x4] sm:$0xf0] }
 0x19b   :  { %v2047_v36 = vpop.f32.mrf.mxu2  ;;  %v2023_v40 = vpop.f32.mrf.mxu0 }
 0x19c   :  { %v2048_v37 = vadd.f32 %v2047_v36, %v2035_v35  ;;  %v2060_v6 = vpop.f32.mrf.mxu3  ;;  %v2036_v41 = vpop.f32.mrf.mxu1  ;;  %v7434_v35 = vld [vmem:[%s13826_s9 + $0x150] sm:$0xf]  ;;  %v8760_v36 = vld [vmem:[%s13826_s9 + $0x154] sm:$0xf0]  ;;  %v7298_v40 = vld [vmem:[%s13826_s9 + $0x40] sm:$0xf] }
 0x19d   :  { %v8726_v41 = vld [vmem:[%s13826_s9 + $0x44] sm:$0xf0] }
 0x19e   :  { %v11001_v42 = vadd.f32 %v2060_v6, %v2048_v37  ;;  %v7307_v37 = vor.u32 %v8728_v27, %v7306_v23  ;;  %v11066_v6 = vld [vmem:[%s13826_s9 + $0x180] sm:$0xff]  ;;  %v8754_v23 = vld [vmem:[%s13826_s9 + $0x124] sm:$0xf0] }
 0x19f   :  { %v7411_v27 = vor.u32 %v8754_v23, %v7410_v22  ;;  %v8719_v23 = vld [vmem:[%s13826_s9 + $0x14] sm:$0xf] }
 0x1a0   :  { %v2087_v44 = vsel %vm2086_vm2, %v11001_v42, 0.0  ;;  %v2097_v45 = vmul.f32 %v11001_v42, %v11001_v42  ;;  %2711 = vmatpush.bf16.msrb.mxu2 %v7307_v37  ;;  %v8738_v37 = vld [vmem:[%s13826_s9 + $0xa4] sm:$0xf0] }
 0x1a1   :  { %v2088_v46 = vrot.slane %v2087_v44, 4 }
 0x1a2   :  { %v2119_v47 = vsel %vm2086_vm2, %v2097_v45, 0.0  ;;  %v7435_v45 = vor.u32 %v8760_v36, %v7434_v35  ;;  %v7267_v35 = vor.u32 %v8718_v31, %v7266_v30  ;;  %v7346_v36 = vld [vmem:[%s13826_s9 + $0xa0] sm:$0xf]  ;;  %v7348_v30 = vld [vmem:[%s13826_s9 + $0xa8] sm:$0xf0] }
 0x1a3   :  { %v2089_v48 = vadd.f32 %v2088_v46, %v2087_v44  ;;  %v2120_v49 = vrot.slane %v2119_v47, 4  ;;  %v2049_v50 = vpop.f32.mrf.mxu2  ;;  %v2599_v44 = vunpack.c.l.b16 %v11066_v6  ;;  %v7426_v46 = vld [vmem:[%s13826_s9 + $0x140] sm:$0xf]  ;;  %v8757_v31 = vld [vmem:[%s13826_s9 + $0x144] sm:$0xf] }
 0x1a4   :  { %v2062_v52 = vpop.f32.mrf.mxu3  ;;  %v7299_v50 = vor.u32 %v8726_v41, %v7298_v40  ;;  %2737 = vmatpush.bf16.msra.mxu0 %v7435_v45  ;;  %v8747_v40 = vld [vmem:[%s13826_s9 + $0xf4] sm:$0xf]  ;;  %v7347_v41 = vor.u32 %v8738_v37, %v7346_v36  ;;  %v7428_v36 = vld [vmem:[%s13826_s9 + $0x148] sm:$0xf0] }
 0x1a5   :  { %v2090_v53 = vrot.slane %v2089_v48, 2  ;;  %v2121_v54 = vadd.f32 %v2120_v49, %v2119_v47  ;;  %v8758_v47 = vld [vmem:[%s13826_s9 + $0x144] sm:$0xf0]  ;;  %v2269_v49 = vld [vmem:[%s13827_s10] sm:$0x1]  ;;  %s13828_s10 = sld [smem:[#allocation9_spill]]  ;;  %v7431_v37 = vor.u32 %v8757_v31, %v7428_v36 }
 0x1a6   :  { %v7290_v52 = vld [vmem:[%s13826_s9 + $0x30] sm:$0xf]  ;;  %2712 = vmatpush.bf16.msrb.mxu2 %v7299_v50  ;;  %v7308_v50 = vld [vmem:[%s13826_s9 + $0x58] sm:$0xf0] }
 0x1a7   :  { %v2091_v55 = vadd.f32 %v2090_v53, %v2089_v48  ;;  %v2122_v11 = vrot.slane %v2121_v54, 2  ;;  %v2649_v48 = vpack.c.b16 %v2599_v44, %v2599_v44  ;;  %v8724_v53 = vld [vmem:[%s13826_s9 + $0x34] sm:$0xf0]  ;;  %v7388_v44 = vld [vmem:[%s13826_s9 + $0xf8] sm:$0xf0] }
 0x1a8   :  { %v7391_v45 = vor.u32 %v8747_v40, %v7388_v44  ;;  %v8717_v40 = vld [vmem:[%s13826_s9 + $0x4] sm:$0xf] }
 0x1a9   :  { %v2092_v17 = vrot.slane %v2091_v55, 1  ;;  %v2123_v56 = vadd.f32 %v2122_v11, %v2121_v54  ;;  %v2704_v54 = vsel %vm2702_vm7, %v2649_v48, 0  ;;  %v8727_v48 = vld [vmem:[%s13826_s9 + $0x54] sm:$0xf] }
 0x1aa   :  { %2755 = vmatpush.bf16.msra.mxu1 %v2704_v54  ;;  %v7311_v54 = vor.u32 %v8727_v48, %v7308_v50  ;;  %v7420_v50 = vld [vmem:[%s13826_s9 + $0x138] sm:$0xf0] }
 0x1ab   :  { %v2124_v57 = vrot.slane %v2123_v56, 1  ;;  %v2093_v58 = vadd.f32 %v2092_v17, %v2091_v55  ;;  %v7427_v55 = vor.u32 %v8758_v47, %v7426_v46  ;;  %v7418_v17 = vld [vmem:[%s13826_s9 + $0x130] sm:$0xf]  ;;  %v8752_v47 = vld [vmem:[%s13826_s9 + $0x114] sm:$0xf0] }
 0x1ac   :  { %v7402_v46 = vld [vmem:[%s13826_s9 + $0x110] sm:$0xf] }
 0x1ad   :  { %v2125_v59 = vadd.f32 %v2124_v57, %v2123_v56  ;;  %v8756_v56 = vld [vmem:[%s13826_s9 + $0x134] sm:$0xf0]  ;;  %2738 = vmatpush.bf16.msra.mxu0 %v7427_v55 }
 0x1af   :  { %v2130_v60 = vsel %vm2126_vm1, %v2093_v58, %v2125_v59  ;;  %v7291_v58 = vor.u32 %v8724_v53, %v7290_v52  ;;  %v2287_v59 = vld [vmem:[%s13828_s10] sm:$0x1]  ;;  %v7338_v52 = vld [vmem:[%s13826_s9 + $0x90] sm:$0xf]  ;;  %v8736_v53 = vld [vmem:[%s13826_s9 + $0x94] sm:$0xf0] }
 0x1b0   :  { %7259 = vmatmul.msk.f32.vlgmr.msra.gmra.mxu3 %vm2180_vm3, %v2130_v60  ;;  %v7282_v60 = vld [vmem:[%s13826_s9 + $0x20] sm:$0xf]  ;;  %v7339_v55 = vor.u32 %v8736_v53, %v7338_v52  ;;  %v8733_v53 = vld [vmem:[%s13826_s9 + $0x84] sm:$0xf]  ;;  %s13829_s10 = sld [smem:[#allocation10_spill]] }
 0x1b1   :  { %2336 = vmatpush.msra.mxu3 %v2295_v15  ;;  %2713 = vmatpush.bf16.msrb.mxu2 %v7291_v58  ;;  %v8746_v15 = vld [vmem:[%s13826_s9 + $0xe4] sm:$0xf0] }
 0x1b2   :  { %v8750_v58 = vld [vmem:[%s13826_s9 + $0x104] sm:$0xf0] }
 0x1b3   :  { %v2201_v26 = vpop.f32.mrf.mxu0 }
 0x1b4   :  { %v2221_v18 = vpop.f32.mrf.mxu1 }
 0x1b5   :  { %v2222_v62 = vadd.f32 %v2221_v18, %v2201_v26  ;;  %v8722_v18 = vld [vmem:[%s13826_s9 + $0x24] sm:$0xf0] }
 0x1b6   :  { %v2853_v31 = vld [vmem:[%s13829_s10 + $0x38] sm:$0xff] }
 0x1f3   :  { %v2241_v61 = vpop.f32.mrf.mxu2 }
 0x1f4   :  { %v2242_v63 = vadd.f32 %v2241_v61, %v2222_v62  ;;  %v7419_v61 = vor.u32 %v8756_v56, %v7418_v17  ;;  %v7386_v62 = vld [vmem:[%s13826_s9 + $0xf0] sm:$0xf]  ;;  %v7380_v17 = vld [vmem:[%s13826_s9 + $0xe8] sm:$0xf0] }
 0x1f6   :  { %2739 = vmatpush.bf16.msra.mxu0 %v7419_v61  ;;  %v8734_v61 = vld [vmem:[%s13826_s9 + $0x84] sm:$0xf0] }
 0x1fa   :  { %2740 = vmatpush.bf16.msra.mxu0 %v7411_v27 }
 0x233   :  { %v2261_v0 = vpop.f32.mrf.mxu3 }
 0x234   :  { %v11010_v1 = vadd.f32 %v2261_v0, %v2242_v63  ;;  %v8748_v63 = vld [vmem:[%s13826_s9 + $0xf4] sm:$0xf0] }
 0x235   :  { %v7387_v13 = vor.u32 %v8748_v63, %v7386_v62 }
 0x236   :  { %v2264_v28 = vmul.f32 %v11010_v1, %v11010_v1 }
 0x238   :  { %v2266_v3 = vrot.slane %v2264_v28, 7  ;;  %v7283_v28 = vor.u32 %v8722_v18, %v7282_v60  ;;  %v7300_v18 = vld [vmem:[%s13826_s9 + $0x48] sm:$0xf0] }
 0x23a   :  { %v2268_v4 = vsub.f32 %v11010_v1, %v2266_v3  ;;  %v8731_v3 = vld [vmem:[%s13826_s9 + $0x74] sm:$0xf]  ;;  %2714 = vmatpush.bf16.msrb.mxu2 %v7283_v28  ;;  %v7372_v28 = vld [vmem:[%s13826_s9 + $0xd8] sm:$0xf0] }
 0x23c   :  { %v2270_v5 = vadd.f32 1e-05, %v2268_v4  ;;  %v7274_v4 = vld [vmem:[%s13826_s9 + $0x10] sm:$0xf] }
 0x23e   :  { %9007 = vrsqrt.f32 %v2270_v5  ;;  %vm2277_vm5 = vweird.f32 %v2270_v5 }
 0x244   :  { %v9008_v33 = vpop.eup %9007 }
 0x245   :  { %v2272_v2 = vmul.f32 %v9008_v33, %v2270_v5  ;;  %vm2278_vm4 = vweird.f32 %v9008_v33  ;;  %v8720_v5 = vld [vmem:[%s13826_s9 + $0x14] sm:$0xf0] }
 0x246   :  { %vm2279_vm6 = vmor %vm2277_vm5, %vm2278_vm4 }
 0x247   :  { %v2273_v12 = vmul.f32 %v9008_v33, %v2272_v2 }
 0x249   :  { %v2274_v16 = vmul.f32 0.5, %v2273_v12  ;;  %v7275_v12 = vor.u32 %v8720_v5, %v7274_v4  ;;  %v7452_v4 = vld [vmem:[%s13826_s9 + $0x178] sm:$0xf0] }
 0x24b   :  { %v2275_v39 = vsub.f32 1.5, %v2274_v16  ;;  %v7379_v16 = vor.u32 %v8746_v15, %v7378_v14  ;;  %2715 = vmatpush.bf16.msrb.mxu2 %v7275_v12  ;;  %v8741_v15 = vld [vmem:[%s13826_s9 + $0xc4] sm:$0xf] }
 0x24d   :  { %v2276_v24 = vmul.f32 %v9008_v33, %v2275_v39  ;;  %v7354_v39 = vld [vmem:[%s13826_s9 + $0xb0] sm:$0xf] }
 0x24e   :  { %v7355_v21 = vor.u32 %v8740_v8, %v7354_v39  ;;  %v8759_v39 = vld [vmem:[%s13826_s9 + $0x154] sm:$0xf] }
 0x24f   :  { %v2280_v32 = vsel %vm2279_vm6, %v9008_v33, %v2276_v24  ;;  %v8729_v24 = vld [vmem:[%s13826_s9 + $0x64] sm:$0xf]  ;;  %2716 = vmatpush.bf16.msrb.mxu2 %v7267_v35  ;;  %vm3175_vm6 = vcmask 261120  }
 0x250   :  { %2282 = vst [vmem:[#allocation1] sm:$0xff] %v2280_v32  ;;  %v7319_v32 = vor.u32 %v8729_v24, %v7316_v29  ;;  %v7276_v24 = vld [vmem:[%s13826_s9 + $0x18] sm:$0xf0]  ;;  %v8737_v29 = vld [vmem:[%s13826_s9 + $0xa4] sm:$0xf] }
 0x251   :  { %v7279_v27 = vor.u32 %v8719_v23, %v7276_v24  ;;  %v7351_v35 = vor.u32 %v8737_v29, %v7348_v30  ;;  %v2858_v23 = vld [vmem:[%s13829_s10 + $0x60] sm:$0xff]  ;;  %v2857_v24 = vld [vmem:[%s13829_s10 + $0x58] sm:$0xff]  ;;  %v2855_v29 = vld [vmem:[%s13829_s10 + $0x48] sm:$0xff] }
 0x252   :  { %v2854_v30 = vld [vmem:[%s13829_s10 + $0x40] sm:$0xff] }
 0x253   :  { %2774 = vmatpush.bf16.msra.mxu2 %v7391_v45 }
 0x257   :  { %v2284_v11 = vld [vmem:[#allocation1 + $0x1] ss:$9 sm:$0xff] }
 0x258   :  { %v2286_v57 = vmul.f32 %v2284_v11, %v2269_v49  ;;  %v7403_v49 = vor.u32 %v8752_v47, %v7402_v46  ;;  %v8745_v11 = vld [vmem:[%s13826_s9 + $0xe4] sm:$0xf]  ;;  %v8735_v46 = vld [vmem:[%s13826_s9 + $0x94] sm:$0xf]  ;;  %v7340_v47 = vld [vmem:[%s13826_s9 + $0x98] sm:$0xf0] }
 0x259   :  { %v7383_v56 = vor.u32 %v8745_v11, %v7380_v17  ;;  %v7343_v48 = vor.u32 %v8735_v46, %v7340_v47  ;;  %v7412_v17 = vld [vmem:[%s13826_s9 + $0x128] sm:$0xf0]  ;;  %v2846_v47 = vld [vmem:[%s13829_s10] sm:$0xff] }
 0x25a   :  { %v2288_v26 = vmul.f32 %v2286_v57, %v11010_v1  ;;  %v7324_v1 = vld [vmem:[%s13826_s9 + $0x78] sm:$0xf0]  ;;  %2741 = vmatpush.bf16.msra.mxu0 %v7403_v49  ;;  %v8755_v49 = vld [vmem:[%s13826_s9 + $0x134] sm:$0xf] }
 0x25b   :  { %v7327_v33 = vor.u32 %v8731_v3, %v7324_v1  ;;  %2775 = vmatpush.bf16.msra.mxu2 %v7383_v56  ;;  %v8763_v3 = vld [vmem:[%s13826_s9 + $0x174] sm:$0xf]  ;;  %v7423_v52 = vor.u32 %v8755_v49, %v7420_v50 }
 0x25c   :  { %v2289_v0 = vsub.f32 %v2287_v59, %v2288_v26  ;;  %v8725_v59 = vld [vmem:[%s13826_s9 + $0x44] sm:$0xf]  ;;  %v7330_v26 = vld [vmem:[%s13826_s9 + $0x80] sm:$0xf]  ;;  %v7455_v5 = vor.u32 %v8763_v3, %v7452_v4 }
 0x25d   :  { %v7303_v62 = vor.u32 %v8725_v59, %v7300_v18  ;;  %v7331_v63 = vor.u32 %v8734_v61, %v7330_v26  ;;  %v7404_v59 = vld [vmem:[%s13826_s9 + $0x118] sm:$0xf0]  ;;  %v8749_v61 = vld [vmem:[%s13826_s9 + $0x104] sm:$0xf] }
 0x25e   :  { %v2291_v10 = vperm.slane %v2289_v0, 0  ;;  %v8743_v0 = vld [vmem:[%s13826_s9 + $0xd4] sm:$0xf] }
 0x25f   :  { %v7375_v1 = vor.u32 %v8743_v0, %v7372_v28 }
 0x260   :  { %v2293_v2 = vsel %vm2126_vm1, %v2286_v57, %v2291_v10  ;;  %v7394_v57 = vld [vmem:[%s13826_s9 + $0x100] sm:$0xf]  ;;  %v8723_v10 = vld [vmem:[%s13826_s9 + $0x34] sm:$0xf] }
 0x261   :  { %7260 = vmatmul.msk.f32.vlgmr.msrb.gmra.mxu3 %vm2180_vm3, %v2293_v2  ;;  %7262 = vmatmul.msk.f32.vlgmr.msrb.gmra.mxu0 %vm2180_vm3, %v2293_v2  ;;  %v7395_v60 = vor.u32 %v8750_v58, %v7394_v57  ;;  %v8751_v58 = vld [vmem:[%s13826_s9 + $0x114] sm:$0xf] }
 0x262   :  { %7263 = vmatmul.msk.f32.vlgmr.msrb.gmra.mxu1 %vm2180_vm3, %v2293_v2  ;;  %2722 = vmatpush.bf16.msrb.mxu3 %v7387_v13  ;;  %v7292_v13 = vld [vmem:[%s13826_s9 + $0x38] sm:$0xf0]  ;;  %v7407_v26 = vor.u32 %v8751_v58, %v7404_v59 }
 0x263   :  { %2761 = vmatpush.bf16.msrb.mxu1 %v7327_v33  ;;  %2742 = vmatpush.bf16.msra.mxu0 %v7395_v60  ;;  %v7295_v14 = vor.u32 %v8723_v10, %v7292_v13  ;;  %v7364_v33 = vld [vmem:[%s13826_s9 + $0xc8] sm:$0xf0] }
 0x264   :  { %2776 = vmatpush.bf16.msra.mxu2 %v7375_v1  ;;  %v7367_v12 = vor.u32 %v8741_v15, %v7364_v33 }
 0x266   :  { %2723 = vmatpush.bf16.msrb.mxu3 %v7379_v16  ;;  %v7444_v16 = vld [vmem:[%s13826_s9 + $0x168] sm:$0xf0] }
 0x267   :  { %2762 = vmatpush.bf16.msrb.mxu1 %v7319_v32  ;;  %v2600_v32 = vunpack.c.h.b16 %v11066_v6 }
 0x268   :  { %2777 = vmatpush.bf16.msra.mxu2 %v7367_v12 }
 0x269   :  { %7261 = vmatmul.msk.f32.vlgmr.msra.gmra.mxu3 %vm2180_vm3, %v2293_v2  ;;  %v8761_v2 = vld [vmem:[%s13826_s9 + $0x164] sm:$0xf]  ;;  %v2650_v44 = vpack.c.b16 %v2600_v32, %v2600_v32  ;;  %v2852_v32 = vld [vmem:[%s13829_s10 + $0x30] sm:$0xff] }
 0x26a   :  { %2724 = vmatpush.bf16.msrb.mxu3 %v7371_v20  ;;  %v7447_v19 = vor.u32 %v8761_v2, %v7444_v16  ;;  %v7284_v20 = vld [vmem:[%s13826_s9 + $0x28] sm:$0xf0] }
 0x26b   :  { %2763 = vmatpush.bf16.msrb.mxu1 %v7311_v54  ;;  %v7287_v43 = vor.u32 %v8721_v38, %v7284_v20  ;;  %v2707_v6 = vsel %vm2702_vm7, %v2650_v44, 0  ;;  %v7332_v54 = vld [vmem:[%s13826_s9 + $0x88] sm:$0xf0]  ;;  %v2848_v44 = vld [vmem:[%s13829_s10 + $0x10] sm:$0xff] }
 0x26c   :  { %2807 = vmatpush.bf16.msrb.mxu0 %v2707_v6  ;;  %v7335_v11 = vor.u32 %v8733_v53, %v7332_v54  ;;  %v2847_v6 = vld [vmem:[%s13829_s10 + $0x8] sm:$0xff]  ;;  %v2862_v53 = vld [vmem:[%s13829_s10 + $0x80] sm:$0xff] }
 0x26e   :  { %2725 = vmatpush.bf16.msrb.mxu3 %v7363_v7  ;;  %v7356_v7 = vld [vmem:[%s13826_s9 + $0xb8] sm:$0xf0] }
 0x26f   :  { %2764 = vmatpush.bf16.msrb.mxu1 %v7303_v62  ;;  %v7359_v8 = vor.u32 %v8739_v34, %v7356_v7  ;;  %v7396_v62 = vld [vmem:[%s13826_s9 + $0x108] sm:$0xf0] }
 0x270   :  { %v7399_v4 = vor.u32 %v8749_v61, %v7396_v62 }
 0x271   :  { %2778 = vmatpush.bf16.msra.mxu2 %v7359_v8 }
 0x272   :  { %2726 = vmatpush.bf16.msrb.mxu3 %v7355_v21  ;;  %v7436_v21 = vld [vmem:[%s13826_s9 + $0x158] sm:$0xf0] }
 0x273   :  { %2765 = vmatpush.bf16.msrb.mxu1 %v7295_v14  ;;  %v7439_v22 = vor.u32 %v8759_v39, %v7436_v21 }
 0x275   :  { %2779 = vmatpush.bf16.msra.mxu2 %v7351_v35  ;;  %v2851_v35 = vld [vmem:[%s13829_s10 + $0x28] sm:$0xff] }
 0x276   :  { %2727 = vmatpush.bf16.msrb.mxu3 %v7347_v41  ;;  %v7268_v41 = vld [vmem:[%s13826_s9 + $0x8] sm:$0xf0] }
 0x277   :  { %2766 = vmatpush.bf16.msrb.mxu1 %v7287_v43  ;;  %v7271_v45 = vor.u32 %v8717_v40, %v7268_v41  ;;  %v2849_v41 = vld [vmem:[%s13829_s10 + $0x18] sm:$0xff] }
 0x279   :  { %2780 = vmatpush.bf16.msra.mxu2 %v7343_v48 }
 0x27a   :  { %2728 = vmatpush.bf16.msrb.mxu3 %v7339_v55  ;;  %v8753_v55 = vld [vmem:[%s13826_s9 + $0x124] sm:$0xf] }
 0x27b   :  { %2767 = vmatpush.bf16.msrb.mxu1 %v7279_v27  ;;  %v7415_v56 = vor.u32 %v8753_v55, %v7412_v17  ;;  %v2856_v27 = vld [vmem:[%s13829_s10 + $0x50] sm:$0xff] }
 0x27d   :  { %2781 = vmatpush.bf16.msra.mxu2 %v7335_v11 }
 0x27e   :  { %2729 = vmatpush.bf16.msrb.mxu3 %v7331_v63 }
 0x27f   :  { %2768 = vmatpush.bf16.msrb.mxu1 %v7271_v45 }
 0x282   :  { %2787 = vmatpush.bf16.msra.mxu3 %v7455_v5 }
 0x286   :  { %2788 = vmatpush.bf16.msra.mxu3 %v7447_v19 }
 0x28a   :  { %2789 = vmatpush.bf16.msra.mxu3 %v7439_v22  ;;  %v2860_v22 = vld [vmem:[%s13829_s10 + $0x70] sm:$0xff] }
 0x28e   :  { %2790 = vmatpush.bf16.msra.mxu3 %v7431_v37  ;;  %v2850_v37 = vld [vmem:[%s13829_s10 + $0x20] sm:$0xff] }
 0x292   :  { %2791 = vmatpush.bf16.msra.mxu3 %v7423_v52  ;;  %v2863_v52 = vld [vmem:[%s13829_s10 + $0x88] sm:$0xff] }
 0x296   :  { %2792 = vmatpush.bf16.msra.mxu3 %v7415_v56 }
 0x29a   :  { %2793 = vmatpush.bf16.msra.mxu3 %v7407_v26 }
 0x29e   :  { %2794 = vmatpush.bf16.msra.mxu3 %v7399_v4 }
 0x2de   :  { %v2358_v57 = vpop.f32.mrf.mxu0 }
 0x2df   :  { %v2383_v60 = vperm.slane %v2358_v57, 0  ;;  %v2378_v18 = vpop.f32.mrf.mxu1  ;;  %v2391_v28 = vperm.slane %v2358_v57, 1 }
 0x2e0   :  { %v2384_v63 = vperm.slane %v2378_v18, 0  ;;  %v2392_v1 = vperm.slane %v2378_v18, 1 }
 0x2e1   :  { %v2387_v0 = vmul.f32 %v2383_v60, %v10990_v25 }
 0x2e2   :  { %v2388_v3 = vmul.f32 %v2384_v63, %v11001_v42 }
 0x2e3   :  { %v2395_v5 = vadd.f32 %v2391_v28, %v2387_v0 }
 0x2e4   :  { %v2396_v10 = vadd.f32 %v2392_v1, %v2388_v3  ;;  %v2318_v13 = vpop.f32.mrf.mxu3 }
 0x2e5   :  { %v2399_v14 = vmax.f32 %v2395_v5, 0.0  ;;  %v2381_v15 = vperm.slane %v2318_v13, 0  ;;  %v2389_v16 = vperm.slane %v2318_v13, 1 }
 0x2e6   :  { %v2400_v33 = vmax.f32 %v2396_v10, 0.0 }
 0x2e7   :  { %v2403_v2 = vpack.c.bf16 %v2399_v14, %v2399_v14  ;;  %v2385_v12 = vmul.f32 %v2381_v15, %v10822_v9  ;;  %v2861_v9 = vld [vmem:[%s13829_s10 + $0x78] sm:$0xff] }
 0x2e8   :  { %v2404_v19 = vpack.c.bf16 %v2400_v33, %v2400_v33 }
 0x2e9   :  { %v2393_v38 = vadd.f32 %v2389_v16, %v2385_v12  ;;  %2743 = vmatmul.bf16.vlgmr.msra.gmra.mxu0 %v2403_v2 }
 0x2ea   :  { %7456 = vmatmul.msk.bf16.vlgmr.msra.gmra.mxu1 %vm2180_vm3, %v2404_v19  ;;  %2902 = vmatpush.msra.mxu0 %v2863_v52 }
 0x2eb   :  { %v2397_v25 = vmax.f32 %v2393_v38, 0.0  ;;  %2868 = vmatpush.msra.mxu1 %v2861_v9 }
 0x2ec   :  { %v2338_v42 = vpop.f32.mrf.mxu3  ;;  %2903 = vmatpush.msra.mxu0 %v2862_v53  ;;  %v8770_v53 = vld [vmem:[%s13787_s3 + $0x28] sm:$0xff] }
 0x2ed   :  { %v2401_v20 = vpack.c.bf16 %v2397_v25, %v2397_v25  ;;  %v2382_v43 = vperm.slane %v2338_v42, 0  ;;  %v2390_v7 = vperm.slane %v2338_v42, 1  ;;  %2869 = vmatpush.msra.mxu1 %v2860_v22 }
 0x2ef   :  { %v2386_v34 = vmul.f32 %v2382_v43, %v10897_v51  ;;  %2717 = vmatmul.bf16.vlgmr.msrb.gmra.mxu2 %v2401_v20  ;;  %v2859_v51 = vld [vmem:[%s13829_s10 + $0x68] sm:$0xff] }
 0x2f0   :  { %2870 = vmatpush.msra.mxu1 %v2859_v51 }
 0x2f1   :  { %v2394_v39 = vadd.f32 %v2390_v7, %v2386_v34 }
 0x2f2   :  { %2871 = vmatpush.msra.mxu1 %v2858_v23 }
 0x2f3   :  { %v2398_v8 = vmax.f32 %v2394_v39, 0.0 }
 0x2f4   :  { %2872 = vmatpush.msra.mxu1 %v2857_v24 }
 0x2f5   :  { %v2402_v21 = vpack.c.bf16 %v2398_v8, %v2398_v8 }
 0x2f6   :  { %2873 = vmatpush.msra.mxu1 %v2856_v27 }
 0x2f7   :  { %2730 = vmatmul.bf16.vlgmr.msrb.gmra.mxu3 %v2402_v21 }
 0x2f8   :  { %2874 = vmatpush.msra.mxu1 %v2855_v29 }
 0x2f9   :  { %7457 = vmatmul.msk.bf16.vlgmr.msrb.gmra.mxu0 %vm2180_vm3, %v2404_v19 }
 0x2fa   :  { %2769 = vmatmul.bf16.vlgmr.msrb.gmra.mxu1 %v2401_v20 }
 0x2fb   :  { %2875 = vmatpush.msra.mxu1 %v2854_v30 }
 0x2fd   :  { %2876 = vmatpush.msra.mxu1 %v2853_v31 }
 0x2ff   :  { %2782 = vmatmul.bf16.vlgmr.msra.gmra.mxu2 %v2402_v21  ;;  %2877 = vmatpush.msra.mxu1 %v2852_v32 }
 0x301   :  { %2878 = vmatpush.msra.mxu1 %v2851_v35 }
 0x303   :  { %2879 = vmatpush.msra.mxu1 %v2850_v37 }
 0x305   :  { %2880 = vmatpush.msra.mxu1 %v2849_v41 }
 0x307   :  { %2795 = vmatmul.bf16.vlgmr.msra.gmra.mxu3 %v2403_v2  ;;  %2881 = vmatpush.msra.mxu1 %v2848_v44  ;;  %v2940_v44 = vld [vmem:[%s13830_s12 + $0x10] sm:$0xff] }
 0x308   :  { %2959 = vmatpush.msrb.mxu0 %v2940_v44 }
 0x309   :  { %2882 = vmatpush.msra.mxu1 %v2847_v6  ;;  %v2938_v6 = vld [vmem:[%s13830_s12] sm:$0xff] }
 0x30a   :  { %2960 = vmatpush.msrb.mxu0 %v2938_v6 }
 0x30b   :  { %2883 = vmatpush.msra.mxu1 %v2846_v47  ;;  %v8772_v47 = vld [vmem:[%s13787_s3 + $0x38] sm:$0xff] }
 0x30c   :  { %3072 = vmatpush.bf16.msrb.mxu3 %v8772_v47  ;;  %v7508_v47 = vld [vmem:[%s13790_s4 + $0x10] sm:$0xf] }
 0x366   :  { %v2744_v36 = vpop.f32.mrf.mxu0 }
 0x367   :  { %v2757_v40 = vpop.f32.mrf.mxu1 }
 0x36e   :  { %v2746_v45 = vpop.f32.mrf.mxu0 }
 0x36f   :  { %v2759_v46 = vpop.f32.mrf.mxu1  ;;  %v2941_v45 = vld [vmem:[%s13830_s12 + $0x18] sm:$0xff] }
 0x370   :  { %2979 = vmatpush.msrb.mxu2 %v2941_v45  ;;  %v2939_v46 = vld [vmem:[%s13830_s12 + $0x8] sm:$0xff] }
 0x372   :  { %v2718_v48 = vpop.f32.mrf.mxu2  ;;  %2980 = vmatpush.msrb.mxu2 %v2939_v46 }
 0x376   :  { %v2809_v49 = vpop.f32.mrf.mxu0 }
 0x377   :  { %v2770_v50 = vpop.f32.mrf.mxu1 }
 0x37a   :  { %v2720_v54 = vpop.f32.mrf.mxu2  ;;  %v2731_v55 = vpop.f32.mrf.mxu3 }
 0x37b   :  { %v2732_v11 = vadd.f32 %v2731_v55, %v2718_v48  ;;  %v8771_v48 = vld [vmem:[%s13787_s3 + $0x30] sm:$0xff] }
 0x37c   :  { %3073 = vmatpush.bf16.msrb.mxu3 %v8771_v48  ;;  %v8777_v48 = vld [vmem:[%s13790_s4 + $0x14] sm:$0xf0] }
 0x37d   :  { %v2745_v17 = vadd.f32 %v2744_v36, %v2732_v11  ;;  %v8769_v11 = vld [vmem:[%s13787_s3 + $0x20] sm:$0xff] }
 0x37e   :  { %v2811_v56 = vpop.f32.mrf.mxu0 }
 0x37f   :  { %v11396_v57 = vadd.f32 %v2757_v40, %v2745_v17  ;;  %v2772_v58 = vpop.f32.mrf.mxu1 }
 0x380   :  { %3074 = vmatpush.bf16.msrb.mxu3 %v8770_v53  ;;  %v8768_v58 = vld [vmem:[%s13787_s3 + $0x18] sm:$0xff]  ;;  %v7509_v53 = vor.u32 %v8777_v48, %v7508_v47 }
 0x381   :  { %v2813_v59 = vsel %vm2064_vm0, %v11396_v57, 0.0  ;;  %v2828_v60 = vmul.f32 %v11396_v57, %v11396_v57 }
 0x382   :  { %v2814_v18 = vrot.slane %v2813_v59, 4  ;;  %v2733_v26 = vpop.f32.mrf.mxu3  ;;  %v2783_v61 = vpop.f32.mrf.mxu2  ;;  %3185 = vmatpush.bf16.msrb.mxu1 %v7509_v53 }
 0x383   :  { %v2830_v62 = vsel %vm2064_vm0, %v2828_v60, 0.0  ;;  %v2784_v5 = vadd.f32 %v2783_v61, %v2770_v50  ;;  %v2931_v26 = vld [vmem:[%s13789_s16] sm:$0x1] }
 0x384   :  { %v2815_v63 = vadd.f32 %v2814_v18, %v2813_v59  ;;  %v2831_v0 = vrot.slane %v2830_v62, 4  ;;  %3075 = vmatpush.bf16.msrb.mxu3 %v8769_v11  ;;  %v2913_v59 = vld [vmem:[%s13788_s15] sm:$0x1] }
 0x386   :  { %v2816_v28 = vrot.slane %v2815_v63, 2  ;;  %v2832_v3 = vadd.f32 %v2831_v0, %v2830_v62 }
 0x388   :  { %v2817_v1 = vadd.f32 %v2816_v28, %v2815_v63  ;;  %v2833_v4 = vrot.slane %v2832_v3, 2  ;;  %3076 = vmatpush.bf16.msrb.mxu3 %v8768_v58  ;;  %v8767_v28 = vld [vmem:[%s13787_s3 + $0x10] sm:$0xff]  ;;  %v8775_v58 = vld [vmem:[%s13790_s4 + $0x4] sm:$0xf0] }
 0x38a   :  { %v2785_v10 = vpop.f32.mrf.mxu2  ;;  %v2796_v13 = vpop.f32.mrf.mxu3  ;;  %v2818_v14 = vrot.slane %v2817_v1, 1  ;;  %v2834_v15 = vadd.f32 %v2833_v4, %v2832_v3  ;;  %v8766_v3 = vld [vmem:[%s13787_s3 + $0x8] sm:$0xff]  ;;  %v8773_v4 = vld [vmem:[%s13787_s3 + $0x40] sm:$0xff] }
 0x38b   :  { %v2797_v33 = vadd.f32 %v2796_v13, %v2784_v5 }
 0x38c   :  { %v2835_v2 = vrot.slane %v2834_v15, 1  ;;  %v2819_v16 = vadd.f32 %v2818_v14, %v2817_v1  ;;  %3077 = vmatpush.bf16.msrb.mxu3 %v8767_v28  ;;  %v8765_v1 = vld [vmem:[%s13787_s3] sm:$0xff] }
 0x38d   :  { %v11403_v12 = vadd.f32 %v2809_v49, %v2797_v33 }
 0x38e   :  { %v2836_v19 = vadd.f32 %v2835_v2, %v2834_v15 }
 0x38f   :  { %v2821_v38 = vsel %vm2820_vm8, %v11403_v12, 0.0  ;;  %v2829_v25 = vmul.f32 %v11403_v12, %v11403_v12 }
 0x390   :  { %v2822_v42 = vrot.slane %v2821_v38, 4  ;;  %v2844_v20 = vsel %vm2126_vm1, %v2819_v16, %v2836_v19  ;;  %3078 = vmatpush.bf16.msrb.mxu3 %v8766_v3 }
 0x391   :  { %v2837_v43 = vsel %vm2820_vm8, %v2829_v25, 0.0  ;;  %2884 = vmatmul.f32.vlgmr.msra.gmra.mxu1 %v2844_v20 }
 0x392   :  { %v2823_v34 = vadd.f32 %v2822_v42, %v2821_v38  ;;  %v2838_v7 = vrot.slane %v2837_v43, 4  ;;  %v2798_v39 = vpop.f32.mrf.mxu3 }
 0x394   :  { %v2824_v8 = vrot.slane %v2823_v34, 2  ;;  %v2839_v21 = vadd.f32 %v2838_v7, %v2837_v43  ;;  %3079 = vmatpush.bf16.msrb.mxu3 %v8765_v1 }
 0x396   :  { %v2825_v9 = vadd.f32 %v2824_v8, %v2823_v34  ;;  %v2840_v22 = vrot.slane %v2839_v21, 2  ;;  %v9076_v34 = vmov 2.0  }
 0x398   :  { %v2826_v51 = vrot.slane %v2825_v9, 1  ;;  %v2841_v23 = vadd.f32 %v2840_v22, %v2839_v21 }
 0x39a   :  { %v2842_v24 = vrot.slane %v2841_v23, 1  ;;  %v2827_v27 = vadd.f32 %v2826_v51, %v2825_v9 }
 0x39c   :  { %v2843_v29 = vadd.f32 %v2842_v24, %v2841_v23 }
 0x39e   :  { %v2845_v30 = vsel %vm2126_vm1, %v2827_v27, %v2843_v29 }
 0x39f   :  { %7458 = vmatmul.msk.f32.vlgmr.msra.gmra.mxu0 %vm2864_vm9, %v2845_v30 }
 0x3a0   :  { %3092 = vmatpush.bf16.msra.mxu0 %v8773_v4  ;;  %v3125_v4 = vld [vmem:[%s13791_s17] sm:$0x1] }
 0x40e   :  { %v2885_v31 = vpop.f32.mrf.mxu1 }
 0x41c   :  { %v2905_v32 = vpop.f32.mrf.mxu0 }
 0x41d   :  { %v2906_v35 = vadd.f32 %v2905_v32, %v2885_v31 }
 0x41f   :  { %v2908_v36 = vmul.f32 %v2906_v35, %v2906_v35 }
 0x421   :  { %v2910_v37 = vrot.slane %v2908_v36, 7 }
 0x423   :  { %v2912_v40 = vsub.f32 %v2906_v35, %v2910_v37 }
 0x425   :  { %v2914_v41 = vadd.f32 1e-05, %v2912_v40 }
 0x427   :  { %9009 = vrsqrt.f32 %v2914_v41  ;;  %vm2921_vm11 = vweird.f32 %v2914_v41 }
 0x428   :  { %9011 = vrcp.f32 %v9076_v34 }
 0x42d   :  { %v9010_v49 = vpop.eup %9009 }
 0x42e   :  { %v2916_v50 = vmul.f32 %v9010_v49, %v2914_v41  ;;  %vm2922_vm10 = vweird.f32 %v9010_v49  ;;  %v9012_v7 = vpop.eup %9011 }
 0x42f   :  { %vm2923_vm12 = vmor %vm2921_vm11, %vm2922_vm10  ;;  %v3107_v39 = vmul.f32 2.0, %v9012_v7  ;;  %vm3111_vm14 = vweird.f32 %v9012_v7 }
 0x430   :  { %v2917_v52 = vmul.f32 %v9010_v49, %v2916_v50 }
 0x431   :  { %v3108_v9 = vsub.f32 1.0, %v3107_v39  ;;  %v8804_v39 = vld [vmem:[%s13793_s5 + $0xcc] sm:$0xf0] }
 0x432   :  { %v2918_v54 = vmul.f32 0.5, %v2917_v52 }
 0x433   :  { %v3109_v23 = vmul.f32 %v9012_v7, %v3108_v9 }
 0x434   :  { %v2919_v55 = vsub.f32 1.5, %v2918_v54  ;;  %v7510_v54 = vld [vmem:[%s13790_s4 + $0x18] sm:$0xf0] }
 0x435   :  { %v3110_v36 = vadd.f32 %v9012_v7, %v3109_v23 }
 0x436   :  { %v2920_v17 = vmul.f32 %v9010_v49, %v2919_v55 }
 0x437   :  { %v11469_v45 = vsel %vm3111_vm14, %v9012_v7, %v3110_v36  ;;  %v7614_v7 = vld [vmem:[%s13793_s5 + $0xc0] sm:$0xf] }
 0x438   :  { %v2924_v56 = vsel %vm2923_vm12, %v9010_v49, %v2920_v17  ;;  %v8776_v49 = vld [vmem:[%s13790_s4 + $0x14] sm:$0xf] }
 0x439   :  { %2926 = vst [vmem:[#allocation1] sm:$0xff] %v2924_v56  ;;  %v7513_v55 = vor.u32 %v8776_v49, %v7510_v54  ;;  %v7500_v56 = vld [vmem:[%s13790_s4] sm:$0xf] }
 0x43b   :  { %3198 = vmatpush.bf16.msra.mxu2 %v7513_v55 }
 0x440   :  { %v2928_v60 = vld [vmem:[#allocation1 + $0x1] ss:$9 sm:$0xff] }
 0x441   :  { %v2930_v18 = vmul.f32 %v2928_v60, %v2913_v59  ;;  %v8774_v59 = vld [vmem:[%s13790_s4 + $0x4] sm:$0xf] }
 0x443   :  { %v2932_v61 = vmul.f32 %v2930_v18, %v2906_v35 }
 0x445   :  { %v2933_v62 = vsub.f32 %v2931_v26, %v2932_v61  ;;  %v7502_v26 = vld [vmem:[%s13790_s4 + $0x8] sm:$0xf0] }
 0x446   :  { %v7505_v61 = vor.u32 %v8774_v59, %v7502_v26  ;;  %v7550_v26 = vld [vmem:[%s13793_s5 + $0x40] sm:$0xf] }
 0x447   :  { %v2935_v63 = vperm.slane %v2933_v62, 0 }
 0x448   :  { %3199 = vmatpush.bf16.msra.mxu2 %v7505_v61  ;;  %v8788_v61 = vld [vmem:[%s13793_s5 + $0x4c] sm:$0xf0] }
 0x449   :  { %v2937_v0 = vsel %vm2126_vm1, %v2930_v18, %v2935_v63  ;;  %v7501_v18 = vor.u32 %v8775_v58, %v7500_v56 }
 0x44a   :  { %7459 = vmatmul.msk.f32.vlgmr.msrb.gmra.mxu0 %vm2864_vm9, %v2937_v0  ;;  %7460 = vmatmul.msk.f32.vlgmr.msrb.gmra.mxu2 %vm2864_vm9, %v2937_v0 }
 0x44b   :  { %3186 = vmatpush.bf16.msrb.mxu1 %v7501_v18 }
 0x4c7   :  { %v2962_v5 = vpop.f32.mrf.mxu0 }
 0x4c8   :  { %v2985_v10 = vperm.slane %v2962_v5, 0  ;;  %v2989_v14 = vperm.slane %v2962_v5, 1 }
 0x4ca   :  { %v2987_v13 = vmul.f32 %v2985_v10, %v11396_v57 }
 0x4cc   :  { %v2991_v15 = vadd.f32 %v2989_v14, %v2987_v13  ;;  %v3138_v14 = vld [vmem:[%s13792_s18] sm:$0x1] }
 0x4cd   :  { %v2982_v33 = vpop.f32.mrf.mxu2 }
 0x4ce   :  { %v2993_v2 = vmax.f32 %v2991_v15, 0.0  ;;  %v2986_v16 = vperm.slane %v2982_v33, 0  ;;  %v2990_v25 = vperm.slane %v2982_v33, 1 }
 0x4d0   :  { %v2995_v19 = vpack.c.bf16 %v2993_v2, %v2993_v2  ;;  %v2988_v38 = vmul.f32 %v2986_v16, %v11403_v12 }
 0x4d2   :  { %v2992_v42 = vadd.f32 %v2990_v25, %v2988_v38  ;;  %3080 = vmatmul.bf16.vlgmr.msrb.gmra.mxu3 %v2995_v19 }
 0x4d4   :  { %v2994_v20 = vmax.f32 %v2992_v42, 0.0 }
 0x4d6   :  { %v2996_v43 = vpack.c.bf16 %v2994_v20, %v2994_v20  ;;  %v7630_v20 = vld [vmem:[%s13793_s5 + $0xe0] sm:$0xf] }
 0x4d8   :  { %7497 = vmatmul.msk.bf16.vlgmr.msra.gmra.mxu0 %vm2864_vm9, %v2996_v43  ;;  %v8808_v43 = vld [vmem:[%s13793_s5 + $0xec] sm:$0xf0] }
 0x4d9   :  { %v7631_v34 = vor.u32 %v8808_v43, %v7630_v20 }
 0x4db   :  { %3518 = vmatpush.bf16.msrb.mxu0 %v7631_v34 }
 0x555   :  { %v3081_v57 = vpop.f32.mrf.mxu3  ;;  %v3094_v8 = vpop.f32.mrf.mxu0 }
 0x556   :  { %v11464_v21 = vadd.f32 %v3094_v8, %v3081_v57  ;;  %v7615_v57 = vor.u32 %v8804_v39, %v7614_v7  ;;  %v7598_v8 = vld [vmem:[%s13793_s5 + $0xa0] sm:$0xf] }
 0x558   :  { %v3099_v22 = vsel %vm3098_vm13, %v11464_v21, 0.0  ;;  %v3114_v12 = vmul.f32 %v11464_v21, %v11464_v21  ;;  %3519 = vmatpush.bf16.msrb.mxu0 %v7615_v57 }
 0x559   :  { %v3100_v51 = vrot.slane %v3099_v22, 4 }
 0x55a   :  { %v3115_v24 = vsel %vm3098_vm13, %v3114_v12, 0.0 }
 0x55b   :  { %v3101_v27 = vadd.f32 %v3100_v51, %v3099_v22  ;;  %v3116_v29 = vrot.slane %v3115_v24, 4 }
 0x55d   :  { %v3102_v30 = vrot.slane %v3101_v27, 2  ;;  %v3117_v31 = vadd.f32 %v3116_v29, %v3115_v24  ;;  %v3083_v32 = vpop.f32.mrf.mxu3  ;;  %v3096_v35 = vpop.f32.mrf.mxu0  ;;  %v7582_v24 = vld [vmem:[%s13793_s5 + $0x80] sm:$0xf] }
 0x55e   :  { %v7632_v32 = vld [vmem:[%s13793_s5 + $0xf0] sm:$0xf0] }
 0x55f   :  { %v3103_v37 = vadd.f32 %v3102_v30, %v3101_v27  ;;  %v3118_v40 = vrot.slane %v3117_v31, 2  ;;  %v8796_v27 = vld [vmem:[%s13793_s5 + $0x8c] sm:$0xf0] }
 0x560   :  { %v7583_v30 = vor.u32 %v8796_v27, %v7582_v24  ;;  %v8790_v24 = vld [vmem:[%s13793_s5 + $0x64] sm:$0xf] }
 0x561   :  { %v3104_v41 = vrot.slane %v3103_v37, 1  ;;  %v3119_v44 = vadd.f32 %v3118_v40, %v3117_v31  ;;  %v8806_v31 = vld [vmem:[%s13793_s5 + $0xe4] sm:$0xf] }
 0x563   :  { %v3105_v6 = vadd.f32 %v3104_v41, %v3103_v37  ;;  %v3120_v46 = vrot.slane %v3119_v44, 1  ;;  %v7635_v37 = vor.u32 %v8806_v31, %v7632_v32  ;;  %v7568_v32 = vld [vmem:[%s13793_s5 + $0x70] sm:$0xf0] }
 0x565   :  { %v3113_v50 = vmul.f32 %v11469_v45, %v3105_v6  ;;  %v3121_v52 = vadd.f32 %v3120_v46, %v3119_v44  ;;  %3544 = vmatpush.bf16.msrb.mxu2 %v7635_v37  ;;  %v7566_v6 = vld [vmem:[%s13793_s5 + $0x60] sm:$0xf]  ;;  %v8792_v46 = vld [vmem:[%s13793_s5 + $0x6c] sm:$0xf0]  ;;  %v8809_v37 = vld [vmem:[%s13793_s5 + $0xf4] sm:$0xf0] }
 0x566   :  { %v7567_v49 = vor.u32 %v8792_v46, %v7566_v6 }
 0x567   :  { %v3122_v11 = vmul.f32 %v3121_v52, %v11469_v45  ;;  %v3123_v17 = vmul.f32 %v3113_v50, %v3113_v50  ;;  %v7616_v52 = vld [vmem:[%s13793_s5 + $0xd0] sm:$0xf0] }
 0x569   :  { %v3124_v60 = vsub.f32 %v3122_v11, %v3123_v17 }
 0x56b   :  { %v3126_v62 = vadd.f32 1e-05, %v3124_v60 }
 0x56d   :  { %9013 = vrsqrt.f32 %v3126_v62  ;;  %vm3133_vm4 = vweird.f32 %v3126_v62 }
 0x573   :  { %v9014_v63 = vpop.eup %9013 }
 0x574   :  { %v3128_v0 = vmul.f32 %v9014_v63, %v3126_v62  ;;  %vm3134_vm15 = vweird.f32 %v9014_v63  ;;  %v7551_v62 = vor.u32 %v8788_v61, %v7550_v26 }
 0x575   :  { %vm3135_vm5 = vmor %vm3133_vm4, %vm3134_vm15 }
 0x576   :  { %v3129_v28 = vmul.f32 %v9014_v63, %v3128_v0  ;;  %v7600_v0 = vld [vmem:[%s13793_s5 + $0xb0] sm:$0xf0] }
 0x578   :  { %v3130_v3 = vmul.f32 0.5, %v3129_v28 }
 0x57a   :  { %v3131_v1 = vsub.f32 1.5, %v3130_v3 }
 0x57c   :  { %v3132_v5 = vmul.f32 %v9014_v63, %v3131_v1 }
 0x57e   :  { %v3136_v10 = vsel %vm3135_vm5, %v9014_v63, %v3132_v5  ;;  %v8798_v63 = vld [vmem:[%s13793_s5 + $0xa4] sm:$0xf] }
 0x57f   :  { %v3137_v13 = vmul.f32 %v3136_v10, %v3125_v4  ;;  %v7603_v5 = vor.u32 %v8798_v63, %v7600_v0  ;;  %v8799_v63 = vld [vmem:[%s13793_s5 + $0xac] sm:$0xf]  ;;  %v7608_v0 = vld [vmem:[%s13793_s5 + $0xb8] sm:$0xf0] }
 0x581   :  { %v3139_v15 = vmul.f32 %v3137_v13, %v3113_v50  ;;  %v3142_v33 = vperm.slane %v3137_v13, 0  ;;  %v8802_v50 = vld [vmem:[%s13793_s5 + $0xc4] sm:$0xf] }
 0x582   :  { %v7619_v17 = vor.u32 %v8802_v50, %v7616_v52  ;;  %v7552_v50 = vld [vmem:[%s13793_s5 + $0x50] sm:$0xf0]  ;;  %v7622_v52 = vld [vmem:[%s13793_s5 + $0xc8] sm:$0xf] }
 0x583   :  { %v3140_v2 = vsub.f32 %v3138_v14, %v3139_v15  ;;  %v3144_v16 = vmul.f32 %v3142_v33, %v11464_v21  ;;  %v8800_v21 = vld [vmem:[%s13793_s5 + $0xac] sm:$0xf0] }
 0x584   :  { %v7599_v9 = vor.u32 %v8800_v21, %v7598_v8  ;;  %3545 = vmatpush.bf16.msrb.mxu2 %v7619_v17  ;;  %v7518_v21 = vld [vmem:[%s13793_s5] sm:$0xf] }
 0x585   :  { %v3146_v19 = vperm.slane %v3140_v2, 0  ;;  %v7534_v2 = vld [vmem:[%s13793_s5 + $0x20] sm:$0xf] }
 0x586   :  { %3520 = vmatpush.bf16.msrb.mxu0 %v7599_v9  ;;  %v8780_v9 = vld [vmem:[%s13793_s5 + $0xc] sm:$0xf0] }
 0x587   :  { %v3148_v38 = vadd.f32 %v3146_v19, %v3144_v16  ;;  %v8784_v16 = vld [vmem:[%s13793_s5 + $0x2c] sm:$0xf0] }
 0x588   :  { %3546 = vmatpush.bf16.msrb.mxu2 %v7603_v5  ;;  %v7535_v19 = vor.u32 %v8784_v16, %v7534_v2  ;;  %v8778_v5 = vld [vmem:[%s13793_s5 + $0x4] sm:$0xf]  ;;  %v7590_v2 = vld [vmem:[%s13793_s5 + $0x88] sm:$0xf]  ;;  %v8797_v16 = vld [vmem:[%s13793_s5 + $0x94] sm:$0xf0] }
 0x589   :  { %v3149_v25 = vmax.f32 %v3148_v38, 0.0  ;;  %v8794_v38 = vld [vmem:[%s13793_s5 + $0x84] sm:$0xf] }
 0x58a   :  { %3521 = vmatpush.bf16.msrb.mxu0 %v7583_v30 }
 0x58b   :  { %v3150_v42 = vpack.c.bf16 %v3149_v25, %v3149_v25  ;;  %v7584_v25 = vld [vmem:[%s13793_s5 + $0x90] sm:$0xf0] }
 0x58c   :  { %v7587_v7 = vor.u32 %v8794_v38, %v7584_v25  ;;  %v7591_v38 = vor.u32 %v8797_v16, %v7590_v2  ;;  %v8795_v25 = vld [vmem:[%s13793_s5 + $0x8c] sm:$0xf] }
 0x58d   :  { %7514 = vmatmul.msk.bf16.vlgmr.msrb.gmra.mxu1 %vm3175_vm6, %v3150_v42  ;;  %7515 = vmatmul.msk.bf16.vlgmr.msra.gmra.mxu2 %vm3175_vm6, %v3150_v42  ;;  %vm5994_vm6 = vcmask 31744  }
 0x58e   :  { %3522 = vmatpush.bf16.msrb.mxu0 %v7567_v49  ;;  %3547 = vmatpush.bf16.msrb.mxu2 %v7587_v7  ;;  %v8786_v49 = vld [vmem:[%s13793_s5 + $0x44] sm:$0xf] }
 0x592   :  { %3523 = vmatpush.bf16.msrb.mxu0 %v7551_v62  ;;  %v8801_v62 = vld [vmem:[%s13793_s5 + $0xb4] sm:$0xf0] }
 0x596   :  { %3524 = vmatpush.bf16.msrb.mxu0 %v7535_v19 }
 0x60a   :  { %v11522_v22 = vpop.f32.mrf.mxu1 }
 0x60b   :  { %v3205_v12 = vsel %vm2064_vm0, %v11522_v22, 0.0  ;;  %v3221_v51 = vmul.f32 %v11522_v22, %v11522_v22 }
 0x60c   :  { %v3206_v23 = vrot.slane %v3205_v12, 4 }
 0x60d   :  { %v3223_v29 = vsel %vm2064_vm0, %v3221_v51, 0.0  ;;  %v7646_v51 = vld [vmem:[%s13793_s5 + $0x100] sm:$0xf] }
 0x60e   :  { %v3207_v35 = vadd.f32 %v3206_v23, %v3205_v12  ;;  %v3224_v36 = vrot.slane %v3223_v29, 4  ;;  %v7519_v12 = vor.u32 %v8780_v9, %v7518_v21  ;;  %v8812_v23 = vld [vmem:[%s13793_s5 + $0x10c] sm:$0xf0]  ;;  %v7576_v21 = vld [vmem:[%s13793_s5 + $0x78] sm:$0xf0] }
 0x60f   :  { %v7647_v31 = vor.u32 %v8812_v23, %v7646_v51  ;;  %v7558_v23 = vld [vmem:[%s13793_s5 + $0x48] sm:$0xf] }
 0x610   :  { %v3208_v40 = vrot.slane %v3207_v35, 2  ;;  %v3225_v41 = vadd.f32 %v3224_v36, %v3223_v29  ;;  %v11541_v44 = vpop.f32.mrf.mxu2  ;;  %3525 = vmatpush.bf16.msrb.mxu0 %v7519_v12  ;;  %v7571_v36 = vor.u32 %v8790_v24, %v7568_v32  ;;  %v8789_v24 = vld [vmem:[%s13793_s5 + $0x54] sm:$0xf0] }
 0x611   :  { %v3212_v47 = vsel %vm2820_vm8, %v11541_v44, 0.0  ;;  %v3222_v48 = vmul.f32 %v11541_v44, %v11541_v44  ;;  %3538 = vmatpush.bf16.msra.mxu1 %v7647_v31  ;;  %v7560_v31 = vld [vmem:[%s13793_s5 + $0x58] sm:$0xf0] }
 0x612   :  { %v3209_v53 = vadd.f32 %v3208_v40, %v3207_v35  ;;  %v3226_v54 = vrot.slane %v3225_v41, 2  ;;  %v3213_v55 = vrot.slane %v3212_v47, 4  ;;  %v3190_v11 = vpop.f32.mrf.mxu1  ;;  %v7638_v35 = vld [vmem:[%s13793_s5 + $0xe8] sm:$0xf]  ;;  %v8807_v40 = vld [vmem:[%s13793_s5 + $0xec] sm:$0xf]  ;;  %3548 = vmatpush.bf16.msrb.mxu2 %v7571_v36 }
 0x613   :  { %v3230_v56 = vsel %vm2820_vm8, %v3222_v48, 0.0  ;;  %v7624_v11 = vld [vmem:[%s13793_s5 + $0xd8] sm:$0xf0]  ;;  %v7542_v36 = vld [vmem:[%s13793_s5 + $0x28] sm:$0xf] }
 0x614   :  { %v3210_v58 = vrot.slane %v3209_v53, 1  ;;  %v3227_v59 = vadd.f32 %v3226_v54, %v3225_v41  ;;  %v3214_v60 = vadd.f32 %v3213_v55, %v3212_v47  ;;  %v3231_v18 = vrot.slane %v3230_v56, 4  ;;  %v7640_v41 = vld [vmem:[%s13793_s5 + $0xf8] sm:$0xf0]  ;;  %v8805_v54 = vld [vmem:[%s13793_s5 + $0xd4] sm:$0xf0] }
 0x615   :  { %v7639_v47 = vor.u32 %v8809_v37, %v7638_v35  ;;  %v7643_v48 = vor.u32 %v8807_v40, %v7640_v41  ;;  %v8803_v55 = vld [vmem:[%s13793_s5 + $0xcc] sm:$0xf]  ;;  %v7623_v17 = vor.u32 %v8805_v54, %v7622_v52  ;;  %v8785_v37 = vld [vmem:[%s13793_s5 + $0x34] sm:$0xf0]  ;;  %v7654_v40 = vld [vmem:[%s13793_s5 + $0x108] sm:$0xf] }
 0x616   :  { %v3211_v28 = vadd.f32 %v3210_v58, %v3209_v53  ;;  %v3228_v3 = vrot.slane %v3227_v59, 1  ;;  %v3215_v1 = vrot.slane %v3214_v60, 2  ;;  %v3232_v4 = vadd.f32 %v3231_v18, %v3230_v56  ;;  %v7606_v18 = vld [vmem:[%s13793_s5 + $0xa8] sm:$0xf]  ;;  %v8811_v52 = vld [vmem:[%s13793_s5 + $0x10c] sm:$0xf] }
 0x617   :  { %v7555_v53 = vor.u32 %v8786_v49, %v7552_v50  ;;  %3570 = vmatpush.bf16.msrb.mxu1 %v7639_v47  ;;  %3596 = vmatpush.bf16.msra.mxu0 %v7643_v48  ;;  %v7627_v56 = vor.u32 %v8803_v55, %v7624_v11  ;;  %v8783_v47 = vld [vmem:[%s13793_s5 + $0x2c] sm:$0xf]  ;;  %v8813_v48 = vld [vmem:[%s13793_s5 + $0x114] sm:$0xf0]  ;;  %v7544_v49 = vld [vmem:[%s13793_s5 + $0x38] sm:$0xf0] }
 0x618   :  { %v11573_v10 = vmul.f32 %v3211_v28, %v11469_v45  ;;  %v3229_v13 = vadd.f32 %v3228_v3, %v3227_v59  ;;  %v3216_v14 = vadd.f32 %v3215_v1, %v3214_v60  ;;  %v3233_v15 = vrot.slane %v3232_v4, 2  ;;  %v3203_v33 = vpop.f32.mrf.mxu2  ;;  %v8782_v59 = vld [vmem:[%s13793_s5 + $0x24] sm:$0xf]  ;;  %v7536_v60 = vld [vmem:[%s13793_s5 + $0x30] sm:$0xf0] }
 0x619   :  { %3549 = vmatpush.bf16.msrb.mxu2 %v7555_v53  ;;  %v7539_v61 = vor.u32 %v8782_v59, %v7536_v60  ;;  %v7607_v3 = vor.u32 %v8801_v62, %v7606_v18  ;;  %v7611_v1 = vor.u32 %v8799_v63, %v7608_v0  ;;  %v7648_v33 = vld [vmem:[%s13793_s5 + $0x110] sm:$0xf0]  ;;  %v7655_v50 = vor.u32 %v8813_v48, %v7654_v40  ;;  %v3243_v11 = vld [vmem:[%s13794_s19] sm:$0x3]  ;;  %v7526_v60 = vld [vmem:[%s13793_s5 + $0x8] sm:$0xf] }
 0x61a   :  { %v3237_v42 = vmul.f32 %v3229_v13, %v11469_v45  ;;  %v3239_v20 = vmul.f32 %v11573_v10, %v11573_v10  ;;  %v3217_v43 = vrot.slane %v3216_v14, 1  ;;  %v3234_v34 = vadd.f32 %v3233_v15, %v3232_v4  ;;  %v7520_v13 = vld [vmem:[%s13793_s5 + $0x10] sm:$0xf0]  ;;  %v8781_v18 = vld [vmem:[%s13793_s5 + $0x14] sm:$0xf0]  ;;  %v9042_v40 = vld [vmem:[%s13824_s7 + $0x48] sm:$0xff] }
 0x61b   :  { %3571 = vmatpush.bf16.msrb.mxu1 %v7623_v17  ;;  %3597 = vmatpush.bf16.msra.mxu0 %v7627_v56  ;;  %v7523_v15 = vor.u32 %v8778_v5, %v7520_v13  ;;  %v7543_v56 = vor.u32 %v8785_v37, %v7542_v36  ;;  %v7528_v62 = vld [vmem:[%s13793_s5 + $0x18] sm:$0xf0]  ;;  %v9040_v36 = vld [vmem:[%s13824_s7 + $0xd0] sm:$0xff]  ;;  %v9047_v48 = vld [vmem:[%s13824_s7 + $0x140] sm:$0xff] }
 0x61c   :  { %v3241_v39 = vsub.f32 %v3237_v42, %v3239_v20  ;;  %v3218_v57 = vadd.f32 %v3217_v43, %v3216_v14  ;;  %v3235_v8 = vrot.slane %v3234_v34, 1  ;;  %v8810_v14 = vld [vmem:[%s13793_s5 + $0x104] sm:$0xf]  ;;  %v7592_v42 = vld [vmem:[%s13793_s5 + $0x98] sm:$0xf0]  ;;  %v9041_v37 = vld [vmem:[%s13824_s7 + $0x150] sm:$0xff] }
 0x61d   :  { %3550 = vmatpush.bf16.msrb.mxu2 %v7539_v61  ;;  %v7651_v19 = vor.u32 %v8810_v14, %v7648_v33  ;;  %v7595_v43 = vor.u32 %v8795_v25, %v7592_v42 }
 0x61e   :  { %v11605_v27 = vadd.f32 1e-05, %v3241_v39  ;;  %v11608_v29 = vmul.f32 %v3218_v57, %v11469_v45  ;;  %v3236_v30 = vadd.f32 %v3235_v8, %v3234_v34  ;;  %v7574_v39 = vld [vmem:[%s13793_s5 + $0x68] sm:$0xf]  ;;  %v8793_v57 = vld [vmem:[%s13793_s5 + $0x74] sm:$0xf0] }
 0x61f   :  { %3572 = vmatpush.bf16.msrb.mxu1 %v7607_v3  ;;  %3598 = vmatpush.bf16.msra.mxu0 %v7611_v1  ;;  %v8791_v8 = vld [vmem:[%s13793_s5 + $0x6c] sm:$0xf]  ;;  %v7575_v12 = vor.u32 %v8793_v57, %v7574_v39  ;;  %v9027_v39 = vld [vmem:[%s13824_s7 + $0x70] sm:$0xff] }
 0x620   :  { %9015 = vrsqrt.f32 %v11605_v27  ;;  %v3238_v6 = vmul.f32 %v3236_v30, %v11469_v45  ;;  %v3240_v46 = vmul.f32 %v11608_v29, %v11608_v29  ;;  %3564 = vmatpush.bf16.msra.mxu3 %v7651_v19  ;;  %v7579_v51 = vor.u32 %v8791_v8, %v7576_v21  ;;  %v8787_v30 = vld [vmem:[%s13793_s5 + $0x4c] sm:$0xf]  ;;  %v9028_v57 = vld [vmem:[%s13824_s7 + $0xf0] sm:$0xff] }
 0x621   :  { %3551 = vmatpush.bf16.msrb.mxu2 %v7523_v15  ;;  %vm3252_vm13 = vweird.f32 %v11605_v27  ;;  %v9029_v8 = vld [vmem:[%s13824_s7 + $0x170] sm:$0xff]  ;;  %v9030_v21 = vld [vmem:[%s13824_s7 + $0x68] sm:$0xff] }
 0x622   :  { %v3242_v45 = vsub.f32 %v3238_v6, %v3240_v46  ;;  %v7559_v6 = vor.u32 %v8789_v24, %v7558_v23  ;;  %v7563_v46 = vor.u32 %v8787_v30, %v7560_v31  ;;  %v9034_v23 = vld [vmem:[%s13824_s7 + $0xe0] sm:$0xff]  ;;  %v9036_v30 = vld [vmem:[%s13824_s7 + $0x58] sm:$0xff] }
 0x623   :  { %3573 = vmatpush.bf16.msrb.mxu1 %v7591_v38  ;;  %3599 = vmatpush.bf16.msra.mxu0 %v7595_v43  ;;  %v9035_v24 = vld [vmem:[%s13824_s7 + $0x160] sm:$0xff]  ;;  %v9037_v31 = vld [vmem:[%s13824_s7 + $0xd8] sm:$0xff] }
 0x624   :  { %v11647_v58 = vadd.f32 1e-05, %v3242_v45  ;;  %v7656_v45 = vld [vmem:[%s13793_s5 + $0x118] sm:$0xf0]  ;;  %3590 = vmatpush.bf16.msrb.mxu3 %v7655_v50 }
 0x625   :  { %v7659_v55 = vor.u32 %v8811_v52, %v7656_v45  ;;  %v9049_v50 = vld [vmem:[%s13824_s7 + $0x38] sm:$0xff] }
 0x626   :  { %v11658_v26 = vpop.eup %9015  ;;  %9017 = vrsqrt.f32 %v11647_v58  ;;  %vm3262_vm10 = vweird.f32 %v11647_v58  ;;  %v9050_v52 = vld [vmem:[%s13824_s7 + $0xb8] sm:$0xff] }
 0x627   :  { %v3247_v28 = vmul.f32 %v11658_v26, %v11605_v27  ;;  %3574 = vmatpush.bf16.msrb.mxu1 %v7575_v12  ;;  %3600 = vmatpush.bf16.msra.mxu0 %v7579_v51  ;;  %vm3253_vm11 = vweird.f32 %v11658_v26  ;;  %v8779_v27 = vld [vmem:[%s13793_s5 + $0xc] sm:$0xf]  ;;  %v9033_v51 = vld [vmem:[%s13824_s7 + $0x60] sm:$0xff]  ;;  %v9051_v45 = vld [vmem:[%s13824_s7 + $0x138] sm:$0xff] }
 0x628   :  { %vm3254_vm14 = vmor %vm3252_vm13, %vm3253_vm11  ;;  %3616 = vmatpush.bf16.msra.mxu2 %v7659_v55  ;;  %v7531_v3 = vor.u32 %v8779_v27, %v7528_v62  ;;  %v9032_v12 = vld [vmem:[%s13824_s7 + $0x168] sm:$0xff]  ;;  %v9054_v55 = vld [vmem:[%s13824_s7 + $0x130] sm:$0xff] }
 0x629   :  { %v3248_v4 = vmul.f32 %v11658_v26, %v3247_v28  ;;  %v7527_v28 = vor.u32 %v8781_v18, %v7526_v60  ;;  %v9060_v60 = vld [vmem:[%s13824_s7 + $0x120] sm:$0xff]  ;;  %v9061_v18 = vld [vmem:[%s13824_s7 + $0x18] sm:$0xff]  ;;  %v9064_v62 = vld [vmem:[%s13824_s7 + $0x10] sm:$0xff] }
 0x62a   :  { %v9063_v27 = vld [vmem:[%s13824_s7 + $0x118] sm:$0xff] }
 0x62b   :  { %v3249_v34 = vmul.f32 0.5, %v3248_v4  ;;  %3575 = vmatpush.bf16.msrb.mxu1 %v7559_v6  ;;  %3601 = vmatpush.bf16.msra.mxu0 %v7563_v46  ;;  %v9044_v6 = vld [vmem:[%s13824_s7 + $0x148] sm:$0xff]  ;;  %v9045_v46 = vld [vmem:[%s13824_s7 + $0x40] sm:$0xff] }
 0x62c   :  { %v9018_v20 = vpop.eup %9017 }
 0x62d   :  { %v3257_v7 = vmul.f32 %v9018_v20, %v11647_v58  ;;  %v3250_v32 = vsub.f32 1.5, %v3249_v34  ;;  %vm3263_vm8 = vweird.f32 %v9018_v20  ;;  %v7547_v58 = vor.u32 %v8783_v47, %v7544_v49  ;;  %v9046_v47 = vld [vmem:[%s13824_s7 + $0xc0] sm:$0xff]  ;;  %v9048_v49 = vld [vmem:[%s13825_s1 + $0x8] sm:$0xff] }
 0x62e   :  { %vm3264_vm12 = vmor %vm3262_vm10, %vm3263_vm8 }
 0x62f   :  { %v3258_v9 = vmul.f32 %v9018_v20, %v3257_v7  ;;  %v3251_v53 = vmul.f32 %v11658_v26, %v3250_v32  ;;  %3576 = vmatpush.bf16.msrb.mxu1 %v7543_v56  ;;  %3602 = vmatpush.bf16.msra.mxu0 %v7547_v58  ;;  %v9026_v7 = vld [vmem:[%s13824_s7 + $0x180] sm:$0xff]  ;;  %v9038_v32 = vld [vmem:[%s13824_s7 + $0x158] sm:$0xff]  ;;  %v9057_v56 = vld [vmem:[%s13824_s7 + $0x128] sm:$0xff] }
 0x630   :  { %v9058_v58 = vld [vmem:[%s13824_s7 + $0x20] sm:$0xff] }
 0x631   :  { %v3259_v35 = vmul.f32 0.5, %v3258_v9  ;;  %v3255_v61 = vsel %vm3254_vm14, %v11658_v26, %v3251_v53  ;;  %v3272_v26 = vld [vmem:[%s13795_s20] sm:$0x3]  ;;  %v9031_v9 = vld [vmem:[%s13824_s7 + $0xe8] sm:$0xff]  ;;  %v9052_v53 = vld [vmem:[%s13824_s7 + $0x30] sm:$0xff] }
 0x633   :  { %v3260_v41 = vsub.f32 1.5, %v3259_v35  ;;  %3577 = vmatpush.bf16.msrb.mxu1 %v7527_v28  ;;  %3603 = vmatpush.bf16.msra.mxu0 %v7531_v3  ;;  %v9039_v35 = vld [vmem:[%s13824_s7 + $0x50] sm:$0xff]  ;;  %v9067_v28 = vld [vmem:[%s13824_s7 + $0x8] sm:$0xff] }
 0x634   :  { %v9068_v3 = vld [vmem:[%s13824_s7 + $0x88] sm:$0xff] }
 0x635   :  { %v3261_v54 = vmul.f32 %v9018_v20, %v3260_v41  ;;  %v9043_v41 = vld [vmem:[%s13824_s7 + $0xc8] sm:$0xff] }
 0x637   :  { %v3265_v17 = vsel %vm3264_vm12, %v9018_v20, %v3261_v54  ;;  %v9053_v54 = vld [vmem:[%s13824_s7 + $0xb0] sm:$0xff] }
 0x638   :  { %v3268_v59 = vrot.slane %v3265_v17, 7  ;;  %v9056_v17 = vld [vmem:[%s13824_s7 + $0xa8] sm:$0xff] }
 0x63a   :  { %v3269_v63 = vsel %vm2126_vm1, %v3255_v61, %v3268_v59  ;;  %v9059_v59 = vld [vmem:[%s13824_s7 + $0xa0] sm:$0xff]  ;;  %v9062_v61 = vld [vmem:[%s13824_s7 + $0x98] sm:$0xff] }
 0x63b   :  { %v3271_v0 = vmul.f32 %v3269_v63, %v3243_v11  ;;  %v9055_v11 = vld [vmem:[%s13824_s7 + $0x28] sm:$0xff]  ;;  %v9065_v63 = vld [vmem:[%s13824_s7 + $0x90] sm:$0xff] }
 0x63d   :  { %v3274_v1 = vperm.slane %v3271_v0, 0  ;;  %v3275_v4 = vperm.slane %v3271_v0, 1  ;;  %v9066_v0 = vld [vmem:[%s13824_s7 + $0x110] sm:$0xff] }
 0x63f   :  { %v3279_v5 = vmul.f32 %v3275_v4, %v11608_v29  ;;  %v3278_v13 = vmul.f32 %v3274_v1, %v11573_v10  ;;  %v3286_v2 = vmul.f32 %v3274_v1, %v11522_v22  ;;  %v3287_v16 = vmul.f32 %v3275_v4, %v11541_v44  ;;  %v9023_v22 = vld [vmem:[%s13824_s7 + $0x78] sm:$0xff]  ;;  %v9069_v1 = vld [vmem:[%s13824_s7 + $0x108] sm:$0xff]  ;;  %v9070_v4 = vld [vmem:[%s13824_s7] sm:$0xff] }
 0x640   :  { %v9024_v44 = vld [vmem:[%s13824_s7 + $0xf8] sm:$0xff] }
 0x641   :  { %v3282_v14 = vrot.slane %v3279_v5, 7  ;;  %v9025_v10 = vld [vmem:[%s13824_s7 + $0x178] sm:$0xff]  ;;  %v9071_v5 = vld [vmem:[%s13824_s7 + $0x80] sm:$0xff] }
 0x643   :  { %v3283_v15 = vsel %vm2126_vm1, %v3278_v13, %v3282_v14  ;;  %v9073_v13 = vld [vmem:[%s13825_s1] sm:$0xff]  ;;  %v9074_v14 = vld [vmem:[%s13825_s1 + $0x10] sm:$0xff] }
 0x644   :  { %v3285_v33 = vsub.f32 %v3272_v26, %v3283_v15  ;;  %v9072_v26 = vld [vmem:[%s13824_s7 + $0x100] sm:$0xff]  ;;  %v9075_v15 = vld [vmem:[%s13825_s1 + $0x18] sm:$0xff] }
 0x646   :  { %v3289_v19 = vperm.slane %v3285_v33, 0  ;;  %v3290_v38 = vperm.slane %v3285_v33, 1 }
 0x648   :  { %v3294_v25 = vadd.f32 %v3290_v38, %v3287_v16  ;;  %v3293_v29 = vadd.f32 %v3289_v19, %v3286_v2 }
 0x64a   :  { %v3296_v42 = vmax.f32 %v3294_v25, 0.0  ;;  %v3295_v20 = vmax.f32 %v3293_v29, 0.0 }
 0x64c   :  { %v3298_v43 = vpack.c.bf16 %v3296_v42, %v3296_v42  ;;  %v3297_v34 = vpack.c.bf16 %v3295_v20, %v3295_v20 }
 0x64e   :  { %3526 = vmatmul.bf16.vlgmr.msrb.gmra.mxu0 %v3297_v34  ;;  %7660 = vmatmul.msk.bf16.vlgmr.msra.gmra.mxu1 %vm2864_vm9, %v3298_v43 }
 0x64f   :  { %3552 = vmatmul.bf16.vlgmr.msrb.gmra.mxu2 %v3297_v34  ;;  %7661 = vmatmul.msk.bf16.vlgmr.msra.gmra.mxu3 %vm2864_vm9, %v3298_v43 }
 0x650   :  { %3689 = vmatpush.msra.mxu3 %v9023_v22  ;;  %3709 = vmatpush.msra.mxu1 %v9024_v44 }
 0x651   :  { %3729 = vmatpush.msrb.mxu2 %v9025_v10  ;;  %3764 = vmatpush.msrb.mxu0 %v9026_v7 }
 0x652   :  { %3690 = vmatpush.msra.mxu3 %v9027_v39  ;;  %3710 = vmatpush.msra.mxu1 %v9028_v57 }
 0x653   :  { %3730 = vmatpush.msrb.mxu2 %v9029_v8 }
 0x654   :  { %3691 = vmatpush.msra.mxu3 %v9030_v21  ;;  %3711 = vmatpush.msra.mxu1 %v9031_v9 }
 0x655   :  { %3731 = vmatpush.msrb.mxu2 %v9032_v12 }
 0x656   :  { %3692 = vmatpush.msra.mxu3 %v9033_v51  ;;  %3712 = vmatpush.msra.mxu1 %v9034_v23 }
 0x657   :  { %3732 = vmatpush.msrb.mxu2 %v9035_v24 }
 0x658   :  { %3693 = vmatpush.msra.mxu3 %v9036_v30  ;;  %3713 = vmatpush.msra.mxu1 %v9037_v31 }
 0x659   :  { %3733 = vmatpush.msrb.mxu2 %v9038_v32 }
 0x65a   :  { %3694 = vmatpush.msra.mxu3 %v9039_v35  ;;  %3714 = vmatpush.msra.mxu1 %v9040_v36 }
 0x65b   :  { %3734 = vmatpush.msrb.mxu2 %v9041_v37 }
 0x65c   :  { %3695 = vmatpush.msra.mxu3 %v9042_v40  ;;  %3715 = vmatpush.msra.mxu1 %v9043_v41 }
 0x65d   :  { %3735 = vmatpush.msrb.mxu2 %v9044_v6 }
 0x65e   :  { %3578 = vmatmul.bf16.vlgmr.msrb.gmra.mxu1 %v3297_v34  ;;  %3604 = vmatmul.bf16.vlgmr.msra.gmra.mxu0 %v3297_v34 }
 0x65f   :  { %7662 = vmatmul.msk.bf16.vlgmr.msrb.gmra.mxu3 %vm2864_vm9, %v3298_v43  ;;  %7663 = vmatmul.msk.bf16.vlgmr.msra.gmra.mxu2 %vm2864_vm9, %v3298_v43 }
 0x660   :  { %3696 = vmatpush.msra.mxu3 %v9045_v46  ;;  %3716 = vmatpush.msra.mxu1 %v9046_v47 }
 0x661   :  { %3736 = vmatpush.msrb.mxu2 %v9047_v48  ;;  %3837 = vmatpush.msra.mxu0 %v9048_v49 }
 0x662   :  { %3697 = vmatpush.msra.mxu3 %v9049_v50  ;;  %3717 = vmatpush.msra.mxu1 %v9050_v52 }
 0x663   :  { %3737 = vmatpush.msrb.mxu2 %v9051_v45 }
 0x664   :  { %3698 = vmatpush.msra.mxu3 %v9052_v53  ;;  %3718 = vmatpush.msra.mxu1 %v9053_v54 }
 0x665   :  { %3738 = vmatpush.msrb.mxu2 %v9054_v55 }
 0x666   :  { %3699 = vmatpush.msra.mxu3 %v9055_v11  ;;  %3719 = vmatpush.msra.mxu1 %v9056_v17 }
 0x667   :  { %3739 = vmatpush.msrb.mxu2 %v9057_v56 }
 0x668   :  { %3700 = vmatpush.msra.mxu3 %v9058_v58  ;;  %3720 = vmatpush.msra.mxu1 %v9059_v59 }
 0x669   :  { %3740 = vmatpush.msrb.mxu2 %v9060_v60 }
 0x66a   :  { %3701 = vmatpush.msra.mxu3 %v9061_v18  ;;  %3721 = vmatpush.msra.mxu1 %v9062_v61 }
 0x66b   :  { %3741 = vmatpush.msrb.mxu2 %v9063_v27 }
 0x66c   :  { %3702 = vmatpush.msra.mxu3 %v9064_v62  ;;  %3722 = vmatpush.msra.mxu1 %v9065_v63 }
 0x66d   :  { %3742 = vmatpush.msrb.mxu2 %v9066_v0 }
 0x66e   :  { %3703 = vmatpush.msra.mxu3 %v9067_v28  ;;  %3723 = vmatpush.msra.mxu1 %v9068_v3 }
 0x66f   :  { %3743 = vmatpush.msrb.mxu2 %v9069_v1 }
 0x670   :  { %3704 = vmatpush.msra.mxu3 %v9070_v4  ;;  %3724 = vmatpush.msra.mxu1 %v9071_v5 }
 0x671   :  { %3744 = vmatpush.msrb.mxu2 %v9072_v26 }
 0x672   :  { %3817 = vmatpush.msrb.mxu3 %v9073_v13  ;;  %3857 = vmatpush.msrb.mxu1 %v9074_v14 }
 0x673   :  { %3877 = vmatpush.msra.mxu2 %v9075_v15 }
 0x6cb   :  { %v3527_v33 = vpop.f32.mrf.mxu0  ;;  %v3540_v2 = vpop.f32.mrf.mxu1 }
 0x6cc   :  { %v11939_v16 = vadd.f32 %v3540_v2, %v3527_v33 }
 0x6ce   :  { %v3622_v19 = vsel %vm2064_vm0, %v11939_v16, 0.0  ;;  %v3650_v38 = vmul.f32 %v11939_v16, %v11939_v16 }
 0x6cf   :  { %v3623_v25 = vrot.slane %v3622_v19, 4 }
 0x6d0   :  { %v3654_v29 = vsel %vm2064_vm0, %v3650_v38, 0.0 }
 0x6d1   :  { %v3624_v42 = vadd.f32 %v3623_v25, %v3622_v19  ;;  %v3655_v20 = vrot.slane %v3654_v29, 4 }
 0x6d2   :  { %v3553_v43 = vpop.f32.mrf.mxu2  ;;  %v3566_v34 = vpop.f32.mrf.mxu3 }
 0x6d3   :  { %v3625_v22 = vrot.slane %v3624_v42, 2  ;;  %v3656_v44 = vadd.f32 %v3655_v20, %v3654_v29  ;;  %v11946_v10 = vadd.f32 %v3566_v34, %v3553_v43  ;;  %v3529_v7 = vpop.f32.mrf.mxu0  ;;  %v3542_v39 = vpop.f32.mrf.mxu1 }
 0x6d5   :  { %v3626_v57 = vadd.f32 %v3625_v22, %v3624_v42  ;;  %v3657_v8 = vrot.slane %v3656_v44, 2  ;;  %v3629_v21 = vsel %vm2064_vm0, %v11946_v10, 0.0  ;;  %v3651_v9 = vmul.f32 %v11946_v10, %v11946_v10 }
 0x6d6   :  { %v3630_v12 = vrot.slane %v3629_v21, 4 }
 0x6d7   :  { %v3627_v51 = vrot.slane %v3626_v57, 1  ;;  %v3658_v23 = vadd.f32 %v3657_v8, %v3656_v44  ;;  %v3661_v24 = vsel %vm2064_vm0, %v3651_v9, 0.0 }
 0x6d8   :  { %v3631_v30 = vadd.f32 %v3630_v12, %v3629_v21  ;;  %v3662_v31 = vrot.slane %v3661_v24, 4 }
 0x6d9   :  { %v3659_v32 = vrot.slane %v3658_v23, 1  ;;  %v3628_v46 = vadd.f32 %v3627_v51, %v3626_v57 }
 0x6da   :  { %v3632_v35 = vrot.slane %v3631_v30, 2  ;;  %v3663_v36 = vadd.f32 %v3662_v31, %v3661_v24  ;;  %v3555_v37 = vpop.f32.mrf.mxu2  ;;  %v3568_v40 = vpop.f32.mrf.mxu3 }
 0x6db   :  { %v3579_v41 = vpop.f32.mrf.mxu1  ;;  %v3605_v6 = vpop.f32.mrf.mxu0  ;;  %v3660_v47 = vadd.f32 %v3659_v32, %v3658_v23 }
 0x6dc   :  { %v3633_v48 = vadd.f32 %v3632_v35, %v3631_v30  ;;  %v3664_v49 = vrot.slane %v3663_v36, 2 }
 0x6dd   :  { %v3682_v50 = vsel %vm2126_vm1, %v3628_v46, %v3660_v47  ;;  %v7895_v46 = vld [vmem:[%s13796_s6 + $0x1c0] sm:$0xf] }
 0x6de   :  { %v3634_v52 = vrot.slane %v3633_v48, 1  ;;  %v3665_v45 = vadd.f32 %v3664_v49, %v3663_v36  ;;  %3705 = vmatmul.f32.vlgmr.msra.gmra.mxu3 %v3682_v50  ;;  %v8874_v47 = vld [vmem:[%s13796_s6 + $0x1dc] sm:$0xf0] }
 0x6df   :  { %v7896_v49 = vor.u32 %v8874_v47, %v7895_v46  ;;  %v8866_v50 = vld [vmem:[%s13796_s6 + $0x19c] sm:$0xf0] }
 0x6e0   :  { %v3666_v53 = vrot.slane %v3665_v45, 1  ;;  %v3635_v11 = vadd.f32 %v3634_v52, %v3633_v48  ;;  %v7863_v48 = vld [vmem:[%s13796_s6 + $0x180] sm:$0xf] }
 0x6e1   :  { %v8151_v52 = vld [vmem:[%s13796_s6 + $0x3c0] sm:$0xf]  ;;  %5109 = vmatpush.bf16.msra.mxu3 %v7896_v49 }
 0x6e2   :  { %v3592_v54 = vpop.f32.mrf.mxu3  ;;  %v3618_v55 = vpop.f32.mrf.mxu2  ;;  %v3667_v17 = vadd.f32 %v3666_v53, %v3665_v45  ;;  %v8938_v45 = vld [vmem:[%s13796_s6 + $0x3dc] sm:$0xf0] }
 0x6e3   :  { %v11954_v56 = vadd.f32 %v3592_v54, %v3579_v41  ;;  %v11956_v58 = vadd.f32 %v3618_v55, %v3605_v6  ;;  %v3581_v59 = vpop.f32.mrf.mxu1  ;;  %v3607_v60 = vpop.f32.mrf.mxu0  ;;  %v8152_v54 = vor.u32 %v8938_v45, %v8151_v52  ;;  %v8119_v55 = vld [vmem:[%s13796_s6 + $0x380] sm:$0xf] }
 0x6e4   :  { %v3683_v18 = vsel %vm2126_vm1, %v3635_v11, %v3667_v17  ;;  %v7864_v17 = vor.u32 %v8866_v50, %v7863_v48  ;;  %v8930_v59 = vld [vmem:[%s13796_s6 + $0x39c] sm:$0xf0] }
 0x6e5   :  { %v3636_v61 = vsel %vm2064_vm0, %v11954_v56, 0.0  ;;  %v3652_v27 = vmul.f32 %v11954_v56, %v11954_v56  ;;  %v3643_v62 = vsel %vm2086_vm2, %v11956_v58, 0.0  ;;  %v3653_v63 = vmul.f32 %v11956_v58, %v11956_v58  ;;  %3725 = vmatmul.f32.vlgmr.msra.gmra.mxu1 %v3683_v18  ;;  %v7831_v60 = vld [vmem:[%s13796_s6 + $0x140] sm:$0xf] }
 0x6e6   :  { %v3637_v0 = vrot.slane %v3636_v61, 4  ;;  %v3644_v28 = vrot.slane %v3643_v62, 4  ;;  %v8858_v18 = vld [vmem:[%s13796_s6 + $0x15c] sm:$0xf0]  ;;  %5110 = vmatpush.bf16.msra.mxu3 %v7864_v17 }
 0x6e7   :  { %v3668_v3 = vsel %vm2064_vm0, %v3652_v27, 0.0  ;;  %v3675_v1 = vsel %vm2086_vm2, %v3653_v63, 0.0  ;;  %v8922_v63 = vld [vmem:[%s13796_s6 + $0x35c] sm:$0xf0] }
 0x6e8   :  { %v3638_v4 = vadd.f32 %v3637_v0, %v3636_v61  ;;  %v3669_v5 = vrot.slane %v3668_v3, 4  ;;  %v3645_v26 = vadd.f32 %v3644_v28, %v3643_v62  ;;  %v3676_v13 = vrot.slane %v3675_v1, 4  ;;  %v8087_v62 = vld [vmem:[%s13796_s6 + $0x340] sm:$0xf] }
 0x6e9   :  { %v8120_v61 = vor.u32 %v8930_v59, %v8119_v55  ;;  %v7832_v28 = vor.u32 %v8858_v18, %v7831_v60  ;;  %v8279_v46 = vld [vmem:[%s13796_s6 + $0x4c0] sm:$0xf] }
 0x6ea   :  { %v3639_v14 = vrot.slane %v3638_v4, 2  ;;  %v3670_v15 = vadd.f32 %v3669_v5, %v3668_v3  ;;  %v3646_v33 = vrot.slane %v3645_v26, 2  ;;  %v3677_v2 = vadd.f32 %v3676_v13, %v3675_v1  ;;  %v3594_v19 = vpop.f32.mrf.mxu3  ;;  %v3620_v38 = vpop.f32.mrf.mxu2  ;;  %v8407_v3 = vld [vmem:[%s13796_s6 + $0x5c0] sm:$0xf] }
 0x6eb   :  { %v9002_v1 = vld [vmem:[%s13796_s6 + $0x5dc] sm:$0xf0]  ;;  %v8088_v13 = vor.u32 %v8922_v63, %v8087_v62  ;;  %5111 = vmatpush.bf16.msra.mxu3 %v7832_v28  ;;  %v7897_v28 = vld [vmem:[%s13796_s6 + $0x1e0] sm:$0xf0] }
 0x6ec   :  { %v3640_v25 = vadd.f32 %v3639_v14, %v3638_v4  ;;  %v3671_v29 = vrot.slane %v3670_v15, 2  ;;  %v3647_v42 = vadd.f32 %v3646_v33, %v3645_v26  ;;  %v3678_v20 = vrot.slane %v3677_v2, 2  ;;  %v12022_v4 = vld [vmem:[%s13796_s6 + $0x600] sm:$0xff] }
 0x6ed   :  { %v7799_v5 = vld [vmem:[%s13796_s6 + $0x100] sm:$0xf]  ;;  %v4682_v33 = vunpack.c.l.b16 %v12022_v4 }
 0x6ee   :  { %v3641_v43 = vrot.slane %v3640_v25, 1  ;;  %v3672_v34 = vadd.f32 %v3671_v29, %v3670_v15  ;;  %v3648_v22 = vrot.slane %v3647_v42, 1  ;;  %v3679_v44 = vadd.f32 %v3678_v20, %v3677_v2  ;;  %v8850_v26 = vld [vmem:[%s13796_s6 + $0x11c] sm:$0xf0] }
 0x6ef   :  { %v8055_v14 = vld [vmem:[%s13796_s6 + $0x300] sm:$0xf]  ;;  %v8408_v15 = vor.u32 %v9002_v1, %v8407_v3  ;;  %v4882_v29 = vpack.c.b16 %v4682_v33, %v4682_v33  ;;  %v7800_v20 = vor.u32 %v8850_v26, %v7799_v5  ;;  %v8153_v1 = vld [vmem:[%s13796_s6 + $0x3e0] sm:$0xf0] }
 0x6f0   :  { %v3673_v7 = vrot.slane %v3672_v34, 1  ;;  %v3680_v39 = vrot.slane %v3679_v44, 1  ;;  %v3642_v57 = vadd.f32 %v3641_v43, %v3640_v25  ;;  %v3649_v8 = vadd.f32 %v3648_v22, %v3647_v42  ;;  %v8914_v19 = vld [vmem:[%s13796_s6 + $0x31c] sm:$0xf0] }
 0x6f1   :  { %v8375_v38 = vld [vmem:[%s13796_s6 + $0x580] sm:$0xf]  ;;  %5135 = vmatpush.bf16.msra.mxu1 %v8408_v15  ;;  %5112 = vmatpush.bf16.msra.mxu3 %v7800_v20  ;;  %v8409_v15 = vld [vmem:[%s13796_s6 + $0x5e0] sm:$0xf0] }
 0x6f2   :  { %v3681_v21 = vadd.f32 %v3680_v39, %v3679_v44  ;;  %v3674_v9 = vadd.f32 %v3673_v7, %v3672_v34  ;;  %v8994_v25 = vld [vmem:[%s13796_s6 + $0x59c] sm:$0xf0]  ;;  %v8056_v7 = vor.u32 %v8914_v19, %v8055_v14  ;;  %v8998_v14 = vld [vmem:[%s13796_s6 + $0x5c4] sm:$0xf] }
 0x6f3   :  { %v7767_v43 = vld [vmem:[%s13796_s6 + $0xc0] sm:$0xf]  ;;  %v8376_v34 = vor.u32 %v8994_v25, %v8375_v38  ;;  %v8862_v25 = vld [vmem:[%s13796_s6 + $0x184] sm:$0xf] }
 0x6f4   :  { %v3684_v12 = vsel %vm2126_vm1, %v3642_v57, %v3674_v9  ;;  %v3685_v51 = vsel %vm2126_vm1, %v3649_v8, %v3681_v21  ;;  %v8343_v22 = vld [vmem:[%s13796_s6 + $0x540] sm:$0xf]  ;;  %v5086_v57 = vsel %vm2702_vm7, %v4882_v29, 0  ;;  %v7865_v29 = vld [vmem:[%s13796_s6 + $0x1a0] sm:$0xf0] }
 0x6f5   :  { %3745 = vmatmul.f32.vlgmr.msrb.gmra.mxu2 %v3684_v12  ;;  %7664 = vmatmul.msk.f32.vlgmr.msrb.gmra.mxu0 %vm2180_vm3, %v3685_v51  ;;  %v8842_v44 = vld [vmem:[%s13796_s6 + $0xdc] sm:$0xf0]  ;;  %v8926_v20 = vld [vmem:[%s13796_s6 + $0x384] sm:$0xf] }
 0x6f6   :  { %5122 = vmatpush.bf16.msrb.mxu0 %v8152_v54  ;;  %v8986_v39 = vld [vmem:[%s13796_s6 + $0x55c] sm:$0xf0]  ;;  %5155 = vmatpush.bf16.msrb.mxu2 %v5086_v57  ;;  %v7768_v51 = vor.u32 %v8842_v44, %v7767_v43  ;;  %v8121_v43 = vld [vmem:[%s13796_s6 + $0x3a0] sm:$0xf0] }
 0x6f7   :  { %v8023_v21 = vld [vmem:[%s13796_s6 + $0x2c0] sm:$0xf]  ;;  %5136 = vmatpush.bf16.msra.mxu1 %v8376_v34  ;;  %v8344_v12 = vor.u32 %v8986_v39, %v8343_v22  ;;  %v8412_v34 = vor.u32 %v8998_v14, %v8409_v15  ;;  %v8990_v22 = vld [vmem:[%s13796_s6 + $0x584] sm:$0xf]  ;;  %v8124_v39 = vor.u32 %v8926_v20, %v8121_v43 }
 0x6f8   :  { %v8906_v9 = vld [vmem:[%s13796_s6 + $0x2dc] sm:$0xf0]  ;;  %5113 = vmatpush.bf16.msra.mxu3 %v7768_v51  ;;  %v8377_v44 = vld [vmem:[%s13796_s6 + $0x5a0] sm:$0xf0] }
 0x6f9   :  { %v8970_v47 = vld [vmem:[%s13796_s6 + $0x4dc] sm:$0xf0]  ;;  %v8854_v57 = vld [vmem:[%s13796_s6 + $0x144] sm:$0xf] }
 0x6fa   :  { %5123 = vmatpush.bf16.msrb.mxu0 %v8120_v61  ;;  %v7703_v48 = vld [vmem:[%s13796_s6 + $0x40] sm:$0xf]  ;;  %v8280_v55 = vor.u32 %v8970_v47, %v8279_v46  ;;  %v8345_v47 = vld [vmem:[%s13796_s6 + $0x560] sm:$0xf0] }
 0x6fb   :  { %5137 = vmatpush.bf16.msra.mxu1 %v8344_v12  ;;  %v8826_v49 = vld [vmem:[%s13796_s6 + $0x5c] sm:$0xf0]  ;;  %v8380_v12 = vor.u32 %v8990_v22, %v8377_v44  ;;  %v7705_v14 = vld [vmem:[%s13796_s6 + $0x60] sm:$0xf0] }
 0x6fc   :  { %v7959_v45 = vld [vmem:[%s13796_s6 + $0x240] sm:$0xf]  ;;  %v7704_v17 = vor.u32 %v8826_v49, %v7703_v48  ;;  %v8838_v48 = vld [vmem:[%s13796_s6 + $0xc4] sm:$0xf] }
 0x6fd   :  { %v8247_v59 = vld [vmem:[%s13796_s6 + $0x480] sm:$0xf]  ;;  %v7769_v49 = vld [vmem:[%s13796_s6 + $0xe0] sm:$0xf0] }
 0x6fe   :  { %5124 = vmatpush.bf16.msrb.mxu0 %v8088_v13  ;;  %v8962_v60 = vld [vmem:[%s13796_s6 + $0x49c] sm:$0xf0]  ;;  %v8886_v15 = vld [vmem:[%s13796_s6 + $0x244] sm:$0xf] }
 0x6ff   :  { %v8818_v62 = vld [vmem:[%s13796_s6 + $0x1c] sm:$0xf0]  ;;  %v8248_v3 = vor.u32 %v8962_v60, %v8247_v59  ;;  %v8313_v60 = vld [vmem:[%s13796_s6 + $0x520] sm:$0xf0] }
 0x700   :  { %v7927_v5 = vld [vmem:[%s13796_s6 + $0x200] sm:$0xf]  ;;  %v7673_v20 = vld [vmem:[%s13796_s6 + $0x20] sm:$0xf0] }
 0x701   :  { %v8882_v26 = vld [vmem:[%s13796_s6 + $0x21c] sm:$0xf0]  ;;  %v7929_v22 = vld [vmem:[%s13796_s6 + $0x220] sm:$0xf0] }
 0x702   :  { %5125 = vmatpush.bf16.msrb.mxu0 %v8056_v7  ;;  %v7868_v7 = vor.u32 %v8862_v25, %v7865_v29  ;;  %v8249_v25 = vld [vmem:[%s13796_s6 + $0x4a0] sm:$0xf0] }
 0x761   :  { %v3706_v23 = vpop.f32.mrf.mxu3 }
 0x762   :  { %v3726_v24 = vpop.f32.mrf.mxu1 }
 0x763   :  { %v3727_v30 = vadd.f32 %v3726_v24, %v3706_v23  ;;  %v8311_v23 = vld [vmem:[%s13796_s6 + $0x500] sm:$0xf] }
 0x764   :  { %v8978_v24 = vld [vmem:[%s13796_s6 + $0x51c] sm:$0xf0] }
 0x772   :  { %v3766_v35 = vpop.f32.mrf.mxu0 }
 0x778   :  { %v3746_v31 = vpop.f32.mrf.mxu2 }
 0x779   :  { %v3747_v32 = vadd.f32 %v3746_v31, %v3727_v30  ;;  %v7735_v30 = vld [vmem:[%s13796_s6 + $0x80] sm:$0xf] }
 0x77a   :  { %v8834_v31 = vld [vmem:[%s13796_s6 + $0x9c] sm:$0xf0] }
 0x77b   :  { %v11972_v36 = vadd.f32 %v3766_v35, %v3747_v32  ;;  %v8024_v32 = vor.u32 %v8906_v9, %v8023_v21  ;;  %v7991_v35 = vld [vmem:[%s13796_s6 + $0x280] sm:$0xf]  ;;  %v8918_v21 = vld [vmem:[%s13796_s6 + $0x344] sm:$0xf] }
 0x77c   :  { %v8089_v9 = vld [vmem:[%s13796_s6 + $0x360] sm:$0xf0] }
 0x77d   :  { %v3769_v37 = vmul.f32 %v11972_v36, %v11972_v36  ;;  %5126 = vmatpush.bf16.msrb.mxu0 %v8024_v32 }
 0x77f   :  { %v3771_v40 = vrot.slane %v3769_v37, 7  ;;  %v8898_v37 = vld [vmem:[%s13796_s6 + $0x29c] sm:$0xf0] }
 0x780   :  { %v7992_v50 = vor.u32 %v8898_v37, %v7991_v35  ;;  %v8057_v35 = vld [vmem:[%s13796_s6 + $0x320] sm:$0xf0] }
 0x781   :  { %v3773_v41 = vsub.f32 %v11972_v36, %v3771_v40  ;;  %v8312_v40 = vor.u32 %v8978_v24, %v8311_v23  ;;  %v8092_v23 = vor.u32 %v8918_v21, %v8089_v9  ;;  %v8846_v24 = vld [vmem:[%s13796_s6 + $0x104] sm:$0xf] }
 0x782   :  { %5127 = vmatpush.bf16.msrb.mxu0 %v7992_v50  ;;  %v8185_v21 = vld [vmem:[%s13796_s6 + $0x420] sm:$0xf0] }
 0x783   :  { %v3775_v6 = vadd.f32 1e-05, %v3773_v41  ;;  %v3774_v41 = vld [vmem:[%s13797_s21] sm:$0x1]  ;;  %5138 = vmatpush.bf16.msra.mxu1 %v8312_v40 }
 0x784   :  { %v8215_v40 = vld [vmem:[%s13796_s6 + $0x440] sm:$0xf] }
 0x785   :  { %9019 = vrsqrt.f32 %v3775_v6  ;;  %vm3782_vm9 = vweird.f32 %v3775_v6 }
 0x787   :  { %5139 = vmatpush.bf16.msra.mxu1 %v8280_v55  ;;  %v8183_v55 = vld [vmem:[%s13796_s6 + $0x400] sm:$0xf] }
 0x78b   :  { %v9020_v53 = vpop.eup %9019  ;;  %5140 = vmatpush.bf16.msra.mxu1 %v8248_v3 }
 0x78c   :  { %v3777_v11 = vmul.f32 %v9020_v53, %v3775_v6  ;;  %vm3783_vm2 = vweird.f32 %v9020_v53  ;;  %v7736_v6 = vor.u32 %v8834_v31, %v7735_v30  ;;  %v7801_v30 = vld [vmem:[%s13796_s6 + $0x120] sm:$0xf0] }
 0x78d   :  { %vm3784_vm15 = vmor %vm3782_vm9, %vm3783_vm2  ;;  %v8910_v31 = vld [vmem:[%s13796_s6 + $0x304] sm:$0xf]  ;;  %v7804_v32 = vor.u32 %v8846_v24, %v7801_v30 }
 0x78e   :  { %v3778_v27 = vmul.f32 %v9020_v53, %v3777_v11  ;;  %v3792_v11 = vld [vmem:[%s13798_s22] sm:$0x1]  ;;  %5114 = vmatpush.bf16.msra.mxu3 %v7736_v6  ;;  %v8060_v37 = vor.u32 %v8910_v31, %v8057_v35  ;;  %v8982_v6 = vld [vmem:[%s13796_s6 + $0x544] sm:$0xf] }
 0x78f   :  { %v8348_v50 = vor.u32 %v8982_v6, %v8345_v47  ;;  %v8159_v6 = vld [vmem:[%s13796_s6 + $0x3c8] sm:$0xf] }
 0x790   :  { %v3779_v0 = vmul.f32 0.5, %v3778_v27  ;;  %v7671_v27 = vld [vmem:[%s13796_s6] sm:$0xf] }
 0x791   :  { %v7672_v33 = vor.u32 %v8818_v62, %v7671_v27  ;;  %v4683_v27 = vunpack.c.h.b16 %v12022_v4  ;;  %v8281_v4 = vld [vmem:[%s13796_s6 + $0x4e0] sm:$0xf0] }
 0x792   :  { %v3780_v2 = vsub.f32 1.5, %v3779_v0  ;;  %v8870_v0 = vld [vmem:[%s13796_s6 + $0x1c4] sm:$0xf]  ;;  %5115 = vmatpush.bf16.msra.mxu3 %v7704_v17 }
 0x793   :  { %v8974_v17 = vld [vmem:[%s13796_s6 + $0x504] sm:$0xf]  ;;  %v4883_v3 = vpack.c.b16 %v4683_v27, %v4683_v27  ;;  %v8931_v27 = vld [vmem:[%s13796_s6 + $0x3a4] sm:$0xf0] }
 0x794   :  { %v3781_v42 = vmul.f32 %v9020_v53, %v3780_v2  ;;  %v7900_v2 = vor.u32 %v8870_v0, %v7897_v28  ;;  %v8316_v62 = vor.u32 %v8974_v17, %v8313_v60  ;;  %v8894_v0 = vld [vmem:[%s13796_s6 + $0x284] sm:$0xf] }
 0x795   :  { %v7993_v28 = vld [vmem:[%s13796_s6 + $0x2a0] sm:$0xf0] }
 0x796   :  { %v3785_v8 = vsel %vm3784_vm15, %v9020_v53, %v3781_v42  ;;  %v8890_v53 = vld [vmem:[%s13796_s6 + $0x25c] sm:$0xf0]  ;;  %v7928_v42 = vor.u32 %v8882_v26, %v7927_v5  ;;  %5116 = vmatpush.bf16.msra.mxu3 %v7672_v33  ;;  %v5089_v5 = vsel %vm2702_vm7, %v4883_v3, 0 }
 0x797   :  { %3787 = vst [vmem:[#allocation1] sm:$0xff] %v3785_v8  ;;  %v7960_v61 = vor.u32 %v8890_v53, %v7959_v45  ;;  %v7833_v8 = vld [vmem:[%s13796_s6 + $0x160] sm:$0xf0] }
 0x798   :  { %v7836_v51 = vor.u32 %v8854_v57, %v7833_v8  ;;  %v8902_v45 = vld [vmem:[%s13796_s6 + $0x2c4] sm:$0xf] }
 0x799   :  { %5128 = vmatpush.bf16.msrb.mxu0 %v7960_v61  ;;  %v8025_v53 = vld [vmem:[%s13796_s6 + $0x2e0] sm:$0xf0] }
 0x79a   :  { %v7737_v61 = vld [vmem:[%s13796_s6 + $0xa0] sm:$0xf0] }
 0x79b   :  { %v8942_v8 = vld [vmem:[%s13796_s6 + $0x404] sm:$0xf] }
 0x79c   :  { %v8188_v9 = vor.u32 %v8942_v8, %v8185_v21  ;;  %v8161_v8 = vld [vmem:[%s13796_s6 + $0x3e8] sm:$0xf0] }
 0x79d   :  { %5129 = vmatpush.bf16.msrb.mxu0 %v7928_v42  ;;  %v8814_v42 = vld [vmem:[%s13796_s6 + $0x4] sm:$0xf] }
 0x79e   :  { %v3789_v52 = vld [vmem:[#allocation1 + $0x1] ss:$9 sm:$0xff]  ;;  %v7676_v43 = vor.u32 %v8814_v42, %v7673_v20 }
 0x79f   :  { %v3791_v54 = vmul.f32 %v3789_v52, %v3774_v41  ;;  %v8954_v41 = vld [vmem:[%s13796_s6 + $0x45c] sm:$0xf0]  ;;  %v7772_v52 = vor.u32 %v8838_v48, %v7769_v49  ;;  %v8063_v42 = vld [vmem:[%s13796_s6 + $0x308] sm:$0xf] }
 0x7a0   :  { %v8216_v46 = vor.u32 %v8954_v41, %v8215_v40  ;;  %v8915_v20 = vld [vmem:[%s13796_s6 + $0x324] sm:$0xf0] }
 0x7a1   :  { %v3793_v18 = vmul.f32 %v3791_v54, %v11972_v36  ;;  %v8934_v36 = vld [vmem:[%s13796_s6 + $0x3c4] sm:$0xf] }
 0x7a2   :  { %v8156_v38 = vor.u32 %v8934_v36, %v8153_v1  ;;  %5141 = vmatpush.bf16.msra.mxu1 %v8216_v46  ;;  %v7996_v36 = vor.u32 %v8894_v0, %v7993_v28  ;;  %v8966_v1 = vld [vmem:[%s13796_s6 + $0x4c4] sm:$0xf]  ;;  %v8939_v46 = vld [vmem:[%s13796_s6 + $0x3e4] sm:$0xf0] }
 0x7a3   :  { %v3794_v63 = vsub.f32 %v3792_v11, %v3793_v18  ;;  %v8946_v11 = vld [vmem:[%s13796_s6 + $0x41c] sm:$0xf0]  ;;  %v8830_v18 = vld [vmem:[%s13796_s6 + $0x84] sm:$0xf]  ;;  %v8284_v26 = vor.u32 %v8966_v1, %v8281_v4  ;;  %v7903_v0 = vld [vmem:[%s13796_s6 + $0x1c8] sm:$0xf] }
 0x7a4   :  { %v8184_v59 = vor.u32 %v8946_v11, %v8183_v55  ;;  %v8875_v28 = vld [vmem:[%s13796_s6 + $0x1e4] sm:$0xf0] }
 0x7a5   :  { %v3796_v13 = vperm.slane %v3794_v63, 0  ;;  %v7740_v63 = vor.u32 %v8830_v18, %v7737_v61  ;;  %v8127_v61 = vld [vmem:[%s13796_s6 + $0x388] sm:$0xf] }
 0x7a6   :  { %5142 = vmatpush.bf16.msra.mxu1 %v8184_v59  ;;  %v8128_v3 = vor.u32 %v8931_v27, %v8127_v61  ;;  %v8255_v61 = vld [vmem:[%s13796_s6 + $0x488] sm:$0xf] }
 0x7a7   :  { %v3798_v19 = vsel %vm2126_vm1, %v3791_v54, %v3796_v13  ;;  %v8028_v54 = vor.u32 %v8902_v45, %v8025_v53  ;;  %v8822_v13 = vld [vmem:[%s13796_s6 + $0x44] sm:$0xf]  ;;  %v8963_v27 = vld [vmem:[%s13796_s6 + $0x4a4] sm:$0xf0] }
 0x7a8   :  { %7665 = vmatmul.msk.f32.vlgmr.msrb.gmra.mxu3 %vm2180_vm3, %v3798_v19  ;;  %7666 = vmatmul.msk.f32.vlgmr.msra.gmra.mxu0 %vm2180_vm3, %v3798_v19  ;;  %v7708_v33 = vor.u32 %v8822_v13, %v7705_v14  ;;  %v7904_v14 = vor.u32 %v8875_v28, %v7903_v0  ;;  %v8911_v0 = vld [vmem:[%s13796_s6 + $0x30c] sm:$0xf] }
 0x7a9   :  { %7667 = vmatmul.msk.f32.vlgmr.msrb.gmra.mxu1 %vm2180_vm3, %v3798_v19  ;;  %7668 = vmatmul.msk.f32.vlgmr.msra.gmra.mxu2 %vm2180_vm3, %v3798_v19  ;;  %v8065_v28 = vld [vmem:[%s13796_s6 + $0x328] sm:$0xf0] }
 0x7aa   :  { %5161 = vmatpush.bf16.msra.mxu2 %v7900_v2  ;;  %5174 = vmatpush.bf16.msrb.mxu3 %v8156_v38  ;;  %v7961_v2 = vld [vmem:[%s13796_s6 + $0x260] sm:$0xf0] }
 0x7ab   :  { %5187 = vmatpush.bf16.msra.mxu0 %v8412_v34  ;;  %5207 = vmatpush.bf16.msrb.mxu1 %v5089_v5  ;;  %v7964_v19 = vor.u32 %v8886_v15, %v7961_v2  ;;  %v8958_v38 = vld [vmem:[%s13796_s6 + $0x484] sm:$0xf]  ;;  %v8095_v5 = vld [vmem:[%s13796_s6 + $0x348] sm:$0xf] }
 0x7ac   :  { %v8252_v29 = vor.u32 %v8958_v38, %v8249_v25  ;;  %v8878_v34 = vld [vmem:[%s13796_s6 + $0x204] sm:$0xf]  ;;  %v8383_v15 = vld [vmem:[%s13796_s6 + $0x588] sm:$0xf] }
 0x7ad   :  { %v7932_v44 = vor.u32 %v8878_v34, %v7929_v22  ;;  %v8867_v38 = vld [vmem:[%s13796_s6 + $0x1a4] sm:$0xf0] }
 0x7ae   :  { %5162 = vmatpush.bf16.msra.mxu2 %v7868_v7  ;;  %5175 = vmatpush.bf16.msrb.mxu3 %v8124_v39  ;;  %v8950_v7 = vld [vmem:[%s13796_s6 + $0x444] sm:$0xf]  ;;  %v8351_v34 = vld [vmem:[%s13796_s6 + $0x548] sm:$0xf] }
 0x7af   :  { %5188 = vmatpush.bf16.msra.mxu0 %v8380_v12  ;;  %v8217_v39 = vld [vmem:[%s13796_s6 + $0x460] sm:$0xf0]  ;;  %v12289_v12 = vld [vmem:[%s13796_s6 + $0x608] sm:$0xff] }
 0x7b0   :  { %v8220_v57 = vor.u32 %v8950_v7, %v8217_v39  ;;  %v4684_v30 = vunpack.c.l.b16 %v12289_v12  ;;  %v8987_v22 = vld [vmem:[%s13796_s6 + $0x564] sm:$0xf0]  ;;  %v8064_v39 = vor.u32 %v8915_v20, %v8063_v42  ;;  %v8903_v42 = vld [vmem:[%s13796_s6 + $0x2cc] sm:$0xf] }
 0x7b1   :  { %v8859_v7 = vld [vmem:[%s13796_s6 + $0x164] sm:$0xf0]  ;;  %v8352_v21 = vor.u32 %v8987_v22, %v8351_v34  ;;  %v8033_v20 = vld [vmem:[%s13796_s6 + $0x2e8] sm:$0xf0] }
 0x7b2   :  { %5163 = vmatpush.bf16.msra.mxu2 %v7836_v51  ;;  %5176 = vmatpush.bf16.msrb.mxu3 %v8092_v23  ;;  %v4884_v47 = vpack.c.b16 %v4684_v30, %v4684_v30  ;;  %v8979_v30 = vld [vmem:[%s13796_s6 + $0x524] sm:$0xf0]  ;;  %v8991_v22 = vld [vmem:[%s13796_s6 + $0x58c] sm:$0xf] }
 0x7b3   :  { %5189 = vmatpush.bf16.msra.mxu0 %v8348_v50 }
 0x7b4   :  { %v5092_v17 = vsel %vm2702_vm7, %v4884_v47, 0  ;;  %v8899_v47 = vld [vmem:[%s13796_s6 + $0x2a4] sm:$0xf0] }
 0x7b6   :  { %5164 = vmatpush.bf16.msra.mxu2 %v7804_v32  ;;  %5177 = vmatpush.bf16.msrb.mxu3 %v8060_v37 }
 0x7b7   :  { %5190 = vmatpush.bf16.msra.mxu0 %v8316_v62 }
 0x7ba   :  { %5165 = vmatpush.bf16.msra.mxu2 %v7772_v52  ;;  %5178 = vmatpush.bf16.msrb.mxu3 %v8028_v54  ;;  %v8160_v54 = vor.u32 %v8939_v46, %v8159_v6  ;;  %v7999_v46 = vld [vmem:[%s13796_s6 + $0x288] sm:$0xf] }
 0x7bb   :  { %5191 = vmatpush.bf16.msra.mxu0 %v8284_v26  ;;  %v8923_v26 = vld [vmem:[%s13796_s6 + $0x364] sm:$0xf0] }
 0x7bc   :  { %v8096_v25 = vor.u32 %v8923_v26, %v8095_v5  ;;  %v8417_v26 = vld [vmem:[%s13796_s6 + $0x5e8] sm:$0xf0] }
 0x7be   :  { %5166 = vmatpush.bf16.msra.mxu2 %v7740_v63  ;;  %5179 = vmatpush.bf16.msrb.mxu3 %v7996_v36 }
 0x7bf   :  { %5192 = vmatpush.bf16.msra.mxu0 %v8252_v29 }
 0x7c2   :  { %5167 = vmatpush.bf16.msra.mxu2 %v7708_v33  ;;  %5180 = vmatpush.bf16.msrb.mxu3 %v7964_v19  ;;  %v8995_v33 = vld [vmem:[%s13796_s6 + $0x5a4] sm:$0xf0] }
 0x7c3   :  { %5193 = vmatpush.bf16.msra.mxu0 %v8220_v57  ;;  %v7871_v19 = vld [vmem:[%s13796_s6 + $0x188] sm:$0xf]  ;;  %v8384_v29 = vor.u32 %v8995_v33, %v8383_v15  ;;  %v8935_v57 = vld [vmem:[%s13796_s6 + $0x3cc] sm:$0xf]  ;;  %v8068_v33 = vor.u32 %v8911_v0, %v8065_v28  ;;  %v9004_v0 = vld [vmem:[%s13796_s6 + $0x5ec] sm:$0xf0] }
 0x7c4   :  { %v8955_v15 = vld [vmem:[%s13796_s6 + $0x464] sm:$0xf0] }
 0x7c6   :  { %5168 = vmatpush.bf16.msra.mxu2 %v7676_v43  ;;  %5181 = vmatpush.bf16.msrb.mxu3 %v7932_v44  ;;  %v7872_v43 = vor.u32 %v8867_v38, %v7871_v19  ;;  %v7839_v44 = vld [vmem:[%s13796_s6 + $0x148] sm:$0xf] }
 0x7c7   :  { %5194 = vmatpush.bf16.msra.mxu0 %v8188_v9  ;;  %v8031_v9 = vld [vmem:[%s13796_s6 + $0x2c8] sm:$0xf] }
 0x7c8   :  { %v7711_v19 = vld [vmem:[%s13796_s6 + $0x48] sm:$0xf] }
 0x7c9   :  { %v8827_v38 = vld [vmem:[%s13796_s6 + $0x64] sm:$0xf0] }
 0x825   :  { %v3839_v51 = vpop.f32.mrf.mxu0 }
 0x826   :  { %v3883_v23 = vperm.slane %v3839_v51, 0  ;;  %v3859_v24 = vpop.f32.mrf.mxu1  ;;  %v3891_v35 = vperm.slane %v3839_v51, 1  ;;  %v8907_v51 = vld [vmem:[%s13796_s6 + $0x2e4] sm:$0xf0] }
 0x827   :  { %v3884_v31 = vperm.slane %v3859_v24, 0  ;;  %v3892_v40 = vperm.slane %v3859_v24, 1  ;;  %v8319_v24 = vld [vmem:[%s13796_s6 + $0x508] sm:$0xf] }
 0x828   :  { %v3887_v32 = vmul.f32 %v3883_v23, %v11946_v10  ;;  %v7840_v23 = vor.u32 %v8859_v7, %v7839_v44  ;;  %v8320_v6 = vor.u32 %v8979_v30, %v8319_v24  ;;  %v7712_v44 = vor.u32 %v8827_v38, %v7711_v19  ;;  %v8191_v7 = vld [vmem:[%s13796_s6 + $0x408] sm:$0xf]  ;;  %v8895_v24 = vld [vmem:[%s13796_s6 + $0x28c] sm:$0xf]  ;;  %v8391_v38 = vld [vmem:[%s13796_s6 + $0x590] sm:$0xf] }
 0x829   :  { %v3888_v37 = vmul.f32 %v3884_v31, %v11954_v56  ;;  %v8164_v31 = vor.u32 %v8935_v57, %v8161_v8  ;;  %v8036_v57 = vor.u32 %v8903_v42, %v8033_v20  ;;  %v7679_v8 = vld [vmem:[%s13796_s6 + $0x8] sm:$0xf]  ;;  %v8001_v30 = vld [vmem:[%s13796_s6 + $0x2a8] sm:$0xf0] }
 0x82a   :  { %v3895_v41 = vadd.f32 %v3891_v35, %v3887_v32  ;;  %v7807_v32 = vld [vmem:[%s13796_s6 + $0x108] sm:$0xf]  ;;  %v8959_v42 = vld [vmem:[%s13796_s6 + $0x48c] sm:$0xf] }
 0x82b   :  { %v3896_v48 = vadd.f32 %v3892_v40, %v3888_v37  ;;  %v3819_v49 = vpop.f32.mrf.mxu3  ;;  %v8851_v35 = vld [vmem:[%s13796_s6 + $0x124] sm:$0xf0]  ;;  %v8032_v37 = vor.u32 %v8907_v51, %v8031_v9  ;;  %v8927_v40 = vld [vmem:[%s13796_s6 + $0x38c] sm:$0xf] }
 0x82c   :  { %v3899_v50 = vmax.f32 %v3895_v41, 0.0  ;;  %v3882_v52 = vperm.slane %v3819_v49, 0  ;;  %v3879_v45 = vpop.f32.mrf.mxu2  ;;  %v3890_v11 = vperm.slane %v3819_v49, 1  ;;  %v8129_v41 = vld [vmem:[%s13796_s6 + $0x3a8] sm:$0xf0] }
 0x82d   :  { %v3900_v10 = vmax.f32 %v3896_v48, 0.0  ;;  %v3885_v53 = vperm.slane %v3879_v45, 0  ;;  %v3893_v18 = vperm.slane %v3879_v45, 1  ;;  %v7808_v48 = vor.u32 %v8851_v35, %v7807_v32  ;;  %v8287_v49 = vld [vmem:[%s13796_s6 + $0x4c8] sm:$0xf] }
 0x82e   :  { %v12300_v56 = vpack.c.bf16 %v3899_v50, %v3899_v50  ;;  %v3886_v55 = vmul.f32 %v3882_v52, %v11939_v16  ;;  %v8415_v16 = vld [vmem:[%s13796_s6 + $0x5c8] sm:$0xf]  ;;  %v8132_v52 = vor.u32 %v8927_v40, %v8129_v41  ;;  %v8871_v9 = vld [vmem:[%s13796_s6 + $0x1cc] sm:$0xf]  ;;  %v8167_v41 = vld [vmem:[%s13796_s6 + $0x3d0] sm:$0xf] }
 0x82f   :  { %v12304_v59 = vpack.c.bf16 %v3900_v10, %v3900_v10  ;;  %v3889_v60 = vmul.f32 %v3885_v53, %v11956_v58  ;;  %v9003_v58 = vld [vmem:[%s13796_s6 + $0x5e4] sm:$0xf0]  ;;  %v8000_v53 = vor.u32 %v8899_v47, %v7999_v46  ;;  %v8353_v40 = vld [vmem:[%s13796_s6 + $0x568] sm:$0xf0]  ;;  %v8004_v46 = vor.u32 %v8895_v24, %v8001_v30  ;;  %v8039_v30 = vld [vmem:[%s13796_s6 + $0x2d0] sm:$0xf] }
 0x830   :  { %v3894_v62 = vadd.f32 %v3890_v11, %v3886_v55  ;;  %5130 = vmatmul.bf16.vlgmr.msrb.gmra.mxu0 %v12300_v56  ;;  %v8416_v4 = vor.u32 %v9003_v58, %v8415_v16  ;;  %v8971_v50 = vld [vmem:[%s13796_s6 + $0x4e4] sm:$0xf0]  ;;  %v8097_v55 = vld [vmem:[%s13796_s6 + $0x368] sm:$0xf0] }
 0x831   :  { %v3897_v63 = vadd.f32 %v3893_v18, %v3889_v60  ;;  %5143 = vmatmul.bf16.vlgmr.msra.gmra.mxu1 %v12304_v59  ;;  %5259 = vmatpush.bf16.msrb.mxu0 %v5092_v17  ;;  %v7775_v45 = vld [vmem:[%s13796_s6 + $0xc8] sm:$0xf]  ;;  %v8288_v11 = vor.u32 %v8971_v50, %v8287_v49  ;;  %v8863_v49 = vld [vmem:[%s13796_s6 + $0x18c] sm:$0xf] }
 0x832   :  { %v3898_v36 = vmax.f32 %v3894_v62, 0.0  ;;  %5226 = vmatpush.bf16.msra.mxu1 %v8160_v54  ;;  %v8843_v10 = vld [vmem:[%s13796_s6 + $0xe4] sm:$0xf0]  ;;  %v8919_v54 = vld [vmem:[%s13796_s6 + $0x34c] sm:$0xf] }
 0x833   :  { %v3901_v1 = vmax.f32 %v3897_v63, 0.0  ;;  %v7967_v17 = vld [vmem:[%s13796_s6 + $0x248] sm:$0xf]  ;;  %v7776_v18 = vor.u32 %v8843_v10, %v7775_v45  ;;  %v8100_v62 = vor.u32 %v8919_v54, %v8097_v55  ;;  %v7873_v50 = vld [vmem:[%s13796_s6 + $0x1a8] sm:$0xf0] }
 0x834   :  { %v12333_v13 = vpack.c.bf16 %v3898_v36, %v3898_v36  ;;  %v8891_v60 = vld [vmem:[%s13796_s6 + $0x264] sm:$0xf0]  ;;  %v8256_v36 = vor.u32 %v8963_v27, %v8255_v61  ;;  %v7969_v45 = vld [vmem:[%s13796_s6 + $0x268] sm:$0xf0] }
 0x835   :  { %v12341_v2 = vpack.c.bf16 %v3901_v1, %v3901_v1  ;;  %v7743_v16 = vld [vmem:[%s13796_s6 + $0x88] sm:$0xf]  ;;  %v7968_v63 = vor.u32 %v8891_v60, %v7967_v17  ;;  %v8975_v54 = vld [vmem:[%s13796_s6 + $0x50c] sm:$0xf]  ;;  %v8135_v60 = vld [vmem:[%s13796_s6 + $0x390] sm:$0xf] }
 0x836   :  { %5227 = vmatpush.bf16.msra.mxu1 %v8128_v3  ;;  %5117 = vmatmul.bf16.vlgmr.msra.gmra.mxu3 %v12333_v13  ;;  %v8835_v58 = vld [vmem:[%s13796_s6 + $0xa4] sm:$0xf0]  ;;  %v8321_v55 = vld [vmem:[%s13796_s6 + $0x528] sm:$0xf0] }
 0x837   :  { %8437 = vmatmul.msk.bf16.vlgmr.msrb.gmra.mxu2 %vm2180_vm3, %v12341_v2  ;;  %5239 = vmatpush.bf16.msra.mxu3 %v8416_v4  ;;  %v7935_v3 = vld [vmem:[%s13796_s6 + $0x208] sm:$0xf]  ;;  %v8999_v4 = vld [vmem:[%s13796_s6 + $0x5cc] sm:$0xf]  ;;  %v7744_v5 = vor.u32 %v8835_v58, %v7743_v16  ;;  %v8324_v58 = vor.u32 %v8975_v54, %v8321_v55 }
 0x838   :  { %5213 = vmatpush.bf16.msrb.mxu2 %v7904_v14  ;;  %v8883_v1 = vld [vmem:[%s13796_s6 + $0x224] sm:$0xf0]  ;;  %v8855_v61 = vld [vmem:[%s13796_s6 + $0x14c] sm:$0xf] }
 0x839   :  { %v8223_v14 = vld [vmem:[%s13796_s6 + $0x448] sm:$0xf]  ;;  %v7841_v27 = vld [vmem:[%s13796_s6 + $0x168] sm:$0xf0] }
 0x83a   :  { %5228 = vmatpush.bf16.msra.mxu1 %v8096_v25  ;;  %v4685_v25 = vunpack.c.h.b16 %v12289_v12  ;;  %v8224_v34 = vor.u32 %v8955_v15, %v8223_v14  ;;  %v8385_v12 = vld [vmem:[%s13796_s6 + $0x5a8] sm:$0xf0] }
 0x83b   :  { %5240 = vmatpush.bf16.msra.mxu3 %v8384_v29  ;;  %v7936_v29 = vor.u32 %v8883_v1, %v7935_v3  ;;  %v7937_v16 = vld [vmem:[%s13796_s6 + $0x228] sm:$0xf0]  ;;  %v7844_v1 = vor.u32 %v8855_v61, %v7841_v27  ;;  %v8872_v61 = vld [vmem:[%s13796_s6 + $0x1d4] sm:$0xf] }
 0x83c   :  { %5214 = vmatpush.bf16.msrb.mxu2 %v7872_v43  ;;  %v8420_v43 = vor.u32 %v8999_v4, %v8417_v26  ;;  %v4885_v51 = vpack.c.b16 %v4685_v25, %v4685_v25  ;;  %v8289_v3 = vld [vmem:[%s13796_s6 + $0x4e8] sm:$0xf0]  ;;  %v8924_v26 = vld [vmem:[%s13796_s6 + $0x36c] sm:$0xf0]  ;;  %v7913_v27 = vld [vmem:[%s13796_s6 + $0x1f0] sm:$0xf0] }
 0x83d   :  { %v8847_v15 = vld [vmem:[%s13796_s6 + $0x10c] sm:$0xf]  ;;  %v8996_v25 = vld [vmem:[%s13796_s6 + $0x5ac] sm:$0xf0] }
 0x83e   :  { %5229 = vmatpush.bf16.msra.mxu1 %v8064_v39  ;;  %v8947_v39 = vld [vmem:[%s13796_s6 + $0x424] sm:$0xf0]  ;;  %v5095_v47 = vsel %vm2702_vm7, %v4885_v51, 0  ;;  %v8257_v20 = vld [vmem:[%s13796_s6 + $0x4a8] sm:$0xf0] }
 0x83f   :  { %5241 = vmatpush.bf16.msra.mxu3 %v8352_v21  ;;  %v8819_v21 = vld [vmem:[%s13796_s6 + $0x24] sm:$0xf0]  ;;  %v8192_v32 = vor.u32 %v8947_v39, %v8191_v7  ;;  %v7777_v7 = vld [vmem:[%s13796_s6 + $0xe8] sm:$0xf0]  ;;  %v12619_v39 = vld [vmem:[%s13796_s6 + $0x610] sm:$0xff] }
 0x840   :  { %5215 = vmatpush.bf16.msrb.mxu2 %v7840_v23  ;;  %5195 = vmatmul.bf16.vlgmr.msra.gmra.mxu0 %v12304_v59  ;;  %v7905_v23 = vld [vmem:[%s13796_s6 + $0x1e8] sm:$0xf0]  ;;  %v7680_v35 = vor.u32 %v8819_v21, %v7679_v8  ;;  %v8359_v8 = vld [vmem:[%s13796_s6 + $0x550] sm:$0xf] }
 0x841   :  { %8438 = vmatmul.msk.bf16.vlgmr.msrb.gmra.mxu1 %vm2180_vm3, %v12341_v2  ;;  %5278 = vmatpush.bf16.msra.mxu0 %v8164_v31  ;;  %v8388_v31 = vor.u32 %v8991_v22, %v8385_v12  ;;  %v8916_v22 = vld [vmem:[%s13796_s6 + $0x32c] sm:$0xf0]  ;;  %v8839_v12 = vld [vmem:[%s13796_s6 + $0xcc] sm:$0xf] }
 0x842   :  { %5230 = vmatpush.bf16.msra.mxu1 %v8032_v37  ;;  %v8983_v37 = vld [vmem:[%s13796_s6 + $0x54c] sm:$0xf]  ;;  %v8988_v21 = vld [vmem:[%s13796_s6 + $0x56c] sm:$0xf0]  ;;  %v7780_v24 = vor.u32 %v8839_v12, %v7777_v7 }
 0x843   :  { %5242 = vmatpush.bf16.msra.mxu3 %v8320_v6  ;;  %v7908_v6 = vor.u32 %v8871_v9, %v7905_v23  ;;  %v8356_v10 = vor.u32 %v8983_v37, %v8353_v40  ;;  %v8951_v51 = vld [vmem:[%s13796_s6 + $0x44c] sm:$0xf]  ;;  %v8231_v12 = vld [vmem:[%s13796_s6 + $0x450] sm:$0xf] }
 0x844   :  { %5216 = vmatpush.bf16.msrb.mxu2 %v7808_v48  ;;  %v8940_v48 = vld [vmem:[%s13796_s6 + $0x3ec] sm:$0xf0]  ;;  %v8225_v23 = vld [vmem:[%s13796_s6 + $0x468] sm:$0xf0] }
 0x845   :  { %5279 = vmatpush.bf16.msra.mxu0 %v8132_v52  ;;  %v8887_v52 = vld [vmem:[%s13796_s6 + $0x24c] sm:$0xf]  ;;  %v8956_v7 = vld [vmem:[%s13796_s6 + $0x46c] sm:$0xf0] }
 0x846   :  { %5231 = vmatpush.bf16.msra.mxu1 %v8000_v53  ;;  %5182 = vmatmul.bf16.vlgmr.msrb.gmra.mxu3 %v12300_v56  ;;  %v8168_v53 = vor.u32 %v8940_v48, %v8167_v41  ;;  %v7972_v17 = vor.u32 %v8887_v52, %v7969_v45  ;;  %v8831_v37 = vld [vmem:[%s13796_s6 + $0x8c] sm:$0xf]  ;;  %v8228_v41 = vor.u32 %v8951_v51, %v8225_v23  ;;  %v8007_v52 = vld [vmem:[%s13796_s6 + $0x290] sm:$0xf] }
 0x847   :  { %5169 = vmatmul.bf16.vlgmr.msra.gmra.mxu2 %v12333_v13  ;;  %5243 = vmatpush.bf16.msra.mxu3 %v8288_v11  ;;  %v7876_v11 = vor.u32 %v8863_v49, %v7873_v50  ;;  %v7745_v40 = vld [vmem:[%s13796_s6 + $0xa8] sm:$0xf0]  ;;  %v8900_v45 = vld [vmem:[%s13796_s6 + $0x2ac] sm:$0xf0] }
 0x848   :  { %5217 = vmatpush.bf16.msrb.mxu2 %v7776_v18  ;;  %v8932_v18 = vld [vmem:[%s13796_s6 + $0x3ac] sm:$0xf0]  ;;  %v8943_v48 = vld [vmem:[%s13796_s6 + $0x40c] sm:$0xf]  ;;  %v7748_v50 = vor.u32 %v8831_v37, %v7745_v40 }
 0x849   :  { %5280 = vmatpush.bf16.msra.mxu0 %v8100_v62  ;;  %v8879_v62 = vld [vmem:[%s13796_s6 + $0x20c] sm:$0xf]  ;;  %v8136_v28 = vor.u32 %v8932_v18, %v8135_v60  ;;  %v8972_v60 = vld [vmem:[%s13796_s6 + $0x4ec] sm:$0xf0]  ;;  %v8008_v18 = vor.u32 %v8900_v45, %v8007_v52  ;;  %v8361_v52 = vld [vmem:[%s13796_s6 + $0x570] sm:$0xf0] }
 0x84a   :  { %5232 = vmatpush.bf16.msra.mxu1 %v7968_v63  ;;  %v8423_v63 = vld [vmem:[%s13796_s6 + $0x5d0] sm:$0xf]  ;;  %v7940_v4 = vor.u32 %v8879_v62, %v7937_v16  ;;  %v8193_v49 = vld [vmem:[%s13796_s6 + $0x428] sm:$0xf0] }
 0x84b   :  { %5244 = vmatpush.bf16.msra.mxu3 %v8256_v36  ;;  %v8967_v36 = vld [vmem:[%s13796_s6 + $0x4cc] sm:$0xf]  ;;  %v8424_v14 = vor.u32 %v9004_v0, %v8423_v63  ;;  %v8892_v63 = vld [vmem:[%s13796_s6 + $0x26c] sm:$0xf0] }
 0x84c   :  { %5218 = vmatpush.bf16.msrb.mxu2 %v7744_v5  ;;  %v8103_v5 = vld [vmem:[%s13796_s6 + $0x350] sm:$0xf]  ;;  %v8292_v19 = vor.u32 %v8967_v36, %v8289_v3  ;;  %v8823_v54 = vld [vmem:[%s13796_s6 + $0x4c] sm:$0xf] }
 0x84d   :  { %5281 = vmatpush.bf16.msra.mxu0 %v8068_v33  ;;  %v7809_v33 = vld [vmem:[%s13796_s6 + $0x128] sm:$0xf0]  ;;  %v7911_v3 = vld [vmem:[%s13796_s6 + $0x1d0] sm:$0xf] }
 0x84e   :  { %5233 = vmatpush.bf16.msra.mxu1 %v7936_v29  ;;  %v8104_v29 = vor.u32 %v8924_v26, %v8103_v5  ;;  %v7713_v55 = vld [vmem:[%s13796_s6 + $0x68] sm:$0xf0]  ;;  %v8263_v5 = vld [vmem:[%s13796_s6 + $0x490] sm:$0xf] }
 0x84f   :  { %5245 = vmatpush.bf16.msra.mxu3 %v8224_v34  ;;  %v8071_v34 = vld [vmem:[%s13796_s6 + $0x310] sm:$0xf]  ;;  %v7716_v62 = vor.u32 %v8823_v54, %v7713_v55  ;;  %v7681_v36 = vld [vmem:[%s13796_s6 + $0x28] sm:$0xf0]  ;;  %v8840_v54 = vld [vmem:[%s13796_s6 + $0xd4] sm:$0xf] }
 0x850   :  { %5219 = vmatpush.bf16.msrb.mxu2 %v7712_v44  ;;  %8439 = vmatmul.msk.bf16.vlgmr.msrb.gmra.mxu0 %vm2180_vm3, %v12341_v2  ;;  %v8392_v44 = vor.u32 %v8996_v25, %v8391_v38  ;;  %v8072_v9 = vor.u32 %v8916_v22, %v8071_v34  ;;  %v8964_v26 = vld [vmem:[%s13796_s6 + $0x4ac] sm:$0xf0]  ;;  %v7785_v55 = vld [vmem:[%s13796_s6 + $0xf0] sm:$0xf0] }
 0x851   :  { %5234 = vmatmul.bf16.vlgmr.msra.gmra.mxu1 %v12300_v56  ;;  %5282 = vmatpush.bf16.msra.mxu0 %v8036_v57  ;;  %v8260_v57 = vor.u32 %v8959_v42, %v8257_v20  ;;  %v7943_v38 = vld [vmem:[%s13796_s6 + $0x210] sm:$0xf]  ;;  %v8264_v42 = vor.u32 %v8964_v26, %v8263_v5  ;;  %v9000_v20 = vld [vmem:[%s13796_s6 + $0x5d4] sm:$0xf] }
 0x852   :  { %5291 = vmatpush.bf16.msrb.mxu1 %v8420_v43  ;;  %v7812_v43 = vor.u32 %v8847_v15, %v7809_v33  ;;  %v8864_v15 = vld [vmem:[%s13796_s6 + $0x194] sm:$0xf]  ;;  %v8884_v25 = vld [vmem:[%s13796_s6 + $0x22c] sm:$0xf0] }
 0x853   :  { %5246 = vmatpush.bf16.msra.mxu3 %v8192_v32  ;;  %v4686_v32 = vunpack.c.l.b16 %v12619_v39  ;;  %v7881_v33 = vld [vmem:[%s13796_s6 + $0x1b0] sm:$0xf0]  ;;  %v7879_v34 = vld [vmem:[%s13796_s6 + $0x190] sm:$0xf] }
 0x854   :  { %5220 = vmatpush.bf16.msrb.mxu2 %v7680_v35  ;;  %v8360_v35 = vor.u32 %v8988_v21, %v8359_v8  ;;  %v7884_v22 = vor.u32 %v8864_v15, %v7881_v33  ;;  %v8856_v8 = vld [vmem:[%s13796_s6 + $0x154] sm:$0xf]  ;;  %v8199_v37 = vld [vmem:[%s13796_s6 + $0x410] sm:$0xf] }
 0x855   :  { %5283 = vmatpush.bf16.msra.mxu0 %v8004_v46  ;;  %v8980_v46 = vld [vmem:[%s13796_s6 + $0x52c] sm:$0xf0]  ;;  %v7849_v21 = vld [vmem:[%s13796_s6 + $0x170] sm:$0xf0] }
 0x856   :  { %5292 = vmatpush.bf16.msrb.mxu1 %v8388_v31  ;;  %5247 = vmatmul.bf16.vlgmr.msra.gmra.mxu3 %v12304_v59  ;;  %v8908_v31 = vld [vmem:[%s13796_s6 + $0x2ec] sm:$0xf0]  ;;  %v8968_v26 = vld [vmem:[%s13796_s6 + $0x4d4] sm:$0xf] }
 0x857   :  { %5311 = vmatpush.bf16.msrb.mxu3 %v5095_v47  ;;  %5221 = vmatmul.bf16.vlgmr.msrb.gmra.mxu2 %v12333_v13  ;;  %v8040_v47 = vor.u32 %v8908_v31, %v8039_v30  ;;  %v8992_v30 = vld [vmem:[%s13796_s6 + $0x594] sm:$0xf]  ;;  %v8948_v40 = vld [vmem:[%s13796_s6 + $0x42c] sm:$0xf0] }
 0x858   :  { %5265 = vmatpush.bf16.msra.mxu2 %v7908_v6  ;;  %v8327_v6 = vld [vmem:[%s13796_s6 + $0x510] sm:$0xf]  ;;  %v8393_v31 = vld [vmem:[%s13796_s6 + $0x5b0] sm:$0xf0] }
 0x859   :  { %5284 = vmatpush.bf16.msra.mxu0 %v7972_v17  ;;  %v8295_v17 = vld [vmem:[%s13796_s6 + $0x4d0] sm:$0xf] }
 0x85a   :  { %5293 = vmatpush.bf16.msrb.mxu1 %v8356_v10  ;;  %v4886_v10 = vpack.c.b16 %v4686_v32, %v4686_v32  ;;  %v8296_v0 = vor.u32 %v8972_v60, %v8295_v17  ;;  %v7847_v32 = vld [vmem:[%s13796_s6 + $0x150] sm:$0xf]  ;;  %v7919_v17 = vld [vmem:[%s13796_s6 + $0x1d8] sm:$0xf] }
 0x85b   :  { %5330 = vmatpush.bf16.msra.mxu3 %v8168_v53  ;;  %v8328_v53 = vor.u32 %v8980_v46, %v8327_v6  ;;  %v7817_v6 = vld [vmem:[%s13796_s6 + $0x130] sm:$0xf0]  ;;  %v7815_v45 = vld [vmem:[%s13796_s6 + $0x110] sm:$0xf]  ;;  %v8877_v60 = vld [vmem:[%s13796_s6 + $0x1f4] sm:$0xf0] }
 0x85c   :  { %5266 = vmatpush.bf16.msra.mxu2 %v7876_v11  ;;  %v8196_v11 = vor.u32 %v8943_v48, %v8193_v49  ;;  %v5098_v16 = vsel %vm2702_vm7, %v4886_v10, 0  ;;  %v8200_v49 = vor.u32 %v8948_v40, %v8199_v37  ;;  %v8233_v37 = vld [vmem:[%s13796_s6 + $0x470] sm:$0xf0] }
 0x85d   :  { %5285 = vmatpush.bf16.msra.mxu0 %v7940_v4  ;;  %v8876_v4 = vld [vmem:[%s13796_s6 + $0x1ec] sm:$0xf0] }
 0x85e   :  { %5294 = vmatpush.bf16.msrb.mxu1 %v8324_v58  ;;  %v7975_v58 = vld [vmem:[%s13796_s6 + $0x250] sm:$0xf] }
 0x85f   :  { %5331 = vmatpush.bf16.msra.mxu3 %v8136_v28  ;;  %v8815_v28 = vld [vmem:[%s13796_s6 + $0xc] sm:$0xf] }
 0x860   :  { %5267 = vmatpush.bf16.msra.mxu2 %v7844_v1  ;;  %5286 = vmatmul.bf16.vlgmr.msra.gmra.mxu0 %v12300_v56  ;;  %v7916_v1 = vor.u32 %v8872_v61, %v7913_v27  ;;  %v8976_v27 = vld [vmem:[%s13796_s6 + $0x514] sm:$0xf] }
 0x861   :  { %5343 = vmatpush.bf16.msrb.mxu0 %v8424_v14  ;;  %v7976_v14 = vor.u32 %v8892_v63, %v7975_v58  ;;  %v7920_v58 = vor.u32 %v8877_v60, %v7919_v17  ;;  %v7783_v63 = vld [vmem:[%s13796_s6 + $0xd0] sm:$0xf]  ;;  %v8201_v17 = vld [vmem:[%s13796_s6 + $0x430] sm:$0xf0] }
 0x862   :  { %5295 = vmatpush.bf16.msrb.mxu1 %v8292_v19  ;;  %v7684_v19 = vor.u32 %v8815_v28, %v7681_v36  ;;  %v8832_v28 = vld [vmem:[%s13796_s6 + $0x94] sm:$0xf] }
 0x863   :  { %5332 = vmatpush.bf16.msra.mxu3 %v8104_v29  ;;  %v7912_v29 = vor.u32 %v8876_v4, %v7911_v3  ;;  %v7753_v36 = vld [vmem:[%s13796_s6 + $0xb0] sm:$0xf0]  ;;  %v7887_v3 = vld [vmem:[%s13796_s6 + $0x198] sm:$0xf] }
 0x864   :  { %5268 = vmatpush.bf16.msra.mxu2 %v7812_v43  ;;  %v8425_v43 = vld [vmem:[%s13796_s6 + $0x5f0] sm:$0xf0]  ;;  %v7756_v15 = vor.u32 %v8832_v28, %v7753_v36  ;;  %v8111_v28 = vld [vmem:[%s13796_s6 + $0x358] sm:$0xf] }
 0x865   :  { %5344 = vmatpush.bf16.msrb.mxu0 %v8392_v44  ;;  %v8868_v44 = vld [vmem:[%s13796_s6 + $0x1ac] sm:$0xf0]  ;;  %v8428_v51 = vor.u32 %v9000_v20, %v8425_v43  ;;  %v8861_v20 = vld [vmem:[%s13796_s6 + $0x174] sm:$0xf0] }
 0x866   :  { %5296 = vmatpush.bf16.msrb.mxu1 %v8260_v57  ;;  %8440 = vmatmul.msk.bf16.vlgmr.msrb.gmra.mxu3 %vm2180_vm3, %v12341_v2  ;;  %v7944_v57 = vor.u32 %v8884_v25, %v7943_v38  ;;  %v7880_v23 = vor.u32 %v8868_v44, %v7879_v34  ;;  %v8836_v38 = vld [vmem:[%s13796_s6 + $0xac] sm:$0xf0]  ;;  %v8824_v25 = vld [vmem:[%s13796_s6 + $0x54] sm:$0xf]  ;;  %v8925_v36 = vld [vmem:[%s13796_s6 + $0x374] sm:$0xf0] }
 0x867   :  { %5333 = vmatpush.bf16.msra.mxu3 %v8072_v9  ;;  %v4687_v9 = vunpack.c.h.b16 %v12619_v39  ;;  %v7852_v39 = vor.u32 %v8856_v8, %v7849_v21  ;;  %v8265_v44 = vld [vmem:[%s13796_s6 + $0x4b0] sm:$0xf0]  ;;  %v8828_v8 = vld [vmem:[%s13796_s6 + $0x6c] sm:$0xf0] }
 0x868   :  { %5269 = vmatpush.bf16.msra.mxu2 %v7780_v24  ;;  %v8232_v24 = vor.u32 %v8956_v7, %v8231_v12  ;;  %v7719_v12 = vld [vmem:[%s13796_s6 + $0x50] sm:$0xf]  ;;  %v8816_v21 = vld [vmem:[%s13796_s6 + $0x14] sm:$0xf] }
 0x869   :  { %5345 = vmatpush.bf16.msrb.mxu0 %v8360_v35  ;;  %v8860_v35 = vld [vmem:[%s13796_s6 + $0x16c] sm:$0xf0]  ;;  %v4887_v46 = vpack.c.b16 %v4687_v9, %v4687_v9  ;;  %v7689_v9 = vld [vmem:[%s13796_s6 + $0x30] sm:$0xf0] }
 0x86a   :  { %5297 = vmatpush.bf16.msrb.mxu1 %v8228_v41  ;;  %v8848_v41 = vld [vmem:[%s13796_s6 + $0x114] sm:$0xf]  ;;  %v7848_v48 = vor.u32 %v8860_v35, %v7847_v32  ;;  %v8941_v32 = vld [vmem:[%s13796_s6 + $0x3f4] sm:$0xf0]  ;;  %v7692_v40 = vor.u32 %v8816_v21, %v7689_v9 }
 0x86b   :  { %5334 = vmatpush.bf16.msra.mxu3 %v8040_v47  ;;  %v8396_v47 = vor.u32 %v8992_v30, %v8393_v31  ;;  %v7820_v10 = vor.u32 %v8848_v41, %v7817_v6  ;;  %v8175_v31 = vld [vmem:[%s13796_s6 + $0x3d8] sm:$0xf]  ;;  %v8952_v35 = vld [vmem:[%s13796_s6 + $0x454] sm:$0xf]  ;;  %v7687_v6 = vld [vmem:[%s13796_s6 + $0x10] sm:$0xf] }
 0x86c   :  { %5270 = vmatpush.bf16.msra.mxu2 %v7748_v50  ;;  %v8984_v50 = vld [vmem:[%s13796_s6 + $0x554] sm:$0xf]  ;;  %v8047_v21 = vld [vmem:[%s13796_s6 + $0x2d8] sm:$0xf] }
 0x86d   :  { %5346 = vmatpush.bf16.msrb.mxu0 %v8328_v53  ;;  %v8852_v53 = vld [vmem:[%s13796_s6 + $0x12c] sm:$0xf0] }
 0x86e   :  { %5298 = vmatpush.bf16.msrb.mxu1 %v8196_v11  ;;  %v5101_v11 = vsel %vm2702_vm7, %v4887_v46, 0  ;;  %v7816_v61 = vor.u32 %v8852_v53, %v7815_v45  ;;  %v8820_v46 = vld [vmem:[%s13796_s6 + $0x2c] sm:$0xf0]  ;;  %v8845_v45 = vld [vmem:[%s13796_s6 + $0xf4] sm:$0xf0] }
 0x86f   :  { %5335 = vmatpush.bf16.msra.mxu3 %v8008_v18  ;;  %v8364_v18 = vor.u32 %v8984_v50, %v8361_v52  ;;  %v8169_v50 = vld [vmem:[%s13796_s6 + $0x3f0] sm:$0xf0]  ;;  %v7791_v52 = vld [vmem:[%s13796_s6 + $0xd8] sm:$0xf] }
 0x870   :  { %5271 = vmatpush.bf16.msra.mxu2 %v7716_v62  ;;  %v8329_v62 = vld [vmem:[%s13796_s6 + $0x530] sm:$0xf0]  ;;  %v8143_v53 = vld [vmem:[%s13796_s6 + $0x398] sm:$0xf] }
 0x871   :  { %5299 = vmatmul.bf16.vlgmr.msrb.gmra.mxu1 %v12304_v59  ;;  %5347 = vmatpush.bf16.msrb.mxu0 %v8296_v0  ;;  %v8844_v0 = vld [vmem:[%s13796_s6 + $0xec] sm:$0xf0]  ;;  %v8332_v4 = vor.u32 %v8976_v27, %v8329_v62 }
 0x872   :  { %5363 = vmatpush.bf16.msra.mxu1 %v5098_v16  ;;  %v7788_v16 = vor.u32 %v8840_v54, %v7785_v55  ;;  %v7784_v5 = vor.u32 %v8844_v0, %v7783_v63  ;;  %v8933_v54 = vld [vmem:[%s13796_s6 + $0x3b4] sm:$0xf0]  ;;  %v7688_v55 = vor.u32 %v8820_v46, %v7687_v6  ;;  %v8041_v6 = vld [vmem:[%s13796_s6 + $0x2f0] sm:$0xf0] }
 0x873   :  { %5336 = vmatpush.bf16.msra.mxu3 %v7976_v14  ;;  %v8297_v14 = vld [vmem:[%s13796_s6 + $0x4f0] sm:$0xf0]  ;;  %v8144_v62 = vor.u32 %v8933_v54, %v8143_v53  ;;  %v8837_v63 = vld [vmem:[%s13796_s6 + $0xb4] sm:$0xf0] }
 0x874   :  { %5272 = vmatpush.bf16.msra.mxu2 %v7684_v19  ;;  %v7751_v19 = vld [vmem:[%s13796_s6 + $0x90] sm:$0xf]  ;;  %v8300_v43 = vor.u32 %v8968_v26, %v8297_v14  ;;  %v8920_v14 = vld [vmem:[%s13796_s6 + $0x354] sm:$0xf]  ;;  %v8015_v46 = vld [vmem:[%s13796_s6 + $0x298] sm:$0xf] }
 0x875   :  { %5348 = vmatpush.bf16.msrb.mxu0 %v8264_v42  ;;  %v7855_v42 = vld [vmem:[%s13796_s6 + $0x158] sm:$0xf]  ;;  %v7752_v34 = vor.u32 %v8836_v38, %v7751_v19 }
 0x876   :  { %5369 = vmatpush.bf16.msrb.mxu1 %v7916_v1  ;;  %v8869_v1 = vld [vmem:[%s13796_s6 + $0x1b4] sm:$0xf0] }
 0x877   :  { %5273 = vmatmul.bf16.vlgmr.msra.gmra.mxu2 %v12333_v13  ;;  %5337 = vmatpush.bf16.msra.mxu3 %v7944_v57  ;;  %v7888_v33 = vor.u32 %v8869_v1, %v7887_v3  ;;  %v7856_v57 = vor.u32 %v8861_v20, %v7855_v42  ;;  %v8873_v3 = vld [vmem:[%s13796_s6 + $0x1dc] sm:$0xf]  ;;  %v7727_v19 = vld [vmem:[%s13796_s6 + $0x58] sm:$0xf] }
 0x878   :  { %5317 = vmatpush.bf16.msrb.mxu2 %v7912_v29  ;;  %v7721_v29 = vld [vmem:[%s13796_s6 + $0x70] sm:$0xf0]  ;;  %v7921_v1 = vld [vmem:[%s13796_s6 + $0x1f8] sm:$0xf0]  ;;  %v8829_v38 = vld [vmem:[%s13796_s6 + $0x74] sm:$0xf0] }
 0x879   :  { %5349 = vmatpush.bf16.msrb.mxu0 %v8232_v24  ;;  %v7724_v7 = vor.u32 %v8824_v25, %v7721_v29  ;;  %v12877_v24 = vld [vmem:[%s13796_s6 + $0x618] sm:$0xff]  ;;  %v7924_v25 = vor.u32 %v8873_v3, %v7921_v1 }
 0x87a   :  { %5370 = vmatpush.bf16.msrb.mxu1 %v7884_v22  ;;  %5338 = vmatmul.bf16.vlgmr.msra.gmra.mxu3 %v12300_v56  ;;  %v8960_v22 = vld [vmem:[%s13796_s6 + $0x494] sm:$0xf]  ;;  %v8079_v29 = vld [vmem:[%s13796_s6 + $0x318] sm:$0xf]  ;;  %v8865_v20 = vld [vmem:[%s13796_s6 + $0x19c] sm:$0xf] }
 0x87b   :  { %5395 = vmatpush.bf16.msrb.mxu3 %v8428_v51  ;;  %v7823_v51 = vld [vmem:[%s13796_s6 + $0x118] sm:$0xf]  ;;  %v8268_v30 = vor.u32 %v8960_v22, %v8265_v44  ;;  %v7728_v22 = vor.u32 %v8829_v38, %v7727_v19  ;;  %v8912_v44 = vld [vmem:[%s13796_s6 + $0x314] sm:$0xf]  ;;  %v9001_v19 = vld [vmem:[%s13796_s6 + $0x5dc] sm:$0xf] }
 0x87c   :  { %5318 = vmatpush.bf16.msrb.mxu2 %v7880_v23  ;;  %v8853_v23 = vld [vmem:[%s13796_s6 + $0x134] sm:$0xf0]  ;;  %v8433_v38 = vld [vmem:[%s13796_s6 + $0x5f8] sm:$0xf0] }
 0x87d   :  { %5350 = vmatpush.bf16.msrb.mxu0 %v8200_v49  ;;  %v7824_v41 = vor.u32 %v8853_v23, %v7823_v51  ;;  %v8176_v49 = vor.u32 %v8941_v32, %v8175_v31  ;;  %v8917_v42 = vld [vmem:[%s13796_s6 + $0x334] sm:$0xf0]  ;;  %v8937_v23 = vld [vmem:[%s13796_s6 + $0x3dc] sm:$0xf] }
 0x87e   :  { %5371 = vmatpush.bf16.msrb.mxu1 %v7852_v39  ;;  %v7720_v39 = vor.u32 %v8828_v8, %v7719_v12  ;;  %v8073_v12 = vld [vmem:[%s13796_s6 + $0x330] sm:$0xf0]  ;;  %v8821_v8 = vld [vmem:[%s13796_s6 + $0x34] sm:$0xf0]  ;;  %v8857_v31 = vld [vmem:[%s13796_s6 + $0x15c] sm:$0xf] }
 0x87f   :  { %5396 = vmatpush.bf16.msrb.mxu3 %v8396_v47  ;;  %v8936_v47 = vld [vmem:[%s13796_s6 + $0x3d4] sm:$0xf]  ;;  %v8909_v51 = vld [vmem:[%s13796_s6 + $0x2f4] sm:$0xf0]  ;;  %v7857_v32 = vld [vmem:[%s13796_s6 + $0x178] sm:$0xf0] }
 0x880   :  { %5319 = vmatpush.bf16.msrb.mxu2 %v7848_v48  ;;  %5351 = vmatmul.bf16.vlgmr.msrb.gmra.mxu0 %v12304_v59  ;;  %v4688_v48 = vunpack.c.l.b16 %v12877_v24  ;;  %v8172_v60 = vor.u32 %v8936_v47, %v8169_v50  ;;  %v7860_v47 = vor.u32 %v8857_v31, %v7857_v32  ;;  %v8145_v50 = vld [vmem:[%s13796_s6 + $0x3b8] sm:$0xf0]  ;;  %v7951_v1 = vld [vmem:[%s13796_s6 + $0x218] sm:$0xf] }
 0x881   :  { %5415 = vmatpush.bf16.msra.mxu0 %v5101_v11  ;;  %8441 = vmatmul.msk.bf16.vlgmr.msra.gmra.mxu1 %vm2180_vm3, %v12341_v2  ;;  %v8944_v11 = vld [vmem:[%s13796_s6 + $0x414] sm:$0xf]  ;;  %v8399_v32 = vld [vmem:[%s13796_s6 + $0x598] sm:$0xf] }
 0x882   :  { %5372 = vmatpush.bf16.msrb.mxu1 %v7820_v10  ;;  %v8236_v10 = vor.u32 %v8952_v35, %v8233_v37  ;;  %v4888_v27 = vpack.c.b16 %v4688_v48, %v4688_v48  ;;  %v8204_v0 = vor.u32 %v8944_v11, %v8201_v17  ;;  %v8048_v37 = vor.u32 %v8909_v51, %v8047_v21  ;;  %v8901_v48 = vld [vmem:[%s13796_s6 + $0x2b4] sm:$0xf0]  ;;  %v8009_v11 = vld [vmem:[%s13796_s6 + $0x2b0] sm:$0xf0]  ;;  %v8401_v51 = vld [vmem:[%s13796_s6 + $0x5b8] sm:$0xf0] }
 0x883   :  { %5397 = vmatpush.bf16.msrb.mxu3 %v8364_v18  ;;  %v7792_v18 = vor.u32 %v8845_v45, %v7791_v52  ;;  %v8849_v52 = vld [vmem:[%s13796_s6 + $0x11c] sm:$0xf]  ;;  %v8016_v53 = vor.u32 %v8901_v48, %v8015_v46 }
 0x884   :  { %5320 = vmatpush.bf16.msrb.mxu2 %v7816_v61  ;;  %v8928_v61 = vld [vmem:[%s13796_s6 + $0x394] sm:$0xf]  ;;  %v5104_v26 = vsel %vm2702_vm7, %v4888_v27, 0  ;;  %v7825_v45 = vld [vmem:[%s13796_s6 + $0x138] sm:$0xf0] }
 0x885   :  { %5421 = vmatpush.bf16.msrb.mxu0 %v7920_v58  ;;  %v7759_v58 = vld [vmem:[%s13796_s6 + $0x98] sm:$0xf]  ;;  %v7828_v17 = vor.u32 %v8849_v52, %v7825_v45  ;;  %v8113_v27 = vld [vmem:[%s13796_s6 + $0x378] sm:$0xf0] }
 0x886   :  { %5373 = vmatpush.bf16.msrb.mxu1 %v7788_v16  ;;  %v8137_v16 = vld [vmem:[%s13796_s6 + $0x3b0] sm:$0xf0]  ;;  %v8985_v46 = vld [vmem:[%s13796_s6 + $0x55c] sm:$0xf]  ;;  %v8367_v45 = vld [vmem:[%s13796_s6 + $0x558] sm:$0xf] }
 0x887   :  { %5398 = vmatpush.bf16.msrb.mxu3 %v8332_v4  ;;  %v8140_v4 = vor.u32 %v8928_v61, %v8137_v16  ;;  %v8921_v61 = vld [vmem:[%s13796_s6 + $0x35c] sm:$0xf] }
 0x888   :  { %5321 = vmatpush.bf16.msrb.mxu2 %v7784_v5  ;;  %v7760_v5 = vor.u32 %v8837_v63, %v7759_v58  ;;  %v7793_v16 = vld [vmem:[%s13796_s6 + $0xf8] sm:$0xf0] }
 0x889   :  { %5422 = vmatpush.bf16.msrb.mxu0 %v7888_v33  ;;  %v8105_v33 = vld [vmem:[%s13796_s6 + $0x370] sm:$0xf0] }
 0x88a   :  { %5374 = vmatpush.bf16.msrb.mxu1 %v7756_v15  ;;  %v8112_v15 = vor.u32 %v8925_v36, %v8111_v28  ;;  %v7977_v28 = vld [vmem:[%s13796_s6 + $0x270] sm:$0xf0]  ;;  %v8116_v36 = vor.u32 %v8921_v61, %v8113_v27 }
 0x88b   :  { %5399 = vmatpush.bf16.msrb.mxu3 %v8300_v43  ;;  %v7889_v43 = vld [vmem:[%s13796_s6 + $0x1b8] sm:$0xf0] }
 0x88c   :  { %5322 = vmatpush.bf16.msrb.mxu2 %v7752_v34  ;;  %v8108_v34 = vor.u32 %v8920_v14, %v8105_v33  ;;  %v7892_v9 = vor.u32 %v8865_v20, %v7889_v43  ;;  %v8833_v14 = vld [vmem:[%s13796_s6 + $0x9c] sm:$0xf] }
 0x88d   :  { %5423 = vmatpush.bf16.msrb.mxu0 %v7856_v57  ;;  %v7695_v57 = vld [vmem:[%s13796_s6 + $0x18] sm:$0xf] }
 0x88e   :  { %5375 = vmatpush.bf16.msrb.mxu1 %v7724_v7  ;;  %v8080_v7 = vor.u32 %v8917_v42, %v8079_v29  ;;  %v7696_v35 = vor.u32 %v8821_v8, %v7695_v57  ;;  %v8880_v29 = vld [vmem:[%s13796_s6 + $0x214] sm:$0xf]  ;;  %v8825_v57 = vld [vmem:[%s13796_s6 + $0x5c] sm:$0xf] }
 0x88f   :  { %5400 = vmatpush.bf16.msrb.mxu3 %v8268_v30  ;;  %v8177_v30 = vld [vmem:[%s13796_s6 + $0x3f8] sm:$0xf0]  ;;  %v7945_v42 = vld [vmem:[%s13796_s6 + $0x230] sm:$0xf0] }
 0x890   :  { %5323 = vmatpush.bf16.msrb.mxu2 %v7720_v39  ;;  %8442 = vmatmul.msk.bf16.vlgmr.msra.gmra.mxu0 %vm2180_vm3, %v12341_v2  ;;  %v8076_v39 = vor.u32 %v8912_v44, %v8073_v12  ;;  %v8905_v44 = vld [vmem:[%s13796_s6 + $0x2dc] sm:$0xf]  ;;  %v8436_v12 = vor.u32 %v9001_v19, %v8433_v38  ;;  %v7948_v21 = vor.u32 %v8880_v29, %v7945_v42  ;;  %v5681_v19 = vld [vmem:[%s13799_s11 + $0xe0] sm:$0xff] }
 0x891   :  { %5424 = vmatpush.bf16.msrb.mxu0 %v7824_v41  ;;  %v8904_v41 = vld [vmem:[%s13796_s6 + $0x2d4] sm:$0xf]  ;;  %v7729_v8 = vld [vmem:[%s13796_s6 + $0x78] sm:$0xf0] }
 0x892   :  { %5376 = vmatpush.bf16.msrb.mxu1 %v7692_v40  ;;  %v8180_v40 = vor.u32 %v8937_v23, %v8177_v30  ;;  %v7732_v31 = vor.u32 %v8825_v57, %v7729_v8  ;;  %v8961_v38 = vld [vmem:[%s13796_s6 + $0x49c] sm:$0xf]  ;;  %v5699_v57 = vld [vmem:[%s13799_s11 + $0x170] sm:$0xff] }
 0x893   :  { %5401 = vmatpush.bf16.msrb.mxu3 %v8236_v10  ;;  %v8044_v10 = vor.u32 %v8904_v41, %v8041_v6  ;;  %v8817_v41 = vld [vmem:[%s13796_s6 + $0x1c] sm:$0xf] }
 0x894   :  { %5324 = vmatpush.bf16.msrb.mxu2 %v7688_v55  ;;  %v8896_v55 = vld [vmem:[%s13796_s6 + $0x294] sm:$0xf]  ;;  %v7697_v6 = vld [vmem:[%s13796_s6 + $0x38] sm:$0xf0] }
 0x895   :  { %5377 = vmatmul.bf16.vlgmr.msrb.gmra.mxu1 %v12333_v13  ;;  %5425 = vmatpush.bf16.msrb.mxu0 %v7792_v18  ;;  %v8893_v18 = vld [vmem:[%s13796_s6 + $0x274] sm:$0xf0]  ;;  %v8012_v58 = vor.u32 %v8896_v55, %v8009_v11  ;;  %v7700_v52 = vor.u32 %v8817_v41, %v7697_v6  ;;  %v8889_v55 = vld [vmem:[%s13796_s6 + $0x25c] sm:$0xf] }
 0x896   :  { %5434 = vmatpush.bf16.msra.mxu1 %v8176_v49  ;;  %v8929_v49 = vld [vmem:[%s13796_s6 + $0x39c] sm:$0xf] }
 0x897   :  { %5325 = vmatmul.bf16.vlgmr.msrb.gmra.mxu2 %v12333_v13  ;;  %5402 = vmatpush.bf16.msrb.mxu3 %v8204_v0  ;;  %v8148_v54 = vor.u32 %v8929_v49, %v8145_v50  ;;  %v8888_v0 = vld [vmem:[%s13796_s6 + $0x254] sm:$0xf]  ;;  %v7985_v11 = vld [vmem:[%s13796_s6 + $0x278] sm:$0xf0] }
 0x898   :  { %5382 = vmatpush.bf16.msra.mxu2 %v8172_v60  ;;  %v7983_v60 = vld [vmem:[%s13796_s6 + $0x258] sm:$0xf]  ;;  %v7980_v33 = vor.u32 %v8888_v0, %v7977_v28  ;;  %v7988_v27 = vor.u32 %v8889_v55, %v7985_v11  ;;  %v7953_v0 = vld [vmem:[%s13796_s6 + $0x238] sm:$0xf0]  ;;  %v5683_v28 = vld [vmem:[%s13799_s11 + $0xf0] sm:$0xff] }
 0x899   :  { %5426 = vmatpush.bf16.msrb.mxu0 %v7760_v5  ;;  %v7984_v63 = vor.u32 %v8893_v18, %v7983_v60  ;;  %v8913_v5 = vld [vmem:[%s13796_s6 + $0x31c] sm:$0xf]  ;;  %v5675_v55 = vld [vmem:[%s13799_s11 + $0xb0] sm:$0xff] }
 0x89a   :  { %5435 = vmatpush.bf16.msra.mxu1 %v8144_v62  ;;  %5403 = vmatmul.bf16.vlgmr.msrb.gmra.mxu3 %v12304_v59  ;;  %v8841_v62 = vld [vmem:[%s13796_s6 + $0xdc] sm:$0xf]  ;;  %v5695_v11 = vld [vmem:[%s13799_s11 + $0x150] sm:$0xff] }
 0x89b   :  { %5467 = vmatpush.bf16.msra.mxu3 %v5104_v26  ;;  %v7796_v3 = vor.u32 %v8841_v62, %v7793_v16  ;;  %v8081_v26 = vld [vmem:[%s13796_s6 + $0x338] sm:$0xf0]  ;;  %v8335_v62 = vld [vmem:[%s13796_s6 + $0x518] sm:$0xf] }
 0x89c   :  { %5383 = vmatpush.bf16.msra.mxu2 %v8140_v4  ;;  %v8885_v4 = vld [vmem:[%s13796_s6 + $0x234] sm:$0xf0]  ;;  %v8084_v20 = vor.u32 %v8913_v5, %v8081_v26  ;;  %v8337_v60 = vld [vmem:[%s13796_s6 + $0x538] sm:$0xf0] }
 0x89d   :  { %5427 = vmatpush.bf16.msrb.mxu0 %v7728_v22  ;;  %v9005_v22 = vld [vmem:[%s13796_s6 + $0x5f4] sm:$0xf0]  ;;  %v8953_v8 = vld [vmem:[%s13796_s6 + $0x45c] sm:$0xf] }
 0x89e   :  { %5436 = vmatpush.bf16.msra.mxu1 %v8112_v15  ;;  %v7761_v15 = vld [vmem:[%s13796_s6 + $0xb8] sm:$0xf0]  ;;  %v8981_v16 = vld [vmem:[%s13796_s6 + $0x534] sm:$0xf0] }
 0x89f   :  { %5473 = vmatpush.bf16.msrb.mxu3 %v7924_v25  ;;  %v7952_v25 = vor.u32 %v8885_v4, %v7951_v1  ;;  %v7764_v43 = vor.u32 %v8833_v14, %v7761_v15  ;;  %v5684_v18 = vld [vmem:[%s13799_s11 + $0xf8] sm:$0xff]  ;;  %v8336_v1 = vor.u32 %v8981_v16, %v8335_v62  ;;  %v5682_v4 = vld [vmem:[%s13799_s11 + $0xe8] sm:$0xff] }
 0x8a0   :  { %5384 = vmatpush.bf16.msra.mxu2 %v8108_v34  ;;  %v8431_v34 = vld [vmem:[%s13796_s6 + $0x5d8] sm:$0xf]  ;;  %v8945_v6 = vld [vmem:[%s13796_s6 + $0x41c] sm:$0xf] }
 0x8a1   :  { %5428 = vmatpush.bf16.msrb.mxu0 %v7696_v35  ;;  %v8432_v23 = vor.u32 %v9005_v22, %v8431_v34  ;;  %v8897_v35 = vld [vmem:[%s13796_s6 + $0x29c] sm:$0xf]  ;;  %v8303_v14 = vld [vmem:[%s13796_s6 + $0x4d8] sm:$0xf] }
 0x8a2   :  { %5437 = vmatpush.bf16.msra.mxu1 %v8080_v7  ;;  %v8049_v7 = vld [vmem:[%s13796_s6 + $0x2f8] sm:$0xf0]  ;;  %v8973_v15 = vld [vmem:[%s13796_s6 + $0x4f4] sm:$0xf0] }
 0x8a3   :  { %5474 = vmatpush.bf16.msrb.mxu3 %v7892_v9  ;;  %v8993_v9 = vld [vmem:[%s13796_s6 + $0x59c] sm:$0xf]  ;;  %v8052_v30 = vor.u32 %v8905_v44, %v8049_v7  ;;  %v8304_v42 = vor.u32 %v8973_v15, %v8303_v14  ;;  %v8271_v34 = vld [vmem:[%s13796_s6 + $0x498] sm:$0xf]  ;;  %v5679_v7 = vld [vmem:[%s13799_s11 + $0xd0] sm:$0xff] }
 0x8a4   :  { %5385 = vmatpush.bf16.msra.mxu2 %v8076_v39  ;;  %5429 = vmatmul.bf16.vlgmr.msrb.gmra.mxu0 %v12333_v13  ;;  %v8997_v39 = vld [vmem:[%s13796_s6 + $0x5b4] sm:$0xf0]  ;;  %v5671_v14 = vld [vmem:[%s13799_s11 + $0x90] sm:$0xff] }
 0x8a5   :  { %5486 = vmatpush.bf16.msra.mxu0 %v8180_v40  ;;  %v8017_v40 = vld [vmem:[%s13796_s6 + $0x2b8] sm:$0xf0]  ;;  %v8400_v48 = vor.u32 %v8997_v39, %v8399_v32  ;;  %v8965_v22 = vld [vmem:[%s13796_s6 + $0x4b4] sm:$0xf0]  ;;  %v5691_v15 = vld [vmem:[%s13799_s11 + $0x130] sm:$0xff] }
 0x8a6   :  { %5438 = vmatpush.bf16.msra.mxu1 %v8048_v37  ;;  %v8404_v37 = vor.u32 %v8993_v9, %v8401_v51  ;;  %v8020_v50 = vor.u32 %v8897_v35, %v8017_v40  ;;  %v5700_v29 = vld [vmem:[%s13799_s11 + $0x178] sm:$0xff]  ;;  %v8272_v9 = vor.u32 %v8965_v22, %v8271_v34  ;;  %v5678_v51 = vld [vmem:[%s13799_s11 + $0xc8] sm:$0xff]  ;;  %v4689_v35 = vunpack.c.h.b16 %v12877_v24  ;;  %v5697_v40 = vld [vmem:[%s13799_s11 + $0x160] sm:$0xff] }
 0x8a7   :  { %5475 = vmatpush.bf16.msrb.mxu3 %v7860_v47  ;;  %v8369_v47 = vld [vmem:[%s13796_s6 + $0x578] sm:$0xf0]  ;;  %v5665_v34 = vld [vmem:[%s13799_s11 + $0x60] sm:$0xff] }
 0x8a8   :  { %5386 = vmatpush.bf16.msra.mxu2 %v8044_v10  ;;  %v8989_v10 = vld [vmem:[%s13796_s6 + $0x574] sm:$0xf0]  ;;  %v5669_v22 = vld [vmem:[%s13799_s11 + $0x80] sm:$0xff] }
 0x8a9   :  { %5487 = vmatpush.bf16.msra.mxu0 %v8148_v54  ;;  %v8372_v54 = vor.u32 %v8985_v46, %v8369_v47  ;;  %v8368_v61 = vor.u32 %v8989_v10, %v8367_v45  ;;  %v8209_v46 = vld [vmem:[%s13796_s6 + $0x438] sm:$0xf0] }
 0x8aa   :  { %5439 = vmatpush.bf16.msra.mxu1 %v8016_v53  ;;  %8443 = vmatmul.msk.bf16.vlgmr.msra.gmra.mxu3 %vm2180_vm3, %v12341_v2  ;;  %v5676_v47 = vld [vmem:[%s13799_s11 + $0xb8] sm:$0xff]  ;;  %v8212_v10 = vor.u32 %v8945_v6, %v8209_v46  ;;  %v5662_v46 = vld [vmem:[%s13799_s11 + $0x48] sm:$0xff] }
 0x8ab   :  { %5476 = vmatpush.bf16.msrb.mxu3 %v7828_v17  ;;  %v8977_v17 = vld [vmem:[%s13796_s6 + $0x51c] sm:$0xf] }
 0x8ac   :  { %5387 = vmatpush.bf16.msra.mxu2 %v8012_v58  ;;  %v8340_v58 = vor.u32 %v8977_v17, %v8337_v60 }
 0x8ad   :  { %5488 = vmatpush.bf16.msra.mxu0 %v8116_v36  ;;  %v13142_v49 = vpop.f32.mrf.mxu0  ;;  %v8969_v36 = vld [vmem:[%s13796_s6 + $0x4dc] sm:$0xf] }
 0x8ae   :  { %5440 = vmatpush.bf16.msra.mxu1 %v7984_v63  ;;  %v13151_v53 = vpop.f32.mrf.mxu1  ;;  %v8881_v63 = vld [vmem:[%s13796_s6 + $0x21c] sm:$0xf] }
 0x8af   :  { %5477 = vmatpush.bf16.msrb.mxu3 %v7796_v3  ;;  %v8305_v3 = vld [vmem:[%s13796_s6 + $0x4f8] sm:$0xf0]  ;;  %v7956_v26 = vor.u32 %v8881_v63, %v7953_v0  ;;  %v5693_v63 = vld [vmem:[%s13799_s11 + $0x140] sm:$0xff] }
 0x8b0   :  { %5388 = vmatpush.bf16.msra.mxu2 %v7980_v33 }
 0x8b1   :  { %5489 = vmatpush.bf16.msra.mxu0 %v8084_v20  ;;  %v5680_v20 = vld [vmem:[%s13799_s11 + $0xd8] sm:$0xff] }
 0x8b2   :  { %5441 = vmatpush.bf16.msra.mxu1 %v7952_v25  ;;  %v8273_v25 = vld [vmem:[%s13796_s6 + $0x4b8] sm:$0xf0] }
 0x8b3   :  { %5478 = vmatpush.bf16.msrb.mxu3 %v7764_v43 }
 0x8b4   :  { %5389 = vmatpush.bf16.msra.mxu2 %v7948_v21  ;;  %v8241_v21 = vld [vmem:[%s13796_s6 + $0x478] sm:$0xf0] }
 0x8b5   :  { %5442 = vmatmul.bf16.vlgmr.msra.gmra.mxu1 %v12300_v56  ;;  %5490 = vmatpush.bf16.msra.mxu0 %v8052_v30  ;;  %v5133_v5 = vpop.f32.mrf.mxu0  ;;  %v8244_v39 = vor.u32 %v8953_v8, %v8241_v21  ;;  %v5664_v21 = vld [vmem:[%s13799_s11 + $0x58] sm:$0xff] }
 0x8b6   :  { %5499 = vmatpush.bf16.msrb.mxu1 %v8436_v12  ;;  %v5146_v33 = vpop.f32.mrf.mxu1  ;;  %v8276_v12 = vor.u32 %v8961_v38, %v8273_v25  ;;  %v5666_v38 = vld [vmem:[%s13799_s11 + $0x68] sm:$0xff] }
 0x8b7   :  { %5479 = vmatpush.bf16.msrb.mxu3 %v7732_v31  ;;  %5390 = vmatmul.bf16.vlgmr.msra.gmra.mxu2 %v12300_v56  ;;  %v8239_v31 = vld [vmem:[%s13796_s6 + $0x458] sm:$0xf]  ;;  %v5670_v25 = vld [vmem:[%s13799_s11 + $0x88] sm:$0xff] }
 0x8b8   :  { %5447 = vmatpush.bf16.msrb.mxu2 %v8432_v23  ;;  %v5698_v23 = vld [vmem:[%s13799_s11 + $0x168] sm:$0xff]  ;;  %v5716_v33 = vld [vmem:[%s13799_s11 + $0x1f8] sm:$0xff] }
 0x8b9   :  { %5491 = vmatpush.bf16.msra.mxu0 %v8020_v50  ;;  %v5118_v43 = vpop.f32.mrf.mxu3  ;;  %v8207_v50 = vld [vmem:[%s13796_s6 + $0x418] sm:$0xf] }
 0x8ba   :  { %5500 = vmatpush.bf16.msrb.mxu1 %v8404_v37  ;;  %v5157_v44 = vpop.f32.mrf.mxu2  ;;  %v5677_v37 = vld [vmem:[%s13799_s11 + $0xc0] sm:$0xff]  ;;  %v5132_v41 = vadd.f32 %v13142_v49, %v5118_v43 }
 0x8bb   :  { %5480 = vmatpush.bf16.msrb.mxu3 %v7700_v52  ;;  %v8949_v52 = vld [vmem:[%s13796_s6 + $0x434] sm:$0xf0] }
 0x8bc   :  { %5448 = vmatpush.bf16.msrb.mxu2 %v8400_v48  ;;  %v5696_v48 = vld [vmem:[%s13799_s11 + $0x158] sm:$0xff]  ;;  %v5145_v17 = vadd.f32 %v13151_v53, %v5132_v41  ;;  %v8208_v60 = vor.u32 %v8949_v52, %v8207_v50  ;;  %v5687_v41 = vld [vmem:[%s13799_s11 + $0x110] sm:$0xff]  ;;  %v5686_v50 = vld [vmem:[%s13799_s11 + $0x108] sm:$0xff] }
 0x8bd   :  { %5492 = vmatpush.bf16.msra.mxu0 %v7988_v27  ;;  %v13239_v30 = vpop.f32.mrf.mxu0  ;;  %v5661_v52 = vld [vmem:[%s13799_s11 + $0x40] sm:$0xff] }
 0x8be   :  { %5501 = vmatpush.bf16.msrb.mxu1 %v8372_v54  ;;  %5481 = vmatmul.bf16.vlgmr.msrb.gmra.mxu3 %v12333_v13  ;;  %v8308_v13 = vor.u32 %v8969_v36, %v8305_v3  ;;  %v13247_v32 = vpop.f32.mrf.mxu1  ;;  %v4889_v54 = vpack.c.b16 %v4689_v35, %v4689_v35  ;;  %v13289_v53 = vadd.f32 %v5157_v44, %v5145_v17  ;;  %v5672_v36 = vld [vmem:[%s13799_s11 + $0x98] sm:$0xff]  ;;  %v5689_v44 = vld [vmem:[%s13799_s11 + $0x120] sm:$0xff] }
 0x8bf   :  { %5801 = vmatpush.msra.mxu3 %v5684_v18  ;;  %v5674_v18 = vld [vmem:[%s13799_s11 + $0xa8] sm:$0xff] }
 0x8c0   :  { %5449 = vmatpush.bf16.msrb.mxu2 %v8368_v61  ;;  %v5694_v61 = vld [vmem:[%s13799_s11 + $0x148] sm:$0xff]  ;;  %v5107_v16 = vsel %vm2702_vm7, %v4889_v54, 0 }
 0x8c1   :  { %5802 = vmatpush.msra.mxu3 %v5683_v28  ;;  %5493 = vmatpush.bf16.msra.mxu0 %v7956_v26  ;;  %v5120_v49 = vpop.f32.mrf.mxu3  ;;  %v5668_v28 = vld [vmem:[%s13799_s11 + $0x78] sm:$0xff]  ;;  %v5667_v26 = vld [vmem:[%s13799_s11 + $0x70] sm:$0xff] }
 0x8c2   :  { %5502 = vmatpush.bf16.msrb.mxu1 %v8340_v58  ;;  %v5159_v45 = vpop.f32.mrf.mxu2  ;;  %v5673_v58 = vld [vmem:[%s13799_s11 + $0xa0] sm:$0xff] }
 0x8c3   :  { %5803 = vmatpush.msra.mxu3 %v5682_v4  ;;  %v5581_v4 = vmul.f32 %v13289_v53, %v13289_v53  ;;  %v5712_v45 = vld [vmem:[%s13799_s11 + $0x1d8] sm:$0xff] }
 0x8c4   :  { %5450 = vmatpush.bf16.msrb.mxu2 %v8336_v1  ;;  %5494 = vmatmul.bf16.vlgmr.msra.gmra.mxu0 %v12300_v56  ;;  %v8957_v56 = vld [vmem:[%s13796_s6 + $0x474] sm:$0xf0] }
 0x8c5   :  { %5804 = vmatpush.msra.mxu3 %v5681_v19  ;;  %5821 = vmatpush.msrb.mxu0 %v5700_v29  ;;  %v8240_v24 = vor.u32 %v8957_v56, %v8239_v31  ;;  %v5198_v27 = vpop.f32.mrf.mxu0  ;;  %v5692_v1 = vld [vmem:[%s13799_s11 + $0x138] sm:$0xff]  ;;  %v5663_v56 = vld [vmem:[%s13799_s11 + $0x50] sm:$0xff] }
 0x8c6   :  { %5503 = vmatpush.bf16.msrb.mxu1 %v8308_v13  ;;  %v5211_v62 = vpop.f32.mrf.mxu1 }
 0x8c7   :  { %5805 = vmatpush.msra.mxu3 %v5680_v20  ;;  %5822 = vmatpush.msrb.mxu0 %v5699_v57  ;;  %v5589_v20 = vsel %vm2064_vm0, %v5581_v4, 0.0  ;;  %v5709_v4 = vld [vmem:[%s13799_s11 + $0x1c0] sm:$0xff] }
 0x8c8   :  { %5451 = vmatpush.bf16.msrb.mxu2 %v8304_v42  ;;  %v5690_v42 = vld [vmem:[%s13799_s11 + $0x128] sm:$0xff] }
 0x8c9   :  { %5806 = vmatpush.msra.mxu3 %v5679_v7  ;;  %5823 = vmatpush.msrb.mxu0 %v5698_v23  ;;  %v5183_v0 = vpop.f32.mrf.mxu3 }
 0x8ca   :  { %5504 = vmatpush.bf16.msrb.mxu1 %v8276_v12  ;;  %v5170_v3 = vpop.f32.mrf.mxu2  ;;  %v5525_v12 = vsel %vm2064_vm0, %v13289_v53, 0.0 }
 0x8cb   :  { %5807 = vmatpush.msra.mxu3 %v5678_v51  ;;  %5824 = vmatpush.msrb.mxu0 %v5697_v40  ;;  %v5184_v5 = vadd.f32 %v5183_v0, %v5170_v3  ;;  %v5526_v35 = vrot.slane %v5525_v12, 4  ;;  %v5710_v0 = vld [vmem:[%s13799_s11 + $0x1c8] sm:$0xff] }
 0x8cc   :  { %5452 = vmatpush.bf16.msrb.mxu2 %v8272_v9  ;;  %v5590_v9 = vrot.slane %v5589_v20, 4 }
 0x8cd   :  { %5808 = vmatpush.msra.mxu3 %v5677_v37  ;;  %5825 = vmatpush.msrb.mxu0 %v5696_v48  ;;  %v5197_v13 = vadd.f32 %v13239_v30, %v5184_v5  ;;  %v13326_v19 = vpop.f32.mrf.mxu0  ;;  %v5688_v30 = vld [vmem:[%s13799_s11 + $0x118] sm:$0xff] }
 0x8ce   :  { %5505 = vmatpush.bf16.msrb.mxu1 %v8244_v39  ;;  %v13334_v29 = vpop.f32.mrf.mxu1  ;;  %v5713_v39 = vld [vmem:[%s13799_s11 + $0x1e0] sm:$0xff] }
 0x8cf   :  { %5809 = vmatpush.msra.mxu3 %v5676_v47  ;;  %5826 = vmatpush.msrb.mxu0 %v5695_v11  ;;  %v13341_v43 = vadd.f32 %v13247_v32, %v5197_v13  ;;  %v5714_v32 = vld [vmem:[%s13799_s11 + $0x1e8] sm:$0xff]  ;;  %v5685_v11 = vld [vmem:[%s13799_s11 + $0x100] sm:$0xff] }
 0x8d0   :  { %5453 = vmatpush.bf16.msrb.mxu2 %v8240_v24  ;;  %v5591_v24 = vadd.f32 %v5590_v9, %v5589_v20  ;;  %v5707_v20 = vld [vmem:[%s13799_s11 + $0x1b0] sm:$0xff] }
 0x8d1   :  { %5810 = vmatpush.msra.mxu3 %v5675_v55  ;;  %5827 = vmatpush.msrb.mxu0 %v5694_v61  ;;  %v5532_v7 = vsel %vm2064_vm0, %v13341_v43, 0.0  ;;  %v5582_v57 = vmul.f32 %v13341_v43, %v13341_v43  ;;  %v5185_v8 = vpop.f32.mrf.mxu3 }
 0x8d2   :  { %5506 = vmatpush.bf16.msrb.mxu1 %v8212_v10  ;;  %v5533_v51 = vrot.slane %v5532_v7, 4  ;;  %v5172_v23 = vpop.f32.mrf.mxu2  ;;  %v5527_v10 = vadd.f32 %v5526_v35, %v5525_v12  ;;  %v5592_v61 = vrot.slane %v5591_v24, 2  ;;  %v5653_v35 = vld [vmem:[%s13799_s11] sm:$0xff] }
 0x8d3   :  { %5811 = vmatpush.msra.mxu3 %v5674_v18  ;;  %5828 = vmatpush.msrb.mxu0 %v5693_v63  ;;  %v5596_v31 = vsel %vm2064_vm0, %v5582_v57, 0.0  ;;  %v5711_v18 = vld [vmem:[%s13799_s11 + $0x1d0] sm:$0xff]  ;;  %v5706_v57 = vld [vmem:[%s13799_s11 + $0x1a8] sm:$0xff] }
 0x8d4   :  { %5454 = vmatpush.bf16.msrb.mxu2 %v8208_v60  ;;  %v5534_v37 = vadd.f32 %v5533_v51, %v5532_v7  ;;  %v5597_v40 = vrot.slane %v5596_v31, 4  ;;  %v5660_v60 = vld [vmem:[%s13799_s11 + $0x38] sm:$0xff]  ;;  %v5659_v63 = vld [vmem:[%s13799_s11 + $0x30] sm:$0xff]  ;;  %v5593_v5 = vadd.f32 %v5592_v61, %v5591_v24  ;;  %v5654_v23 = vld [vmem:[%s13799_s11 + $0x8] sm:$0xff] }
 0x8d5   :  { %5507 = vmatmul.bf16.vlgmr.msrb.gmra.mxu1 %v12304_v59  ;;  %5812 = vmatpush.msra.mxu3 %v5673_v58  ;;  %v5263_v6 = vpop.f32.mrf.mxu0  ;;  %v5655_v7 = vld [vmem:[%s13799_s11 + $0x10] sm:$0xff] }
 0x8d6   :  { %5829 = vmatpush.msrb.mxu0 %v5692_v1  ;;  %5841 = vmatpush.msra.mxu1 %v5716_v33  ;;  %v5535_v47 = vrot.slane %v5534_v37, 2  ;;  %v5598_v48 = vadd.f32 %v5597_v40, %v5596_v31  ;;  %v5237_v49 = vpop.f32.mrf.mxu1  ;;  %v5657_v33 = vld [vmem:[%s13799_s11 + $0x20] sm:$0xff]  ;;  %v5704_v31 = vld [vmem:[%s13799_s11 + $0x198] sm:$0xff] }
 0x8d7   :  { %5455 = vmatmul.bf16.vlgmr.msrb.gmra.mxu2 %v12304_v59  ;;  %5813 = vmatpush.msra.mxu3 %v5672_v36  ;;  %v5715_v59 = vld [vmem:[%s13799_s11 + $0x1f0] sm:$0xff] }
 0x8d8   :  { %5519 = vmatpush.bf16.msra.mxu2 %v5107_v16  ;;  %5830 = vmatpush.msrb.mxu0 %v5691_v15  ;;  %v5536_v54 = vadd.f32 %v5535_v47, %v5534_v37  ;;  %v5599_v55 = vrot.slane %v5598_v48, 2  ;;  %v5703_v37 = vld [vmem:[%s13799_s11 + $0x190] sm:$0xff] }
 0x8d9   :  { %5814 = vmatpush.msra.mxu3 %v5671_v14  ;;  %5842 = vmatpush.msra.mxu1 %v5715_v59  ;;  %v5248_v17 = vpop.f32.mrf.mxu3  ;;  %v5708_v59 = vld [vmem:[%s13799_s11 + $0x1b8] sm:$0xff] }
 0x8da   :  { %5831 = vmatpush.msrb.mxu0 %v5690_v42  ;;  %v5222_v27 = vpop.f32.mrf.mxu2  ;;  %v5537_v62 = vrot.slane %v5536_v54, 1  ;;  %v5600_v16 = vadd.f32 %v5599_v55, %v5598_v48  ;;  %v5656_v42 = vld [vmem:[%s13799_s11 + $0x18] sm:$0xff] }
 0x8db   :  { %5815 = vmatpush.msra.mxu3 %v5670_v25  ;;  %5843 = vmatpush.msra.mxu1 %v5714_v32  ;;  %v5236_v58 = vadd.f32 %v13334_v29, %v5222_v27 }
 0x8dc   :  { %5781 = vmatpush.msrb.mxu2 %v5668_v28  ;;  %5832 = vmatpush.msrb.mxu0 %v5689_v44  ;;  %v5528_v28 = vrot.slane %v5527_v10, 2  ;;  %v5601_v36 = vrot.slane %v5600_v16, 1 }
 0x8dd   :  { %5816 = vmatpush.msra.mxu3 %v5669_v22  ;;  %5844 = vmatpush.msra.mxu1 %v5713_v39  ;;  %v5249_v3 = vadd.f32 %v5248_v17, %v5236_v58  ;;  %v13407_v1 = vpop.f32.mrf.mxu0  ;;  %v5730_v17 = vld [vmem:[%s13799_s11 + $0x268] sm:$0xff] }
 0x8de   :  { %5782 = vmatpush.msrb.mxu2 %v5667_v26  ;;  %5833 = vmatpush.msrb.mxu0 %v5688_v30  ;;  %v5538_v26 = vadd.f32 %v5537_v62, %v5536_v54  ;;  %v5602_v14 = vadd.f32 %v5601_v36, %v5600_v16  ;;  %v5529_v13 = vadd.f32 %v5528_v28, %v5527_v10  ;;  %v5705_v30 = vld [vmem:[%s13799_s11 + $0x1a0] sm:$0xff]  ;;  %v5728_v62 = vld [vmem:[%s13799_s11 + $0x258] sm:$0xff]  ;;  %v5727_v16 = vld [vmem:[%s13799_s11 + $0x250] sm:$0xff] }
 0x8df   :  { %5845 = vmatpush.msra.mxu1 %v5712_v45  ;;  %v13416_v15 = vadd.f32 %v13326_v19, %v5249_v3  ;;  %v5701_v45 = vld [vmem:[%s13799_s11 + $0x180] sm:$0xff] }
 0x8e0   :  { %5783 = vmatpush.msrb.mxu2 %v5666_v38  ;;  %5834 = vmatpush.msrb.mxu0 %v5687_v41  ;;  %v5646_v38 = vsel %vm2126_vm1, %v5538_v26, %v5602_v14  ;;  %v5530_v8 = vrot.slane %v5529_v13, 1 }
 0x8e1   :  { %5846 = vmatpush.msra.mxu1 %v5711_v18  ;;  %v5539_v25 = vsel %vm2064_vm0, %v13416_v15, 0.0  ;;  %v5583_v19 = vmul.f32 %v13416_v15, %v13416_v15  ;;  %5817 = vmatmul.f32.vlgmr.msra.gmra.mxu3 %v5646_v38  ;;  %v5250_v29 = vpop.f32.mrf.mxu3  ;;  %v5729_v18 = vld [vmem:[%s13799_s11 + $0x260] sm:$0xff] }
 0x8e2   :  { %5784 = vmatpush.msrb.mxu2 %v5665_v34  ;;  %5835 = vmatpush.msrb.mxu0 %v5686_v50  ;;  %v5594_v34 = vrot.slane %v5593_v5, 1  ;;  %v5540_v22 = vrot.slane %v5539_v25, 4  ;;  %v5224_v44 = vpop.f32.mrf.mxu2  ;;  %v5531_v40 = vadd.f32 %v5530_v8, %v5529_v13  ;;  %v5702_v50 = vld [vmem:[%s13799_s11 + $0x188] sm:$0xff] }
 0x8e3   :  { %5847 = vmatpush.msra.mxu1 %v5710_v0  ;;  %v5603_v12 = vsel %vm2064_vm0, %v5583_v19, 0.0  ;;  %v5726_v0 = vld [vmem:[%s13799_s11 + $0x248] sm:$0xff] }
 0x8e4   :  { %5785 = vmatpush.msrb.mxu2 %v5664_v21  ;;  %5836 = vmatpush.msrb.mxu0 %v5685_v11  ;;  %v5541_v21 = vadd.f32 %v5540_v22, %v5539_v25  ;;  %v5604_v9 = vrot.slane %v5603_v12, 4  ;;  %v5595_v39 = vadd.f32 %v5594_v34, %v5593_v5  ;;  %v5731_v11 = vld [vmem:[%s13799_s11 + $0x270] sm:$0xff]  ;;  %v5722_v25 = vld [vmem:[%s13799_s11 + $0x228] sm:$0xff]  ;;  %v5721_v34 = vld [vmem:[%s13799_s11 + $0x220] sm:$0xff] }
 0x8e5   :  { %5848 = vmatpush.msra.mxu1 %v5709_v4  ;;  %v5289_v51 = vpop.f32.mrf.mxu0 }
 0x8e6   :  { %5786 = vmatpush.msrb.mxu2 %v5663_v56  ;;  %v5542_v56 = vrot.slane %v5541_v21, 2  ;;  %v5605_v32 = vadd.f32 %v5604_v9, %v5603_v12  ;;  %v5645_v48 = vsel %vm2126_vm1, %v5531_v40, %v5595_v39  ;;  %v5747_v40 = vld [vmem:[%s13799_s11 + $0x2f0] sm:$0xff] }
 0x8e7   :  { %8444 = vmatmul.msk.bf16.vlgmr.msra.gmra.mxu2 %vm2180_vm3, %v12341_v2  ;;  %v5658_v2 = vld [vmem:[%s13799_s11 + $0x28] sm:$0xff]  ;;  %5849 = vmatpush.msra.mxu1 %v5708_v59 }
 0x8e8   :  { %5787 = vmatpush.msrb.mxu2 %v5662_v46  ;;  %v5543_v41 = vadd.f32 %v5542_v56, %v5541_v21  ;;  %v5606_v6 = vrot.slane %v5605_v32, 2  ;;  %v5717_v56 = vld [vmem:[%s13799_s11 + $0x200] sm:$0xff] }
 0x8e9   :  { %5850 = vmatpush.msra.mxu1 %v5707_v20  ;;  %v5313_v46 = vpop.f32.mrf.mxu3 }
 0x8ea   :  { %5788 = vmatpush.msrb.mxu2 %v5661_v52  ;;  %v5544_v24 = vrot.slane %v5543_v41, 1  ;;  %v5607_v47 = vadd.f32 %v5606_v6, %v5605_v32  ;;  %v5732_v52 = vld [vmem:[%s13799_s11 + $0x278] sm:$0xff] }
 0x8eb   :  { %5851 = vmatpush.msra.mxu1 %v5706_v57  ;;  %v5719_v57 = vld [vmem:[%s13799_s11 + $0x210] sm:$0xff] }
 0x8ec   :  { %5789 = vmatpush.msrb.mxu2 %v5660_v60  ;;  %v5608_v10 = vrot.slane %v5607_v47, 1  ;;  %v5545_v54 = vadd.f32 %v5544_v24, %v5543_v41  ;;  %v5746_v41 = vld [vmem:[%s13799_s11 + $0x2e8] sm:$0xff]  ;;  %v5744_v24 = vld [vmem:[%s13799_s11 + $0x2d8] sm:$0xff] }
 0x8ed   :  { %5852 = vmatpush.msra.mxu1 %v5705_v30 }
 0x8ee   :  { %5790 = vmatpush.msrb.mxu2 %v5659_v63  ;;  %v5300_v49 = vpop.f32.mrf.mxu1  ;;  %v5609_v55 = vadd.f32 %v5608_v10, %v5607_v47 }
 0x8ef   :  { %5853 = vmatpush.msra.mxu1 %v5704_v31  ;;  %v5748_v31 = vld [vmem:[%s13799_s11 + $0x2f8] sm:$0xff] }
 0x8f0   :  { %5791 = vmatpush.msrb.mxu2 %v5658_v2  ;;  %v5647_v60 = vsel %vm2126_vm1, %v5545_v54, %v5609_v55  ;;  %v5725_v2 = vld [vmem:[%s13799_s11 + $0x240] sm:$0xff]  ;;  %5881 = vmatpush.msrb.mxu3 %v5748_v31 }
 0x8f1   :  { %5854 = vmatpush.msra.mxu1 %v5703_v37  ;;  %5837 = vmatmul.f32.vlgmr.msrb.gmra.mxu0 %v5647_v60  ;;  %v5315_v61 = vpop.f32.mrf.mxu3  ;;  %v5741_v55 = vld [vmem:[%s13799_s11 + $0x2c0] sm:$0xff] }
 0x8f2   :  { %5792 = vmatpush.msrb.mxu2 %v5657_v33  ;;  %v5723_v33 = vld [vmem:[%s13799_s11 + $0x230] sm:$0xff]  ;;  %5882 = vmatpush.msrb.mxu3 %v5747_v40 }
 0x8f3   :  { %5855 = vmatpush.msra.mxu1 %v5702_v50 }
 0x8f4   :  { %5793 = vmatpush.msrb.mxu2 %v5656_v42  ;;  %5883 = vmatpush.msrb.mxu3 %v5746_v41  ;;  %v5756_v41 = vld [vmem:[%s13799_s11 + $0x338] sm:$0xff] }
 0x8f5   :  { %5856 = vmatpush.msra.mxu1 %v5701_v45  ;;  %v5742_v45 = vld [vmem:[%s13799_s11 + $0x2c8] sm:$0xff] }
 0x8f6   :  { %5794 = vmatpush.msrb.mxu2 %v5655_v7  ;;  %v5302_v27 = vpop.f32.mrf.mxu1  ;;  %v5720_v7 = vld [vmem:[%s13799_s11 + $0x218] sm:$0xff] }
 0x8f7   :  { %v5739_v27 = vld [vmem:[%s13799_s11 + $0x2b0] sm:$0xff] }
 0x8f8   :  { %5795 = vmatpush.msrb.mxu2 %v5654_v23  ;;  %v5718_v23 = vld [vmem:[%s13799_s11 + $0x208] sm:$0xff] }
 0x8fa   :  { %5796 = vmatpush.msrb.mxu2 %v5653_v35  ;;  %v5274_v58 = vpop.f32.mrf.mxu2 }
 0x8fb   :  { %5797 = vmatmul.f32.vlgmr.msrb.gmra.mxu2 %v5645_v48  ;;  %v5288_v63 = vadd.f32 %v13407_v1, %v5274_v58  ;;  %v5724_v1 = vld [vmem:[%s13799_s11 + $0x238] sm:$0xff] }
 0x8fc   :  { %5861 = vmatpush.msra.mxu2 %v5732_v52 }
 0x8fd   :  { %v5301_v28 = vadd.f32 %v5300_v49, %v5288_v63  ;;  %v5339_v36 = vpop.f32.mrf.mxu3  ;;  %v5352_v3 = vpop.f32.mrf.mxu0  ;;  %v5743_v49 = vld [vmem:[%s13799_s11 + $0x2d0] sm:$0xff]  ;;  %v5738_v63 = vld [vmem:[%s13799_s11 + $0x2a8] sm:$0xff] }
 0x8fe   :  { %5862 = vmatpush.msra.mxu2 %v5731_v11  ;;  %v13490_v4 = vpop.f32.mrf.mxu1 }
 0x8ff   :  { %v13492_v5 = vadd.f32 %v5313_v46, %v5301_v28  ;;  %v5745_v46 = vld [vmem:[%s13799_s11 + $0x2e0] sm:$0xff] }
 0x900   :  { %5863 = vmatpush.msra.mxu2 %v5730_v17  ;;  %5884 = vmatpush.msrb.mxu3 %v5745_v46  ;;  %v5740_v17 = vld [vmem:[%s13799_s11 + $0x2b8] sm:$0xff]  ;;  %v5755_v46 = vld [vmem:[%s13799_s11 + $0x330] sm:$0xff] }
 0x901   :  { %v5546_v26 = vsel %vm2064_vm0, %v13492_v5, 0.0  ;;  %v5584_v14 = vmul.f32 %v13492_v5, %v13492_v5 }
 0x902   :  { %5864 = vmatpush.msra.mxu2 %v5729_v18  ;;  %v5547_v59 = vrot.slane %v5546_v26, 4  ;;  %v5276_v13 = vpop.f32.mrf.mxu2  ;;  %5885 = vmatpush.msrb.mxu3 %v5744_v24  ;;  %v5778_v24 = vld [vmem:[%s13799_s11 + $0x3e8] sm:$0xff] }
 0x903   :  { %v5610_v38 = vsel %vm2064_vm0, %v5584_v14, 0.0  ;;  %v5764_v14 = vld [vmem:[%s13799_s11 + $0x378] sm:$0xff] }
 0x904   :  { %5865 = vmatpush.msra.mxu2 %v5728_v62  ;;  %v5548_v19 = vadd.f32 %v5547_v59, %v5546_v26  ;;  %v5611_v29 = vrot.slane %v5610_v38, 4  ;;  %5886 = vmatpush.msrb.mxu3 %v5743_v49  ;;  %v5735_v26 = vld [vmem:[%s13799_s11 + $0x290] sm:$0xff] }
 0x905   :  { %v5341_v42 = vpop.f32.mrf.mxu3  ;;  %v5354_v20 = vpop.f32.mrf.mxu0  ;;  %5901 = vmatpush.msra.mxu0 %v5764_v14 }
 0x906   :  { %5866 = vmatpush.msra.mxu2 %v5727_v16  ;;  %v5549_v22 = vrot.slane %v5548_v19, 2  ;;  %v5612_v44 = vadd.f32 %v5611_v29, %v5610_v38  ;;  %v5367_v12 = vpop.f32.mrf.mxu1  ;;  %5887 = vmatpush.msrb.mxu3 %v5742_v45  ;;  %v5763_v42 = vld [vmem:[%s13799_s11 + $0x370] sm:$0xff] }
 0x907   :  { %5902 = vmatpush.msra.mxu0 %v5763_v42  ;;  %v5770_v42 = vld [vmem:[%s13799_s11 + $0x3a8] sm:$0xff] }
 0x908   :  { %5867 = vmatpush.msra.mxu2 %v5726_v0  ;;  %v5550_v8 = vadd.f32 %v5549_v22, %v5548_v19  ;;  %v5613_v21 = vrot.slane %v5612_v44, 2  ;;  %5888 = vmatpush.msrb.mxu3 %v5741_v55  ;;  %v5734_v19 = vld [vmem:[%s13799_s11 + $0x288] sm:$0xff]  ;;  %v5753_v55 = vld [vmem:[%s13799_s11 + $0x320] sm:$0xff] }
 0x90a   :  { %5868 = vmatpush.msra.mxu2 %v5725_v2  ;;  %v5551_v9 = vrot.slane %v5550_v8, 1  ;;  %v5614_v51 = vadd.f32 %v5613_v21, %v5612_v44  ;;  %5889 = vmatpush.msrb.mxu3 %v5740_v17  ;;  %v5760_v21 = vld [vmem:[%s13799_s11 + $0x358] sm:$0xff] }
 0x90b   :  { %v5776_v17 = vld [vmem:[%s13799_s11 + $0x3d8] sm:$0xff] }
 0x90c   :  { %5869 = vmatpush.msra.mxu2 %v5724_v1  ;;  %v5615_v30 = vrot.slane %v5614_v51, 1  ;;  %v5552_v35 = vadd.f32 %v5551_v9, %v5550_v8  ;;  %5890 = vmatpush.msrb.mxu3 %v5739_v27  ;;  %v5736_v1 = vld [vmem:[%s13799_s11 + $0x298] sm:$0xff]  ;;  %v5759_v9 = vld [vmem:[%s13799_s11 + $0x350] sm:$0xff] }
 0x90d   :  { %v13526_v32 = vpop.f32.mrf.mxu0  ;;  %v5752_v27 = vld [vmem:[%s13799_s11 + $0x318] sm:$0xff] }
 0x90e   :  { %5870 = vmatpush.msra.mxu2 %v5723_v33  ;;  %v5616_v37 = vadd.f32 %v5615_v30, %v5614_v51  ;;  %5891 = vmatpush.msrb.mxu3 %v5738_v63  ;;  %v5758_v30 = vld [vmem:[%s13799_s11 + $0x348] sm:$0xff]  ;;  %v5751_v63 = vld [vmem:[%s13799_s11 + $0x310] sm:$0xff] }
 0x910   :  { %5871 = vmatpush.msra.mxu2 %v5722_v25  ;;  %v5648_v6 = vsel %vm2126_vm1, %v5552_v35, %v5616_v37  ;;  %v5757_v35 = vld [vmem:[%s13799_s11 + $0x340] sm:$0xff]  ;;  %v5780_v37 = vld [vmem:[%s13799_s11 + $0x3f8] sm:$0xff] }
 0x911   :  { %5857 = vmatmul.f32.vlgmr.msra.gmra.mxu1 %v5648_v6 }
 0x912   :  { %5872 = vmatpush.msra.mxu2 %v5721_v34  ;;  %v13528_v39 = vpop.f32.mrf.mxu1  ;;  %v5733_v34 = vld [vmem:[%s13799_s11 + $0x280] sm:$0xff]  ;;  %5921 = vmatpush.msrb.mxu1 %v5780_v37 }
 0x914   :  { %5873 = vmatpush.msra.mxu2 %v5720_v7  ;;  %v5762_v7 = vld [vmem:[%s13799_s11 + $0x368] sm:$0xff] }
 0x915   :  { %v5419_v47 = vpop.f32.mrf.mxu0  ;;  %5903 = vmatpush.msra.mxu0 %v5762_v7  ;;  %v5767_v7 = vld [vmem:[%s13799_s11 + $0x390] sm:$0xff] }
 0x916   :  { %5874 = vmatpush.msra.mxu2 %v5719_v57  ;;  %v5761_v57 = vld [vmem:[%s13799_s11 + $0x360] sm:$0xff] }
 0x917   :  { %5904 = vmatpush.msra.mxu0 %v5761_v57 }
 0x918   :  { %5875 = vmatpush.msra.mxu2 %v5718_v23 }
 0x919   :  { %5905 = vmatpush.msra.mxu0 %v5760_v21 }
 0x91a   :  { %5876 = vmatpush.msra.mxu2 %v5717_v56  ;;  %v5380_v48 = vpop.f32.mrf.mxu1  ;;  %v5326_v50 = vpop.f32.mrf.mxu2 }
 0x91b   :  { %v5340_v52 = vadd.f32 %v5339_v36, %v5326_v50  ;;  %5906 = vmatpush.msra.mxu0 %v5759_v9  ;;  %v5777_v50 = vld [vmem:[%s13799_s11 + $0x3e0] sm:$0xff]  ;;  %v5766_v9 = vld [vmem:[%s13799_s11 + $0x388] sm:$0xff] }
 0x91d   :  { %v5353_v10 = vadd.f32 %v5352_v3, %v5340_v52  ;;  %v13549_v54 = vpop.f32.mrf.mxu3  ;;  %v5737_v3 = vld [vmem:[%s13799_s11 + $0x2a0] sm:$0xff]  ;;  %5907 = vmatpush.msra.mxu0 %v5758_v30 }
 0x91e   :  { %5892 = vmatpush.msrb.mxu3 %v5737_v3 }
 0x91f   :  { %v13555_v11 = vadd.f32 %v13490_v4, %v5353_v10  ;;  %5908 = vmatpush.msra.mxu0 %v5757_v35 }
 0x920   :  { %5893 = vmatpush.msrb.mxu3 %v5736_v1 }
 0x921   :  { %v5553_v60 = vsel %vm2064_vm0, %v13555_v11, 0.0  ;;  %v5585_v18 = vmul.f32 %v13555_v11, %v13555_v11  ;;  %v13564_v61 = vpop.f32.mrf.mxu0  ;;  %5909 = vmatpush.msra.mxu0 %v5756_v41 }
 0x922   :  { %v5554_v62 = vrot.slane %v5553_v60, 4  ;;  %v5328_v16 = vpop.f32.mrf.mxu2  ;;  %5894 = vmatpush.msrb.mxu3 %v5735_v26 }
 0x923   :  { %v5617_v58 = vsel %vm2064_vm0, %v5585_v18, 0.0  ;;  %5910 = vmatpush.msra.mxu0 %v5755_v46 }
 0x924   :  { %v5555_v0 = vadd.f32 %v5554_v62, %v5553_v60  ;;  %v5618_v28 = vrot.slane %v5617_v58, 4  ;;  %5895 = vmatpush.msrb.mxu3 %v5734_v19  ;;  %v5775_v62 = vld [vmem:[%s13799_s11 + $0x3d0] sm:$0xff] }
 0x925   :  { %v5406_v36 = vpop.f32.mrf.mxu3 }
 0x926   :  { %v5556_v2 = vrot.slane %v5555_v0, 2  ;;  %v5619_v4 = vadd.f32 %v5618_v28, %v5617_v58  ;;  %5896 = vmatpush.msrb.mxu3 %v5733_v34 }
 0x928   :  { %v5557_v33 = vadd.f32 %v5556_v2, %v5555_v0  ;;  %v5620_v59 = vrot.slane %v5619_v4, 2  ;;  %v5774_v0 = vld [vmem:[%s13799_s11 + $0x3c8] sm:$0xff] }
 0x929   :  { %v5432_v13 = vpop.f32.mrf.mxu0  ;;  %v5750_v2 = vld [vmem:[%s13799_s11 + $0x308] sm:$0xff] }
 0x92a   :  { %v5558_v38 = vrot.slane %v5557_v33, 1  ;;  %v5621_v25 = vadd.f32 %v5620_v59, %v5619_v4  ;;  %v5773_v4 = vld [vmem:[%s13799_s11 + $0x3c0] sm:$0xff]  ;;  %v5772_v59 = vld [vmem:[%s13799_s11 + $0x3b8] sm:$0xff] }
 0x92c   :  { %v5622_v29 = vrot.slane %v5621_v25, 1  ;;  %v5559_v44 = vadd.f32 %v5558_v38, %v5557_v33  ;;  %v5749_v33 = vld [vmem:[%s13799_s11 + $0x300] sm:$0xff]  ;;  %v5771_v38 = vld [vmem:[%s13799_s11 + $0x3b0] sm:$0xff] }
 0x92d   :  { %v13591_v20 = vpop.f32.mrf.mxu3 }
 0x92e   :  { %v5623_v12 = vadd.f32 %v5622_v29, %v5621_v25 }
 0x930   :  { %v5649_v8 = vsel %vm2126_vm1, %v5559_v44, %v5623_v12  ;;  %v5769_v44 = vld [vmem:[%s13799_s11 + $0x3a0] sm:$0xff]  ;;  %v5768_v12 = vld [vmem:[%s13799_s11 + $0x398] sm:$0xff] }
 0x931   :  { %5877 = vmatmul.f32.vlgmr.msra.gmra.mxu2 %v5649_v8 }
 0x932   :  { %v13596_v22 = vpop.f32.mrf.mxu1 }
 0x933   :  { %v5444_v57 = vadd.f32 %v13596_v22, %v13564_v61 }
 0x935   :  { %v5471_v51 = vpop.f32.mrf.mxu3 }
 0x93a   :  { %v5445_v23 = vpop.f32.mrf.mxu1  ;;  %v5391_v31 = vpop.f32.mrf.mxu2 }
 0x93b   :  { %v5392_v56 = vadd.f32 %v5391_v31, %v13528_v39  ;;  %v5779_v39 = vld [vmem:[%s13799_s11 + $0x3f0] sm:$0xff]  ;;  %v5765_v23 = vld [vmem:[%s13799_s11 + $0x380] sm:$0xff] }
 0x93c   :  { %5922 = vmatpush.msrb.mxu1 %v5779_v39 }
 0x93d   :  { %v5405_v40 = vadd.f32 %v13549_v54, %v5392_v56 }
 0x93e   :  { %5923 = vmatpush.msrb.mxu1 %v5778_v24 }
 0x93f   :  { %v13629_v6 = vadd.f32 %v13526_v32, %v5405_v40  ;;  %v5754_v32 = vld [vmem:[%s13799_s11 + $0x328] sm:$0xff] }
 0x940   :  { %5911 = vmatpush.msra.mxu0 %v5754_v32  ;;  %5924 = vmatpush.msrb.mxu1 %v5777_v50 }
 0x941   :  { %v13637_v47 = vpop.f32.mrf.mxu3  ;;  %v5560_v48 = vsel %vm2064_vm0, %v13629_v6, 0.0  ;;  %v5586_v49 = vmul.f32 %v13629_v6, %v13629_v6  ;;  %v13649_v45 = vpop.f32.mrf.mxu0 }
 0x942   :  { %v5561_v52 = vrot.slane %v5560_v48, 4  ;;  %v5393_v10 = vpop.f32.mrf.mxu2  ;;  %5912 = vmatpush.msra.mxu0 %v5753_v55  ;;  %5925 = vmatpush.msrb.mxu1 %v5776_v17 }
 0x943   :  { %v5624_v54 = vsel %vm2064_vm0, %v5586_v49, 0.0 }
 0x944   :  { %v5562_v60 = vadd.f32 %v5561_v52, %v5560_v48  ;;  %v5625_v18 = vrot.slane %v5624_v54, 4  ;;  %5913 = vmatpush.msra.mxu0 %v5752_v27  ;;  %5926 = vmatpush.msrb.mxu1 %v5775_v62 }
 0x946   :  { %v5563_v16 = vrot.slane %v5562_v60, 2  ;;  %v5626_v58 = vadd.f32 %v5625_v18, %v5624_v54  ;;  %5914 = vmatpush.msra.mxu0 %v5751_v63  ;;  %5927 = vmatpush.msrb.mxu1 %v5774_v0 }
 0x948   :  { %v5564_v28 = vadd.f32 %v5563_v16, %v5562_v60  ;;  %v5627_v36 = vrot.slane %v5626_v58, 2  ;;  %5915 = vmatpush.msra.mxu0 %v5750_v2  ;;  %5928 = vmatpush.msrb.mxu1 %v5773_v4 }
 0x949   :  { %v5484_v3 = vpop.f32.mrf.mxu3  ;;  %v5497_v1 = vpop.f32.mrf.mxu0 }
 0x94a   :  { %v5565_v26 = vrot.slane %v5564_v28, 1  ;;  %v5628_v14 = vadd.f32 %v5627_v36, %v5626_v58  ;;  %5916 = vmatpush.msra.mxu0 %v5749_v33  ;;  %5929 = vmatpush.msrb.mxu1 %v5772_v59 }
 0x94c   :  { %v5629_v13 = vrot.slane %v5628_v14, 1  ;;  %v5566_v25 = vadd.f32 %v5565_v26, %v5564_v28  ;;  %5930 = vmatpush.msrb.mxu1 %v5771_v38 }
 0x94e   :  { %v5630_v19 = vadd.f32 %v5629_v13, %v5628_v14  ;;  %5931 = vmatpush.msrb.mxu1 %v5770_v42 }
 0x950   :  { %v5650_v34 = vsel %vm2126_vm1, %v5566_v25, %v5630_v19  ;;  %5932 = vmatpush.msrb.mxu1 %v5769_v44 }
 0x951   :  { %5897 = vmatmul.f32.vlgmr.msrb.gmra.mxu3 %v5650_v34 }
 0x952   :  { %v5508_v29 = vpop.f32.mrf.mxu1  ;;  %5933 = vmatpush.msrb.mxu1 %v5768_v12 }
 0x954   :  { %5934 = vmatpush.msrb.mxu1 %v5767_v7 }
 0x956   :  { %5935 = vmatpush.msrb.mxu1 %v5766_v9 }
 0x958   :  { %5936 = vmatpush.msrb.mxu1 %v5765_v23 }
 0x95a   :  { %v5510_v8 = vpop.f32.mrf.mxu1  ;;  %v5456_v21 = vpop.f32.mrf.mxu2 }
 0x95b   :  { %v5457_v51 = vadd.f32 %v5456_v21, %v5444_v57 }
 0x95d   :  { %v13707_v30 = vadd.f32 %v13591_v20, %v5457_v51  ;;  %v5496_v20 = vadd.f32 %v13649_v45, %v13637_v47 }
 0x95f   :  { %v5567_v61 = vsel %vm2064_vm0, %v13707_v30, 0.0  ;;  %v5587_v22 = vmul.f32 %v13707_v30, %v13707_v30  ;;  %v5509_v32 = vadd.f32 %v5508_v29, %v5496_v20 }
 0x960   :  { %v5568_v31 = vrot.slane %v5567_v61, 4 }
 0x961   :  { %v5631_v56 = vsel %vm2064_vm0, %v5587_v22, 0.0 }
 0x962   :  { %v5569_v35 = vadd.f32 %v5568_v31, %v5567_v61  ;;  %v5632_v37 = vrot.slane %v5631_v56, 4  ;;  %v5458_v40 = vpop.f32.mrf.mxu2 }
 0x964   :  { %v5570_v41 = vrot.slane %v5569_v35, 2  ;;  %v5633_v39 = vadd.f32 %v5632_v37, %v5631_v56  ;;  %v5818_v33 = vpop.f32.mrf.mxu3 }
 0x966   :  { %v5571_v46 = vadd.f32 %v5570_v41, %v5569_v35  ;;  %v5634_v24 = vrot.slane %v5633_v39, 2  ;;  %v5971_v41 = vld [vmem:[%s13823_s28] sm:$0xff] }
 0x968   :  { %v5572_v48 = vrot.slane %v5571_v46, 1  ;;  %v5635_v49 = vadd.f32 %v5634_v24, %v5633_v39  ;;  %v5946_v39 = vld [vmem:[%s13800_s23] sm:$0x1]  ;;  %v5973_v24 = vld [vmem:[%s13823_s28 + $0x10] sm:$0xff] }
 0x96a   :  { %v5521_v50 = vpop.f32.mrf.mxu2  ;;  %v5636_v52 = vrot.slane %v5635_v49, 1  ;;  %v5573_v54 = vadd.f32 %v5572_v48, %v5571_v46  ;;  %v5972_v46 = vld [vmem:[%s13823_s28 + $0x8] sm:$0xff] }
 0x96b   :  { %v13716_v10 = vadd.f32 %v5521_v50, %v5509_v32 }
 0x96c   :  { %v5637_v55 = vadd.f32 %v5636_v52, %v5635_v49  ;;  %v5964_v49 = vld [vmem:[%s13801_s24] sm:$0x1] }
 0x96d   :  { %v5574_v17 = vsel %vm2064_vm0, %v13716_v10, 0.0  ;;  %v5588_v60 = vmul.f32 %v13716_v10, %v13716_v10 }
 0x96e   :  { %v5575_v18 = vrot.slane %v5574_v17, 4  ;;  %v5651_v27 = vsel %vm2126_vm1, %v5573_v54, %v5637_v55  ;;  %v5838_v13 = vpop.f32.mrf.mxu0 }
 0x96f   :  { %v5638_v47 = vsel %vm2064_vm0, %v5588_v60, 0.0  ;;  %5917 = vmatmul.f32.vlgmr.msra.gmra.mxu0 %v5651_v27 }
 0x970   :  { %v5576_v45 = vadd.f32 %v5575_v18, %v5574_v17  ;;  %v5639_v62 = vrot.slane %v5638_v47, 4 }
 0x972   :  { %v5577_v16 = vrot.slane %v5576_v45, 2  ;;  %v5640_v58 = vadd.f32 %v5639_v62, %v5638_v47  ;;  %v5523_v63 = vpop.f32.mrf.mxu2  ;;  %v5993_v62 = vld.sshfl [vmem:[#allocation1 + $0x38] sm:$0xff pattern:$0x75316420] }
 0x974   :  { %v5578_v0 = vadd.f32 %v5577_v16, %v5576_v45  ;;  %v5641_v28 = vrot.slane %v5640_v58, 2  ;;  %v5992_v45 = vld.sshfl [vmem:[#allocation1 + $0x30] sm:$0xff pattern:$0x75316420] }
 0x976   :  { %v5579_v36 = vrot.slane %v5578_v0, 1  ;;  %v5642_v3 = vadd.f32 %v5641_v28, %v5640_v58 }
 0x978   :  { %v5643_v2 = vrot.slane %v5642_v3, 1  ;;  %v5580_v4 = vadd.f32 %v5579_v36, %v5578_v0 }
 0x97a   :  { %v5644_v1 = vadd.f32 %v5643_v2, %v5642_v3 }
 0x97c   :  { %v5652_v26 = vsel %vm2126_vm1, %v5580_v4, %v5644_v1 }
 0x97d   :  { %5937 = vmatmul.f32.vlgmr.msrb.gmra.mxu1 %v5652_v26 }
 0x97e   :  { %v5798_v14 = vpop.f32.mrf.mxu2 }
 0x97f   :  { %v5819_v59 = vadd.f32 %v5818_v33, %v5798_v14 }
 0x981   :  { %v5839_v25 = vadd.f32 %v5838_v13, %v5819_v59 }
 0x98e   :  { %v5858_v38 = vpop.f32.mrf.mxu1 }
 0x98f   :  { %v5859_v29 = vadd.f32 %v5858_v38, %v5839_v25 }
 0x9b4   :  { %v5878_v19 = vpop.f32.mrf.mxu2 }
 0x9b5   :  { %v5879_v34 = vadd.f32 %v5878_v19, %v5859_v29 }
 0x9d4   :  { %v5898_v42 = vpop.f32.mrf.mxu3 }
 0x9d5   :  { %v5899_v12 = vadd.f32 %v5898_v42, %v5879_v34 }
 0x9ec   :  { %v5918_v44 = vpop.f32.mrf.mxu0 }
 0x9ed   :  { %v5919_v7 = vadd.f32 %v5918_v44, %v5899_v12 }
 0x9fa   :  { %v5938_v57 = vpop.f32.mrf.mxu1 }
 0x9fb   :  { %v5939_v8 = vadd.f32 %v5938_v57, %v5919_v7 }
 0x9fd   :  { %v5941_v21 = vmul.f32 %v5939_v8, %v5939_v8 }
 0x9ff   :  { %v5943_v9 = vrot.slane %v5941_v21, 7 }
 0xa01   :  { %v5945_v51 = vsub.f32 %v5939_v8, %v5943_v9 }
 0xa03   :  { %v5947_v23 = vadd.f32 1e-05, %v5945_v51 }
 0xa05   :  { %9021 = vrsqrt.f32 %v5947_v23  ;;  %vm5954_vm4 = vweird.f32 %v5947_v23 }
 0xa0b   :  { %v9022_v61 = vpop.eup %9021 }
 0xa0c   :  { %v5949_v22 = vmul.f32 %v9022_v61, %v5947_v23  ;;  %vm5955_vm3 = vweird.f32 %v9022_v61 }
 0xa0d   :  { %vm5956_vm5 = vmor %vm5954_vm4, %vm5955_vm3 }
 0xa0e   :  { %v5950_v31 = vmul.f32 %v9022_v61, %v5949_v22 }
 0xa10   :  { %v5951_v56 = vmul.f32 0.5, %v5950_v31 }
 0xa12   :  { %v5952_v35 = vsub.f32 1.5, %v5951_v56 }
 0xa14   :  { %v5953_v37 = vmul.f32 %v9022_v61, %v5952_v35 }
 0xa16   :  { %v5957_v40 = vsel %vm5956_vm5, %v9022_v61, %v5953_v37 }
 0xa17   :  { %5959 = vst [vmem:[#allocation1] sm:$0xff] %v5957_v40 }
 0xa1e   :  { %v5961_v20 = vld [vmem:[#allocation1 + $0x1] ss:$9 sm:$0xff] }
 0xa1f   :  { %v5963_v48 = vmul.f32 %v5961_v20, %v5946_v39  ;;  %5979 = vst [vmem:[#allocation1] ss:$2 sm:$0xff] %v5971_v41 }
 0xa20   :  { %5981 = vst [vmem:[#allocation1 + $0x10] ss:$2 sm:$0xff] %v5972_v46 }
 0xa21   :  { %v5965_v32 = vmul.f32 %v5963_v48, %v5939_v8  ;;  %5983 = vst [vmem:[#allocation1 + $0x20] ss:$2 sm:$0xff] %v5973_v24 }
 0xa23   :  { %v5966_v50 = vsub.f32 %v5964_v49, %v5965_v32 }
 0xa25   :  { %v5968_v52 = vperm.slane %v5966_v50, 0 }
 0xa26   :  { %v5986_v54 = vld.sshfl [vmem:[#allocation1] sm:$0xff pattern:$0x75316420]  ;;  %v5987_v55 = vld.sshfl [vmem:[#allocation1 + $0x8] sm:$0xff pattern:$0x75316420] }
 0xa27   :  { %v5970_v17 = vsel %vm2126_vm1, %v5963_v48, %v5968_v52  ;;  %8445 = vmatpush.msk.msrb.mxu2 %vm2702_vm7, %v5986_v54  ;;  %8447 = vmatpush.msk.msra.mxu3 %vm2702_vm7, %v5987_v55  ;;  %v5988_v60 = vld.sshfl [vmem:[#allocation1 + $0x10] sm:$0xff pattern:$0x75316420]  ;;  %v5989_v18 = vld.sshfl [vmem:[#allocation1 + $0x18] sm:$0xff pattern:$0x75316420] }
 0xa28   :  { %8449 = vmatpush.msk.msrb.mxu0 %vm2702_vm7, %v5988_v60  ;;  %8451 = vmatpush.msk.msra.mxu1 %vm2702_vm7, %v5989_v18  ;;  %v5990_v27 = vld.sshfl [vmem:[#allocation1 + $0x20] sm:$0xff pattern:$0x75316420]  ;;  %v5991_v47 = vld.sshfl [vmem:[#allocation1 + $0x28] sm:$0xff pattern:$0x75316420] }
 0xa29   :  { %8446 = vmatmul.msk.f32.vlgmr.msrb.gmra.mxu2 %vm5994_vm6, %v5970_v17  ;;  %8448 = vmatmul.msk.f32.vlgmr.msra.gmra.mxu3 %vm5994_vm6, %v5970_v17  ;;  %vm6221_vm1 = vcmask 1045508  }
 0xa2a   :  { %8450 = vmatmul.msk.f32.vlgmr.msrb.gmra.mxu0 %vm5994_vm6, %v5970_v17  ;;  %8452 = vmatmul.msk.f32.vlgmr.msra.gmra.mxu1 %vm5994_vm6, %v5970_v17 }
 0xa2b   :  { %8453 = vmatpush.msk.msra.mxu2 %vm2702_vm7, %v5990_v27  ;;  %8455 = vmatpush.msk.msrb.mxu3 %vm2702_vm7, %v5991_v47 }
 0xa2c   :  { %8457 = vmatpush.msk.msra.mxu0 %vm2702_vm7, %v5992_v45  ;;  %8459 = vmatpush.msk.msrb.mxu1 %vm2702_vm7, %v5993_v62 }
 0xa31   :  { %8454 = vmatmul.msk.f32.vlgmr.msra.gmra.mxu2 %vm5994_vm6, %v5970_v17  ;;  %8456 = vmatmul.msk.f32.vlgmr.msrb.gmra.mxu3 %vm5994_vm6, %v5970_v17 }
 0xa32   :  { %8458 = vmatmul.msk.f32.vlgmr.msra.gmra.mxu0 %vm5994_vm6, %v5970_v17  ;;  %8460 = vmatmul.msk.f32.vlgmr.msrb.gmra.mxu1 %vm5994_vm6, %v5970_v17 }
 0xaa7   :  { %v6071_v16 = vpop.f32.mrf.mxu0  ;;  %v6091_v58 = vpop.f32.mrf.mxu1 }
 0xaa8   :  { %v6176_v63 = vperm.slane %v6071_v16, 0  ;;  %v6177_v0 = vperm.slane %v6091_v58, 0  ;;  %v6192_v36 = vperm.slane %v6071_v16, 1  ;;  %v6193_v2 = vperm.slane %v6091_v58, 1 }
 0xaaa   :  { %v6184_v28 = vmul.f32 %v6176_v63, %v13416_v15  ;;  %v6185_v3 = vmul.f32 %v6177_v0, %v13492_v5 }
 0xaac   :  { %v6200_v4 = vadd.f32 %v6192_v36, %v6184_v28  ;;  %v6201_v1 = vadd.f32 %v6193_v2, %v6185_v3  ;;  %v6031_v26 = vpop.f32.mrf.mxu2  ;;  %v6051_v14 = vpop.f32.mrf.mxu3 }
 0xaad   :  { %v6174_v33 = vperm.slane %v6031_v26, 0  ;;  %v6175_v59 = vperm.slane %v6051_v14, 0  ;;  %v6191_v25 = vperm.slane %v6051_v14, 1  ;;  %v6190_v5 = vperm.slane %v6031_v26, 1 }
 0xaae   :  { %v6215_v42 = vrot.slane %v6200_v4, 4  ;;  %v6216_v34 = vrot.slane %v6201_v1, 2 }
 0xaaf   :  { %v6182_v13 = vmul.f32 %v6174_v33, %v13289_v53  ;;  %v6183_v38 = vmul.f32 %v6175_v59, %v13341_v43  ;;  %v6151_v19 = vpop.f32.mrf.mxu0  ;;  %v6171_v29 = vpop.f32.mrf.mxu1 }
 0xab0   :  { %v6180_v15 = vperm.slane %v6151_v19, 0  ;;  %v6181_v44 = vperm.slane %v6171_v29, 0  ;;  %v6196_v57 = vperm.slane %v6151_v19, 1  ;;  %v6197_v53 = vperm.slane %v6171_v29, 1 }
 0xab1   :  { %v6199_v12 = vadd.f32 %v6191_v25, %v6183_v38  ;;  %v6198_v21 = vadd.f32 %v6190_v5, %v6182_v13  ;;  %v6222_v43 = vsel %vm6221_vm1, %v6215_v42, %v6216_v34 }
 0xab2   :  { %v6188_v7 = vmul.f32 %v6180_v15, %v13707_v30  ;;  %v6189_v8 = vmul.f32 %v6181_v44, %v13716_v10 }
 0xab3   :  { %v6214_v9 = vrot.slane %v6199_v12, 6 }
 0xab4   :  { %v6204_v51 = vadd.f32 %v6196_v57, %v6188_v7  ;;  %v6111_v23 = vpop.f32.mrf.mxu2  ;;  %v6131_v61 = vpop.f32.mrf.mxu3  ;;  %v6205_v31 = vadd.f32 %v6197_v53, %v6189_v8 }
 0xab5   :  { %v6220_v22 = vsel %vm2064_vm0, %v6198_v21, %v6214_v9  ;;  %v6178_v56 = vperm.slane %v6111_v23, 0  ;;  %v6179_v35 = vperm.slane %v6131_v61, 0  ;;  %v6195_v10 = vperm.slane %v6131_v61, 1 }
 0xab6   :  { %v6223_v37 = vsel %vm2702_vm7, %v6220_v22, %v6222_v43  ;;  %v6218_v41 = vrot.slane %v6204_v51, 4  ;;  %v6219_v39 = vrot.slane %v6205_v31, 2  ;;  %v6194_v46 = vperm.slane %v6111_v23, 1 }
 0xab7   :  { %v6186_v30 = vmul.f32 %v6178_v56, %v13555_v11  ;;  %v6187_v40 = vmul.f32 %v6179_v35, %v13629_v6  ;;  %6229 = vst [vmem:[%s13802_s25] sm:$0xff] %v6223_v37 }
 0xab8   :  { %v6225_v49 = vsel %vm6221_vm1, %v6218_v41, %v6219_v39 }
 0xab9   :  { %v6203_v24 = vadd.f32 %v6195_v10, %v6187_v40  ;;  %v6202_v20 = vadd.f32 %v6194_v46, %v6186_v30 }
 0xabb   :  { %v6217_v48 = vrot.slane %v6203_v24, 6 }
 0xabd   :  { %v6224_v32 = vsel %vm2064_vm0, %v6202_v20, %v6217_v48 }
 0xabe   :  { %v6226_v50 = vsel %vm2702_vm7, %v6224_v32, %v6225_v49 }
 0xabf   :  { %6230 = vst [vmem:[%s13802_s25 + $0x8] sm:$0xff] %v6226_v50 }

</bundles_post_ra>
